<compile_context>
chip_gen: v5e
topology: v5e:2x2
jax: 0.10.0
libtpu: 0.0.40
codegen_flags: <defaults>
</compile_context>

<pallas_src>
import numpy as np
import jax
import jax.numpy as jnp
from jax.experimental import pallas as pl
from jax.experimental.pallas import tpu as pltpu

# Small model dims consistent with the module's forward pass.
B = 4            # real batch size
BP = 8           # batch padded to a full sublane group
P = 16           # num_pixels (e.g. 4x4 encoded image)
F = 32           # features_dim  (2048 in the original; shrunk for the demo)
A = 32           # attention_dim
E = 16           # embed_dim
D = 32           # decoder_dim
V = 64           # vocab_size
VP = 128         # vocab padded to a full lane group (lane-dense fc output)
T_CAP = 8        # max caption length
T_DEC = T_CAP - 1  # static number of decode steps (no data-dependent recompiles)


def _decoder_kernel(img_ref, emb_ref, mask_ref,
                    w_init_ref, b_init_ref,
                    w_enc_ref, w_full_ref, b_att_ref, b_fb_ref,
                    w_hall_ref, w_ihe_ref, w_ihf_ref, b_lstm_ref,
                    w_fc_ref, b_fc_ref,
                    preds_ref, alpha_ref,
                    ge_sc):
    img = img_ref[...]                                        # (BP, P, F)

    # ---- init_hidden_state: one fused matmul gives [h0 | c0] ----
    mean_f = jnp.mean(img, axis=1)                            # (BP, F)
    hc0 = (jnp.dot(mean_f, w_init_ref[...],
                   preferred_element_type=jnp.float32) + b_init_ref[...])
    h0 = hc0[:, :D]
    c0 = hc0[:, D:]

    # ---- hoisted loop-invariant work (computed once per forward) ----
    # encoder_att(image): independent of t.  encoder/decoder biases are
    # pre-summed into b_att (added with the h projection below); full_att's
    # bias cancels under the pixel softmax and is omitted.
    att1 = jnp.einsum('bpf,fa->bpa', img, w_enc_ref[...],
                      preferred_element_type=jnp.float32)     # (BP, P, A)
    # Embedding contribution to the LSTM gates for ALL steps in one MXU pass,
    # with the (pre-summed) LSTM biases folded in.
    ge_sc[...] = (jnp.einsum('tbe,eg->tbg', emb_ref[...], w_ihe_ref[...],
                             preferred_element_type=jnp.float32)
                  + b_lstm_ref[...])                          # (T_DEC, BP, 4D)

    w_hall = w_hall_ref[...]     # (D, 4D + A + F): [Whh | Wd | Wfb]
    w_full = w_full_ref[...]     # (1, A)
    b_att = b_att_ref[...]       # (1, A) = be + bd
    b_fb = b_fb_ref[...]         # (1, F)
    w_ihf = w_ihf_ref[...]       # (F, 4D)
    w_fc = w_fc_ref[...]         # (D, VP)  lane-dense (V zero-padded to 128)
    b_fc = b_fc_ref[...]         # (1, VP)

    def step(t, carry):
        h, c = carry
        # All three projections of the previous hidden state in one MXU pass.
        h_proj = jnp.dot(h, w_hall, preferred_element_type=jnp.float32)
        h_gates = h_proj[:, :4 * D]                            # LSTM W_hh term
        att2 = h_proj[:, 4 * D:4 * D + A] + b_att              # decoder_att(h)
        gate = jax.nn.sigmoid(h_proj[:, 4 * D + A:] + b_fb)    # f_beta gate

        # ---- Attention ----
        att_pre = jnp.maximum(att1 + att2[:, None, :], 0.0)    # ReLU, (BP,P,A)
        att = jnp.sum(att_pre * w_full[None], axis=2)          # (BP, P)
        att = att - jnp.max(att, axis=1, keepdims=True)
        e = jnp.exp(att)
        alpha = e * pl.reciprocal(jnp.sum(e, axis=1, keepdims=True),
                                  approx=True)                 # softmax (EUP recip)
        # TODO(synk): at production dims (P=196, F=2048) express this weighted
        # sum as an MXU contraction instead of a VPU multiply + sublane reduce.
        awe = jnp.sum(img * alpha[:, :, None], axis=1)         # (BP, F)
        awe = gate * awe

        # ---- LSTMCell (embedding term + biases come pre-computed from ge_sc) ----
        emb_gates = ge_sc[t]                                   # (BP, 4D)
        gates = (emb_gates + h_gates
                 + jnp.dot(awe, w_ihf, preferred_element_type=jnp.float32))
        i_g = jax.nn.sigmoid(gates[:, 0 * D:1 * D])
        f_g = jax.nn.sigmoid(gates[:, 1 * D:2 * D])
        g_g = jnp.tanh(gates[:, 2 * D:3 * D])
        o_g = jax.nn.sigmoid(gates[:, 3 * D:4 * D])
        c_new = f_g * c + i_g * g_g
        h_new = o_g * jnp.tanh(c_new)

        # ---- Output projection (lane-dense, VP = 128) ----
        # TODO(synk): nn.Dropout is treated as identity (eval-mode semantics).
        preds = jnp.dot(h_new, w_fc, preferred_element_type=jnp.float32) + b_fc

        # Rows whose caption has finished (t >= decode_length) and batch-pad
        # rows stay zero, matching the torch.zeros(...) predictions/alphas.
        m = mask_ref[t]                                        # (BP, 1)
        preds_ref[t] = preds * m
        alpha_ref[t] = alpha * m
        return (h_new, c_new)

    jax.lax.fori_loop(0, T_DEC, step, (h0, c0), unroll=True)


def init_params(key):
    keys = jax.random.split(key, 20)
    u = lambda k, shape: jax.random.uniform(k, shape, jnp.float32, -0.1, 0.1)
    return {
        'emb_w':    u(keys[0], (V, E)),                  # embedding table
        'wih_init': u(keys[1], (F, D)), 'bih_init': u(keys[2], (1, D)),   # init_h
        'wic_init': u(keys[3], (F, D)), 'bic_init': u(keys[4], (1, D)),   # init_c
        'we':       u(keys[5], (F, A)), 'be':       u(keys[6], (1, A)),   # encoder_att
        'wd':       u(keys[7], (D, A)), 'bd':       u(keys[8], (1, A)),   # decoder_att
        'wf':       u(keys[9], (1, A)), 'bf':       u(keys[10], (1, 1)),  # full_att
        'wih_e':    u(keys[11], (E, 4 * D)),             # LSTM W_ih (embedding rows)
        'wih_f':    u(keys[12], (F, 4 * D)),             # LSTM W_ih (attention rows)
        'whh':      u(keys[13], (D, 4 * D)),
        'bih':      u(keys[14], (1, 4 * D)), 'bhh':  u(keys[15], (1, 4 * D)),
        'wfb':      u(keys[16], (D, F)), 'bfb':      u(keys[17], (1, F)), # f_beta
        'wfc':      u(keys[18], (D, V)),                 # fc (uniform like init_weights)
        'bfc':      jnp.zeros((1, V), jnp.float32),      # fc bias filled with 0
    }


def decoder_forward(params, image_features, encoded_captions, caption_lengths_np):
    """Mirrors DecoderWithAttention.forward (eval-mode dropout)."""
    cap = np.asarray(caption_lengths_np).reshape(-1)
    n_real = cap.shape[0]
    sort_ind = np.argsort(-cap, kind="stable")           # descending sort
    cap_sorted = cap[sort_ind]
    decode_lengths = (cap_sorted - 1).tolist()
    t_actual = int(max(decode_lengths))

    sort_ind_j = jnp.asarray(sort_ind)
    img = image_features[sort_ind_j]                      # (B, P, F)
    caps = encoded_captions[sort_ind_j]                   # (B, T_CAP)

    # Pad batch to BP = 8 so every (B, .) tile fills whole sublane groups.
    pad_b = BP - n_real
    img_p = jnp.pad(img, ((0, pad_b), (0, 0), (0, 0)))
    caps_p = jnp.pad(caps, ((0, pad_b), (0, 0)))

    emb = jnp.take(params['emb_w'], caps_p, axis=0)       # (BP, T_CAP, E)
    emb_t = jnp.transpose(emb[:, :T_DEC, :], (1, 0, 2))   # (T_DEC, BP, E)

    # (T_DEC, BP, 1) activity mask: 1.0 while t < decode_length for real rows,
    # 0.0 for finished captions and batch padding (matches torch semantics).
    dl = np.zeros((BP,), np.int32)
    dl[:n_real] = np.asarray(decode_lengths, np.int32)
    step_mask = jnp.asarray(
        (np.arange(T_DEC)[:, None] < dl[None, :]).astype(np.float32)[..., None])

    # ---- one-off weight packing / fusion (trace time) ----
    w_init = jnp.concatenate([params['wih_init'], params['wic_init']], axis=1)   # (F, 2D)
    b_init = jnp.concatenate([params['bih_init'], params['bic_init']], axis=1)   # (1, 2D)
    b_att = params['be'] + params['bd']                                          # (1, A)
    w_hall = jnp.concatenate([params['whh'], params['wd'], params['wfb']],
                             axis=1)                                             # (D, 4D+A+F)
    b_lstm = params['bih'] + params['bhh']                                       # (1, 4D)
    w_fc = jnp.pad(params['wfc'], ((0, 0), (0, VP - V)))                         # (D, VP)
    b_fc = jnp.pad(params['bfc'], ((0, 0), (0, VP - V)))                         # (1, VP)

    weights = [w_init, b_init, params['we'], params['wf'], b_att, params['bfb'],
               w_hall, params['wih_e'], params['wih_f'], b_lstm, w_fc, b_fc]

    def fullspec(x):
        nd = x.ndim
        return pl.BlockSpec(x.shape, lambda i, _n=nd: (0,) * _n)

    in_specs = ([fullspec(img_p), fullspec(emb_t), fullspec(step_mask)]
                + [fullspec(w) for w in weights])
    out_shapes = (jax.ShapeDtypeStruct((T_DEC, BP, VP), jnp.float32),
                  jax.ShapeDtypeStruct((T_DEC, BP, P), jnp.float32))
    out_specs = [pl.BlockSpec((T_DEC, BP, VP), lambda i: (0, 0, 0)),
                 pl.BlockSpec((T_DEC, BP, P), lambda i: (0, 0, 0))]

    preds_pad, alphas_pad = pl.pallas_call(
        _decoder_kernel,
        out_shape=out_shapes,
        grid_spec=pltpu.PrefetchScalarGridSpec(
            num_scalar_prefetch=0,
            grid=(1,),                                    # single invocation
            in_specs=in_specs,
            out_specs=out_specs,
            scratch_shapes=[pltpu.VMEM((T_DEC, BP, 4 * D), jnp.float32)],
        ),
        compiler_params=pltpu.CompilerParams(
            dimension_semantics=("arbitrary",)),
    )(img_p, emb_t, step_mask, *weights)

    # Strip batch / vocab padding, time-major -> batch-major, clip to the
    # actual max decode length of this batch (kernel itself is length-static).
    predictions = jnp.transpose(preds_pad[:, :n_real, :V], (1, 0, 2))[:, :t_actual]
    alphas = jnp.transpose(alphas_pad[:, :n_real, :], (1, 0, 2))[:, :t_actual]
    return predictions, caps, decode_lengths, alphas, sort_ind_j


def reference_forward(params, image_features, encoded_captions, caption_lengths_np):
    """Pure numpy reference replicating the PyTorch forward (eval-mode dropout)."""
    cap = np.asarray(caption_lengths_np).reshape(-1)
    sort_ind = np.argsort(-cap, kind="stable")
    img = np.asarray(image_features)[sort_ind]
    caps = np.asarray(encoded_captions)[sort_ind]
    decode_lengths = (cap[sort_ind] - 1).tolist()
    T = int(max(decode_lengths))
    p = {k: np.asarray(v) for k, v in params.items()}
    sigmoid = lambda x: 1.0 / (1.0 + np.exp(-x))

    emb_all = p['emb_w'][caps]                             # (B, T_CAP, E)
    mean_f = img.mean(axis=1)
    h = mean_f @ p['wih_init'] + p['bih_init']
    c = mean_f @ p['wic_init'] + p['bic_init']
    preds_out = np.zeros((img.shape[0], T, V), np.float32)
    alphas_out = np.zeros((img.shape[0], T, P), np.float32)
    dl = np.array(decode_lengths)
    for t in range(T):
        att1 = img @ p['we'] + p['be']
        att2 = h @ p['wd'] + p['bd']
        att_pre = np.maximum(att1 + att2[:, None, :], 0.0)
        att = (att_pre * p['wf'][None]).sum(axis=2) + p['bf']
        att = att - att.max(axis=1, keepdims=True)
        e = np.exp(att)
        alpha = e / e.sum(axis=1, keepdims=True)
        awe = (img * alpha[:, :, None]).sum(axis=1)
        gate = sigmoid(h @ p['wfb'] + p['bfb'])
        awe = gate * awe
        emb = emb_all[:, t, :]
        gates = (emb @ p['wih_e'] + awe @ p['wih_f'] + p['bih']
                 + h @ p['whh'] + p['bhh'])
        i_g = sigmoid(gates[:, :D]); f_g = sigmoid(gates[:, D:2 * D])
        g_g = np.tanh(gates[:, 2 * D:3 * D]); o_g = sigmoid(gates[:, 3 * D:])
        c = f_g * c + i_g * g_g
        h = o_g * np.tanh(c)
        preds = h @ p['wfc'] + p['bfc']
        mask = (dl > t)
        preds_out[:, t, :] = np.where(mask[:, None], preds, 0.0)
        alphas_out[:, t, :] = np.where(mask[:, None], alpha, 0.0)
    return preds_out, alphas_out


if __name__ == "__main__":
    key = jax.random.PRNGKey(0)
    pkey, ikey, ckey = jax.random.split(key, 3)
    params = init_params(pkey)

    image_features = jax.random.normal(ikey, (B, P, F), jnp.float32)
    encoded_captions = jax.random.randint(ckey, (B, T_CAP), 0, V, dtype=jnp.int32)
    caption_lengths = np.array([[6], [8], [5], [7]], dtype=np.int32)  # (B, 1)

    preds, caps_sorted, decode_lengths, alphas, sort_ind = decoder_forward(
        params, image_features, encoded_captions, caption_lengths)
    jax.block_until_ready((preds, alphas, caps_sorted, sort_ind))

    ref_preds, ref_alphas = reference_forward(
        params, image_features, encoded_captions, caption_lengths)
    # Tolerance accounts for the approximate (EUP) softmax reciprocal.
    assert np.allclose(np.asarray(preds), ref_preds, atol=5e-3, rtol=5e-3), "preds mismatch"
    assert np.allclose(np.asarray(alphas), ref_alphas, atol=5e-3, rtol=5e-3), "alphas mismatch"
    print("KERNEL_OK")
</pallas_src>

<mosaic_0001>
module attributes {stable_mosaic.version = 11 : i64} {
  func.func @_decoder_kernel(%arg0: i32, %arg1: memref<8x16x32xf32, #tpu.memory_space<vmem>>, %arg2: memref<7x8x16xf32, #tpu.memory_space<vmem>>, %arg3: memref<7x8x1xf32, #tpu.memory_space<vmem>>, %arg4: memref<32x64xf32, #tpu.memory_space<vmem>>, %arg5: memref<1x64xf32, #tpu.memory_space<vmem>>, %arg6: memref<32x32xf32, #tpu.memory_space<vmem>>, %arg7: memref<1x32xf32, #tpu.memory_space<vmem>>, %arg8: memref<1x32xf32, #tpu.memory_space<vmem>>, %arg9: memref<1x32xf32, #tpu.memory_space<vmem>>, %arg10: memref<32x192xf32, #tpu.memory_space<vmem>>, %arg11: memref<16x128xf32, #tpu.memory_space<vmem>>, %arg12: memref<32x128xf32, #tpu.memory_space<vmem>>, %arg13: memref<1x128xf32, #tpu.memory_space<vmem>>, %arg14: memref<32x128xf32, #tpu.memory_space<vmem>>, %arg15: memref<1x128xf32, #tpu.memory_space<vmem>>, %arg16: memref<7x8x128xf32, #tpu.memory_space<vmem>>, %arg17: memref<7x8x16xf32, #tpu.memory_space<vmem>>, %arg18: memref<7x8x128xf32, #tpu.memory_space<vmem>>) attributes {dimension_semantics = [#tpu.dimension_semantics<arbitrary>], iteration_bounds = array<i64: 1>, scalar_prefetch = 0 : i64, scratch_operands = 1 : i64, tpu.core_type = #tpu.core_type<tc>, window_params = [{pipeline_mode = #tpu.pipeline_mode<synchronous>, transform_indices = @transform_0, window_bounds = array<i64: 8, 16, 32>}, {pipeline_mode = #tpu.pipeline_mode<synchronous>, transform_indices = @transform_1, window_bounds = array<i64: 7, 8, 16>}, {pipeline_mode = #tpu.pipeline_mode<synchronous>, transform_indices = @transform_2, window_bounds = array<i64: 7, 8, 1>}, {pipeline_mode = #tpu.pipeline_mode<synchronous>, transform_indices = @transform_3, window_bounds = array<i64: 32, 64>}, {pipeline_mode = #tpu.pipeline_mode<synchronous>, transform_indices = @transform_4, window_bounds = array<i64: 1, 64>}, {pipeline_mode = #tpu.pipeline_mode<synchronous>, transform_indices = @transform_5, window_bounds = array<i64: 32, 32>}, {pipeline_mode = #tpu.pipeline_mode<synchronous>, transform_indices = @transform_6, window_bounds = array<i64: 1, 32>}, {pipeline_mode = #tpu.pipeline_mode<synchronous>, transform_indices = @transform_7, window_bounds = array<i64: 1, 32>}, {pipeline_mode = #tpu.pipeline_mode<synchronous>, transform_indices = @transform_8, window_bounds = array<i64: 1, 32>}, {pipeline_mode = #tpu.pipeline_mode<synchronous>, transform_indices = @transform_9, window_bounds = array<i64: 32, 192>}, {pipeline_mode = #tpu.pipeline_mode<synchronous>, transform_indices = @transform_10, window_bounds = array<i64: 16, 128>}, {pipeline_mode = #tpu.pipeline_mode<synchronous>, transform_indices = @transform_11, window_bounds = array<i64: 32, 128>}, {pipeline_mode = #tpu.pipeline_mode<synchronous>, transform_indices = @transform_12, window_bounds = array<i64: 1, 128>}, {pipeline_mode = #tpu.pipeline_mode<synchronous>, transform_indices = @transform_13, window_bounds = array<i64: 32, 128>}, {pipeline_mode = #tpu.pipeline_mode<synchronous>, transform_indices = @transform_14, window_bounds = array<i64: 1, 128>}, {pipeline_mode = #tpu.pipeline_mode<synchronous>, transform_indices = @transform_15, window_bounds = array<i64: 7, 8, 128>}, {pipeline_mode = #tpu.pipeline_mode<synchronous>, transform_indices = @transform_16, window_bounds = array<i64: 7, 8, 16>}]} {
    %c0 = arith.constant 0 : index
    %c0_0 = arith.constant 0 : index
    %c0_1 = arith.constant 0 : index
    %0 = vector.load %arg1[%c0, %c0_0, %c0_1] : memref<8x16x32xf32, #tpu.memory_space<vmem>>, vector<8x16x32xf32>
    %cst = arith.constant dense<0.000000e+00> : vector<8x32xf32>
    %1 = vector.multi_reduction <add>, %0, %cst [1] : vector<8x16x32xf32> to vector<8x32xf32>
    %cst_2 = arith.constant 1.600000e+01 : f32
    %2 = vector.broadcast %cst_2 : f32 to vector<8x32xf32>
    %3 = arith.divf %1, %2 : vector<8x32xf32>
    %c0_3 = arith.constant 0 : index
    %c0_4 = arith.constant 0 : index
    %4 = vector.load %arg4[%c0_3, %c0_4] : memref<32x64xf32, #tpu.memory_space<vmem>>, vector<32x64xf32>
    %cst_5 = arith.constant dense<0.000000e+00> : vector<8x64xf32>
    %5 = tpu.matmul %3, %4, %cst_5 {dimension_numbers = #tpu.dot_dimension_numbers<[1], [0], [0], [1], [0, 0, 1, 1], [], []>} : vector<8x32xf32>, vector<32x64xf32>, vector<8x64xf32> -> vector<8x64xf32>
    %c0_6 = arith.constant 0 : index
    %c0_7 = arith.constant 0 : index
    %6 = vector.load %arg5[%c0_6, %c0_7] : memref<1x64xf32, #tpu.memory_space<vmem>>, vector<1x64xf32>
    %7 = vector.broadcast %6 : vector<1x64xf32> to vector<8x64xf32>
    %8 = arith.addf %5, %7 : vector<8x64xf32>
    %9 = vector.extract_strided_slice %8 {offsets = [0, 0], sizes = [8, 32], strides = [1, 1]} : vector<8x64xf32> to vector<8x32xf32>
    %10 = vector.extract_strided_slice %8 {offsets = [0, 32], sizes = [8, 32], strides = [1, 1]} : vector<8x64xf32> to vector<8x32xf32>
    %c0_8 = arith.constant 0 : index
    %c0_9 = arith.constant 0 : index
    %11 = vector.load %arg6[%c0_8, %c0_9] : memref<32x32xf32, #tpu.memory_space<vmem>>, vector<32x32xf32>
    "tpu.trace_start"() <{level = 10 : i32, message = "bpf,fa->bpa"}> : () -> ()
    %cst_10 = arith.constant dense<0.000000e+00> : vector<8x16x32xf32>
    %12 = tpu.matmul %0, %11, %cst_10 {dimension_numbers = #tpu.dot_dimension_numbers<[2], [0], [0, 1], [1], [0, 0, 0, 1, 1, 1], [], []>} : vector<8x16x32xf32>, vector<32x32xf32>, vector<8x16x32xf32> -> vector<8x16x32xf32>
    "tpu.trace_stop"() : () -> ()
    %c0_11 = arith.constant 0 : index
    %c0_12 = arith.constant 0 : index
    %c0_13 = arith.constant 0 : index
    %13 = vector.load %arg2[%c0_11, %c0_12, %c0_13] : memref<7x8x16xf32, #tpu.memory_space<vmem>>, vector<7x8x16xf32>
    %c0_14 = arith.constant 0 : index
    %c0_15 = arith.constant 0 : index
    %14 = vector.load %arg11[%c0_14, %c0_15] : memref<16x128xf32, #tpu.memory_space<vmem>>, vector<16x128xf32>
    "tpu.trace_start"() <{level = 10 : i32, message = "tbe,eg->tbg"}> : () -> ()
    %cst_16 = arith.constant dense<0.000000e+00> : vector<7x8x128xf32>
    %15 = tpu.matmul %13, %14, %cst_16 {dimension_numbers = #tpu.dot_dimension_numbers<[2], [0], [0, 1], [1], [0, 0, 0, 1, 1, 1], [], []>} : vector<7x8x16xf32>, vector<16x128xf32>, vector<7x8x128xf32> -> vector<7x8x128xf32>
    "tpu.trace_stop"() : () -> ()
    %c0_17 = arith.constant 0 : index
    %c0_18 = arith.constant 0 : index
    %16 = vector.load %arg13[%c0_17, %c0_18] : memref<1x128xf32, #tpu.memory_space<vmem>>, vector<1x128xf32>
    %17 = vector.shape_cast %16 : vector<1x128xf32> to vector<1x1x128xf32>
    %18 = vector.broadcast %17 : vector<1x1x128xf32> to vector<7x8x128xf32>
    %19 = arith.addf %15, %18 : vector<7x8x128xf32>
    %c0_19 = arith.constant 0 : index
    %c0_20 = arith.constant 0 : index
    %c0_21 = arith.constant 0 : index
    %20 = vector.load %arg18[%c0_19, %c0_20, %c0_21] : memref<7x8x128xf32, #tpu.memory_space<vmem>>, vector<7x8x128xf32>
    tpu.vector_store %arg18[%c0_19, %c0_20, %c0_21], %19 {strides = array<i32>} : memref<7x8x128xf32, #tpu.memory_space<vmem>>, vector<7x8x128xf32>,
    %c0_22 = arith.constant 0 : index
    %c0_23 = arith.constant 0 : index
    %21 = vector.load %arg10[%c0_22, %c0_23] : memref<32x192xf32, #tpu.memory_space<vmem>>, vector<32x192xf32>
    %c0_24 = arith.constant 0 : index
    %c0_25 = arith.constant 0 : index
    %22 = vector.load %arg7[%c0_24, %c0_25] : memref<1x32xf32, #tpu.memory_space<vmem>>, vector<1x32xf32>
    %c0_26 = arith.constant 0 : index
    %c0_27 = arith.constant 0 : index
    %23 = vector.load %arg8[%c0_26, %c0_27] : memref<1x32xf32, #tpu.memory_space<vmem>>, vector<1x32xf32>
    %c0_28 = arith.constant 0 : index
    %c0_29 = arith.constant 0 : index
    %24 = vector.load %arg9[%c0_28, %c0_29] : memref<1x32xf32, #tpu.memory_space<vmem>>, vector<1x32xf32>
    %c0_30 = arith.constant 0 : index
    %c0_31 = arith.constant 0 : index
    %25 = vector.load %arg12[%c0_30, %c0_31] : memref<32x128xf32, #tpu.memory_space<vmem>>, vector<32x128xf32>
    %c0_32 = arith.constant 0 : index
    %c0_33 = arith.constant 0 : index
    %26 = vector.load %arg14[%c0_32, %c0_33] : memref<32x128xf32, #tpu.memory_space<vmem>>, vector<32x128xf32>
    %c0_34 = arith.constant 0 : index
    %c0_35 = arith.constant 0 : index
    %27 = vector.load %arg15[%c0_34, %c0_35] : memref<1x128xf32, #tpu.memory_space<vmem>>, vector<1x128xf32>
    %c0_i32 = arith.constant 0 : i32
    %cst_36 = arith.constant dense<0.000000e+00> : vector<8x192xf32>
    %28 = tpu.matmul %9, %21, %cst_36 {dimension_numbers = #tpu.dot_dimension_numbers<[1], [0], [0], [1], [0, 0, 1, 1], [], []>} : vector<8x32xf32>, vector<32x192xf32>, vector<8x192xf32> -> vector<8x192xf32>
    %29 = vector.extract_strided_slice %28 {offsets = [0, 0], sizes = [8, 128], strides = [1, 1]} : vector<8x192xf32> to vector<8x128xf32>
    %30 = vector.extract_strided_slice %28 {offsets = [0, 128], sizes = [8, 32], strides = [1, 1]} : vector<8x192xf32> to vector<8x32xf32>
    %31 = vector.broadcast %23 : vector<1x32xf32> to vector<8x32xf32>
    %32 = arith.addf %30, %31 : vector<8x32xf32>
    %33 = vector.extract_strided_slice %28 {offsets = [0, 160], sizes = [8, 32], strides = [1, 1]} : vector<8x192xf32> to vector<8x32xf32>
    %34 = vector.broadcast %24 : vector<1x32xf32> to vector<8x32xf32>
    %35 = arith.addf %33, %34 : vector<8x32xf32>
    %36 = arith.negf %35 : vector<8x32xf32>
    %37 = math.exp %36 : vector<8x32xf32>
    %cst_37 = arith.constant 1.000000e+00 : f32
    %38 = vector.broadcast %cst_37 : f32 to vector<8x32xf32>
    %39 = arith.addf %38, %37 : vector<8x32xf32>
    %40 = arith.divf %38, %39 : vector<8x32xf32>
    %41 = vector.shape_cast %32 : vector<8x32xf32> to vector<8x1x32xf32>
    %42 = vector.broadcast %41 : vector<8x1x32xf32> to vector<8x16x32xf32>
    %43 = arith.addf %12, %42 : vector<8x16x32xf32>
    %cst_38 = arith.constant 0.000000e+00 : f32
    %44 = vector.broadcast %cst_38 : f32 to vector<8x16x32xf32>
    %45 = arith.maximumf %43, %44 : vector<8x16x32xf32>
    %46 = vector.shape_cast %22 : vector<1x32xf32> to vector<1x1x32xf32>
    %47 = vector.broadcast %46 : vector<1x1x32xf32> to vector<8x16x32xf32>
    %48 = arith.mulf %45, %47 : vector<8x16x32xf32>
    %cst_39 = arith.constant dense<0.000000e+00> : vector<8x16xf32>
    %49 = vector.multi_reduction <add>, %48, %cst_39 [2] : vector<8x16x32xf32> to vector<8x16xf32>
    %cst_40 = arith.constant dense<0xFF800000> : vector<8xf32>
    %50 = vector.multi_reduction <maximumf>, %49, %cst_40 [1] : vector<8x16xf32> to vector<8xf32>
    %51 = vector.shape_cast %50 : vector<8xf32> to vector<8x1xf32>
    %52 = vector.broadcast %51 : vector<8x1xf32> to vector<8x16xf32>
    %53 = arith.subf %49, %52 : vector<8x16xf32>
    %54 = math.exp %53 : vector<8x16xf32>
    %cst_41 = arith.constant dense<0.000000e+00> : vector<8xf32>
    %55 = vector.multi_reduction <add>, %54, %cst_41 [1] : vector<8x16xf32> to vector<8xf32>
    %56 = vector.shape_cast %55 : vector<8xf32> to vector<8x1xf32>
    %57 = tpu.reciprocal %56 {approx = true} : vector<8x1xf32> -> vector<8x1xf32>
    %58 = vector.broadcast %57 : vector<8x1xf32> to vector<8x16xf32>
    %59 = arith.mulf %54, %58 : vector<8x16xf32>
    %60 = vector.shape_cast %59 : vector<8x16xf32> to vector<8x16x1xf32>
    %61 = vector.broadcast %60 : vector<8x16x1xf32> to vector<8x16x32xf32>
    %62 = arith.mulf %0, %61 : vector<8x16x32xf32>
    %cst_42 = arith.constant dense<0.000000e+00> : vector<8x32xf32>
    %63 = vector.multi_reduction <add>, %62, %cst_42 [1] : vector<8x16x32xf32> to vector<8x32xf32>
    %64 = arith.mulf %40, %63 : vector<8x32xf32>
    %65 = arith.index_cast %c0_i32 : i32 to index
    %c0_43 = arith.constant 0 : index
    %c0_44 = arith.constant 0 : index
    %66 = vector.load %arg18[%65, %c0_43, %c0_44] : memref<7x8x128xf32, #tpu.memory_space<vmem>>, vector<1x8x128xf32>
    %67 = vector.shape_cast %66 : vector<1x8x128xf32> to vector<8x128xf32>
    %68 = arith.addf %67, %29 : vector<8x128xf32>
    %cst_45 = arith.constant dense<0.000000e+00> : vector<8x128xf32>
    %69 = tpu.matmul %64, %25, %cst_45 {dimension_numbers = #tpu.dot_dimension_numbers<[1], [0], [0], [1], [0, 0, 1, 1], [], []>} : vector<8x32xf32>, vector<32x128xf32>, vector<8x128xf32> -> vector<8x128xf32>
    %70 = arith.addf %68, %69 : vector<8x128xf32>
    %71 = vector.extract_strided_slice %70 {offsets = [0, 0], sizes = [8, 32], strides = [1, 1]} : vector<8x128xf32> to vector<8x32xf32>
    %72 = arith.negf %71 : vector<8x32xf32>
    %73 = math.exp %72 : vector<8x32xf32>
    %cst_46 = arith.constant 1.000000e+00 : f32
    %74 = vector.broadcast %cst_46 : f32 to vector<8x32xf32>
    %75 = arith.addf %74, %73 : vector<8x32xf32>
    %76 = arith.divf %74, %75 : vector<8x32xf32>
    %77 = vector.extract_strided_slice %70 {offsets = [0, 32], sizes = [8, 32], strides = [1, 1]} : vector<8x128xf32> to vector<8x32xf32>
    %78 = arith.negf %77 : vector<8x32xf32>
    %79 = math.exp %78 : vector<8x32xf32>
    %cst_47 = arith.constant 1.000000e+00 : f32
    %80 = vector.broadcast %cst_47 : f32 to vector<8x32xf32>
    %81 = arith.addf %80, %79 : vector<8x32xf32>
    %82 = arith.divf %80, %81 : vector<8x32xf32>
    %83 = vector.extract_strided_slice %70 {offsets = [0, 64], sizes = [8, 32], strides = [1, 1]} : vector<8x128xf32> to vector<8x32xf32>
    %84 = math.tanh %83 : vector<8x32xf32>
    %85 = vector.extract_strided_slice %70 {offsets = [0, 96], sizes = [8, 32], strides = [1, 1]} : vector<8x128xf32> to vector<8x32xf32>
    %86 = arith.negf %85 : vector<8x32xf32>
    %87 = math.exp %86 : vector<8x32xf32>
    %cst_48 = arith.constant 1.000000e+00 : f32
    %88 = vector.broadcast %cst_48 : f32 to vector<8x32xf32>
    %89 = arith.addf %88, %87 : vector<8x32xf32>
    %90 = arith.divf %88, %89 : vector<8x32xf32>
    %91 = arith.mulf %82, %10 : vector<8x32xf32>
    %92 = arith.mulf %76, %84 : vector<8x32xf32>
    %93 = arith.addf %91, %92 : vector<8x32xf32>
    %94 = math.tanh %93 : vector<8x32xf32>
    %95 = arith.mulf %90, %94 : vector<8x32xf32>
    %cst_49 = arith.constant dense<0.000000e+00> : vector<8x128xf32>
    %96 = tpu.matmul %95, %26, %cst_49 {dimension_numbers = #tpu.dot_dimension_numbers<[1], [0], [0], [1], [0, 0, 1, 1], [], []>} : vector<8x32xf32>, vector<32x128xf32>, vector<8x128xf32> -> vector<8x128xf32>
    %97 = vector.broadcast %27 : vector<1x128xf32> to vector<8x128xf32>
    %98 = arith.addf %96, %97 : vector<8x128xf32>
    %99 = arith.index_cast %c0_i32 : i32 to index
    %c0_50 = arith.constant 0 : index
    %c0_51 = arith.constant 0 : index
    %100 = vector.load %arg3[%99, %c0_50, %c0_51] : memref<7x8x1xf32, #tpu.memory_space<vmem>>, vector<1x8x1xf32>
    %101 = vector.shape_cast %100 : vector<1x8x1xf32> to vector<8x1xf32>
    %102 = vector.broadcast %101 : vector<8x1xf32> to vector<8x128xf32>
    %103 = arith.mulf %98, %102 : vector<8x128xf32>
    %104 = arith.index_cast %c0_i32 : i32 to index
    %c0_52 = arith.constant 0 : index
    %c0_53 = arith.constant 0 : index
    %105 = vector.load %arg16[%104, %c0_52, %c0_53] : memref<7x8x128xf32, #tpu.memory_space<vmem>>, vector<1x8x128xf32>
    %106 = vector.shape_cast %105 : vector<1x8x128xf32> to vector<8x128xf32>
    %107 = vector.shape_cast %103 : vector<8x128xf32> to vector<1x8x128xf32>
    tpu.vector_store %arg16[%104, %c0_52, %c0_53], %107 {strides = array<i32>} : memref<7x8x128xf32, #tpu.memory_space<vmem>>, vector<1x8x128xf32>,
    %108 = vector.broadcast %101 : vector<8x1xf32> to vector<8x16xf32>
    %109 = arith.mulf %59, %108 : vector<8x16xf32>
    %110 = arith.index_cast %c0_i32 : i32 to index
    %c0_54 = arith.constant 0 : index
    %c0_55 = arith.constant 0 : index
    %111 = vector.load %arg17[%110, %c0_54, %c0_55] : memref<7x8x16xf32, #tpu.memory_space<vmem>>, vector<1x8x16xf32>
    %112 = vector.shape_cast %111 : vector<1x8x16xf32> to vector<8x16xf32>
    %113 = vector.shape_cast %109 : vector<8x16xf32> to vector<1x8x16xf32>
    tpu.vector_store %arg17[%110, %c0_54, %c0_55], %113 {strides = array<i32>} : memref<7x8x16xf32, #tpu.memory_space<vmem>>, vector<1x8x16xf32>,
    %c1_i32 = arith.constant 1 : i32
    %cst_56 = arith.constant dense<0.000000e+00> : vector<8x192xf32>
    %114 = tpu.matmul %95, %21, %cst_56 {dimension_numbers = #tpu.dot_dimension_numbers<[1], [0], [0], [1], [0, 0, 1, 1], [], []>} : vector<8x32xf32>, vector<32x192xf32>, vector<8x192xf32> -> vector<8x192xf32>
    %115 = vector.extract_strided_slice %114 {offsets = [0, 0], sizes = [8, 128], strides = [1, 1]} : vector<8x192xf32> to vector<8x128xf32>
    %116 = vector.extract_strided_slice %114 {offsets = [0, 128], sizes = [8, 32], strides = [1, 1]} : vector<8x192xf32> to vector<8x32xf32>
    %117 = vector.broadcast %23 : vector<1x32xf32> to vector<8x32xf32>
    %118 = arith.addf %116, %117 : vector<8x32xf32>
    %119 = vector.extract_strided_slice %114 {offsets = [0, 160], sizes = [8, 32], strides = [1, 1]} : vector<8x192xf32> to vector<8x32xf32>
    %120 = vector.broadcast %24 : vector<1x32xf32> to vector<8x32xf32>
    %121 = arith.addf %119, %120 : vector<8x32xf32>
    %122 = arith.negf %121 : vector<8x32xf32>
    %123 = math.exp %122 : vector<8x32xf32>
    %cst_57 = arith.constant 1.000000e+00 : f32
    %124 = vector.broadcast %cst_57 : f32 to vector<8x32xf32>
    %125 = arith.addf %124, %123 : vector<8x32xf32>
    %126 = arith.divf %124, %125 : vector<8x32xf32>
    %127 = vector.shape_cast %118 : vector<8x32xf32> to vector<8x1x32xf32>
    %128 = vector.broadcast %127 : vector<8x1x32xf32> to vector<8x16x32xf32>
    %129 = arith.addf %12, %128 : vector<8x16x32xf32>
    %cst_58 = arith.constant 0.000000e+00 : f32
    %130 = vector.broadcast %cst_58 : f32 to vector<8x16x32xf32>
    %131 = arith.maximumf %129, %130 : vector<8x16x32xf32>
    %132 = vector.shape_cast %22 : vector<1x32xf32> to vector<1x1x32xf32>
    %133 = vector.broadcast %132 : vector<1x1x32xf32> to vector<8x16x32xf32>
    %134 = arith.mulf %131, %133 : vector<8x16x32xf32>
    %cst_59 = arith.constant dense<0.000000e+00> : vector<8x16xf32>
    %135 = vector.multi_reduction <add>, %134, %cst_59 [2] : vector<8x16x32xf32> to vector<8x16xf32>
    %cst_60 = arith.constant dense<0xFF800000> : vector<8xf32>
    %136 = vector.multi_reduction <maximumf>, %135, %cst_60 [1] : vector<8x16xf32> to vector<8xf32>
    %137 = vector.shape_cast %136 : vector<8xf32> to vector<8x1xf32>
    %138 = vector.broadcast %137 : vector<8x1xf32> to vector<8x16xf32>
    %139 = arith.subf %135, %138 : vector<8x16xf32>
    %140 = math.exp %139 : vector<8x16xf32>
    %cst_61 = arith.constant dense<0.000000e+00> : vector<8xf32>
    %141 = vector.multi_reduction <add>, %140, %cst_61 [1] : vector<8x16xf32> to vector<8xf32>
    %142 = vector.shape_cast %141 : vector<8xf32> to vector<8x1xf32>
    %143 = tpu.reciprocal %142 {approx = true} : vector<8x1xf32> -> vector<8x1xf32>
    %144 = vector.broadcast %143 : vector<8x1xf32> to vector<8x16xf32>
    %145 = arith.mulf %140, %144 : vector<8x16xf32>
    %146 = vector.shape_cast %145 : vector<8x16xf32> to vector<8x16x1xf32>
    %147 = vector.broadcast %146 : vector<8x16x1xf32> to vector<8x16x32xf32>
    %148 = arith.mulf %0, %147 : vector<8x16x32xf32>
    %cst_62 = arith.constant dense<0.000000e+00> : vector<8x32xf32>
    %149 = vector.multi_reduction <add>, %148, %cst_62 [1] : vector<8x16x32xf32> to vector<8x32xf32>
    %150 = arith.mulf %126, %149 : vector<8x32xf32>
    %151 = arith.index_cast %c1_i32 : i32 to index
    %c0_63 = arith.constant 0 : index
    %c0_64 = arith.constant 0 : index
    %152 = vector.load %arg18[%151, %c0_63, %c0_64] : memref<7x8x128xf32, #tpu.memory_space<vmem>>, vector<1x8x128xf32>
    %153 = vector.shape_cast %152 : vector<1x8x128xf32> to vector<8x128xf32>
    %154 = arith.addf %153, %115 : vector<8x128xf32>
    %cst_65 = arith.constant dense<0.000000e+00> : vector<8x128xf32>
    %155 = tpu.matmul %150, %25, %cst_65 {dimension_numbers = #tpu.dot_dimension_numbers<[1], [0], [0], [1], [0, 0, 1, 1], [], []>} : vector<8x32xf32>, vector<32x128xf32>, vector<8x128xf32> -> vector<8x128xf32>
    %156 = arith.addf %154, %155 : vector<8x128xf32>
    %157 = vector.extract_strided_slice %156 {offsets = [0, 0], sizes = [8, 32], strides = [1, 1]} : vector<8x128xf32> to vector<8x32xf32>
    %158 = arith.negf %157 : vector<8x32xf32>
    %159 = math.exp %158 : vector<8x32xf32>
    %cst_66 = arith.constant 1.000000e+00 : f32
    %160 = vector.broadcast %cst_66 : f32 to vector<8x32xf32>
    %161 = arith.addf %160, %159 : vector<8x32xf32>
    %162 = arith.divf %160, %161 : vector<8x32xf32>
    %163 = vector.extract_strided_slice %156 {offsets = [0, 32], sizes = [8, 32], strides = [1, 1]} : vector<8x128xf32> to vector<8x32xf32>
    %164 = arith.negf %163 : vector<8x32xf32>
    %165 = math.exp %164 : vector<8x32xf32>
    %cst_67 = arith.constant 1.000000e+00 : f32
    %166 = vector.broadcast %cst_67 : f32 to vector<8x32xf32>
    %167 = arith.addf %166, %165 : vector<8x32xf32>
    %168 = arith.divf %166, %167 : vector<8x32xf32>
    %169 = vector.extract_strided_slice %156 {offsets = [0, 64], sizes = [8, 32], strides = [1, 1]} : vector<8x128xf32> to vector<8x32xf32>
    %170 = math.tanh %169 : vector<8x32xf32>
    %171 = vector.extract_strided_slice %156 {offsets = [0, 96], sizes = [8, 32], strides = [1, 1]} : vector<8x128xf32> to vector<8x32xf32>
    %172 = arith.negf %171 : vector<8x32xf32>
    %173 = math.exp %172 : vector<8x32xf32>
    %cst_68 = arith.constant 1.000000e+00 : f32
    %174 = vector.broadcast %cst_68 : f32 to vector<8x32xf32>
    %175 = arith.addf %174, %173 : vector<8x32xf32>
    %176 = arith.divf %174, %175 : vector<8x32xf32>
    %177 = arith.mulf %168, %93 : vector<8x32xf32>
    %178 = arith.mulf %162, %170 : vector<8x32xf32>
    %179 = arith.addf %177, %178 : vector<8x32xf32>
    %180 = math.tanh %179 : vector<8x32xf32>
    %181 = arith.mulf %176, %180 : vector<8x32xf32>
    %cst_69 = arith.constant dense<0.000000e+00> : vector<8x128xf32>
    %182 = tpu.matmul %181, %26, %cst_69 {dimension_numbers = #tpu.dot_dimension_numbers<[1], [0], [0], [1], [0, 0, 1, 1], [], []>} : vector<8x32xf32>, vector<32x128xf32>, vector<8x128xf32> -> vector<8x128xf32>
    %183 = vector.broadcast %27 : vector<1x128xf32> to vector<8x128xf32>
    %184 = arith.addf %182, %183 : vector<8x128xf32>
    %185 = arith.index_cast %c1_i32 : i32 to index
    %c0_70 = arith.constant 0 : index
    %c0_71 = arith.constant 0 : index
    %186 = vector.load %arg3[%185, %c0_70, %c0_71] : memref<7x8x1xf32, #tpu.memory_space<vmem>>, vector<1x8x1xf32>
    %187 = vector.shape_cast %186 : vector<1x8x1xf32> to vector<8x1xf32>
    %188 = vector.broadcast %187 : vector<8x1xf32> to vector<8x128xf32>
    %189 = arith.mulf %184, %188 : vector<8x128xf32>
    %190 = arith.index_cast %c1_i32 : i32 to index
    %c0_72 = arith.constant 0 : index
    %c0_73 = arith.constant 0 : index
    %191 = vector.load %arg16[%190, %c0_72, %c0_73] : memref<7x8x128xf32, #tpu.memory_space<vmem>>, vector<1x8x128xf32>
    %192 = vector.shape_cast %191 : vector<1x8x128xf32> to vector<8x128xf32>
    %193 = vector.shape_cast %189 : vector<8x128xf32> to vector<1x8x128xf32>
    tpu.vector_store %arg16[%190, %c0_72, %c0_73], %193 {strides = array<i32>} : memref<7x8x128xf32, #tpu.memory_space<vmem>>, vector<1x8x128xf32>,
    %194 = vector.broadcast %187 : vector<8x1xf32> to vector<8x16xf32>
    %195 = arith.mulf %145, %194 : vector<8x16xf32>
    %196 = arith.index_cast %c1_i32 : i32 to index
    %c0_74 = arith.constant 0 : index
    %c0_75 = arith.constant 0 : index
    %197 = vector.load %arg17[%196, %c0_74, %c0_75] : memref<7x8x16xf32, #tpu.memory_space<vmem>>, vector<1x8x16xf32>
    %198 = vector.shape_cast %197 : vector<1x8x16xf32> to vector<8x16xf32>
    %199 = vector.shape_cast %195 : vector<8x16xf32> to vector<1x8x16xf32>
    tpu.vector_store %arg17[%196, %c0_74, %c0_75], %199 {strides = array<i32>} : memref<7x8x16xf32, #tpu.memory_space<vmem>>, vector<1x8x16xf32>,
    %c2_i32 = arith.constant 2 : i32
    %cst_76 = arith.constant dense<0.000000e+00> : vector<8x192xf32>
    %200 = tpu.matmul %181, %21, %cst_76 {dimension_numbers = #tpu.dot_dimension_numbers<[1], [0], [0], [1], [0, 0, 1, 1], [], []>} : vector<8x32xf32>, vector<32x192xf32>, vector<8x192xf32> -> vector<8x192xf32>
    %201 = vector.extract_strided_slice %200 {offsets = [0, 0], sizes = [8, 128], strides = [1, 1]} : vector<8x192xf32> to vector<8x128xf32>
    %202 = vector.extract_strided_slice %200 {offsets = [0, 128], sizes = [8, 32], strides = [1, 1]} : vector<8x192xf32> to vector<8x32xf32>
    %203 = vector.broadcast %23 : vector<1x32xf32> to vector<8x32xf32>
    %204 = arith.addf %202, %203 : vector<8x32xf32>
    %205 = vector.extract_strided_slice %200 {offsets = [0, 160], sizes = [8, 32], strides = [1, 1]} : vector<8x192xf32> to vector<8x32xf32>
    %206 = vector.broadcast %24 : vector<1x32xf32> to vector<8x32xf32>
    %207 = arith.addf %205, %206 : vector<8x32xf32>
    %208 = arith.negf %207 : vector<8x32xf32>
    %209 = math.exp %208 : vector<8x32xf32>
    %cst_77 = arith.constant 1.000000e+00 : f32
    %210 = vector.broadcast %cst_77 : f32 to vector<8x32xf32>
    %211 = arith.addf %210, %209 : vector<8x32xf32>
    %212 = arith.divf %210, %211 : vector<8x32xf32>
    %213 = vector.shape_cast %204 : vector<8x32xf32> to vector<8x1x32xf32>
    %214 = vector.broadcast %213 : vector<8x1x32xf32> to vector<8x16x32xf32>
    %215 = arith.addf %12, %214 : vector<8x16x32xf32>
    %cst_78 = arith.constant 0.000000e+00 : f32
    %216 = vector.broadcast %cst_78 : f32 to vector<8x16x32xf32>
    %217 = arith.maximumf %215, %216 : vector<8x16x32xf32>
    %218 = vector.shape_cast %22 : vector<1x32xf32> to vector<1x1x32xf32>
    %219 = vector.broadcast %218 : vector<1x1x32xf32> to vector<8x16x32xf32>
    %220 = arith.mulf %217, %219 : vector<8x16x32xf32>
    %cst_79 = arith.constant dense<0.000000e+00> : vector<8x16xf32>
    %221 = vector.multi_reduction <add>, %220, %cst_79 [2] : vector<8x16x32xf32> to vector<8x16xf32>
    %cst_80 = arith.constant dense<0xFF800000> : vector<8xf32>
    %222 = vector.multi_reduction <maximumf>, %221, %cst_80 [1] : vector<8x16xf32> to vector<8xf32>
    %223 = vector.shape_cast %222 : vector<8xf32> to vector<8x1xf32>
    %224 = vector.broadcast %223 : vector<8x1xf32> to vector<8x16xf32>
    %225 = arith.subf %221, %224 : vector<8x16xf32>
    %226 = math.exp %225 : vector<8x16xf32>
    %cst_81 = arith.constant dense<0.000000e+00> : vector<8xf32>
    %227 = vector.multi_reduction <add>, %226, %cst_81 [1] : vector<8x16xf32> to vector<8xf32>
    %228 = vector.shape_cast %227 : vector<8xf32> to vector<8x1xf32>
    %229 = tpu.reciprocal %228 {approx = true} : vector<8x1xf32> -> vector<8x1xf32>
    %230 = vector.broadcast %229 : vector<8x1xf32> to vector<8x16xf32>
    %231 = arith.mulf %226, %230 : vector<8x16xf32>
    %232 = vector.shape_cast %231 : vector<8x16xf32> to vector<8x16x1xf32>
    %233 = vector.broadcast %232 : vector<8x16x1xf32> to vector<8x16x32xf32>
    %234 = arith.mulf %0, %233 : vector<8x16x32xf32>
    %cst_82 = arith.constant dense<0.000000e+00> : vector<8x32xf32>
    %235 = vector.multi_reduction <add>, %234, %cst_82 [1] : vector<8x16x32xf32> to vector<8x32xf32>
    %236 = arith.mulf %212, %235 : vector<8x32xf32>
    %237 = arith.index_cast %c2_i32 : i32 to index
    %c0_83 = arith.constant 0 : index
    %c0_84 = arith.constant 0 : index
    %238 = vector.load %arg18[%237, %c0_83, %c0_84] : memref<7x8x128xf32, #tpu.memory_space<vmem>>, vector<1x8x128xf32>
    %239 = vector.shape_cast %238 : vector<1x8x128xf32> to vector<8x128xf32>
    %240 = arith.addf %239, %201 : vector<8x128xf32>
    %cst_85 = arith.constant dense<0.000000e+00> : vector<8x128xf32>
    %241 = tpu.matmul %236, %25, %cst_85 {dimension_numbers = #tpu.dot_dimension_numbers<[1], [0], [0], [1], [0, 0, 1, 1], [], []>} : vector<8x32xf32>, vector<32x128xf32>, vector<8x128xf32> -> vector<8x128xf32>
    %242 = arith.addf %240, %241 : vector<8x128xf32>
    %243 = vector.extract_strided_slice %242 {offsets = [0, 0], sizes = [8, 32], strides = [1, 1]} : vector<8x128xf32> to vector<8x32xf32>
    %244 = arith.negf %243 : vector<8x32xf32>
    %245 = math.exp %244 : vector<8x32xf32>
    %cst_86 = arith.constant 1.000000e+00 : f32
    %246 = vector.broadcast %cst_86 : f32 to vector<8x32xf32>
    %247 = arith.addf %246, %245 : vector<8x32xf32>
    %248 = arith.divf %246, %247 : vector<8x32xf32>
    %249 = vector.extract_strided_slice %242 {offsets = [0, 32], sizes = [8, 32], strides = [1, 1]} : vector<8x128xf32> to vector<8x32xf32>
    %250 = arith.negf %249 : vector<8x32xf32>
    %251 = math.exp %250 : vector<8x32xf32>
    %cst_87 = arith.constant 1.000000e+00 : f32
    %252 = vector.broadcast %cst_87 : f32 to vector<8x32xf32>
    %253 = arith.addf %252, %251 : vector<8x32xf32>
    %254 = arith.divf %252, %253 : vector<8x32xf32>
    %255 = vector.extract_strided_slice %242 {offsets = [0, 64], sizes = [8, 32], strides = [1, 1]} : vector<8x128xf32> to vector<8x32xf32>
    %256 = math.tanh %255 : vector<8x32xf32>
    %257 = vector.extract_strided_slice %242 {offsets = [0, 96], sizes = [8, 32], strides = [1, 1]} : vector<8x128xf32> to vector<8x32xf32>
    %258 = arith.negf %257 : vector<8x32xf32>
    %259 = math.exp %258 : vector<8x32xf32>
    %cst_88 = arith.constant 1.000000e+00 : f32
    %260 = vector.broadcast %cst_88 : f32 to vector<8x32xf32>
    %261 = arith.addf %260, %259 : vector<8x32xf32>
    %262 = arith.divf %260, %261 : vector<8x32xf32>
    %263 = arith.mulf %254, %179 : vector<8x32xf32>
    %264 = arith.mulf %248, %256 : vector<8x32xf32>
    %265 = arith.addf %263, %264 : vector<8x32xf32>
    %266 = math.tanh %265 : vector<8x32xf32>
    %267 = arith.mulf %262, %266 : vector<8x32xf32>
    %cst_89 = arith.constant dense<0.000000e+00> : vector<8x128xf32>
    %268 = tpu.matmul %267, %26, %cst_89 {dimension_numbers = #tpu.dot_dimension_numbers<[1], [0], [0], [1], [0, 0, 1, 1], [], []>} : vector<8x32xf32>, vector<32x128xf32>, vector<8x128xf32> -> vector<8x128xf32>
    %269 = vector.broadcast %27 : vector<1x128xf32> to vector<8x128xf32>
    %270 = arith.addf %268, %269 : vector<8x128xf32>
    %271 = arith.index_cast %c2_i32 : i32 to index
    %c0_90 = arith.constant 0 : index
    %c0_91 = arith.constant 0 : index
    %272 = vector.load %arg3[%271, %c0_90, %c0_91] : memref<7x8x1xf32, #tpu.memory_space<vmem>>, vector<1x8x1xf32>
    %273 = vector.shape_cast %272 : vector<1x8x1xf32> to vector<8x1xf32>
    %274 = vector.broadcast %273 : vector<8x1xf32> to vector<8x128xf32>
    %275 = arith.mulf %270, %274 : vector<8x128xf32>
    %276 = arith.index_cast %c2_i32 : i32 to index
    %c0_92 = arith.constant 0 : index
    %c0_93 = arith.constant 0 : index
    %277 = vector.load %arg16[%276, %c0_92, %c0_93] : memref<7x8x128xf32, #tpu.memory_space<vmem>>, vector<1x8x128xf32>
    %278 = vector.shape_cast %277 : vector<1x8x128xf32> to vector<8x128xf32>
    %279 = vector.shape_cast %275 : vector<8x128xf32> to vector<1x8x128xf32>
    tpu.vector_store %arg16[%276, %c0_92, %c0_93], %279 {strides = array<i32>} : memref<7x8x128xf32, #tpu.memory_space<vmem>>, vector<1x8x128xf32>,
    %280 = vector.broadcast %273 : vector<8x1xf32> to vector<8x16xf32>
    %281 = arith.mulf %231, %280 : vector<8x16xf32>
    %282 = arith.index_cast %c2_i32 : i32 to index
    %c0_94 = arith.constant 0 : index
    %c0_95 = arith.constant 0 : index
    %283 = vector.load %arg17[%282, %c0_94, %c0_95] : memref<7x8x16xf32, #tpu.memory_space<vmem>>, vector<1x8x16xf32>
    %284 = vector.shape_cast %283 : vector<1x8x16xf32> to vector<8x16xf32>
    %285 = vector.shape_cast %281 : vector<8x16xf32> to vector<1x8x16xf32>
    tpu.vector_store %arg17[%282, %c0_94, %c0_95], %285 {strides = array<i32>} : memref<7x8x16xf32, #tpu.memory_space<vmem>>, vector<1x8x16xf32>,
    %c3_i32 = arith.constant 3 : i32
    %cst_96 = arith.constant dense<0.000000e+00> : vector<8x192xf32>
    %286 = tpu.matmul %267, %21, %cst_96 {dimension_numbers = #tpu.dot_dimension_numbers<[1], [0], [0], [1], [0, 0, 1, 1], [], []>} : vector<8x32xf32>, vector<32x192xf32>, vector<8x192xf32> -> vector<8x192xf32>
    %287 = vector.extract_strided_slice %286 {offsets = [0, 0], sizes = [8, 128], strides = [1, 1]} : vector<8x192xf32> to vector<8x128xf32>
    %288 = vector.extract_strided_slice %286 {offsets = [0, 128], sizes = [8, 32], strides = [1, 1]} : vector<8x192xf32> to vector<8x32xf32>
    %289 = vector.broadcast %23 : vector<1x32xf32> to vector<8x32xf32>
    %290 = arith.addf %288, %289 : vector<8x32xf32>
    %291 = vector.extract_strided_slice %286 {offsets = [0, 160], sizes = [8, 32], strides = [1, 1]} : vector<8x192xf32> to vector<8x32xf32>
    %292 = vector.broadcast %24 : vector<1x32xf32> to vector<8x32xf32>
    %293 = arith.addf %291, %292 : vector<8x32xf32>
    %294 = arith.negf %293 : vector<8x32xf32>
    %295 = math.exp %294 : vector<8x32xf32>
    %cst_97 = arith.constant 1.000000e+00 : f32
    %296 = vector.broadcast %cst_97 : f32 to vector<8x32xf32>
    %297 = arith.addf %296, %295 : vector<8x32xf32>
    %298 = arith.divf %296, %297 : vector<8x32xf32>
    %299 = vector.shape_cast %290 : vector<8x32xf32> to vector<8x1x32xf32>
    %300 = vector.broadcast %299 : vector<8x1x32xf32> to vector<8x16x32xf32>
    %301 = arith.addf %12, %300 : vector<8x16x32xf32>
    %cst_98 = arith.constant 0.000000e+00 : f32
    %302 = vector.broadcast %cst_98 : f32 to vector<8x16x32xf32>
    %303 = arith.maximumf %301, %302 : vector<8x16x32xf32>
    %304 = vector.shape_cast %22 : vector<1x32xf32> to vector<1x1x32xf32>
    %305 = vector.broadcast %304 : vector<1x1x32xf32> to vector<8x16x32xf32>
    %306 = arith.mulf %303, %305 : vector<8x16x32xf32>
    %cst_99 = arith.constant dense<0.000000e+00> : vector<8x16xf32>
    %307 = vector.multi_reduction <add>, %306, %cst_99 [2] : vector<8x16x32xf32> to vector<8x16xf32>
    %cst_100 = arith.constant dense<0xFF800000> : vector<8xf32>
    %308 = vector.multi_reduction <maximumf>, %307, %cst_100 [1] : vector<8x16xf32> to vector<8xf32>
    %309 = vector.shape_cast %308 : vector<8xf32> to vector<8x1xf32>
    %310 = vector.broadcast %309 : vector<8x1xf32> to vector<8x16xf32>
    %311 = arith.subf %307, %310 : vector<8x16xf32>
    %312 = math.exp %311 : vector<8x16xf32>
    %cst_101 = arith.constant dense<0.000000e+00> : vector<8xf32>
    %313 = vector.multi_reduction <add>, %312, %cst_101 [1] : vector<8x16xf32> to vector<8xf32>
    %314 = vector.shape_cast %313 : vector<8xf32> to vector<8x1xf32>
    %315 = tpu.reciprocal %314 {approx = true} : vector<8x1xf32> -> vector<8x1xf32>
    %316 = vector.broadcast %315 : vector<8x1xf32> to vector<8x16xf32>
    %317 = arith.mulf %312, %316 : vector<8x16xf32>
    %318 = vector.shape_cast %317 : vector<8x16xf32> to vector<8x16x1xf32>
    %319 = vector.broadcast %318 : vector<8x16x1xf32> to vector<8x16x32xf32>
    %320 = arith.mulf %0, %319 : vector<8x16x32xf32>
    %cst_102 = arith.constant dense<0.000000e+00> : vector<8x32xf32>
    %321 = vector.multi_reduction <add>, %320, %cst_102 [1] : vector<8x16x32xf32> to vector<8x32xf32>
    %322 = arith.mulf %298, %321 : vector<8x32xf32>
    %323 = arith.index_cast %c3_i32 : i32 to index
    %c0_103 = arith.constant 0 : index
    %c0_104 = arith.constant 0 : index
    %324 = vector.load %arg18[%323, %c0_103, %c0_104] : memref<7x8x128xf32, #tpu.memory_space<vmem>>, vector<1x8x128xf32>
    %325 = vector.shape_cast %324 : vector<1x8x128xf32> to vector<8x128xf32>
    %326 = arith.addf %325, %287 : vector<8x128xf32>
    %cst_105 = arith.constant dense<0.000000e+00> : vector<8x128xf32>
    %327 = tpu.matmul %322, %25, %cst_105 {dimension_numbers = #tpu.dot_dimension_numbers<[1], [0], [0], [1], [0, 0, 1, 1], [], []>} : vector<8x32xf32>, vector<32x128xf32>, vector<8x128xf32> -> vector<8x128xf32>
    %328 = arith.addf %326, %327 : vector<8x128xf32>
    %329 = vector.extract_strided_slice %328 {offsets = [0, 0], sizes = [8, 32], strides = [1, 1]} : vector<8x128xf32> to vector<8x32xf32>
    %330 = arith.negf %329 : vector<8x32xf32>
    %331 = math.exp %330 : vector<8x32xf32>
    %cst_106 = arith.constant 1.000000e+00 : f32
    %332 = vector.broadcast %cst_106 : f32 to vector<8x32xf32>
    %333 = arith.addf %332, %331 : vector<8x32xf32>
    %334 = arith.divf %332, %333 : vector<8x32xf32>
    %335 = vector.extract_strided_slice %328 {offsets = [0, 32], sizes = [8, 32], strides = [1, 1]} : vector<8x128xf32> to vector<8x32xf32>
    %336 = arith.negf %335 : vector<8x32xf32>
    %337 = math.exp %336 : vector<8x32xf32>
    %cst_107 = arith.constant 1.000000e+00 : f32
    %338 = vector.broadcast %cst_107 : f32 to vector<8x32xf32>
    %339 = arith.addf %338, %337 : vector<8x32xf32>
    %340 = arith.divf %338, %339 : vector<8x32xf32>
    %341 = vector.extract_strided_slice %328 {offsets = [0, 64], sizes = [8, 32], strides = [1, 1]} : vector<8x128xf32> to vector<8x32xf32>
    %342 = math.tanh %341 : vector<8x32xf32>
    %343 = vector.extract_strided_slice %328 {offsets = [0, 96], sizes = [8, 32], strides = [1, 1]} : vector<8x128xf32> to vector<8x32xf32>
    %344 = arith.negf %343 : vector<8x32xf32>
    %345 = math.exp %344 : vector<8x32xf32>
    %cst_108 = arith.constant 1.000000e+00 : f32
    %346 = vector.broadcast %cst_108 : f32 to vector<8x32xf32>
    %347 = arith.addf %346, %345 : vector<8x32xf32>
    %348 = arith.divf %346, %347 : vector<8x32xf32>
    %349 = arith.mulf %340, %265 : vector<8x32xf32>
    %350 = arith.mulf %334, %342 : vector<8x32xf32>
    %351 = arith.addf %349, %350 : vector<8x32xf32>
    %352 = math.tanh %351 : vector<8x32xf32>
    %353 = arith.mulf %348, %352 : vector<8x32xf32>
    %cst_109 = arith.constant dense<0.000000e+00> : vector<8x128xf32>
    %354 = tpu.matmul %353, %26, %cst_109 {dimension_numbers = #tpu.dot_dimension_numbers<[1], [0], [0], [1], [0, 0, 1, 1], [], []>} : vector<8x32xf32>, vector<32x128xf32>, vector<8x128xf32> -> vector<8x128xf32>
    %355 = vector.broadcast %27 : vector<1x128xf32> to vector<8x128xf32>
    %356 = arith.addf %354, %355 : vector<8x128xf32>
    %357 = arith.index_cast %c3_i32 : i32 to index
    %c0_110 = arith.constant 0 : index
    %c0_111 = arith.constant 0 : index
    %358 = vector.load %arg3[%357, %c0_110, %c0_111] : memref<7x8x1xf32, #tpu.memory_space<vmem>>, vector<1x8x1xf32>
    %359 = vector.shape_cast %358 : vector<1x8x1xf32> to vector<8x1xf32>
    %360 = vector.broadcast %359 : vector<8x1xf32> to vector<8x128xf32>
    %361 = arith.mulf %356, %360 : vector<8x128xf32>
    %362 = arith.index_cast %c3_i32 : i32 to index
    %c0_112 = arith.constant 0 : index
    %c0_113 = arith.constant 0 : index
    %363 = vector.load %arg16[%362, %c0_112, %c0_113] : memref<7x8x128xf32, #tpu.memory_space<vmem>>, vector<1x8x128xf32>
    %364 = vector.shape_cast %363 : vector<1x8x128xf32> to vector<8x128xf32>
    %365 = vector.shape_cast %361 : vector<8x128xf32> to vector<1x8x128xf32>
    tpu.vector_store %arg16[%362, %c0_112, %c0_113], %365 {strides = array<i32>} : memref<7x8x128xf32, #tpu.memory_space<vmem>>, vector<1x8x128xf32>,
    %366 = vector.broadcast %359 : vector<8x1xf32> to vector<8x16xf32>
    %367 = arith.mulf %317, %366 : vector<8x16xf32>
    %368 = arith.index_cast %c3_i32 : i32 to index
    %c0_114 = arith.constant 0 : index
    %c0_115 = arith.constant 0 : index
    %369 = vector.load %arg17[%368, %c0_114, %c0_115] : memref<7x8x16xf32, #tpu.memory_space<vmem>>, vector<1x8x16xf32>
    %370 = vector.shape_cast %369 : vector<1x8x16xf32> to vector<8x16xf32>
    %371 = vector.shape_cast %367 : vector<8x16xf32> to vector<1x8x16xf32>
    tpu.vector_store %arg17[%368, %c0_114, %c0_115], %371 {strides = array<i32>} : memref<7x8x16xf32, #tpu.memory_space<vmem>>, vector<1x8x16xf32>,
    %c4_i32 = arith.constant 4 : i32
    %cst_116 = arith.constant dense<0.000000e+00> : vector<8x192xf32>
    %372 = tpu.matmul %353, %21, %cst_116 {dimension_numbers = #tpu.dot_dimension_numbers<[1], [0], [0], [1], [0, 0, 1, 1], [], []>} : vector<8x32xf32>, vector<32x192xf32>, vector<8x192xf32> -> vector<8x192xf32>
    %373 = vector.extract_strided_slice %372 {offsets = [0, 0], sizes = [8, 128], strides = [1, 1]} : vector<8x192xf32> to vector<8x128xf32>
    %374 = vector.extract_strided_slice %372 {offsets = [0, 128], sizes = [8, 32], strides = [1, 1]} : vector<8x192xf32> to vector<8x32xf32>
    %375 = vector.broadcast %23 : vector<1x32xf32> to vector<8x32xf32>
    %376 = arith.addf %374, %375 : vector<8x32xf32>
    %377 = vector.extract_strided_slice %372 {offsets = [0, 160], sizes = [8, 32], strides = [1, 1]} : vector<8x192xf32> to vector<8x32xf32>
    %378 = vector.broadcast %24 : vector<1x32xf32> to vector<8x32xf32>
    %379 = arith.addf %377, %378 : vector<8x32xf32>
    %380 = arith.negf %379 : vector<8x32xf32>
    %381 = math.exp %380 : vector<8x32xf32>
    %cst_117 = arith.constant 1.000000e+00 : f32
    %382 = vector.broadcast %cst_117 : f32 to vector<8x32xf32>
    %383 = arith.addf %382, %381 : vector<8x32xf32>
    %384 = arith.divf %382, %383 : vector<8x32xf32>
    %385 = vector.shape_cast %376 : vector<8x32xf32> to vector<8x1x32xf32>
    %386 = vector.broadcast %385 : vector<8x1x32xf32> to vector<8x16x32xf32>
    %387 = arith.addf %12, %386 : vector<8x16x32xf32>
    %cst_118 = arith.constant 0.000000e+00 : f32
    %388 = vector.broadcast %cst_118 : f32 to vector<8x16x32xf32>
    %389 = arith.maximumf %387, %388 : vector<8x16x32xf32>
    %390 = vector.shape_cast %22 : vector<1x32xf32> to vector<1x1x32xf32>
    %391 = vector.broadcast %390 : vector<1x1x32xf32> to vector<8x16x32xf32>
    %392 = arith.mulf %389, %391 : vector<8x16x32xf32>
    %cst_119 = arith.constant dense<0.000000e+00> : vector<8x16xf32>
    %393 = vector.multi_reduction <add>, %392, %cst_119 [2] : vector<8x16x32xf32> to vector<8x16xf32>
    %cst_120 = arith.constant dense<0xFF800000> : vector<8xf32>
    %394 = vector.multi_reduction <maximumf>, %393, %cst_120 [1] : vector<8x16xf32> to vector<8xf32>
    %395 = vector.shape_cast %394 : vector<8xf32> to vector<8x1xf32>
    %396 = vector.broadcast %395 : vector<8x1xf32> to vector<8x16xf32>
    %397 = arith.subf %393, %396 : vector<8x16xf32>
    %398 = math.exp %397 : vector<8x16xf32>
    %cst_121 = arith.constant dense<0.000000e+00> : vector<8xf32>
    %399 = vector.multi_reduction <add>, %398, %cst_121 [1] : vector<8x16xf32> to vector<8xf32>
    %400 = vector.shape_cast %399 : vector<8xf32> to vector<8x1xf32>
    %401 = tpu.reciprocal %400 {approx = true} : vector<8x1xf32> -> vector<8x1xf32>
    %402 = vector.broadcast %401 : vector<8x1xf32> to vector<8x16xf32>
    %403 = arith.mulf %398, %402 : vector<8x16xf32>
    %404 = vector.shape_cast %403 : vector<8x16xf32> to vector<8x16x1xf32>
    %405 = vector.broadcast %404 : vector<8x16x1xf32> to vector<8x16x32xf32>
    %406 = arith.mulf %0, %405 : vector<8x16x32xf32>
    %cst_122 = arith.constant dense<0.000000e+00> : vector<8x32xf32>
    %407 = vector.multi_reduction <add>, %406, %cst_122 [1] : vector<8x16x32xf32> to vector<8x32xf32>
    %408 = arith.mulf %384, %407 : vector<8x32xf32>
    %409 = arith.index_cast %c4_i32 : i32 to index
    %c0_123 = arith.constant 0 : index
    %c0_124 = arith.constant 0 : index
    %410 = vector.load %arg18[%409, %c0_123, %c0_124] : memref<7x8x128xf32, #tpu.memory_space<vmem>>, vector<1x8x128xf32>
    %411 = vector.shape_cast %410 : vector<1x8x128xf32> to vector<8x128xf32>
    %412 = arith.addf %411, %373 : vector<8x128xf32>
    %cst_125 = arith.constant dense<0.000000e+00> : vector<8x128xf32>
    %413 = tpu.matmul %408, %25, %cst_125 {dimension_numbers = #tpu.dot_dimension_numbers<[1], [0], [0], [1], [0, 0, 1, 1], [], []>} : vector<8x32xf32>, vector<32x128xf32>, vector<8x128xf32> -> vector<8x128xf32>
    %414 = arith.addf %412, %413 : vector<8x128xf32>
    %415 = vector.extract_strided_slice %414 {offsets = [0, 0], sizes = [8, 32], strides = [1, 1]} : vector<8x128xf32> to vector<8x32xf32>
    %416 = arith.negf %415 : vector<8x32xf32>
    %417 = math.exp %416 : vector<8x32xf32>
    %cst_126 = arith.constant 1.000000e+00 : f32
    %418 = vector.broadcast %cst_126 : f32 to vector<8x32xf32>
    %419 = arith.addf %418, %417 : vector<8x32xf32>
    %420 = arith.divf %418, %419 : vector<8x32xf32>
    %421 = vector.extract_strided_slice %414 {offsets = [0, 32], sizes = [8, 32], strides = [1, 1]} : vector<8x128xf32> to vector<8x32xf32>
    %422 = arith.negf %421 : vector<8x32xf32>
    %423 = math.exp %422 : vector<8x32xf32>
    %cst_127 = arith.constant 1.000000e+00 : f32
    %424 = vector.broadcast %cst_127 : f32 to vector<8x32xf32>
    %425 = arith.addf %424, %423 : vector<8x32xf32>
    %426 = arith.divf %424, %425 : vector<8x32xf32>
    %427 = vector.extract_strided_slice %414 {offsets = [0, 64], sizes = [8, 32], strides = [1, 1]} : vector<8x128xf32> to vector<8x32xf32>
    %428 = math.tanh %427 : vector<8x32xf32>
    %429 = vector.extract_strided_slice %414 {offsets = [0, 96], sizes = [8, 32], strides = [1, 1]} : vector<8x128xf32> to vector<8x32xf32>
    %430 = arith.negf %429 : vector<8x32xf32>
    %431 = math.exp %430 : vector<8x32xf32>
    %cst_128 = arith.constant 1.000000e+00 : f32
    %432 = vector.broadcast %cst_128 : f32 to vector<8x32xf32>
    %433 = arith.addf %432, %431 : vector<8x32xf32>
    %434 = arith.divf %432, %433 : vector<8x32xf32>
    %435 = arith.mulf %426, %351 : vector<8x32xf32>
    %436 = arith.mulf %420, %428 : vector<8x32xf32>
    %437 = arith.addf %435, %436 : vector<8x32xf32>
    %438 = math.tanh %437 : vector<8x32xf32>
    %439 = arith.mulf %434, %438 : vector<8x32xf32>
    %cst_129 = arith.constant dense<0.000000e+00> : vector<8x128xf32>
    %440 = tpu.matmul %439, %26, %cst_129 {dimension_numbers = #tpu.dot_dimension_numbers<[1], [0], [0], [1], [0, 0, 1, 1], [], []>} : vector<8x32xf32>, vector<32x128xf32>, vector<8x128xf32> -> vector<8x128xf32>
    %441 = vector.broadcast %27 : vector<1x128xf32> to vector<8x128xf32>
    %442 = arith.addf %440, %441 : vector<8x128xf32>
    %443 = arith.index_cast %c4_i32 : i32 to index
    %c0_130 = arith.constant 0 : index
    %c0_131 = arith.constant 0 : index
    %444 = vector.load %arg3[%443, %c0_130, %c0_131] : memref<7x8x1xf32, #tpu.memory_space<vmem>>, vector<1x8x1xf32>
    %445 = vector.shape_cast %444 : vector<1x8x1xf32> to vector<8x1xf32>
    %446 = vector.broadcast %445 : vector<8x1xf32> to vector<8x128xf32>
    %447 = arith.mulf %442, %446 : vector<8x128xf32>
    %448 = arith.index_cast %c4_i32 : i32 to index
    %c0_132 = arith.constant 0 : index
    %c0_133 = arith.constant 0 : index
    %449 = vector.load %arg16[%448, %c0_132, %c0_133] : memref<7x8x128xf32, #tpu.memory_space<vmem>>, vector<1x8x128xf32>
    %450 = vector.shape_cast %449 : vector<1x8x128xf32> to vector<8x128xf32>
    %451 = vector.shape_cast %447 : vector<8x128xf32> to vector<1x8x128xf32>
    tpu.vector_store %arg16[%448, %c0_132, %c0_133], %451 {strides = array<i32>} : memref<7x8x128xf32, #tpu.memory_space<vmem>>, vector<1x8x128xf32>,
    %452 = vector.broadcast %445 : vector<8x1xf32> to vector<8x16xf32>
    %453 = arith.mulf %403, %452 : vector<8x16xf32>
    %454 = arith.index_cast %c4_i32 : i32 to index
    %c0_134 = arith.constant 0 : index
    %c0_135 = arith.constant 0 : index
    %455 = vector.load %arg17[%454, %c0_134, %c0_135] : memref<7x8x16xf32, #tpu.memory_space<vmem>>, vector<1x8x16xf32>
    %456 = vector.shape_cast %455 : vector<1x8x16xf32> to vector<8x16xf32>
    %457 = vector.shape_cast %453 : vector<8x16xf32> to vector<1x8x16xf32>
    tpu.vector_store %arg17[%454, %c0_134, %c0_135], %457 {strides = array<i32>} : memref<7x8x16xf32, #tpu.memory_space<vmem>>, vector<1x8x16xf32>,
    %c5_i32 = arith.constant 5 : i32
    %cst_136 = arith.constant dense<0.000000e+00> : vector<8x192xf32>
    %458 = tpu.matmul %439, %21, %cst_136 {dimension_numbers = #tpu.dot_dimension_numbers<[1], [0], [0], [1], [0, 0, 1, 1], [], []>} : vector<8x32xf32>, vector<32x192xf32>, vector<8x192xf32> -> vector<8x192xf32>
    %459 = vector.extract_strided_slice %458 {offsets = [0, 0], sizes = [8, 128], strides = [1, 1]} : vector<8x192xf32> to vector<8x128xf32>
    %460 = vector.extract_strided_slice %458 {offsets = [0, 128], sizes = [8, 32], strides = [1, 1]} : vector<8x192xf32> to vector<8x32xf32>
    %461 = vector.broadcast %23 : vector<1x32xf32> to vector<8x32xf32>
    %462 = arith.addf %460, %461 : vector<8x32xf32>
    %463 = vector.extract_strided_slice %458 {offsets = [0, 160], sizes = [8, 32], strides = [1, 1]} : vector<8x192xf32> to vector<8x32xf32>
    %464 = vector.broadcast %24 : vector<1x32xf32> to vector<8x32xf32>
    %465 = arith.addf %463, %464 : vector<8x32xf32>
    %466 = arith.negf %465 : vector<8x32xf32>
    %467 = math.exp %466 : vector<8x32xf32>
    %cst_137 = arith.constant 1.000000e+00 : f32
    %468 = vector.broadcast %cst_137 : f32 to vector<8x32xf32>
    %469 = arith.addf %468, %467 : vector<8x32xf32>
    %470 = arith.divf %468, %469 : vector<8x32xf32>
    %471 = vector.shape_cast %462 : vector<8x32xf32> to vector<8x1x32xf32>
    %472 = vector.broadcast %471 : vector<8x1x32xf32> to vector<8x16x32xf32>
    %473 = arith.addf %12, %472 : vector<8x16x32xf32>
    %cst_138 = arith.constant 0.000000e+00 : f32
    %474 = vector.broadcast %cst_138 : f32 to vector<8x16x32xf32>
    %475 = arith.maximumf %473, %474 : vector<8x16x32xf32>
    %476 = vector.shape_cast %22 : vector<1x32xf32> to vector<1x1x32xf32>
    %477 = vector.broadcast %476 : vector<1x1x32xf32> to vector<8x16x32xf32>
    %478 = arith.mulf %475, %477 : vector<8x16x32xf32>
    %cst_139 = arith.constant dense<0.000000e+00> : vector<8x16xf32>
    %479 = vector.multi_reduction <add>, %478, %cst_139 [2] : vector<8x16x32xf32> to vector<8x16xf32>
    %cst_140 = arith.constant dense<0xFF800000> : vector<8xf32>
    %480 = vector.multi_reduction <maximumf>, %479, %cst_140 [1] : vector<8x16xf32> to vector<8xf32>
    %481 = vector.shape_cast %480 : vector<8xf32> to vector<8x1xf32>
    %482 = vector.broadcast %481 : vector<8x1xf32> to vector<8x16xf32>
    %483 = arith.subf %479, %482 : vector<8x16xf32>
    %484 = math.exp %483 : vector<8x16xf32>
    %cst_141 = arith.constant dense<0.000000e+00> : vector<8xf32>
    %485 = vector.multi_reduction <add>, %484, %cst_141 [1] : vector<8x16xf32> to vector<8xf32>
    %486 = vector.shape_cast %485 : vector<8xf32> to vector<8x1xf32>
    %487 = tpu.reciprocal %486 {approx = true} : vector<8x1xf32> -> vector<8x1xf32>
    %488 = vector.broadcast %487 : vector<8x1xf32> to vector<8x16xf32>
    %489 = arith.mulf %484, %488 : vector<8x16xf32>
    %490 = vector.shape_cast %489 : vector<8x16xf32> to vector<8x16x1xf32>
    %491 = vector.broadcast %490 : vector<8x16x1xf32> to vector<8x16x32xf32>
    %492 = arith.mulf %0, %491 : vector<8x16x32xf32>
    %cst_142 = arith.constant dense<0.000000e+00> : vector<8x32xf32>
    %493 = vector.multi_reduction <add>, %492, %cst_142 [1] : vector<8x16x32xf32> to vector<8x32xf32>
    %494 = arith.mulf %470, %493 : vector<8x32xf32>
    %495 = arith.index_cast %c5_i32 : i32 to index
    %c0_143 = arith.constant 0 : index
    %c0_144 = arith.constant 0 : index
    %496 = vector.load %arg18[%495, %c0_143, %c0_144] : memref<7x8x128xf32, #tpu.memory_space<vmem>>, vector<1x8x128xf32>
    %497 = vector.shape_cast %496 : vector<1x8x128xf32> to vector<8x128xf32>
    %498 = arith.addf %497, %459 : vector<8x128xf32>
    %cst_145 = arith.constant dense<0.000000e+00> : vector<8x128xf32>
    %499 = tpu.matmul %494, %25, %cst_145 {dimension_numbers = #tpu.dot_dimension_numbers<[1], [0], [0], [1], [0, 0, 1, 1], [], []>} : vector<8x32xf32>, vector<32x128xf32>, vector<8x128xf32> -> vector<8x128xf32>
    %500 = arith.addf %498, %499 : vector<8x128xf32>
    %501 = vector.extract_strided_slice %500 {offsets = [0, 0], sizes = [8, 32], strides = [1, 1]} : vector<8x128xf32> to vector<8x32xf32>
    %502 = arith.negf %501 : vector<8x32xf32>
    %503 = math.exp %502 : vector<8x32xf32>
    %cst_146 = arith.constant 1.000000e+00 : f32
    %504 = vector.broadcast %cst_146 : f32 to vector<8x32xf32>
    %505 = arith.addf %504, %503 : vector<8x32xf32>
    %506 = arith.divf %504, %505 : vector<8x32xf32>
    %507 = vector.extract_strided_slice %500 {offsets = [0, 32], sizes = [8, 32], strides = [1, 1]} : vector<8x128xf32> to vector<8x32xf32>
    %508 = arith.negf %507 : vector<8x32xf32>
    %509 = math.exp %508 : vector<8x32xf32>
    %cst_147 = arith.constant 1.000000e+00 : f32
    %510 = vector.broadcast %cst_147 : f32 to vector<8x32xf32>
    %511 = arith.addf %510, %509 : vector<8x32xf32>
    %512 = arith.divf %510, %511 : vector<8x32xf32>
    %513 = vector.extract_strided_slice %500 {offsets = [0, 64], sizes = [8, 32], strides = [1, 1]} : vector<8x128xf32> to vector<8x32xf32>
    %514 = math.tanh %513 : vector<8x32xf32>
    %515 = vector.extract_strided_slice %500 {offsets = [0, 96], sizes = [8, 32], strides = [1, 1]} : vector<8x128xf32> to vector<8x32xf32>
    %516 = arith.negf %515 : vector<8x32xf32>
    %517 = math.exp %516 : vector<8x32xf32>
    %cst_148 = arith.constant 1.000000e+00 : f32
    %518 = vector.broadcast %cst_148 : f32 to vector<8x32xf32>
    %519 = arith.addf %518, %517 : vector<8x32xf32>
    %520 = arith.divf %518, %519 : vector<8x32xf32>
    %521 = arith.mulf %512, %437 : vector<8x32xf32>
    %522 = arith.mulf %506, %514 : vector<8x32xf32>
    %523 = arith.addf %521, %522 : vector<8x32xf32>
    %524 = math.tanh %523 : vector<8x32xf32>
    %525 = arith.mulf %520, %524 : vector<8x32xf32>
    %cst_149 = arith.constant dense<0.000000e+00> : vector<8x128xf32>
    %526 = tpu.matmul %525, %26, %cst_149 {dimension_numbers = #tpu.dot_dimension_numbers<[1], [0], [0], [1], [0, 0, 1, 1], [], []>} : vector<8x32xf32>, vector<32x128xf32>, vector<8x128xf32> -> vector<8x128xf32>
    %527 = vector.broadcast %27 : vector<1x128xf32> to vector<8x128xf32>
    %528 = arith.addf %526, %527 : vector<8x128xf32>
    %529 = arith.index_cast %c5_i32 : i32 to index
    %c0_150 = arith.constant 0 : index
    %c0_151 = arith.constant 0 : index
    %530 = vector.load %arg3[%529, %c0_150, %c0_151] : memref<7x8x1xf32, #tpu.memory_space<vmem>>, vector<1x8x1xf32>
    %531 = vector.shape_cast %530 : vector<1x8x1xf32> to vector<8x1xf32>
    %532 = vector.broadcast %531 : vector<8x1xf32> to vector<8x128xf32>
    %533 = arith.mulf %528, %532 : vector<8x128xf32>
    %534 = arith.index_cast %c5_i32 : i32 to index
    %c0_152 = arith.constant 0 : index
    %c0_153 = arith.constant 0 : index
    %535 = vector.load %arg16[%534, %c0_152, %c0_153] : memref<7x8x128xf32, #tpu.memory_space<vmem>>, vector<1x8x128xf32>
    %536 = vector.shape_cast %535 : vector<1x8x128xf32> to vector<8x128xf32>
    %537 = vector.shape_cast %533 : vector<8x128xf32> to vector<1x8x128xf32>
    tpu.vector_store %arg16[%534, %c0_152, %c0_153], %537 {strides = array<i32>} : memref<7x8x128xf32, #tpu.memory_space<vmem>>, vector<1x8x128xf32>,
    %538 = vector.broadcast %531 : vector<8x1xf32> to vector<8x16xf32>
    %539 = arith.mulf %489, %538 : vector<8x16xf32>
    %540 = arith.index_cast %c5_i32 : i32 to index
    %c0_154 = arith.constant 0 : index
    %c0_155 = arith.constant 0 : index
    %541 = vector.load %arg17[%540, %c0_154, %c0_155] : memref<7x8x16xf32, #tpu.memory_space<vmem>>, vector<1x8x16xf32>
    %542 = vector.shape_cast %541 : vector<1x8x16xf32> to vector<8x16xf32>
    %543 = vector.shape_cast %539 : vector<8x16xf32> to vector<1x8x16xf32>
    tpu.vector_store %arg17[%540, %c0_154, %c0_155], %543 {strides = array<i32>} : memref<7x8x16xf32, #tpu.memory_space<vmem>>, vector<1x8x16xf32>,
    %c6_i32 = arith.constant 6 : i32
    %cst_156 = arith.constant dense<0.000000e+00> : vector<8x192xf32>
    %544 = tpu.matmul %525, %21, %cst_156 {dimension_numbers = #tpu.dot_dimension_numbers<[1], [0], [0], [1], [0, 0, 1, 1], [], []>} : vector<8x32xf32>, vector<32x192xf32>, vector<8x192xf32> -> vector<8x192xf32>
    %545 = vector.extract_strided_slice %544 {offsets = [0, 0], sizes = [8, 128], strides = [1, 1]} : vector<8x192xf32> to vector<8x128xf32>
    %546 = vector.extract_strided_slice %544 {offsets = [0, 128], sizes = [8, 32], strides = [1, 1]} : vector<8x192xf32> to vector<8x32xf32>
    %547 = vector.broadcast %23 : vector<1x32xf32> to vector<8x32xf32>
    %548 = arith.addf %546, %547 : vector<8x32xf32>
    %549 = vector.extract_strided_slice %544 {offsets = [0, 160], sizes = [8, 32], strides = [1, 1]} : vector<8x192xf32> to vector<8x32xf32>
    %550 = vector.broadcast %24 : vector<1x32xf32> to vector<8x32xf32>
    %551 = arith.addf %549, %550 : vector<8x32xf32>
    %552 = arith.negf %551 : vector<8x32xf32>
    %553 = math.exp %552 : vector<8x32xf32>
    %cst_157 = arith.constant 1.000000e+00 : f32
    %554 = vector.broadcast %cst_157 : f32 to vector<8x32xf32>
    %555 = arith.addf %554, %553 : vector<8x32xf32>
    %556 = arith.divf %554, %555 : vector<8x32xf32>
    %557 = vector.shape_cast %548 : vector<8x32xf32> to vector<8x1x32xf32>
    %558 = vector.broadcast %557 : vector<8x1x32xf32> to vector<8x16x32xf32>
    %559 = arith.addf %12, %558 : vector<8x16x32xf32>
    %cst_158 = arith.constant 0.000000e+00 : f32
    %560 = vector.broadcast %cst_158 : f32 to vector<8x16x32xf32>
    %561 = arith.maximumf %559, %560 : vector<8x16x32xf32>
    %562 = vector.shape_cast %22 : vector<1x32xf32> to vector<1x1x32xf32>
    %563 = vector.broadcast %562 : vector<1x1x32xf32> to vector<8x16x32xf32>
    %564 = arith.mulf %561, %563 : vector<8x16x32xf32>
    %cst_159 = arith.constant dense<0.000000e+00> : vector<8x16xf32>
    %565 = vector.multi_reduction <add>, %564, %cst_159 [2] : vector<8x16x32xf32> to vector<8x16xf32>
    %cst_160 = arith.constant dense<0xFF800000> : vector<8xf32>
    %566 = vector.multi_reduction <maximumf>, %565, %cst_160 [1] : vector<8x16xf32> to vector<8xf32>
    %567 = vector.shape_cast %566 : vector<8xf32> to vector<8x1xf32>
    %568 = vector.broadcast %567 : vector<8x1xf32> to vector<8x16xf32>
    %569 = arith.subf %565, %568 : vector<8x16xf32>
    %570 = math.exp %569 : vector<8x16xf32>
    %cst_161 = arith.constant dense<0.000000e+00> : vector<8xf32>
    %571 = vector.multi_reduction <add>, %570, %cst_161 [1] : vector<8x16xf32> to vector<8xf32>
    %572 = vector.shape_cast %571 : vector<8xf32> to vector<8x1xf32>
    %573 = tpu.reciprocal %572 {approx = true} : vector<8x1xf32> -> vector<8x1xf32>
    %574 = vector.broadcast %573 : vector<8x1xf32> to vector<8x16xf32>
    %575 = arith.mulf %570, %574 : vector<8x16xf32>
    %576 = vector.shape_cast %575 : vector<8x16xf32> to vector<8x16x1xf32>
    %577 = vector.broadcast %576 : vector<8x16x1xf32> to vector<8x16x32xf32>
    %578 = arith.mulf %0, %577 : vector<8x16x32xf32>
    %cst_162 = arith.constant dense<0.000000e+00> : vector<8x32xf32>
    %579 = vector.multi_reduction <add>, %578, %cst_162 [1] : vector<8x16x32xf32> to vector<8x32xf32>
    %580 = arith.mulf %556, %579 : vector<8x32xf32>
    %581 = arith.index_cast %c6_i32 : i32 to index
    %c0_163 = arith.constant 0 : index
    %c0_164 = arith.constant 0 : index
    %582 = vector.load %arg18[%581, %c0_163, %c0_164] : memref<7x8x128xf32, #tpu.memory_space<vmem>>, vector<1x8x128xf32>
    %583 = vector.shape_cast %582 : vector<1x8x128xf32> to vector<8x128xf32>
    %584 = arith.addf %583, %545 : vector<8x128xf32>
    %cst_165 = arith.constant dense<0.000000e+00> : vector<8x128xf32>
    %585 = tpu.matmul %580, %25, %cst_165 {dimension_numbers = #tpu.dot_dimension_numbers<[1], [0], [0], [1], [0, 0, 1, 1], [], []>} : vector<8x32xf32>, vector<32x128xf32>, vector<8x128xf32> -> vector<8x128xf32>
    %586 = arith.addf %584, %585 : vector<8x128xf32>
    %587 = vector.extract_strided_slice %586 {offsets = [0, 0], sizes = [8, 32], strides = [1, 1]} : vector<8x128xf32> to vector<8x32xf32>
    %588 = arith.negf %587 : vector<8x32xf32>
    %589 = math.exp %588 : vector<8x32xf32>
    %cst_166 = arith.constant 1.000000e+00 : f32
    %590 = vector.broadcast %cst_166 : f32 to vector<8x32xf32>
    %591 = arith.addf %590, %589 : vector<8x32xf32>
    %592 = arith.divf %590, %591 : vector<8x32xf32>
    %593 = vector.extract_strided_slice %586 {offsets = [0, 32], sizes = [8, 32], strides = [1, 1]} : vector<8x128xf32> to vector<8x32xf32>
    %594 = arith.negf %593 : vector<8x32xf32>
    %595 = math.exp %594 : vector<8x32xf32>
    %cst_167 = arith.constant 1.000000e+00 : f32
    %596 = vector.broadcast %cst_167 : f32 to vector<8x32xf32>
    %597 = arith.addf %596, %595 : vector<8x32xf32>
    %598 = arith.divf %596, %597 : vector<8x32xf32>
    %599 = vector.extract_strided_slice %586 {offsets = [0, 64], sizes = [8, 32], strides = [1, 1]} : vector<8x128xf32> to vector<8x32xf32>
    %600 = math.tanh %599 : vector<8x32xf32>
    %601 = vector.extract_strided_slice %586 {offsets = [0, 96], sizes = [8, 32], strides = [1, 1]} : vector<8x128xf32> to vector<8x32xf32>
    %602 = arith.negf %601 : vector<8x32xf32>
    %603 = math.exp %602 : vector<8x32xf32>
    %cst_168 = arith.constant 1.000000e+00 : f32
    %604 = vector.broadcast %cst_168 : f32 to vector<8x32xf32>
    %605 = arith.addf %604, %603 : vector<8x32xf32>
    %606 = arith.divf %604, %605 : vector<8x32xf32>
    %607 = arith.mulf %598, %523 : vector<8x32xf32>
    %608 = arith.mulf %592, %600 : vector<8x32xf32>
    %609 = arith.addf %607, %608 : vector<8x32xf32>
    %610 = math.tanh %609 : vector<8x32xf32>
    %611 = arith.mulf %606, %610 : vector<8x32xf32>
    %cst_169 = arith.constant dense<0.000000e+00> : vector<8x128xf32>
    %612 = tpu.matmul %611, %26, %cst_169 {dimension_numbers = #tpu.dot_dimension_numbers<[1], [0], [0], [1], [0, 0, 1, 1], [], []>} : vector<8x32xf32>, vector<32x128xf32>, vector<8x128xf32> -> vector<8x128xf32>
    %613 = vector.broadcast %27 : vector<1x128xf32> to vector<8x128xf32>
    %614 = arith.addf %612, %613 : vector<8x128xf32>
    %615 = arith.index_cast %c6_i32 : i32 to index
    %c0_170 = arith.constant 0 : index
    %c0_171 = arith.constant 0 : index
    %616 = vector.load %arg3[%615, %c0_170, %c0_171] : memref<7x8x1xf32, #tpu.memory_space<vmem>>, vector<1x8x1xf32>
    %617 = vector.shape_cast %616 : vector<1x8x1xf32> to vector<8x1xf32>
    %618 = vector.broadcast %617 : vector<8x1xf32> to vector<8x128xf32>
    %619 = arith.mulf %614, %618 : vector<8x128xf32>
    %620 = arith.index_cast %c6_i32 : i32 to index
    %c0_172 = arith.constant 0 : index
    %c0_173 = arith.constant 0 : index
    %621 = vector.load %arg16[%620, %c0_172, %c0_173] : memref<7x8x128xf32, #tpu.memory_space<vmem>>, vector<1x8x128xf32>
    %622 = vector.shape_cast %621 : vector<1x8x128xf32> to vector<8x128xf32>
    %623 = vector.shape_cast %619 : vector<8x128xf32> to vector<1x8x128xf32>
    tpu.vector_store %arg16[%620, %c0_172, %c0_173], %623 {strides = array<i32>} : memref<7x8x128xf32, #tpu.memory_space<vmem>>, vector<1x8x128xf32>,
    %624 = vector.broadcast %617 : vector<8x1xf32> to vector<8x16xf32>
    %625 = arith.mulf %575, %624 : vector<8x16xf32>
    %626 = arith.index_cast %c6_i32 : i32 to index
    %c0_174 = arith.constant 0 : index
    %c0_175 = arith.constant 0 : index
    %627 = vector.load %arg17[%626, %c0_174, %c0_175] : memref<7x8x16xf32, #tpu.memory_space<vmem>>, vector<1x8x16xf32>
    %628 = vector.shape_cast %627 : vector<1x8x16xf32> to vector<8x16xf32>
    %629 = vector.shape_cast %625 : vector<8x16xf32> to vector<1x8x16xf32>
    tpu.vector_store %arg17[%626, %c0_174, %c0_175], %629 {strides = array<i32>} : memref<7x8x16xf32, #tpu.memory_space<vmem>>, vector<1x8x16xf32>,
    %c7_i32 = arith.constant 7 : i32
    return
  }
  func.func @transform_0(%arg0: i32) -> (i32, i32, i32) {
    %c0_i32 = arith.constant 0 : i32
    %c0_i32_0 = arith.constant 0 : i32
    %c0_i32_1 = arith.constant 0 : i32
    %c0_i32_2 = arith.constant 0 : i32
    return %c0_i32, %c0_i32_0, %c0_i32_1 : i32, i32, i32
  }
  func.func @transform_1(%arg0: i32) -> (i32, i32, i32) {
    %c0_i32 = arith.constant 0 : i32
    %c0_i32_0 = arith.constant 0 : i32
    %c0_i32_1 = arith.constant 0 : i32
    %c0_i32_2 = arith.constant 0 : i32
    return %c0_i32, %c0_i32_0, %c0_i32_1 : i32, i32, i32
  }
  func.func @transform_2(%arg0: i32) -> (i32, i32, i32) {
    %c0_i32 = arith.constant 0 : i32
    %c0_i32_0 = arith.constant 0 : i32
    %c0_i32_1 = arith.constant 0 : i32
    %c0_i32_2 = arith.constant 0 : i32
    return %c0_i32, %c0_i32_0, %c0_i32_1 : i32, i32, i32
  }
  func.func @transform_3(%arg0: i32) -> (i32, i32) {
    %c0_i32 = arith.constant 0 : i32
    %c0_i32_0 = arith.constant 0 : i32
    %c0_i32_1 = arith.constant 0 : i32
    return %c0_i32, %c0_i32_0 : i32, i32
  }
  func.func @transform_4(%arg0: i32) -> (i32, i32) {
    %c0_i32 = arith.constant 0 : i32
    %c0_i32_0 = arith.constant 0 : i32
    %c0_i32_1 = arith.constant 0 : i32
    return %c0_i32, %c0_i32_0 : i32, i32
  }
  func.func @transform_5(%arg0: i32) -> (i32, i32) {
    %c0_i32 = arith.constant 0 : i32
    %c0_i32_0 = arith.constant 0 : i32
    %c0_i32_1 = arith.constant 0 : i32
    return %c0_i32, %c0_i32_0 : i32, i32
  }
  func.func @transform_6(%arg0: i32) -> (i32, i32) {
    %c0_i32 = arith.constant 0 : i32
    %c0_i32_0 = arith.constant 0 : i32
    %c0_i32_1 = arith.constant 0 : i32
    return %c0_i32, %c0_i32_0 : i32, i32
  }
  func.func @transform_7(%arg0: i32) -> (i32, i32) {
    %c0_i32 = arith.constant 0 : i32
    %c0_i32_0 = arith.constant 0 : i32
    %c0_i32_1 = arith.constant 0 : i32
    return %c0_i32, %c0_i32_0 : i32, i32
  }
  func.func @transform_8(%arg0: i32) -> (i32, i32) {
    %c0_i32 = arith.constant 0 : i32
    %c0_i32_0 = arith.constant 0 : i32
    %c0_i32_1 = arith.constant 0 : i32
    return %c0_i32, %c0_i32_0 : i32, i32
  }
  func.func @transform_9(%arg0: i32) -> (i32, i32) {
    %c0_i32 = arith.constant 0 : i32
    %c0_i32_0 = arith.constant 0 : i32
    %c0_i32_1 = arith.constant 0 : i32
    return %c0_i32, %c0_i32_0 : i32, i32
  }
  func.func @transform_10(%arg0: i32) -> (i32, i32) {
    %c0_i32 = arith.constant 0 : i32
    %c0_i32_0 = arith.constant 0 : i32
    %c0_i32_1 = arith.constant 0 : i32
    return %c0_i32, %c0_i32_0 : i32, i32
  }
  func.func @transform_11(%arg0: i32) -> (i32, i32) {
    %c0_i32 = arith.constant 0 : i32
    %c0_i32_0 = arith.constant 0 : i32
    %c0_i32_1 = arith.constant 0 : i32
    return %c0_i32, %c0_i32_0 : i32, i32
  }
  func.func @transform_12(%arg0: i32) -> (i32, i32) {
    %c0_i32 = arith.constant 0 : i32
    %c0_i32_0 = arith.constant 0 : i32
    %c0_i32_1 = arith.constant 0 : i32
    return %c0_i32, %c0_i32_0 : i32, i32
  }
  func.func @transform_13(%arg0: i32) -> (i32, i32) {
    %c0_i32 = arith.constant 0 : i32
    %c0_i32_0 = arith.constant 0 : i32
    %c0_i32_1 = arith.constant 0 : i32
    return %c0_i32, %c0_i32_0 : i32, i32
  }
  func.func @transform_14(%arg0: i32) -> (i32, i32) {
    %c0_i32 = arith.constant 0 : i32
    %c0_i32_0 = arith.constant 0 : i32
    %c0_i32_1 = arith.constant 0 : i32
    return %c0_i32, %c0_i32_0 : i32, i32
  }
  func.func @transform_15(%arg0: i32) -> (i32, i32, i32) {
    %c0_i32 = arith.constant 0 : i32
    %c0_i32_0 = arith.constant 0 : i32
    %c0_i32_1 = arith.constant 0 : i32
    %c0_i32_2 = arith.constant 0 : i32
    return %c0_i32, %c0_i32_0, %c0_i32_1 : i32, i32, i32
  }
  func.func @transform_16(%arg0: i32) -> (i32, i32, i32) {
    %c0_i32 = arith.constant 0 : i32
    %c0_i32_0 = arith.constant 0 : i32
    %c0_i32_1 = arith.constant 0 : i32
    %c0_i32_2 = arith.constant 0 : i32
    return %c0_i32, %c0_i32_0, %c0_i32_1 : i32, i32, i32
  }
}

</mosaic_0001>

<bundles_post_ra>
// kernel: tpu_custom_call.1
= control target key start
LH: loop header
LB: loop body
LE: loop exit
PB: predicated region body
PF: predicated region fallthrough
CT: control target
= control target key end

     0   :  { %s10756_s0 = inlined_call_operand.hbm [shape: f32[8,16,32], index: 0, kind: input, shape index: {}]   ;;  %s10757_s1 = inlined_call_operand.hbm [shape: f32[7,8,16], index: 1, kind: input, shape index: {}]   ;;  %s10758_s2 = inlined_call_operand.vmem [shape: f32[7,8,1], index: 2, kind: input, shape index: {}]   ;;  %s10759_s3 = inlined_call_operand.hbm [shape: f32[32,64], index: 3, kind: input, shape index: {}]   ;;  %s10760_s4 = inlined_call_operand.vmem [shape: f32[1,64], index: 4, kind: input, shape index: {}]   ;;  %s10761_s5 = inlined_call_operand.hbm [shape: f32[32,32], index: 5, kind: input, shape index: {}]   ;;  %s10762_s6 = inlined_call_operand.vmem [shape: f32[1,32], index: 6, kind: input, shape index: {}]   ;;  %s10763_s7 = inlined_call_operand.vmem [shape: f32[1,32], index: 7, kind: input, shape index: {}]   ;;  %s10764_s8 = inlined_call_operand.vmem [shape: f32[1,32], index: 8, kind: input, shape index: {}]   ;;  %s10765_s9 = inlined_call_operand.vmem [shape: f32[32,192], index: 9, kind: input, shape index: {}]   ;;  %s10766_s10 = inlined_call_operand.hbm [shape: f32[16,128], index: 10, kind: input, shape index: {}]   ;;  %s10767_s11 = inlined_call_operand.hbm [shape: f32[32,128], index: 11, kind: input, shape index: {}]   ;;  %s10768_s12 = inlined_call_operand.vmem [shape: f32[1,128], index: 12, kind: input, shape index: {}]   ;;  %s10769_s13 = inlined_call_operand.hbm [shape: f32[32,128], index: 13, kind: input, shape index: {}]   ;;  %s10770_s14 = inlined_call_operand.vmem [shape: f32[1,128], index: 14, kind: input, shape index: {}]   ;;  %s10771_s15 = inlined_call_operand.hbm [shape: f32[7,8,128], index: 15, kind: output, shape index: {0}]   ;;  %s10772_s16 = inlined_call_operand.hbm [shape: f32[7,8,16], index: 16, kind: output, shape index: {1}]  }
   0x1   :  { %10865 = sst [smem:[#allocation116_spill]] %s10756_s0 }
   0x2   :  { %22 = vsyncpa [#allocation4], 0 }
   0x3   :  { %23 = vsyncpa [#allocation7], 0 }
   0x4   :  { %24 = vsyncpa [#allocation10], 0 }
   0x5   :  { %25 = vsyncpa [#allocation13], 0 }
   0x6   :  { %26 = vsyncpa [#allocation5], 0 }
   0x7   :  { %27 = vsyncpa [#allocation17], 0  ;;  %s45_s23 = sshll.u32 %s10757_s1, 4  ;;  %s7380_s24 = smov [#allocation6]   ;;  %s46_s23 = int_to_ptr.hbm [resolvable:$true] %s45_s23 }
   0x8   :  { %s47_s25 = sshll.u32 %s7380_s24, 4  ;;  %s75_s28 = sshll.u32 %s10761_s5, 4  ;;  %s48_s25 = int_to_ptr.vmem [resolvable:$true] %s47_s25  ;;  %s76_s28 = int_to_ptr.hbm [resolvable:$true] %s75_s28 }
   0x9   :  { %s7381_s29 = smov 128   ;;  %s7382_s30 = smov 8  }
   0xa   :  { %53 = dma.hbm_to_vmem [thread:$0]  %s46_s23, 896, %s48_s25, [#allocation7], %s7381_s29, %s7381_s29, %s7382_s30  }
   0xb   :  { %s7383_s0 = smov [#allocation9]   ;;  %s109_s1 = sshll.u32 %s10767_s11, 4  ;;  %s110_s1 = int_to_ptr.hbm [resolvable:$true] %s109_s1 }
   0xc   :  { %s77_s17 = sshll.u32 %s7383_s0, 4  ;;  %s10866_s21 = sld [smem:[#allocation116_spill]]  ;;  %s78_s17 = int_to_ptr.vmem [resolvable:$true] %s77_s17 }
   0xd   :  { %83 = dma.hbm_to_vmem [thread:$0]  %s76_s28, 512, %s78_s17, [#allocation10], %s7381_s29, %s7381_s29, %s7382_s30  }
   0xe   :  { %s7384_s24 = smov [#allocation12]   ;;  %s7385_s23 = smov [#allocation3]  }
   0xf   :  { %s111_s26 = sshll.u32 %s7384_s24, 4  ;;  %s34_s11 = sshll.u32 %s7385_s23, 4  ;;  %s112_s26 = int_to_ptr.vmem [resolvable:$true] %s111_s26  ;;  %s35_s11 = int_to_ptr.vmem [resolvable:$true] %s34_s11 }
  0x10   :  { %117 = dma.hbm_to_vmem [thread:$0]  %s110_s1, 512, %s112_s26, [#allocation13], %s7381_s29, %s7381_s29, %s7382_s30  }
  0x11   :  { %s60_s0 = sshll.u32 %s10759_s3, 4  ;;  %s96_s18 = sshll.u32 %s10766_s10, 4  ;;  %s61_s0 = int_to_ptr.hbm [resolvable:$true] %s60_s0  ;;  %s97_s18 = int_to_ptr.hbm [resolvable:$true] %s96_s18 }
  0x12   :  { %s32_s22 = sshll.u32 %s10866_s21, 4  ;;  %s7386_s19 = smov [#allocation8]   ;;  %s33_s22 = int_to_ptr.hbm [resolvable:$true] %s32_s22 }
  0x13   :  { %40 = dma.hbm_to_vmem [thread:$0]  %s33_s22, 2048, %s35_s11, [#allocation4], %s7381_s29, %s7381_s29, %s7382_s30  }
  0x14   :  { %s62_s5 = sshll.u32 %s7386_s19, 4  ;;  %s7387_s1 = smov [#allocation11]   ;;  %s63_s5 = int_to_ptr.vmem [resolvable:$true] %s62_s5 }
  0x15   :  { %68 = dma.hbm_to_vmem [thread:$0]  %s61_s0, 512, %s63_s5, [#allocation7], %s7381_s29, %s7381_s29, %s7382_s30  }
  0x16   :  { %s98_s3 = sshll.u32 %s7387_s1, 4  ;;  %s124_s24 = sshll.u32 %s10769_s13, 4  ;;  %s99_s3 = int_to_ptr.vmem [resolvable:$true] %s98_s3  ;;  %s125_s24 = int_to_ptr.hbm [resolvable:$true] %s124_s24 }
  0x17   :  { %104 = dma.hbm_to_vmem [thread:$0]  %s97_s18, 256, %s99_s3, [#allocation10], %s7381_s29, %s7381_s29, %s7382_s30  }
  0x18   :  { %s7388_s10 = smov [#allocation14]  }
  0x19   :  { %s126_s22 = sshll.u32 %s7388_s10, 4  ;;  %s127_s22 = int_to_ptr.vmem [resolvable:$true] %s126_s22 }
  0x1a   :  { %132 = dma.hbm_to_vmem [thread:$0]  %s125_s24, 512, %s127_s22, [#allocation13], %s7381_s29, %s7381_s29, %s7382_s30  }
  0x1b   :  { %7368 = dma.done.wait [#allocation4], 2048  }
  0x1c   :  { %7369 = vsyncadd [#allocation4], 4294965248 }
  0x1d   :  { %7370 = dma.done.wait [#allocation7], 1408  }
  0x1e   :  { %7371 = vsyncadd [#allocation7], 4294965888 }
  0x1f   :  { %7372 = dma.done.wait [#allocation10], 768  }
  0x20   :  { %7373 = vsyncadd [#allocation10], 4294966528 }
  0x21   :  { %7374 = dma.done.wait [#allocation13], 1024  }
  0x22   :  { %7375 = vsyncadd [#allocation13], 4294966272  ;;  %vm179_vm0 = vcmask 261120   ;;  %v270_v0 = vld [vmem:[#allocation8 + $0x18] sm:$0xff]  ;;  %v269_v1 = vld [vmem:[#allocation8 + $0x10] sm:$0xff]  ;;  %v7389_v11 = vmov 16.0  }
  0x23   :  { %311 = vmatpush.msra.mxu3 %v270_v0  ;;  %v268_v2 = vld [vmem:[#allocation8 + $0x8] sm:$0xff]  ;;  %v7525_v4 = vld [vmem:[#allocation3 + $0x8] sm:$0xff]  ;;  %v267_v5 = vld [vmem:[#allocation8] sm:$0xff]  ;;  %6634 = vrcp.f32 %v7389_v11  ;;  %vm283_vm2 = vcmask 1041409   ;;  %vm285_vm3 = vcmask 1042434   ;;  %vm287_vm4 = vcmask 1043459  }
  0x24   :  { %v7523_v3 = vld [vmem:[#allocation3] sm:$0xff]  ;;  %v7527_v6 = vld [vmem:[#allocation3 + $0x10] sm:$0xff]  ;;  %v7529_v7 = vld [vmem:[#allocation3 + $0x18] sm:$0xff]  ;;  %v181_v10 = vsel %vm179_vm0, %v7525_v4, 0.0  ;;  %vm289_vm5 = vcmask 1044484   ;;  %vm291_vm6 = vcmask 1045509  }
  0x25   :  { %v7531_v8 = vld [vmem:[#allocation3 + $0x20] sm:$0xff]  ;;  %v180_v9 = vsel %vm179_vm0, %v7523_v3, 0.0  ;;  %312 = vmatpush.msra.mxu3 %v269_v1  ;;  %v7537_v12 = vld [vmem:[#allocation3 + $0x28] sm:$0xff]  ;;  %v7539_v13 = vld [vmem:[#allocation3 + $0x30] sm:$0xff]  ;;  %v189_v16 = vsel %vm179_vm0, %v7527_v6, 0.0  ;;  %v190_v17 = vsel %vm179_vm0, %v7529_v7, 0.0 }
  0x26   :  { %v7541_v14 = vld [vmem:[#allocation3 + $0x38] sm:$0xff]  ;;  %v182_v15 = vadd.f32 %v181_v10, %v180_v9  ;;  %v198_v18 = vsel %vm179_vm0, %v7531_v8, 0.0  ;;  %v7549_v19 = vld [vmem:[#allocation3 + $0x40] sm:$0xff]  ;;  %v7551_v20 = vld [vmem:[#allocation3 + $0x48] sm:$0xff]  ;;  %v191_v22 = vadd.f32 %v190_v17, %v189_v16  ;;  %v199_v23 = vsel %vm179_vm0, %v7537_v12, 0.0  ;;  %s7391_s25 = smov 32  }
  0x27   :  { %v7553_v21 = vld [vmem:[#allocation3 + $0x50] sm:$0xff]  ;;  %v207_v24 = vsel %vm179_vm0, %v7539_v13, 0.0  ;;  %v208_v25 = vsel %vm179_vm0, %v7541_v14, 0.0  ;;  %313 = vmatpush.msra.mxu3 %v268_v2  ;;  %v7561_v26 = vld [vmem:[#allocation3 + $0x58] sm:$0xff]  ;;  %v7563_v27 = vld [vmem:[#allocation3 + $0x60] sm:$0xff]  ;;  %v200_v30 = vadd.f32 %v199_v23, %v198_v18  ;;  %v216_v32 = vsel %vm179_vm0, %v7549_v19, 0.0 }
  0x28   :  { %v7565_v28 = vld [vmem:[#allocation3 + $0x68] sm:$0xff]  ;;  %v183_v29 = vrot.slane %v182_v15, 4  ;;  %v209_v31 = vadd.f32 %v208_v25, %v207_v24  ;;  %v192_v33 = vrot.slane %v191_v22, 4  ;;  %v217_v34 = vsel %vm179_vm0, %v7551_v20, 0.0  ;;  %v7575_v37 = vld [vmem:[#allocation3 + $0x70] sm:$0xff]  ;;  %v178_v45 = vld [vmem:[#allocation3 + $0x78] sm:$0xff] }
  0x29   :  { %v225_v35 = vsel %vm179_vm0, %v7553_v21, 0.0  ;;  %v226_v36 = vsel %vm179_vm0, %v7561_v26, 0.0  ;;  %314 = vmatpush.msra.mxu3 %v267_v5  ;;  %v201_v39 = vrot.slane %v200_v30, 4  ;;  %v218_v41 = vadd.f32 %v217_v34, %v216_v32  ;;  %v322_v42 = vld [vmem:[#allocation9 + $0x18] sm:$0xff]  ;;  %v321_v43 = vld [vmem:[#allocation9 + $0x10] sm:$0xff]  ;;  %v7577_v44 = vpop.eup %6634  ;;  %v320_v50 = vld [vmem:[#allocation9 + $0x8] sm:$0xff] }
  0x2a   :  { %v184_v38 = vadd.f32 %v183_v29, %v182_v15  ;;  %v210_v40 = vrot.slane %v209_v31, 4  ;;  %v193_v46 = vadd.f32 %v192_v33, %v191_v22  ;;  %v227_v47 = vadd.f32 %v226_v36, %v225_v35  ;;  %6601 = vmatpush.msra.mxu1 %v322_v42  ;;  %383 = vmatpush.msra.mxu0 %v322_v42  ;;  %v319_v59 = vld [vmem:[#allocation9] sm:$0xff]  ;;  %s7392_s17 = smov 96   ;;  %s7393_s5 = smov 64  }
  0x2b   :  { %v234_v48 = vsel %vm179_vm0, %v7563_v27, 0.0  ;;  %v235_v49 = vsel %vm179_vm0, %v7565_v28, 0.0  ;;  %v202_v52 = vadd.f32 %v201_v39, %v200_v30  ;;  %v219_v54 = vrot.slane %v218_v41, 4  ;;  %6602 = vmatpush.msra.mxu2 %v322_v42  ;;  %s6508_s1 = sshll.u32 %s10772_s16, 4  ;;  %s7395_s16 = smov [#allocation15]   ;;  %s6509_s1 = int_to_ptr.hbm [resolvable:$true] %s6508_s1 }
  0x2c   :  { %v185_v51 = vrot.slane %v184_v38, 2  ;;  %v211_v53 = vadd.f32 %v210_v40, %v209_v31  ;;  %v194_v55 = vrot.slane %v193_v46, 2  ;;  %v228_v56 = vrot.slane %v227_v47, 4  ;;  %6603 = vmatpush.msra.mxu1 %v321_v43  ;;  %384 = vmatpush.msra.mxu0 %v321_v43  ;;  %s6493_s3 = sshll.u32 %s7395_s16, 4  ;;  %s6495_s24 = sshll.u32 %s10771_s15, 4  ;;  %s6494_s3 = int_to_ptr.vmem [resolvable:$true] %s6493_s3  ;;  %s6496_s24 = int_to_ptr.hbm [resolvable:$true] %s6495_s24 }
  0x2d   :  { %v236_v57 = vadd.f32 %v235_v49, %v234_v48  ;;  %v243_v58 = vsel %vm179_vm0, %v7575_v37, 0.0  ;;  %v203_v61 = vrot.slane %v202_v52, 2  ;;  %v220_v63 = vadd.f32 %v219_v54, %v218_v41  ;;  %6604 = vmatpush.msra.mxu2 %v321_v43 }
  0x2e   :  { %v186_v60 = vadd.f32 %v185_v51, %v184_v38  ;;  %v212_v62 = vrot.slane %v211_v53, 2  ;;  %v195_v0 = vadd.f32 %v194_v55, %v193_v46  ;;  %v229_v1 = vadd.f32 %v228_v56, %v227_v47  ;;  %6605 = vmatpush.msra.mxu1 %v320_v50  ;;  %385 = vmatpush.msra.mxu0 %v320_v50 }
  0x2f   :  { %v237_v2 = vrot.slane %v236_v57, 4  ;;  %v244_v5 = vsel %vm179_vm0, %v178_v45, 0.0  ;;  %v204_v9 = vadd.f32 %v203_v61, %v202_v52  ;;  %v221_v11 = vrot.slane %v220_v63, 2  ;;  %6606 = vmatpush.msra.mxu2 %v320_v50 }
  0x30   :  { %v213_v10 = vadd.f32 %v212_v62, %v211_v53  ;;  %v253_v15 = vmul.f32 16.0, %v7577_v44  ;;  %v230_v16 = vrot.slane %v229_v1, 2  ;;  %v245_v18 = vadd.f32 %v244_v5, %v243_v58  ;;  %6607 = vmatpush.msra.mxu1 %v319_v59  ;;  %386 = vmatpush.msra.mxu0 %v319_v59  ;;  %v517_v5 = vld [vmem:[%s10765_s9 + $0x8] sm:$0xff] }
  0x31   :  { %v238_v17 = vadd.f32 %v237_v2, %v236_v57  ;;  %v187_v22 = vrot.slane %v186_v60, 1  ;;  %v196_v23 = vrot.slane %v195_v0, 1  ;;  %v222_v24 = vadd.f32 %v221_v11, %v220_v63  ;;  %6532 = vmatmul.msk.f32.vlgmr.msra.gmra.mxu1 %vm179_vm0, %v7527_v6  ;;  %6530 = vmatmul.msk.f32.vlgmr.msra.gmra.mxu0 %vm179_vm0, %v7523_v3  ;;  %v520_v2 = vld [vmem:[%s10765_s9 + $0x20] sm:$0xff] }
  0x32   :  { %v205_v25 = vrot.slane %v204_v9, 1  ;;  %v231_v29 = vadd.f32 %v230_v16, %v229_v1  ;;  %v246_v31 = vrot.slane %v245_v18, 4  ;;  %6608 = vmatpush.msra.mxu2 %v319_v59  ;;  %v214_v32 = vrot.slane %v213_v10, 1  ;;  %v523_v1 = vld [vmem:[%s10765_s9 + $0x38] sm:$0xff] }
  0x33   :  { %v239_v30 = vrot.slane %v238_v17, 2  ;;  %v223_v33 = vrot.slane %v222_v24, 1  ;;  %v254_v34 = vsub.f32 1.0, %v253_v15  ;;  %6545 = vmatmul.msk.f32.vlgmr.msra.gmra.mxu2 %vm179_vm0, %v178_v45  ;;  %v188_v39 = vadd.f32 %v187_v22, %v186_v60  ;;  %571 = vmatpush.msrb.mxu0 %v523_v1 }
  0x34   :  { %v232_v35 = vrot.slane %v231_v29, 1  ;;  %v247_v38 = vadd.f32 %v246_v31, %v245_v18  ;;  %vm257_vm1 = vweird.f32 %v7577_v44  ;;  %v197_v6 = vadd.f32 %v196_v23, %v195_v0 }
  0x35   :  { %v240_v36 = vadd.f32 %v239_v30, %v238_v17  ;;  %v255_v40 = vmul.f32 %v7577_v44, %v254_v34  ;;  %v206_v3 = vadd.f32 %v205_v25, %v204_v9  ;;  %v215_v43 = vadd.f32 %v214_v32, %v213_v10 }
  0x36   :  { %v248_v42 = vrot.slane %v247_v38, 2  ;;  %v224_v46 = vadd.f32 %v223_v33, %v222_v24  ;;  %v233_v48 = vadd.f32 %v232_v35, %v231_v29  ;;  %vm293_vm7 = vcmask 1046534   ;;  %v6629_v29 = vld [vmem:[%s10763_s7] ss:$0 sm:$0xff] }
  0x37   :  { %v241_v41 = vrot.slane %v240_v36, 1  ;;  %v256_v47 = vadd.f32 %v7577_v44, %v255_v40  ;;  %vm295_vm8 = vcmask 1047559   ;;  %vm449_vm9 = vcmask 130048  }
  0x38   :  { %v249_v49 = vadd.f32 %v248_v42, %v247_v38  ;;  %v7711_v38 = vld [vmem:[%s10762_s6] ss:$0 sm:$0xff]  ;;  %vm752_vm10 = vcmask 130112  }
  0x39   :  { %v242_v50 = vadd.f32 %v241_v41, %v240_v36  ;;  %v258_v45 = vsel %vm257_vm1, %v7577_v44, %v256_v47  ;;  %6533 = vmatmul.msk.f32.gmra.mxu1 %vm179_vm0, %v7529_v7  ;;  %6531 = vmatmul.msk.f32.gmra.mxu0 %vm179_vm0, %v7525_v4 }
  0x3a   :  { %v250_v51 = vrot.slane %v249_v49, 1  ;;  %v259_v52 = vmul.f32 %v258_v45, %v188_v39  ;;  %v260_v53 = vmul.f32 %v258_v45, %v197_v6  ;;  %v261_v54 = vmul.f32 %v258_v45, %v206_v3 }
  0x3b   :  { %v262_v55 = vmul.f32 %v258_v45, %v215_v43  ;;  %v263_v56 = vmul.f32 %v258_v45, %v224_v46  ;;  %v264_v58 = vmul.f32 %v258_v45, %v233_v48  ;;  %v265_v44 = vmul.f32 %v258_v45, %v242_v50 }
  0x3c   :  { %v251_v57 = vadd.f32 %v250_v51, %v249_v49  ;;  %v284_v59 = vsel %vm283_vm2, %v260_v53, %v259_v52 }
  0x3d   :  { %v286_v60 = vsel %vm285_vm3, %v261_v54, %v284_v59 }
  0x3e   :  { %v266_v7 = vmul.f32 %v258_v45, %v251_v57  ;;  %v288_v61 = vsel %vm287_vm4, %v262_v55, %v286_v60 }
  0x3f   :  { %v290_v4 = vsel %vm289_vm5, %v263_v56, %v288_v61 }
  0x40   :  { %v292_v62 = vsel %vm291_vm6, %v264_v58, %v290_v4 }
  0x41   :  { %v294_v63 = vsel %vm293_vm7, %v265_v44, %v292_v62  ;;  %6534 = vmatmul.msk.f32.gmra.mxu1 %vm179_vm0, %v7531_v8  ;;  %v521_v8 = vld [vmem:[%s10765_s9 + $0x28] sm:$0xff] }
  0x42   :  { %v296_v0 = vsel %vm295_vm8, %v266_v7, %v294_v63  ;;  %572 = vmatpush.msrb.mxu0 %v521_v8 }
  0x43   :  { %6529 = vmatmul.msk.f32.vlgmr.msra.gmra.mxu3 %vm179_vm0, %v296_v0 }
  0x49   :  { %6535 = vmatmul.msk.f32.gmra.mxu1 %vm179_vm0, %v7537_v12  ;;  %v519_v12 = vld [vmem:[%s10765_s9 + $0x18] sm:$0xff] }
  0x4a   :  { %573 = vmatpush.msrb.mxu0 %v519_v12 }
  0x4c   :  { %574 = vmatpush.msrb.mxu0 %v517_v5 }
  0x51   :  { %6536 = vmatmul.msk.f32.gmra.mxu1 %vm179_vm0, %v7539_v13  ;;  %v522_v13 = vld [vmem:[%s10765_s9 + $0x30] sm:$0xff] }
  0x52   :  { %551 = vmatpush.msrb.mxu3 %v522_v13 }
  0x54   :  { %552 = vmatpush.msrb.mxu3 %v520_v2 }
  0x59   :  { %6537 = vmatmul.msk.f32.gmra.mxu1 %vm179_vm0, %v7541_v14  ;;  %v444_v14 = vld [vmem:[#allocation11 + $0x8] sm:$0xff] }
  0x5a   :  { %485 = vmatpush.msrb.mxu2 %v444_v14 }
  0x61   :  { %6538 = vmatmul.msk.f32.gmra.mxu1 %vm179_vm0, %v7549_v19  ;;  %v443_v19 = vld [vmem:[#allocation11] sm:$0xff] }
  0x62   :  { %486 = vmatpush.msrb.mxu2 %v443_v19 }
  0x64   :  { %3129 = vmatpush.msra.mxu2 %v523_v1 }
  0x66   :  { %3130 = vmatpush.msra.mxu2 %v521_v8 }
  0x68   :  { %3131 = vmatpush.msra.mxu2 %v519_v12 }
  0x69   :  { %6539 = vmatmul.msk.f32.gmra.mxu1 %vm179_vm0, %v7551_v20  ;;  %v7651_v20 = vld [vmem:[%s10765_s9 + $0x10] sm:$0xff] }
  0x6a   :  { %553 = vmatpush.msrb.mxu3 %v7651_v20  ;;  %3132 = vmatpush.msra.mxu2 %v517_v5 }
  0x71   :  { %6540 = vmatmul.msk.f32.gmra.mxu1 %vm179_vm0, %v7553_v21  ;;  %v436_v21 = vld [vmem:[#allocation6] sm:$0xff] }
  0x72   :  { %6546 = vmatmul.msk.f32.vlgmr.msrb.gmra.mxu2 %vm449_vm9, %v436_v21 }
  0x73   :  { %3957 = vmatpush.msrb.mxu2 %v522_v13 }
  0x75   :  { %3958 = vmatpush.msrb.mxu2 %v520_v2 }
  0x77   :  { %3959 = vmatpush.msrb.mxu2 %v7651_v20 }
  0x79   :  { %6541 = vmatmul.msk.f32.gmra.mxu1 %vm179_vm0, %v7561_v26  ;;  %v7658_v26 = vld [vmem:[%s10765_s9] sm:$0xff] }
  0x7a   :  { %554 = vmatpush.msrb.mxu3 %v7658_v26  ;;  %3960 = vmatpush.msrb.mxu2 %v7658_v26 }
  0x81   :  { %6542 = vmatmul.msk.f32.gmra.mxu1 %vm179_vm0, %v7563_v27  ;;  %v6628_v27 = vld [vmem:[%s10760_s4] ss:$0 sm:$0xff] }
  0x89   :  { %6543 = vmatmul.msk.f32.gmra.mxu1 %vm179_vm0, %v7565_v28 }
  0x91   :  { %6544 = vmatmul.msk.f32.gmra.mxu1 %vm179_vm0, %v7575_v37 }
  0xae   :  { %v7672_v9 = vpop.f32.mrf.mxu1  ;;  %v7688_v23 = vpop.f32.mrf.mxu0 }
  0xb6   :  { %v7674_v10 = vpop.f32.mrf.mxu1  ;;  %v7692_v25 = vpop.f32.mrf.mxu0 }
  0xbe   :  { %v7676_v11 = vpop.f32.mrf.mxu1 }
  0xc6   :  { %v316_v28 = vpop.f32.mrf.mxu3  ;;  %v7678_v15 = vpop.f32.mrf.mxu1 }
  0xc7   :  { %v7666_v37 = vadd.f32 %v6628_v27, %v316_v28 }
  0xc9   :  { %6553 = vmatmul.msk.f32.vlgmr.msrb.gmra.mxu3 %vm179_vm0, %v7666_v37  ;;  %6554 = vmatmul.msk.f32.vlgmr.msrb.gmra.mxu0 %vm179_vm0, %v7666_v37 }
  0xce   :  { %v7680_v16 = vpop.f32.mrf.mxu1 }
  0xd6   :  { %v7682_v17 = vpop.f32.mrf.mxu1 }
  0xde   :  { %v7684_v18 = vpop.f32.mrf.mxu1 }
  0xe6   :  { %v7686_v22 = vpop.f32.mrf.mxu1 }
  0xee   :  { %v7690_v24 = vpop.f32.mrf.mxu1 }
  0xf6   :  { %v7697_v30 = vpop.f32.mrf.mxu1 }
  0xfe   :  { %v7721_v51 = vpop.f32.mrf.mxu1 }
 0x106   :  { %v7736_v13 = vpop.f32.mrf.mxu1 }
 0x146   :  { %v7699_v31 = vpop.f32.mrf.mxu0 }
 0x147   :  { %v7702_v32 = vadd.f32 %v6629_v29, %v7699_v31 }
 0x149   :  { %v616_v33 = vperm.slane %v7702_v32, 0  ;;  %v610_v34 = vrot.slane %v7702_v32, 2  ;;  %v609_v35 = vrot.slane %v7702_v32, 1  ;;  %v611_v6 = vrot.slane %v7702_v32, 3 }
 0x14a   :  { %v612_v47 = vrot.slane %v7702_v32, 4  ;;  %v613_v1 = vrot.slane %v7702_v32, 5  ;;  %v614_v29 = vrot.slane %v7702_v32, 6 }
 0x14b   :  { %v632_v36 = vadd.f32 %v616_v33, %v7688_v23  ;;  %v618_v39 = vperm.slane %v610_v34, 0  ;;  %v617_v40 = vperm.slane %v609_v35, 0  ;;  %v633_v43 = vadd.f32 %v616_v33, %v7692_v25 }
 0x14c   :  { %v619_v52 = vperm.slane %v611_v6, 0  ;;  %v620_v57 = vperm.slane %v612_v47, 0  ;;  %v621_v21 = vperm.slane %v613_v1, 0 }
 0x14d   :  { %v648_v3 = vmax.f32 %v632_v36, 0.0  ;;  %v636_v41 = vadd.f32 %v618_v39, %v7676_v11  ;;  %v634_v42 = vadd.f32 %v617_v40, %v7672_v9  ;;  %v637_v46 = vadd.f32 %v618_v39, %v7678_v15 }
 0x14e   :  { %v635_v45 = vadd.f32 %v617_v40, %v7674_v10  ;;  %v649_v56 = vmax.f32 %v633_v43, 0.0  ;;  %v638_v61 = vadd.f32 %v619_v52, %v7680_v16  ;;  %v640_v4 = vadd.f32 %v620_v57, %v7684_v18 }
 0x14f   :  { %v667_v48 = vmul.f32 %v7711_v38, %v648_v3  ;;  %v652_v49 = vmax.f32 %v636_v41, 0.0  ;;  %v650_v50 = vmax.f32 %v634_v42, 0.0  ;;  %v653_v44 = vmax.f32 %v637_v46, 0.0 }
 0x150   :  { %v651_v60 = vmax.f32 %v635_v45, 0.0  ;;  %v668_v7 = vmul.f32 %v7711_v38, %v649_v56  ;;  %v639_v0 = vadd.f32 %v619_v52, %v7682_v17  ;;  %v654_v12 = vmax.f32 %v638_v61, 0.0 }
 0x151   :  { %v683_v53 = vsel %vm179_vm0, %v667_v48, 0.0  ;;  %v671_v54 = vmul.f32 %v7711_v38, %v652_v49  ;;  %v669_v55 = vmul.f32 %v7711_v38, %v650_v50  ;;  %v672_v62 = vmul.f32 %v7711_v38, %v653_v44  ;;  %v7751_v48 = vpop.f32.mrf.mxu1  ;;  %v7762_v44 = vpop.f32.mrf.mxu2 }
 0x152   :  { %684 = vadd.xlane.f32.xlu0 %v683_v53  ;;  %v670_v63 = vmul.f32 %v7711_v38, %v651_v60  ;;  %v686_v8 = vsel %vm179_vm0, %v668_v7, 0.0  ;;  %v656_v14 = vmax.f32 %v640_v4, 0.0  ;;  %v655_v19 = vmax.f32 %v639_v0, 0.0 }
 0x153   :  { %v695_v58 = vsel %vm179_vm0, %v671_v54, 0.0  ;;  %v689_v59 = vsel %vm179_vm0, %v669_v55, 0.0  ;;  %v698_v2 = vsel %vm179_vm0, %v672_v62, 0.0  ;;  %v673_v27 = vmul.f32 %v7711_v38, %v654_v12 }
 0x154   :  { %696 = vadd.xlane.f32.xlu2 %v695_v58  ;;  %690 = vadd.xlane.f32.xlu1 %v689_v59  ;;  %v692_v5 = vsel %vm179_vm0, %v670_v63, 0.0  ;;  %v641_v28 = vadd.f32 %v620_v57, %v7686_v22  ;;  %v675_v33 = vmul.f32 %v7711_v38, %v656_v14  ;;  %v674_v34 = vmul.f32 %v7711_v38, %v655_v19 }
 0x155   :  { %v643_v35 = vadd.f32 %v621_v21, %v7697_v30  ;;  %v642_v36 = vadd.f32 %v621_v21, %v7690_v24  ;;  %v615_v39 = vrot.slane %v7702_v32, 7  ;;  %v701_v40 = vsel %vm179_vm0, %v673_v27, 0.0 }
 0x156   :  { %v657_v6 = vmax.f32 %v641_v28, 0.0  ;;  %v622_v3 = vperm.slane %v614_v29, 0  ;;  %v707_v41 = vsel %vm179_vm0, %v675_v33, 0.0  ;;  %v704_v42 = vsel %vm179_vm0, %v674_v34, 0.0 }
 0x157   :  { %v659_v43 = vmax.f32 %v643_v35, 0.0  ;;  %v658_v46 = vmax.f32 %v642_v36, 0.0  ;;  %v623_v47 = vperm.slane %v615_v39, 0  ;;  %v747_v34 = vlaneseq }
 0x158   :  { %v676_v49 = vmul.f32 %v7711_v38, %v657_v6  ;;  %v644_v32 = vadd.f32 %v622_v3, %v7721_v51  ;;  %v645_v53 = vadd.f32 %v622_v3, %v7736_v13 }
 0x159   :  { %v678_v50 = vmul.f32 %v7711_v38, %v659_v43  ;;  %v677_v45 = vmul.f32 %v7711_v38, %v658_v46  ;;  %v646_v52 = vadd.f32 %v623_v47, %v7751_v48  ;;  %v647_v7 = vadd.f32 %v623_v47, %v7762_v44 }
 0x15a   :  { %687 = vadd.xlane.f32.xlu0 %v686_v8  ;;  %v710_v54 = vsel %vm179_vm0, %v676_v49, 0.0  ;;  %v660_v55 = vmax.f32 %v644_v32, 0.0  ;;  %v661_v59 = vmax.f32 %v645_v53, 0.0 }
 0x15b   :  { %v716_v56 = vsel %vm179_vm0, %v678_v50, 0.0  ;;  %v713_v57 = vsel %vm179_vm0, %v677_v45, 0.0  ;;  %v662_v58 = vmax.f32 %v646_v52, 0.0  ;;  %v663_v63 = vmax.f32 %v647_v7, 0.0 }
 0x15c   :  { %699 = vadd.xlane.f32.xlu2 %v698_v2  ;;  %693 = vadd.xlane.f32.xlu1 %v692_v5  ;;  %v679_v60 = vmul.f32 %v7711_v38, %v660_v55  ;;  %v680_v4 = vmul.f32 %v7711_v38, %v661_v59 }
 0x15d   :  { %v681_v61 = vmul.f32 %v7711_v38, %v662_v58  ;;  %v682_v8 = vmul.f32 %v7711_v38, %v663_v63  ;;  %v7785_v38 = vand.u32 127, %v747_v34 }
 0x15e   :  { %v719_v62 = vsel %vm179_vm0, %v679_v60, 0.0  ;;  %v722_v1 = vsel %vm179_vm0, %v680_v4, 0.0 }
 0x15f   :  { %v725_v0 = vsel %vm179_vm0, %v681_v61, 0.0  ;;  %v728_v12 = vsel %vm179_vm0, %v682_v8, 0.0  ;;  %v7790_v36 = vadd.s32 4294967288, %v7785_v38 }
 0x162   :  { %702 = vadd.xlane.f32.xlu0 %v701_v40 }
 0x164   :  { %708 = vadd.xlane.f32.xlu2 %v707_v41  ;;  %705 = vadd.xlane.f32.xlu1 %v704_v42 }
 0x16a   :  { %711 = vadd.xlane.f32.xlu0 %v710_v54 }
 0x16c   :  { %717 = vadd.xlane.f32.xlu2 %v716_v56  ;;  %714 = vadd.xlane.f32.xlu1 %v713_v57 }
 0x172   :  { %720 = vadd.xlane.f32.xlu0 %v719_v62 }
 0x174   :  { %726 = vadd.xlane.f32.xlu2 %v725_v0  ;;  %723 = vadd.xlane.f32.xlu1 %v722_v1 }
 0x17a   :  { %729 = vadd.xlane.f32.xlu0 %v728_v12 }
 0x1c5   :  { %v685_v14 = vpop.xlane.xlu0 %684 }
 0x1c6   :  { %v749_v43 = vperm.slane %v685_v14, %v7785_v38 }
 0x1c7   :  { %v7773_v2 = vpop.xlane.xlu2 %696  ;;  %v691_v5 = vpop.xlane.xlu1 %690 }
 0x1c8   :  { %v754_v3 = vperm.slane %v691_v5, %v7785_v38  ;;  %v757_v49 = vperm.slane %v7773_v2, %v7785_v38 }
 0x1cd   :  { %v688_v19 = vpop.xlane.xlu0 %687 }
 0x1ce   :  { %v751_v41 = vperm.slane %v688_v19, %v7790_v36 }
 0x1cf   :  { %v7775_v21 = vpop.xlane.xlu2 %699  ;;  %v7777_v27 = vpop.xlane.xlu1 %693 }
 0x1d0   :  { %v755_v40 = vperm.slane %v7777_v27, %v7790_v36  ;;  %v758_v42 = vperm.slane %v7775_v21, %v7790_v36  ;;  %v753_v45 = vsel %vm752_vm10, %v751_v41, %v749_v43 }
 0x1d2   :  { %v756_v46 = vsel %vm752_vm10, %v755_v40, %v754_v3  ;;  %v759_v53 = vsel %vm752_vm10, %v758_v42, %v757_v49 }
 0x1d3   :  { %v775_v54 = vsel %vm283_vm2, %v756_v46, %v753_v45 }
 0x1d4   :  { %v776_v61 = vsel %vm285_vm3, %v759_v53, %v775_v54 }
 0x1d5   :  { %v7779_v28 = vpop.xlane.xlu0 %702 }
 0x1d6   :  { %v760_v52 = vperm.slane %v7779_v28, %v7785_v38 }
 0x1d7   :  { %v7781_v29 = vpop.xlane.xlu2 %708  ;;  %v7783_v33 = vpop.xlane.xlu1 %705 }
 0x1d8   :  { %v761_v47 = vperm.slane %v7783_v33, %v7790_v36  ;;  %v763_v55 = vperm.slane %v7781_v29, %v7785_v38 }
 0x1da   :  { %v762_v57 = vsel %vm752_vm10, %v761_v47, %v760_v52  ;;  %v7390_v47 = vmov 0  }
 0x1db   :  { %v777_v4 = vsel %vm287_vm4, %v762_v57, %v776_v61  ;;  %6627 = vset.pattern.permute.xlu1 %v7390_v47  ;;  %6626 = vset.pattern.permute.xlu0 %v7390_v47 }
 0x1dc   :  { %6625 = vset.pattern.permute.xlu2 %v7390_v47 }
 0x1dd   :  { %v7787_v35 = vpop.xlane.xlu0 %711 }
 0x1de   :  { %v764_v32 = vperm.slane %v7787_v35, %v7790_v36 }
 0x1df   :  { %v7792_v39 = vpop.xlane.xlu1 %714  ;;  %v7796_v6 = vpop.xlane.xlu2 %717 }
 0x1e0   :  { %v767_v58 = vperm.slane %v7796_v6, %v7790_v36  ;;  %v766_v59 = vperm.slane %v7792_v39, %v7785_v38  ;;  %v765_v60 = vsel %vm752_vm10, %v764_v32, %v763_v55 }
 0x1e1   :  { %v778_v1 = vsel %vm289_vm5, %v765_v60, %v777_v4 }
 0x1e2   :  { %v768_v0 = vsel %vm752_vm10, %v767_v58, %v766_v59 }
 0x1e3   :  { %v779_v3 = vsel %vm291_vm6, %v768_v0, %v778_v1 }
 0x1e5   :  { %v7810_v50 = vpop.xlane.xlu0 %720 }
 0x1e6   :  { %v769_v62 = vperm.slane %v7810_v50, %v7785_v38 }
 0x1e7   :  { %v7819_v56 = vpop.xlane.xlu1 %723  ;;  %v7833_v63 = vpop.xlane.xlu2 %726 }
 0x1e8   :  { %v770_v7 = vperm.slane %v7819_v56, %v7790_v36  ;;  %v772_v34 = vperm.slane %v7833_v63, %v7785_v38 }
 0x1ea   :  { %v771_v12 = vsel %vm752_vm10, %v770_v7, %v769_v62 }
 0x1eb   :  { %v780_v42 = vsel %vm293_vm7, %v771_v12, %v779_v3 }
 0x1ed   :  { %v7837_v8 = vpop.xlane.xlu0 %729 }
 0x1ee   :  { %v773_v40 = vperm.slane %v7837_v8, %v7790_v36 }
 0x1f0   :  { %v774_v41 = vsel %vm752_vm10, %v773_v40, %v772_v34 }
 0x1f1   :  { %v781_v43 = vsel %vm295_vm8, %v774_v41, %v780_v42 }
 0x1f2   :  { %v783_v46 = vsel %vm449_vm9, %v781_v43, -inf }
 0x1f3   :  { %784 = vmax.xlane.f32.xlu1 %v783_v46 }
 0x266   :  { %v7849_v49 = vpop.xlane.xlu1 %784 }
 0x267   :  { %v788_v32 = vperm.slane %v7849_v49, 1  ;;  %v787_v45 = vperm.slane %v7849_v49, 0  ;;  %v789_v55 = vperm.slane %v7849_v49, 2  ;;  %v791_v57 = vperm.slane %v7849_v49, 4 }
 0x268   :  { %v794_v41 = vperm.slane %v7849_v49, 7 }
 0x269   :  { %v805_v52 = vsub.f32 %v691_v5, %v788_v32  ;;  %v804_v53 = vsub.f32 %v688_v19, %v787_v45  ;;  %v803_v54 = vsub.f32 %v685_v14, %v787_v45  ;;  %v808_v7 = vsub.f32 %v7775_v21, %v789_v55 }
 0x26a   :  { %v811_v61 = vsub.f32 %v7781_v29, %v791_v57  ;;  %v806_v4 = vsub.f32 %v7777_v27, %v788_v32  ;;  %v790_v5 = vperm.slane %v7849_v49, 3  ;;  %v792_v19 = vperm.slane %v7849_v49, 5 }
 0x26b   :  { %v823_v58 = vmul.f32 1.442695, %v805_v52  ;;  %v821_v59 = vmul.f32 1.442695, %v804_v53  ;;  %v819_v60 = vmul.f32 1.442695, %v803_v54  ;;  %v807_v34 = vsub.f32 %v7773_v2, %v789_v55 }
 0x26c   :  { %v829_v62 = vmul.f32 1.442695, %v808_v7  ;;  %v835_v14 = vmul.f32 1.442695, %v811_v61  ;;  %v825_v1 = vmul.f32 1.442695, %v806_v4  ;;  %v810_v27 = vsub.f32 %v7783_v33, %v790_v5 }
 0x26d   :  { %6636 = vpow2.f32 %v823_v58  ;;  %v814_v29 = vsub.f32 %v7796_v6, %v792_v19  ;;  %v827_v43 = vmul.f32 1.442695, %v807_v34  ;;  %v813_v6 = vsub.f32 %v7792_v39, %v792_v19 }
 0x26e   :  { %6638 = vpow2.f32 %v821_v59  ;;  %v833_v40 = vmul.f32 1.442695, %v810_v27  ;;  %v817_v2 = vsub.f32 %v7833_v63, %v794_v41  ;;  %v809_v47 = vsub.f32 %v7779_v28, %v790_v5 }
 0x26f   :  { %6640 = vpow2.f32 %v819_v60  ;;  %v841_v3 = vmul.f32 1.442695, %v814_v29  ;;  %v839_v32 = vmul.f32 1.442695, %v813_v6  ;;  %v793_v45 = vperm.slane %v7849_v49, 6 }
 0x270   :  { %6642 = vpow2.f32 %v829_v62  ;;  %v847_v52 = vmul.f32 1.442695, %v817_v2  ;;  %v831_v54 = vmul.f32 1.442695, %v809_v47  ;;  %v812_v28 = vsub.f32 %v7787_v35, %v791_v57 }
 0x271   :  { %6644 = vpow2.f32 %v835_v14  ;;  %v816_v63 = vsub.f32 %v7819_v56, %v793_v45  ;;  %v815_v56 = vsub.f32 %v7810_v50, %v793_v45  ;;  %v818_v4 = vsub.f32 %v7837_v8, %v794_v41 }
 0x272   :  { %6646 = vpow2.f32 %v825_v1  ;;  %v837_v59 = vmul.f32 1.442695, %v812_v28 }
 0x273   :  { %v7860_v0 = vpop.eup %6636  ;;  %6648 = vpow2.f32 %v833_v40  ;;  %v845_v49 = vmul.f32 1.442695, %v816_v63  ;;  %v843_v35 = vmul.f32 1.442695, %v815_v56  ;;  %v849_v62 = vmul.f32 1.442695, %v818_v4 }
 0x274   :  { %v7862_v12 = vpop.eup %6638  ;;  %874 = vperm.xlu1 %6627, %v7860_v0   ;;  %6650 = vpow2.f32 %v841_v3 }
 0x275   :  { %v7865_v21 = vpop.eup %6640  ;;  %871 = vperm.xlu0 %6626, %v7862_v12   ;;  %6652 = vpow2.f32 %v827_v43 }
 0x276   :  { %868 = vperm.xlu2 %6625, %v7865_v21   ;;  %v7873_v42 = vpop.eup %6642  ;;  %6654 = vpow2.f32 %v839_v32 }
 0x277   :  { %v7875_v46 = vpop.eup %6644  ;;  %6656 = vpow2.f32 %v847_v52 }
 0x278   :  { %v7878_v33 = vpop.eup %6646  ;;  %6658 = vpow2.f32 %v831_v54 }
 0x279   :  { %v7886_v53 = vpop.eup %6648  ;;  %6660 = vpow2.f32 %v845_v49 }
 0x27a   :  { %v7888_v55 = vpop.eup %6650  ;;  %6662 = vpow2.f32 %v837_v59 }
 0x27b   :  { %v7891_v39 = vpop.eup %6652  ;;  %6664 = vpow2.f32 %v843_v35 }
 0x27c   :  { %883 = vperm.xlu1 %6627, %v7873_v42   ;;  %v7897_v58 = vpop.eup %6654  ;;  %6666 = vpow2.f32 %v849_v62 }
 0x27d   :  { %892 = vperm.xlu0 %6626, %v7875_v46   ;;  %v7899_v60 = vpop.eup %6656 }
 0x27e   :  { %877 = vperm.xlu2 %6625, %v7878_v33   ;;  %v7902_v7 = vpop.eup %6658 }
 0x27f   :  { %v7907_v61 = vpop.eup %6660 }
 0x280   :  { %v7910_v57 = vpop.eup %6662 }
 0x281   :  { %v7914_v5 = vpop.eup %6664 }
 0x282   :  { %v7917_v14 = vpop.eup %6666 }
 0x284   :  { %889 = vperm.xlu1 %6627, %v7886_v53  }
 0x285   :  { %901 = vperm.xlu0 %6626, %v7888_v55  }
 0x286   :  { %880 = vperm.xlu2 %6625, %v7891_v39  }
 0x28c   :  { %898 = vperm.xlu1 %6627, %v7897_v58  }
 0x28d   :  { %910 = vperm.xlu0 %6626, %v7899_v60  }
 0x28e   :  { %886 = vperm.xlu2 %6625, %v7902_v7  }
 0x294   :  { %907 = vperm.xlu1 %6627, %v7907_v61  }
 0x296   :  { %895 = vperm.xlu2 %6625, %v7910_v57  }
 0x29e   :  { %904 = vperm.xlu2 %6625, %v7914_v5  }
 0x2a6   :  { %913 = vperm.xlu2 %6625, %v7917_v14  }
 0x2d0   :  { %v869_v50 = vpop.permute.xlu2 %868 }
 0x2d1   :  { %v915_v45 = vperm.slane %v869_v50, %v7785_v38 }
 0x2d8   :  { %v878_v19 = vpop.permute.xlu2 %877 }
 0x2d9   :  { %v919_v52 = vperm.slane %v878_v19, %v7790_v36 }
 0x2e0   :  { %v881_v1 = vpop.permute.xlu2 %880 }
 0x2e1   :  { %v921_v28 = vperm.slane %v881_v1, %v7785_v38 }
 0x2e6   :  { %v875_v27 = vpop.permute.xlu1 %874 }
 0x2e7   :  { %v872_v29 = vpop.permute.xlu0 %871  ;;  %v918_v2 = vperm.slane %v875_v27, %v7785_v38 }
 0x2e8   :  { %v887_v34 = vpop.permute.xlu2 %886  ;;  %v916_v47 = vperm.slane %v872_v29, %v7790_v36 }
 0x2e9   :  { %v920_v49 = vsel %vm752_vm10, %v919_v52, %v918_v2  ;;  %v924_v56 = vperm.slane %v887_v34, %v7785_v38 }
 0x2ea   :  { %v917_v59 = vsel %vm752_vm10, %v916_v47, %v915_v45 }
 0x2eb   :  { %v939_v50 = vsel %vm283_vm2, %v920_v49, %v917_v59 }
 0x2ee   :  { %v884_v40 = vpop.permute.xlu1 %883 }
 0x2ef   :  { %v893_v3 = vpop.permute.xlu0 %892  ;;  %v922_v32 = vperm.slane %v884_v40, %v7790_v36 }
 0x2f0   :  { %v896_v43 = vpop.permute.xlu2 %895  ;;  %v927_v19 = vperm.slane %v893_v3, %v7785_v38 }
 0x2f1   :  { %v923_v35 = vsel %vm752_vm10, %v922_v32, %v921_v28  ;;  %v928_v27 = vperm.slane %v896_v43, %v7790_v36 }
 0x2f2   :  { %v940_v40 = vsel %vm285_vm3, %v923_v35, %v939_v50 }
 0x2f3   :  { %v929_v52 = vsel %vm752_vm10, %v928_v27, %v927_v19 }
 0x2f6   :  { %v890_v8 = vpop.permute.xlu1 %889 }
 0x2f7   :  { %v902_v41 = vpop.permute.xlu0 %901  ;;  %v925_v54 = vperm.slane %v890_v8, %v7790_v36 }
 0x2f8   :  { %v905_v6 = vpop.permute.xlu2 %904  ;;  %v931_v8 = vperm.slane %v902_v41, %v7790_v36 }
 0x2f9   :  { %v926_v4 = vsel %vm752_vm10, %v925_v54, %v924_v56  ;;  %v933_v3 = vperm.slane %v905_v6, %v7785_v38 }
 0x2fa   :  { %v941_v34 = vsel %vm287_vm4, %v926_v4, %v940_v40 }
 0x2fb   :  { %v942_v54 = vsel %vm289_vm5, %v929_v52, %v941_v34 }
 0x2fe   :  { %v899_v63 = vpop.permute.xlu1 %898 }
 0x2ff   :  { %v930_v62 = vperm.slane %v899_v63, %v7785_v38  ;;  %v911_v29 = vpop.permute.xlu0 %910 }
 0x300   :  { %v914_v1 = vpop.permute.xlu2 %913  ;;  %v936_v47 = vperm.slane %v911_v29, %v7785_v38 }
 0x301   :  { %v932_v2 = vsel %vm752_vm10, %v931_v8, %v930_v62  ;;  %v937_v32 = vperm.slane %v914_v1, %v7790_v36 }
 0x302   :  { %v943_v41 = vsel %vm291_vm6, %v932_v2, %v942_v54 }
 0x303   :  { %v938_v28 = vsel %vm752_vm10, %v937_v32, %v936_v47 }
 0x306   :  { %v908_v45 = vpop.permute.xlu1 %907 }
 0x307   :  { %v934_v43 = vperm.slane %v908_v45, %v7790_v36 }
 0x309   :  { %v935_v63 = vsel %vm752_vm10, %v934_v43, %v933_v3 }
 0x30a   :  { %v944_v49 = vsel %vm293_vm7, %v935_v63, %v943_v41 }
 0x30b   :  { %v945_v59 = vsel %vm295_vm8, %v938_v28, %v944_v49  ;;  %v6958_v28 = vld [vmem:[#allocation3 + $0x10] sm:$0xff] }
 0x30c   :  { %v947_v56 = vsel %vm449_vm9, %v945_v59, 0.0  ;;  %v6959_v59 = vld [vmem:[#allocation3 + $0x20] sm:$0xff] }
 0x30d   :  { %948 = vadd.xlane.f32.xlu1 %v947_v56  ;;  %v6960_v56 = vld [vmem:[#allocation3 + $0x18] sm:$0xff] }
 0x380   :  { %v949_v35 = vpop.xlane.xlu1 %948 }
 0x381   :  { %6668 = vrcp.f32 %v949_v35 }
 0x387   :  { %v6669_v6 = vpop.eup %6668 }
 0x388   :  { %v957_v4 = vperm.slane %v6669_v6, 5  ;;  %v952_v62 = vperm.slane %v6669_v6, 0  ;;  %v953_v29 = vperm.slane %v6669_v6, 1 }
 0x38a   :  { %v7953_v50 = vmul.f32 %v7897_v58, %v957_v4  ;;  %v7956_v19 = vmul.f32 %v7862_v12, %v952_v62  ;;  %v7959_v27 = vmul.f32 %v7865_v21, %v952_v62  ;;  %v7965_v1 = vmul.f32 %v7878_v33, %v953_v29  ;;  %v6962_v62 = vld [vmem:[#allocation3 + $0x30] sm:$0xff] }
 0x38b   :  { %v7968_v40 = vmul.f32 %v7860_v0, %v953_v29  ;;  %v954_v12 = vperm.slane %v6669_v6, 2  ;;  %v955_v33 = vperm.slane %v6669_v6, 3 }
 0x38c   :  { %10867 = vst [vmem:[#allocation24_spill] sm:$0xff] %v7953_v50  ;;  %1036 = vperm.xlu1 %6627, %v7953_v50   ;;  %991 = vperm.xlu2 %6625, %v7956_v19  }
 0x38d   :  { %10868 = vst [vmem:[#allocation25_spill] sm:$0xff] %v7956_v19  ;;  %986 = vperm.xlu0 %6626, %v7959_v27   ;;  %v7973_v21 = vmul.f32 %v7873_v42, %v954_v12  ;;  %v7976_v58 = vmul.f32 %v7891_v39, %v954_v12  ;;  %v7981_v8 = vmul.f32 %v7886_v53, %v955_v33  ;;  %v956_v42 = vperm.slane %v6669_v6, 4  ;;  %v6963_v12 = vld [vmem:[#allocation3 + $0x28] sm:$0xff] }
 0x38e   :  { %10869 = vst [vmem:[#allocation26_spill] sm:$0xff] %v7959_v27  ;;  %v7984_v0 = vmul.f32 %v7902_v7, %v955_v33  ;;  %v958_v53 = vperm.slane %v6669_v6, 6  ;;  %v8000_v7 = vmul.f32 %v7888_v55, %v957_v4  ;;  %v6632_v55 = vld [vmem:[%s10764_s8] ss:$0 sm:$0xff] }
 0x38f   :  { %10870 = vst [vmem:[#allocation27_spill] sm:$0xff] %v7965_v1  ;;  %v7989_v34 = vmul.f32 %v7910_v57, %v956_v42  ;;  %v7992_v39 = vmul.f32 %v7875_v46, %v956_v42  ;;  %v959_v57 = vperm.slane %v6669_v6, 7  ;;  %v6961_v6 = vld [vmem:[#allocation3] sm:$0xff] }
 0x390   :  { %10871 = vst [vmem:[#allocation28_spill] sm:$0xff] %v7968_v40  ;;  %v7997_v2 = vmul.f32 %v7914_v5, %v958_v53  ;;  %v8008_v46 = vmul.f32 %v7907_v61, %v958_v53  ;;  %v6964_v53 = vld [vmem:[#allocation3 + $0x40] sm:$0xff] }
 0x391   :  { %10872 = vst [vmem:[#allocation29_spill] sm:$0xff] %v7973_v21  ;;  %v8005_v47 = vmul.f32 %v7899_v60, %v959_v57  ;;  %v8016_v5 = vmul.f32 %v7917_v14, %v959_v57 }
 0x392   :  { %10873 = vst [vmem:[#allocation30_spill] sm:$0xff] %v7976_v58 }
 0x393   :  { %10874 = vst [vmem:[#allocation31_spill] sm:$0xff] %v7981_v8 }
 0x394   :  { %1001 = vperm.xlu2 %6625, %v7965_v1   ;;  %10875 = vst [vmem:[#allocation32_spill] sm:$0xff] %v7984_v0 }
 0x395   :  { %996 = vperm.xlu0 %6626, %v7968_v40   ;;  %10876 = vst [vmem:[#allocation33_spill] sm:$0xff] %v7989_v34 }
 0x396   :  { %10877 = vst [vmem:[#allocation34_spill] sm:$0xff] %v7992_v39 }
 0x397   :  { %10878 = vst [vmem:[#allocation35_spill] sm:$0xff] %v7997_v2 }
 0x398   :  { %10879 = vst [vmem:[#allocation36_spill] sm:$0xff] %v8000_v7 }
 0x399   :  { %10880 = vst [vmem:[#allocation37_spill] sm:$0xff] %v8005_v47 }
 0x39a   :  { %10881 = vst [vmem:[#allocation38_spill] sm:$0xff] %v8008_v46 }
 0x39b   :  { %10882 = vst [vmem:[#allocation39_spill] sm:$0xff] %v8016_v5 }
 0x39c   :  { %1011 = vperm.xlu2 %6625, %v7973_v21  }
 0x39d   :  { %1006 = vperm.xlu0 %6626, %v7976_v58  }
 0x3a4   :  { %1021 = vperm.xlu2 %6625, %v7981_v8  }
 0x3a5   :  { %1016 = vperm.xlu0 %6626, %v7984_v0  }
 0x3ac   :  { %1031 = vperm.xlu2 %6625, %v7989_v34  }
 0x3ad   :  { %1026 = vperm.xlu0 %6626, %v7992_v39  }
 0x3b4   :  { %1046 = vperm.xlu2 %6625, %v7997_v2  }
 0x3b5   :  { %1041 = vperm.xlu0 %6626, %v8000_v7   ;;  %v6966_v7 = vld [vmem:[#allocation3 + $0x38] sm:$0xff] }
 0x3bc   :  { %1056 = vperm.xlu2 %6625, %v8005_v47  }
 0x3bd   :  { %1051 = vperm.xlu0 %6626, %v8008_v46  }
 0x3c4   :  { %585 = vrot.lane.b32.xlu2 %v6632_v55, %s7391_s25  ;;  %v6965_v55 = vld [vmem:[#allocation3 + $0x8] sm:$0xff] }
 0x3c5   :  { %1061 = vperm.xlu0 %6626, %v8016_v5  }
 0x3e6   :  { %v992_v60 = vpop.permute.xlu2 %991 }
 0x3e7   :  { %v1065_v47 = vmul.f32 %v6965_v55, %v992_v60 }
 0x3ee   :  { %v1002_v61 = vpop.permute.xlu2 %1001 }
 0x3ef   :  { %v1067_v35 = vmul.f32 %v6960_v56, %v1002_v61 }
 0x3f1   :  { %v1090_v61 = vsel %vm179_vm0, %v1067_v35, 0.0 }
 0x3f6   :  { %v1012_v52 = vpop.permute.xlu2 %1011 }
 0x3f7   :  { %v1069_v33 = vmul.f32 %v6963_v12, %v1012_v52 }
 0x3fe   :  { %v1022_v43 = vpop.permute.xlu2 %1021  ;;  %v1037_v42 = vpop.permute.xlu1 %1036 }
 0x3ff   :  { %v987_v32 = vpop.permute.xlu0 %986  ;;  %v1071_v46 = vmul.f32 %v6966_v7, %v1022_v43  ;;  %v1081_v43 = vsel %vm179_vm0, %v1065_v47, 0.0 }
 0x400   :  { %v1064_v4 = vmul.f32 %v6961_v6, %v987_v32  ;;  %v6968_v32 = vld [vmem:[#allocation3 + $0x50] sm:$0xff] }
 0x406   :  { %v1032_v63 = vpop.permute.xlu2 %1031 }
 0x407   :  { %v997_v45 = vpop.permute.xlu0 %996 }
 0x408   :  { %v1066_v49 = vmul.f32 %v6958_v28, %v997_v45  ;;  %v6967_v45 = vld [vmem:[#allocation3 + $0x48] sm:$0xff] }
 0x409   :  { %v1073_v28 = vmul.f32 %v6967_v45, %v1032_v63  ;;  %v1108_v63 = vsel %vm179_vm0, %v1071_v46, 0.0  ;;  %v6970_v45 = vld [vmem:[#allocation3 + $0x60] sm:$0xff] }
 0x40a   :  { %v1089_v50 = vsel %vm179_vm0, %v1066_v49, 0.0 }
 0x40b   :  { %v1091_v56 = vadd.f32 %v1090_v61, %v1089_v50 }
 0x40e   :  { %v1047_v12 = vpop.permute.xlu2 %1046 }
 0x40f   :  { %v1007_v3 = vpop.permute.xlu0 %1006  ;;  %v1076_v46 = vmul.f32 %v6970_v45, %v1047_v12 }
 0x410   :  { %v1068_v14 = vmul.f32 %v6959_v59, %v1007_v3  ;;  %v1074_v59 = vmul.f32 %v6968_v32, %v1037_v42 }
 0x412   :  { %v1098_v3 = vsel %vm179_vm0, %v1068_v14, 0.0  ;;  %v6969_v14 = vld [vmem:[#allocation3 + $0x58] sm:$0xff] }
 0x417   :  { %v1017_v54 = vpop.permute.xlu0 %1016 }
 0x418   :  { %v1070_v29 = vmul.f32 %v6962_v62, %v1017_v54  ;;  %v1080_v54 = vsel %vm179_vm0, %v1064_v4, 0.0  ;;  %v1117_v62 = vsel %vm179_vm0, %v1073_v28, 0.0  ;;  %v6971_v28 = vld [vmem:[#allocation3 + $0x68] sm:$0xff] }
 0x419   :  { %v1082_v35 = vadd.f32 %v1081_v43, %v1080_v54 }
 0x41a   :  { %v1107_v52 = vsel %vm179_vm0, %v1070_v29, 0.0  ;;  %v1125_v29 = vsel %vm179_vm0, %v1074_v59, 0.0  ;;  %v1134_v59 = vsel %vm179_vm0, %v1076_v46, 0.0 }
 0x41b   :  { %v1109_v4 = vadd.f32 %v1108_v63, %v1107_v52  ;;  %v1083_v55 = vrot.slane %v1082_v35, 4 }
 0x41d   :  { %v1110_v47 = vrot.slane %v1109_v4, 4  ;;  %v1084_v52 = vadd.f32 %v1083_v55, %v1082_v35 }
 0x41f   :  { %v1027_v41 = vpop.permute.xlu0 %1026  ;;  %v1111_v43 = vadd.f32 %v1110_v47, %v1109_v4  ;;  %v1085_v12 = vrot.slane %v1084_v52, 2  ;;  %v6973_v47 = vld [vmem:[#allocation3 + $0x78] sm:$0xff] }
 0x420   :  { %v1072_v57 = vmul.f32 %v6964_v53, %v1027_v41  ;;  %v1099_v41 = vsel %vm179_vm0, %v1069_v33, 0.0  ;;  %v1092_v33 = vrot.slane %v1091_v56, 4 }
 0x421   :  { %v1100_v49 = vadd.f32 %v1099_v41, %v1098_v3  ;;  %v1112_v45 = vrot.slane %v1111_v43, 2  ;;  %v1086_v46 = vadd.f32 %v1085_v12, %v1084_v52 }
 0x422   :  { %v1116_v60 = vsel %vm179_vm0, %v1072_v57, 0.0  ;;  %v1093_v61 = vadd.f32 %v1092_v33, %v1091_v56  ;;  %v6972_v33 = vld [vmem:[#allocation3 + $0x70] sm:$0xff] }
 0x423   :  { %v1118_v42 = vadd.f32 %v1117_v62, %v1116_v60  ;;  %v1101_v57 = vrot.slane %v1100_v49, 4 }
 0x425   :  { %v1119_v3 = vrot.slane %v1118_v42, 4  ;;  %v1102_v41 = vadd.f32 %v1101_v57, %v1100_v49 }
 0x427   :  { %v1042_v7 = vpop.permute.xlu0 %1041  ;;  %v1120_v60 = vadd.f32 %v1119_v3, %v1118_v42  ;;  %v1113_v3 = vadd.f32 %v1112_v45, %v1111_v43 }
 0x428   :  { %v1075_v6 = vmul.f32 %v6969_v14, %v1042_v7  ;;  %v1094_v14 = vrot.slane %v1093_v61, 2 }
 0x429   :  { %v1121_v49 = vrot.slane %v1120_v60, 2 }
 0x42a   :  { %v1126_v50 = vsel %vm179_vm0, %v1075_v6, 0.0  ;;  %v1057_v6 = vpop.permute.xlu2 %1056  ;;  %v1095_v57 = vadd.f32 %v1094_v14, %v1093_v61  ;;  %v1087_v61 = vrot.slane %v1086_v46, 1  ;;  %v1114_v14 = vrot.slane %v1113_v3, 1 }
 0x42b   :  { %v1127_v53 = vadd.f32 %v1126_v50, %v1125_v29  ;;  %v1103_v50 = vrot.slane %v1102_v41, 2  ;;  %v1078_v39 = vmul.f32 %v6972_v33, %v1057_v6 }
 0x42c   :  { %v1088_v12 = vadd.f32 %v1087_v61, %v1086_v46  ;;  %v1115_v45 = vadd.f32 %v1114_v14, %v1113_v3  ;;  %v528_v61 = vld [vmem:[#allocation12 + $0x8] sm:$0xff]  ;;  %v527_v14 = vld [vmem:[#allocation12] sm:$0xff] }
 0x42d   :  { %v1128_v32 = vrot.slane %v1127_v53, 4  ;;  %v1104_v55 = vadd.f32 %v1103_v50, %v1102_v41 }
 0x42f   :  { %v1052_v54 = vpop.permute.xlu0 %1051  ;;  %v1129_v62 = vadd.f32 %v1128_v32, %v1127_v53  ;;  %v1143_v53 = vsel %vm179_vm0, %v1078_v39, 0.0  ;;  %v1122_v32 = vadd.f32 %v1121_v49, %v1120_v60  ;;  %v1105_v6 = vrot.slane %v1104_v55, 1 }
 0x430   :  { %v1077_v7 = vmul.f32 %v6971_v28, %v1052_v54 }
 0x431   :  { %v1130_v54 = vrot.slane %v1129_v62, 2  ;;  %v1106_v52 = vadd.f32 %v1105_v6, %v1104_v55  ;;  %v530_v6 = vld [vmem:[#allocation12 + $0x18] sm:$0xff] }
 0x432   :  { %v1135_v63 = vsel %vm179_vm0, %v1077_v7, 0.0  ;;  %v8044_v3 = vpop.permute.xlu2 %585  ;;  %1190 = vmatpush.msra.mxu3 %v530_v6 }
 0x433   :  { %v1136_v29 = vadd.f32 %v1135_v63, %v1134_v59  ;;  %v1096_v59 = vrot.slane %v1095_v57, 1  ;;  %v1131_v63 = vadd.f32 %v1130_v54, %v1129_v62 }
 0x435   :  { %v1137_v56 = vrot.slane %v1136_v29, 4  ;;  %v1097_v41 = vadd.f32 %v1096_v59, %v1095_v57  ;;  %v1132_v50 = vrot.slane %v1131_v63, 1 }
 0x437   :  { %v1138_v35 = vadd.f32 %v1137_v56, %v1136_v29  ;;  %v1062_v4 = vpop.permute.xlu0 %1061  ;;  %v1123_v56 = vrot.slane %v1122_v32, 1  ;;  %v1133_v49 = vadd.f32 %v1132_v50, %v1131_v63  ;;  %v1160_v62 = vsel %vm283_vm2, %v1097_v41, %v1088_v12  ;;  %v8057_v41 = vld [vmem:[%s10765_s9 + $0x20] sm:$0xff] }
 0x438   :  { %v1079_v42 = vmul.f32 %v6973_v47, %v1062_v4 }
 0x439   :  { %v1139_v28 = vrot.slane %v1138_v35, 2  ;;  %v1124_v60 = vadd.f32 %v1123_v56, %v1122_v32  ;;  %v588_v32 = vadd.f32 %v8044_v3, %v7699_v31  ;;  %v8051_v56 = vld [vmem:[%s10765_s9 + $0x30] sm:$0xff] }
 0x43a   :  { %v1144_v7 = vsel %vm179_vm0, %v1079_v42, 0.0 }
 0x43b   :  { %v1145_v21 = vadd.f32 %v1144_v7, %v1143_v53  ;;  %v1140_v33 = vadd.f32 %v1139_v28, %v1138_v35  ;;  %v1161_v35 = vsel %vm285_vm3, %v1106_v52, %v1160_v62  ;;  %v6555_v7 = vmul.f32 -1.442695, %v588_v32  ;;  %v488_v62 = vpop.f32.mrf.mxu2 }
 0x43c   :  { %v1162_v28 = vsel %vm287_vm4, %v1115_v45, %v1161_v35 }
 0x43d   :  { %v1146_v29 = vrot.slane %v1145_v21, 4  ;;  %v1141_v43 = vrot.slane %v1140_v33, 1  ;;  %v1163_v57 = vsel %vm289_vm5, %v1124_v60, %v1162_v28  ;;  %6670 = vpow2.f32 %v6555_v7 }
 0x43f   :  { %v1147_v4 = vadd.f32 %v1146_v29, %v1145_v21  ;;  %v1142_v54 = vadd.f32 %v1141_v43, %v1140_v33  ;;  %v1164_v21 = vsel %vm291_vm6, %v1133_v49, %v1163_v57  ;;  %v529_v33 = vld [vmem:[#allocation12 + $0x10] sm:$0xff] }
 0x440   :  { %1191 = vmatpush.msra.mxu3 %v529_v33 }
 0x441   :  { %v1148_v39 = vrot.slane %v1147_v4, 2  ;;  %v1165_v55 = vsel %vm293_vm7, %v1142_v54, %v1164_v21  ;;  %v556_v54 = vpop.f32.mrf.mxu3 }
 0x442   :  { %1192 = vmatpush.msra.mxu3 %v528_v61 }
 0x443   :  { %v1149_v47 = vadd.f32 %v1148_v39, %v1147_v4  ;;  %v6671_v59 = vpop.eup %6670 }
 0x444   :  { %v592_v63 = vadd.f32 1.0, %v6671_v59  ;;  %1193 = vmatpush.msra.mxu3 %v527_v14 }
 0x445   :  { %v1150_v42 = vrot.slane %v1149_v47, 1 }
 0x446   :  { %6672 = vrcp.f32 %v592_v63  ;;  %1413 = vmatpush.msrb.mxu3 %v8051_v56  ;;  %v604_v43 = vand.u32 2147483648, %v592_v63  ;;  %vm598_vm12 = vweird.f32 %v592_v63  ;;  %v602_v12 = vand.u32 2147483647, %v592_v63 }
 0x447   :  { %v1151_v53 = vadd.f32 %v1150_v42, %v1149_v47 }
 0x448   :  { %1414 = vmatpush.msrb.mxu3 %v8057_v41  ;;  %v605_v39 = vor.u32 1.1754944e-38, %v604_v43  ;;  %vm603_vm14 = vcmp.eq.f32.partialorder %v602_v12, 8.507059e+37 }
 0x449   :  { %v1166_v46 = vsel %vm295_vm8, %v1151_v53, %v1165_v55 }
 0x44a   :  { %1167 = vrot.lane.b32.xlu1 %v1166_v46, %s7391_s25  ;;  %1415 = vmatpush.msrb.mxu3 %v7651_v20 }
 0x44c   :  { %v6673_v29 = vpop.eup %6672  ;;  %1416 = vmatpush.msrb.mxu3 %v7658_v26  ;;  %v6630_v26 = vld [vmem:[%s10768_s12] ss:$0 sm:$0xff] }
 0x44d   :  { %v594_v31 = vmul.f32 %v6673_v29, %v592_v63  ;;  %vm599_vm11 = vweird.f32 %v6673_v29  ;;  %v489_v35 = vadd.f32 %v6630_v26, %v488_v62  ;;  %v6977_v26 = vld [vmem:[%s10765_s9 + $0x28] sm:$0xff]  ;;  %v6978_v62 = vld [vmem:[%s10765_s9 + $0x18] sm:$0xff] }
 0x44e   :  { %vm600_vm13 = vmor %vm598_vm12, %vm599_vm11 }
 0x44f   :  { %v595_v50 = vsub.f32 1.0, %v594_v31  ;;  %v1172_v42 = vadd.f32 %v556_v54, %v489_v35  ;;  %v6979_v54 = vld [vmem:[%s10765_s9 + $0x8] sm:$0xff] }
 0x451   :  { %v596_v4 = vmul.f32 %v6673_v29, %v595_v50 }
 0x453   :  { %v597_v52 = vadd.f32 %v6673_v29, %v596_v4 }
 0x455   :  { %v601_v45 = vsel %vm600_vm13, %v6673_v29, %v597_v52 }
 0x456   :  { %v606_v60 = vsel %vm603_vm14, %v605_v39, %v601_v45  ;;  %v534_v39 = vld [vmem:[#allocation14 + $0x18] sm:$0xff] }
 0x457   :  { %1256 = vmatpush.msra.mxu0 %v534_v39 }
 0x4bc   :  { %v1168_v49 = vpop.permute.xlu1 %1167 }
 0x4bd   :  { %v1170_v47 = vmul.f32 %v1168_v49, %v606_v60  ;;  %v533_v60 = vld [vmem:[#allocation14 + $0x10] sm:$0xff]  ;;  %v437_v49 = vld [vmem:[#allocation6 + $0x8] sm:$0xff] }
 0x4be   :  { %6547 = vmatmul.msk.f32.gmra.mxu2 %vm449_vm9, %v437_v49  ;;  %1257 = vmatpush.msra.mxu0 %v533_v60 }
 0x4bf   :  { %1174 = vrot.lane.b32.xlu0 %v1170_v47, %s7392_s17  ;;  %v532_v47 = vld [vmem:[#allocation14 + $0x8] sm:$0xff] }
 0x4c0   :  { %1258 = vmatpush.msra.mxu0 %v532_v47 }
 0x531   :  { %v1175_v20 = vpop.permute.xlu0 %1174 }
 0x532   :  { %6556 = vmatmul.msk.f32.vlgmr.msra.gmra.mxu3 %vm179_vm0, %v1175_v20  ;;  %v531_v20 = vld [vmem:[#allocation14] sm:$0xff] }
 0x533   :  { %2038 = vmatpush.msra.mxu3 %v530_v6  ;;  %1259 = vmatpush.msra.mxu0 %v531_v20 }
 0x535   :  { %2039 = vmatpush.msra.mxu3 %v529_v33 }
 0x537   :  { %2040 = vmatpush.msra.mxu3 %v528_v61 }
 0x539   :  { %2041 = vmatpush.msra.mxu3 %v527_v14 }
 0x5b5   :  { %v1195_v28 = vpop.f32.mrf.mxu3 }
 0x5b6   :  { %v1198_v57 = vadd.f32 %v1195_v28, %v1172_v42 }
 0x5b8   :  { %6674 = vtanh.f32 %v1198_v57  ;;  %v6557_v21 = vmul.f32 -1.442695, %v1198_v57  ;;  %v6980_v57 = vld [vmem:[%s10765_s9 + $0x10] sm:$0xff] }
 0x5ba   :  { %6676 = vpow2.f32 %v6557_v21  ;;  %v6982_v21 = vld [vmem:[%s10763_s7] ss:$0 sm:$0xff] }
 0x5be   :  { %v6675_v53 = vpop.eup %6674 }
 0x5bf   :  { %1221 = vrot.lane.b32.xlu2 %v6675_v53, %s7393_s5  ;;  %v6981_v53 = vld [vmem:[%s10765_s9] sm:$0xff] }
 0x5c0   :  { %v6677_v55 = vpop.eup %6676 }
 0x5c1   :  { %v1202_v46 = vadd.f32 1.0, %v6677_v55 }
 0x5c3   :  { %6678 = vrcp.f32 %v1202_v46  ;;  %v1214_v33 = vand.u32 2147483648, %v1202_v46  ;;  %vm1208_vm1 = vweird.f32 %v1202_v46  ;;  %v1212_v61 = vand.u32 2147483647, %v1202_v46 }
 0x5c5   :  { %v1215_v29 = vor.u32 1.1754944e-38, %v1214_v33  ;;  %vm1213_vm12 = vcmp.eq.f32.partialorder %v1212_v61, 8.507059e+37 }
 0x5c9   :  { %v6679_v32 = vpop.eup %6678 }
 0x5ca   :  { %v1204_v7 = vmul.f32 %v6679_v32, %v1202_v46  ;;  %vm1209_vm15 = vweird.f32 %v6679_v32 }
 0x5cb   :  { %vm1210_vm11 = vmor %vm1208_vm1, %vm1209_vm15 }
 0x5cc   :  { %v1205_v59 = vsub.f32 1.0, %v1204_v7 }
 0x5ce   :  { %v1206_v63 = vmul.f32 %v6679_v32, %v1205_v59 }
 0x5d0   :  { %v1207_v6 = vadd.f32 %v6679_v32, %v1206_v63 }
 0x5d2   :  { %v1211_v14 = vsel %vm1210_vm11, %v6679_v32, %v1207_v6 }
 0x5d3   :  { %v1216_v50 = vsel %vm1213_vm12, %v1215_v29, %v1211_v14 }
 0x5d4   :  { %v1219_v52 = vmul.f32 %v1216_v50, %v7666_v37  ;;  %v6976_v37 = vld [vmem:[%s10765_s9 + $0x38] sm:$0xff] }
 0x5d5   :  { %1433 = vmatpush.msrb.mxu0 %v6976_v37 }
 0x5d7   :  { %1434 = vmatpush.msrb.mxu0 %v6977_v26 }
 0x5d9   :  { %1435 = vmatpush.msrb.mxu0 %v6978_v62 }
 0x5db   :  { %1436 = vmatpush.msrb.mxu0 %v6979_v54 }
 0x619   :  { %v1222_v31 = vpop.permute.xlu2 %1221 }
 0x61a   :  { %v1224_v4 = vmul.f32 %v1222_v31, %v1216_v50 }
 0x61c   :  { %1226 = vrot.lane.b32.xlu1 %v1224_v4, %s7391_s25 }
 0x68e   :  { %v1227_v43 = vpop.permute.xlu1 %1226 }
 0x68f   :  { %v8070_v12 = vadd.f32 %v1227_v43, %v1219_v52  ;;  %v8115_v43 = vld [vmem:[%s10762_s6] ss:$0 sm:$0xff] }
 0x691   :  { %6680 = vtanh.f32 %v8070_v12 }
 0x697   :  { %v6681_v45 = vpop.eup %6680 }
 0x698   :  { %1232 = vrot.lane.b32.xlu0 %v6681_v45, %s7393_s5 }
 0x70a   :  { %v1233_v35 = vpop.permute.xlu0 %1232 }
 0x70b   :  { %v1235_v42 = vmul.f32 %v1233_v35, %v1216_v50 }
 0x70d   :  { %1240 = vrot.lane.b32.xlu2 %v1235_v42, %s7391_s25 }
 0x767   :  { %v1241_v28 = vpop.permute.xlu2 %1240 }
 0x768   :  { %6558 = vmatmul.msk.f32.vlgmr.msra.gmra.mxu0 %vm179_vm0, %v1241_v28  ;;  %6559 = vmatmul.msk.f32.vlgmr.msrb.gmra.mxu3 %vm179_vm0, %v1241_v28 }
 0x769   :  { %2101 = vmatpush.msra.mxu0 %v534_v39  ;;  %2261 = vmatpush.msrb.mxu3 %v8051_v56 }
 0x76b   :  { %2102 = vmatpush.msra.mxu0 %v533_v60  ;;  %2262 = vmatpush.msrb.mxu3 %v8057_v41 }
 0x76d   :  { %2103 = vmatpush.msra.mxu0 %v532_v47  ;;  %2263 = vmatpush.msrb.mxu3 %v6980_v57 }
 0x76f   :  { %2104 = vmatpush.msra.mxu0 %v531_v20  ;;  %2264 = vmatpush.msrb.mxu3 %v6981_v53 }
 0x770   :  { %6560 = vmatmul.msk.f32.vlgmr.msrb.gmra.mxu0 %vm179_vm0, %v1241_v28 }
 0x771   :  { %2281 = vmatpush.msrb.mxu0 %v6976_v37 }
 0x773   :  { %2282 = vmatpush.msrb.mxu0 %v6977_v26 }
 0x775   :  { %2283 = vmatpush.msrb.mxu0 %v6978_v62 }
 0x777   :  { %2284 = vmatpush.msrb.mxu0 %v6979_v54 }
 0x7e5   :  { %v8099_v56 = vpop.f32.mrf.mxu0 }
 0x7e6   :  { %10883 = vst [vmem:[#allocation40_spill] sm:$0xff] %v8099_v56 }
 0x7ed   :  { %v8101_v41 = vpop.f32.mrf.mxu0 }
 0x7ee   :  { %v1441_v55 = vadd.f32 %v6982_v21, %v8101_v41 }
 0x7f0   :  { %v1470_v46 = vperm.slane %v1441_v55, 0  ;;  %v1463_v32 = vrot.slane %v1441_v55, 1  ;;  %v1464_v7 = vrot.slane %v1441_v55, 2  ;;  %v1466_v61 = vrot.slane %v1441_v55, 4 }
 0x7f1   :  { %v1465_v14 = vrot.slane %v1441_v55, 3 }
 0x7f2   :  { %v1487_v59 = vadd.f32 %v1470_v46, %v7692_v25  ;;  %v1486_v63 = vadd.f32 %v1470_v46, %v7688_v23  ;;  %v1471_v6 = vperm.slane %v1463_v32, 0  ;;  %v1472_v33 = vperm.slane %v1464_v7, 0 }
 0x7f3   :  { %v1474_v20 = vperm.slane %v1466_v61, 0  ;;  %v1473_v37 = vperm.slane %v1465_v14, 0  ;;  %v1467_v32 = vrot.slane %v1441_v55, 5 }
 0x7f4   :  { %v1503_v29 = vmax.f32 %v1487_v59, 0.0  ;;  %v1502_v31 = vmax.f32 %v1486_v63, 0.0  ;;  %v1488_v50 = vadd.f32 %v1471_v6, %v7672_v9  ;;  %v1489_v4 = vadd.f32 %v1471_v6, %v7674_v10 }
 0x7f5   :  { %v1491_v52 = vadd.f32 %v1472_v33, %v7678_v15  ;;  %v1490_v49 = vadd.f32 %v1472_v33, %v7676_v11  ;;  %v1494_v57 = vadd.f32 %v1474_v20, %v7684_v18  ;;  %v1492_v53 = vadd.f32 %v1473_v37, %v7680_v16 }
 0x7f6   :  { %v1519_v45 = vmul.f32 %v8115_v43, %v1503_v29  ;;  %v1518_v39 = vmul.f32 %v8115_v43, %v1502_v31  ;;  %v1504_v60 = vmax.f32 %v1488_v50, 0.0  ;;  %v1505_v47 = vmax.f32 %v1489_v4, 0.0 }
 0x7f7   :  { %v1507_v35 = vmax.f32 %v1491_v52, 0.0  ;;  %v1506_v28 = vmax.f32 %v1490_v49, 0.0  ;;  %v1493_v59 = vadd.f32 %v1473_v37, %v7682_v17  ;;  %v1510_v63 = vmax.f32 %v1494_v57, 0.0 }
 0x7f8   :  { %v1537_v26 = vsel %vm179_vm0, %v1519_v45, 0.0  ;;  %v1534_v62 = vsel %vm179_vm0, %v1518_v39, 0.0  ;;  %v1520_v54 = vmul.f32 %v8115_v43, %v1504_v60  ;;  %v1521_v46 = vmul.f32 %v8115_v43, %v1505_v47 }
 0x7f9   :  { %1538 = vadd.xlane.f32.xlu0 %v1537_v26  ;;  %1535 = vadd.xlane.f32.xlu1 %v1534_v62  ;;  %v1523_v21 = vmul.f32 %v8115_v43, %v1507_v35  ;;  %v1522_v7 = vmul.f32 %v8115_v43, %v1506_v28  ;;  %v1508_v6 = vmax.f32 %v1492_v53, 0.0  ;;  %v1475_v14 = vperm.slane %v1467_v32, 0 }
 0x7fa   :  { %v1540_v42 = vsel %vm179_vm0, %v1520_v54, 0.0  ;;  %v1543_v61 = vsel %vm179_vm0, %v1521_v46, 0.0  ;;  %v1509_v31 = vmax.f32 %v1493_v59, 0.0  ;;  %v1526_v50 = vmul.f32 %v8115_v43, %v1510_v63 }
 0x7fb   :  { %1541 = vadd.xlane.f32.xlu2 %v1540_v42  ;;  %v1549_v33 = vsel %vm179_vm0, %v1523_v21, 0.0  ;;  %v1546_v29 = vsel %vm179_vm0, %v1522_v7, 0.0  ;;  %v1524_v4 = vmul.f32 %v8115_v43, %v1508_v6  ;;  %v1497_v52 = vadd.f32 %v1475_v14, %v7697_v30 }
 0x7fc   :  { %v1495_v45 = vadd.f32 %v1474_v20, %v7686_v22  ;;  %v1469_v39 = vrot.slane %v1441_v55, 7  ;;  %v1468_v60 = vrot.slane %v1441_v55, 6  ;;  %v1525_v49 = vmul.f32 %v8115_v43, %v1509_v31 }
 0x7fd   :  { %v1496_v47 = vadd.f32 %v1475_v14, %v7690_v24  ;;  %v1558_v37 = vsel %vm179_vm0, %v1526_v50, 0.0  ;;  %v1552_v26 = vsel %vm179_vm0, %v1524_v4, 0.0  ;;  %v1513_v62 = vmax.f32 %v1497_v52, 0.0 }
 0x7fe   :  { %v1511_v54 = vmax.f32 %v1495_v45, 0.0  ;;  %v1477_v35 = vperm.slane %v1469_v39, 0  ;;  %v1476_v42 = vperm.slane %v1468_v60, 0  ;;  %v1555_v28 = vsel %vm179_vm0, %v1525_v49, 0.0 }
 0x7ff   :  { %v1512_v57 = vmax.f32 %v1496_v47, 0.0  ;;  %v1529_v55 = vmul.f32 %v8115_v43, %v1513_v62 }
 0x800   :  { %v1527_v20 = vmul.f32 %v8115_v43, %v1511_v54  ;;  %v1500_v53 = vadd.f32 %v1477_v35, %v7751_v48  ;;  %v1498_v21 = vadd.f32 %v1476_v42, %v7721_v51  ;;  %v1499_v32 = vadd.f32 %v1476_v42, %v7736_v13 }
 0x801   :  { %1550 = vadd.xlane.f32.xlu0 %v1549_v33  ;;  %1544 = vadd.xlane.f32.xlu1 %v1543_v61  ;;  %v1528_v46 = vmul.f32 %v8115_v43, %v1512_v57  ;;  %v1567_v7 = vsel %vm179_vm0, %v1529_v55, 0.0  ;;  %v1501_v31 = vadd.f32 %v1477_v35, %v7762_v44 }
 0x802   :  { %v1561_v59 = vsel %vm179_vm0, %v1527_v20, 0.0  ;;  %v1516_v63 = vmax.f32 %v1500_v53, 0.0  ;;  %v1514_v6 = vmax.f32 %v1498_v21, 0.0  ;;  %v1515_v61 = vmax.f32 %v1499_v32, 0.0 }
 0x803   :  { %1547 = vadd.xlane.f32.xlu2 %v1546_v29  ;;  %v1564_v33 = vsel %vm179_vm0, %v1528_v46, 0.0  ;;  %v1517_v45 = vmax.f32 %v1501_v31, 0.0 }
 0x804   :  { %v1532_v14 = vmul.f32 %v8115_v43, %v1516_v63  ;;  %v1530_v29 = vmul.f32 %v8115_v43, %v1514_v6  ;;  %v1531_v50 = vmul.f32 %v8115_v43, %v1515_v61 }
 0x805   :  { %v1533_v60 = vmul.f32 %v8115_v43, %v1517_v45 }
 0x806   :  { %v1576_v4 = vsel %vm179_vm0, %v1532_v14, 0.0  ;;  %v1570_v52 = vsel %vm179_vm0, %v1530_v29, 0.0  ;;  %v1573_v39 = vsel %vm179_vm0, %v1531_v50, 0.0 }
 0x807   :  { %v1579_v49 = vsel %vm179_vm0, %v1533_v60, 0.0 }
 0x809   :  { %1559 = vadd.xlane.f32.xlu0 %v1558_v37  ;;  %1553 = vadd.xlane.f32.xlu1 %v1552_v26 }
 0x80b   :  { %1556 = vadd.xlane.f32.xlu2 %v1555_v28 }
 0x811   :  { %1568 = vadd.xlane.f32.xlu0 %v1567_v7  ;;  %1562 = vadd.xlane.f32.xlu1 %v1561_v59 }
 0x813   :  { %1565 = vadd.xlane.f32.xlu2 %v1564_v33 }
 0x819   :  { %1577 = vadd.xlane.f32.xlu0 %v1576_v4  ;;  %1571 = vadd.xlane.f32.xlu1 %v1570_v52 }
 0x81b   :  { %1574 = vadd.xlane.f32.xlu2 %v1573_v39 }
 0x821   :  { %1580 = vadd.xlane.f32.xlu1 %v1579_v49 }
 0x86c   :  { %v1539_v47 = vpop.xlane.xlu0 %1538  ;;  %v1536_v37 = vpop.xlane.xlu1 %1535 }
 0x86d   :  { %v1599_v21 = vperm.slane %v1539_v47, %v7790_v36  ;;  %v1598_v46 = vperm.slane %v1536_v37, %v7785_v38 }
 0x86e   :  { %v1542_v26 = vpop.xlane.xlu2 %1541 }
 0x86f   :  { %v1601_v32 = vperm.slane %v1542_v26, %v7785_v38  ;;  %v1600_v14 = vsel %vm752_vm10, %v1599_v21, %v1598_v46 }
 0x874   :  { %v1551_v62 = vpop.xlane.xlu0 %1550  ;;  %v1545_v54 = vpop.xlane.xlu1 %1544 }
 0x875   :  { %v1602_v43 = vperm.slane %v1545_v54, %v7790_v36  ;;  %v1605_v6 = vperm.slane %v1551_v62, %v7790_v36 }
 0x876   :  { %v8160_v35 = vpop.xlane.xlu2 %1547 }
 0x877   :  { %v1604_v7 = vperm.slane %v8160_v35, %v7785_v38  ;;  %v1603_v59 = vsel %vm752_vm10, %v1602_v43, %v1601_v32 }
 0x878   :  { %v1622_v31 = vsel %vm283_vm2, %v1603_v59, %v1600_v14 }
 0x879   :  { %v1606_v50 = vsel %vm752_vm10, %v1605_v6, %v1604_v7 }
 0x87a   :  { %v1623_v43 = vsel %vm285_vm3, %v1606_v50, %v1622_v31 }
 0x87c   :  { %v1554_v42 = vpop.xlane.xlu1 %1553  ;;  %v8162_v28 = vpop.xlane.xlu0 %1559 }
 0x87d   :  { %v1607_v29 = vperm.slane %v1554_v42, %v7785_v38  ;;  %v1610_v4 = vperm.slane %v8162_v28, %v7785_v38 }
 0x87e   :  { %v8164_v57 = vpop.xlane.xlu2 %1556 }
 0x87f   :  { %v1608_v63 = vperm.slane %v8164_v57, %v7790_v36 }
 0x881   :  { %v1609_v45 = vsel %vm752_vm10, %v1608_v63, %v1607_v29 }
 0x882   :  { %v1624_v46 = vsel %vm287_vm4, %v1609_v45, %v1623_v43 }
 0x884   :  { %v8166_v55 = vpop.xlane.xlu1 %1562  ;;  %v8171_v53 = vpop.xlane.xlu0 %1568 }
 0x885   :  { %v1611_v33 = vperm.slane %v8166_v55, %v7790_v36  ;;  %v1614_v21 = vperm.slane %v8171_v53, %v7790_v36 }
 0x886   :  { %v8168_v20 = vpop.xlane.xlu2 %1565 }
 0x887   :  { %v1613_v39 = vperm.slane %v8168_v20, %v7785_v38  ;;  %v1612_v60 = vsel %vm752_vm10, %v1611_v33, %v1610_v4 }
 0x888   :  { %v1625_v63 = vsel %vm289_vm5, %v1612_v60, %v1624_v46 }
 0x889   :  { %v1615_v59 = vsel %vm752_vm10, %v1614_v21, %v1613_v39 }
 0x88a   :  { %v1626_v31 = vsel %vm291_vm6, %v1615_v59, %v1625_v63 }
 0x88c   :  { %v8184_v61 = vpop.xlane.xlu1 %1571  ;;  %v8204_v32 = vpop.xlane.xlu0 %1577 }
 0x88d   :  { %v1616_v7 = vperm.slane %v8184_v61, %v7785_v38  ;;  %v1619_v14 = vperm.slane %v8204_v32, %v7785_v38 }
 0x88e   :  { %v8192_v52 = vpop.xlane.xlu2 %1574 }
 0x88f   :  { %v1617_v49 = vperm.slane %v8192_v52, %v7790_v36 }
 0x891   :  { %v1618_v33 = vsel %vm752_vm10, %v1617_v49, %v1616_v7 }
 0x892   :  { %v1627_v4 = vsel %vm293_vm7, %v1618_v33, %v1626_v31 }
 0x894   :  { %v8210_v6 = vpop.xlane.xlu1 %1580 }
 0x895   :  { %v1620_v29 = vperm.slane %v8210_v6, %v7790_v36 }
 0x897   :  { %v1621_v50 = vsel %vm752_vm10, %v1620_v29, %v1619_v14 }
 0x898   :  { %v1628_v45 = vsel %vm295_vm8, %v1621_v50, %v1627_v4 }
 0x899   :  { %v1630_v39 = vsel %vm449_vm9, %v1628_v45, -inf }
 0x89a   :  { %1631 = vmax.xlane.f32.xlu2 %v1630_v39 }
 0x90d   :  { %v8222_v60 = vpop.xlane.xlu2 %1631 }
 0x90e   :  { %v1635_v49 = vperm.slane %v8222_v60, 1  ;;  %v1634_v43 = vperm.slane %v8222_v60, 0  ;;  %v1637_v59 = vperm.slane %v8222_v60, 3  ;;  %v1636_v63 = vperm.slane %v8222_v60, 2 }
 0x90f   :  { %v1638_v39 = vperm.slane %v8222_v60, 4 }
 0x910   :  { %v1652_v21 = vsub.f32 %v1542_v26, %v1635_v49  ;;  %v1651_v46 = vsub.f32 %v1539_v47, %v1634_v43  ;;  %v1650_v7 = vsub.f32 %v1536_v37, %v1634_v43  ;;  %v1656_v31 = vsub.f32 %v1554_v42, %v1637_v59 }
 0x911   :  { %v1655_v50 = vsub.f32 %v1551_v62, %v1636_v63  ;;  %v1653_v4 = vsub.f32 %v1545_v54, %v1635_v49  ;;  %v1659_v62 = vsub.f32 %v8166_v55, %v1638_v39  ;;  %v1658_v54 = vsub.f32 %v8162_v28, %v1638_v39 }
 0x912   :  { %v1670_v14 = vmul.f32 1.442695, %v1652_v21  ;;  %v1668_v33 = vmul.f32 1.442695, %v1651_v46  ;;  %v1666_v29 = vmul.f32 1.442695, %v1650_v7  ;;  %v1654_v42 = vsub.f32 %v8160_v35, %v1636_v63 }
 0x913   :  { %v1678_v45 = vmul.f32 1.442695, %v1656_v31  ;;  %v1676_v0 = vmul.f32 1.442695, %v1655_v50  ;;  %v1672_v47 = vmul.f32 1.442695, %v1653_v4  ;;  %v1657_v28 = vsub.f32 %v8164_v57, %v1637_v59 }
 0x914   :  { %6682 = vpow2.f32 %v1670_v14  ;;  %v1684_v49 = vmul.f32 1.442695, %v1659_v62  ;;  %v1640_v21 = vperm.slane %v8222_v60, 6  ;;  %v1682_v46 = vmul.f32 1.442695, %v1658_v54 }
 0x915   :  { %6684 = vpow2.f32 %v1668_v33  ;;  %v1639_v7 = vperm.slane %v8222_v60, 5  ;;  %v1674_v33 = vmul.f32 1.442695, %v1654_v42  ;;  %v1641_v31 = vperm.slane %v8222_v60, 7 }
 0x916   :  { %6686 = vpow2.f32 %v1666_v29 }
 0x917   :  { %6688 = vpow2.f32 %v1678_v45  ;;  %v1661_v35 = vsub.f32 %v8171_v53, %v1639_v7  ;;  %v1680_v45 = vmul.f32 1.442695, %v1657_v28  ;;  %v1665_v53 = vsub.f32 %v8210_v6, %v1641_v31 }
 0x918   :  { %6690 = vpow2.f32 %v1676_v0  ;;  %v1662_v0 = vsub.f32 %v8184_v61, %v1640_v21  ;;  %v1664_v57 = vsub.f32 %v8204_v32, %v1641_v31  ;;  %v1660_v60 = vsub.f32 %v8168_v20, %v1639_v7 }
 0x919   :  { %6692 = vpow2.f32 %v1672_v47  ;;  %v1688_v50 = vmul.f32 1.442695, %v1661_v35  ;;  %v1696_v59 = vmul.f32 1.442695, %v1665_v53  ;;  %v1663_v20 = vsub.f32 %v8192_v52, %v1640_v21 }
 0x91a   :  { %v8229_v26 = vpop.eup %6682  ;;  %6694 = vpow2.f32 %v1684_v49  ;;  %v1690_v63 = vmul.f32 1.442695, %v1662_v0  ;;  %v1694_v47 = vmul.f32 1.442695, %v1664_v57  ;;  %v1686_v54 = vmul.f32 1.442695, %v1660_v60 }
 0x91b   :  { %v8231_v37 = vpop.eup %6684  ;;  %1721 = vperm.xlu2 %6625, %v8229_v26   ;;  %6696 = vpow2.f32 %v1682_v46  ;;  %v1692_v6 = vmul.f32 1.442695, %v1663_v20 }
 0x91c   :  { %v8234_v43 = vpop.eup %6686  ;;  %1718 = vperm.xlu1 %6627, %v8231_v37   ;;  %6698 = vpow2.f32 %v1674_v33 }
 0x91d   :  { %1715 = vperm.xlu0 %6626, %v8234_v43   ;;  %v8243_v14 = vpop.eup %6688  ;;  %6700 = vpow2.f32 %v1690_v63 }
 0x91e   :  { %v8245_v29 = vpop.eup %6690  ;;  %6702 = vpow2.f32 %v1688_v50 }
 0x91f   :  { %v8248_v55 = vpop.eup %6692  ;;  %6704 = vpow2.f32 %v1680_v45 }
 0x920   :  { %v8256_v4 = vpop.eup %6694  ;;  %6706 = vpow2.f32 %v1696_v59 }
 0x921   :  { %v8258_v39 = vpop.eup %6696  ;;  %6708 = vpow2.f32 %v1694_v47 }
 0x922   :  { %v8261_v61 = vpop.eup %6698  ;;  %6710 = vpow2.f32 %v1686_v54 }
 0x923   :  { %1733 = vperm.xlu2 %6625, %v8243_v14   ;;  %v8268_v62 = vpop.eup %6700  ;;  %6712 = vpow2.f32 %v1692_v6 }
 0x924   :  { %1730 = vperm.xlu1 %6627, %v8245_v29   ;;  %v8270_v42 = vpop.eup %6702 }
 0x925   :  { %1724 = vperm.xlu0 %6626, %v8248_v55   ;;  %v8273_v49 = vpop.eup %6704 }
 0x926   :  { %v8278_v32 = vpop.eup %6706 }
 0x927   :  { %v8280_v46 = vpop.eup %6708 }
 0x928   :  { %v8283_v7 = vpop.eup %6710 }
 0x929   :  { %v8287_v33 = vpop.eup %6712 }
 0x92b   :  { %1742 = vperm.xlu2 %6625, %v8256_v4  }
 0x92c   :  { %1739 = vperm.xlu1 %6627, %v8258_v39  }
 0x92d   :  { %1727 = vperm.xlu0 %6626, %v8261_v61  }
 0x933   :  { %1751 = vperm.xlu2 %6625, %v8268_v62  }
 0x934   :  { %1748 = vperm.xlu1 %6627, %v8270_v42  }
 0x935   :  { %1736 = vperm.xlu0 %6626, %v8273_v49  }
 0x93b   :  { %1760 = vperm.xlu2 %6625, %v8278_v32  }
 0x93c   :  { %1757 = vperm.xlu1 %6627, %v8280_v46  }
 0x93d   :  { %1745 = vperm.xlu0 %6626, %v8283_v7  }
 0x945   :  { %1754 = vperm.xlu0 %6626, %v8287_v33  }
 0x975   :  { %v1722_v0 = vpop.permute.xlu2 %1721 }
 0x976   :  { %v1765_v54 = vperm.slane %v1722_v0, %v7785_v38 }
 0x97d   :  { %v1734_v63 = vpop.permute.xlu2 %1733 }
 0x97e   :  { %v1771_v5 = vperm.slane %v1734_v63, %v7785_v38 }
 0x985   :  { %v1743_v45 = vpop.permute.xlu2 %1742 }
 0x986   :  { %v1775_v63 = vperm.slane %v1743_v45, %v7790_v36 }
 0x98d   :  { %v1752_v60 = vpop.permute.xlu2 %1751 }
 0x98e   :  { %v1719_v52 = vpop.permute.xlu1 %1718 }
 0x98f   :  { %v1716_v21 = vpop.permute.xlu0 %1715  ;;  %v1763_v20 = vperm.slane %v1719_v52, %v7790_v36 }
 0x990   :  { %v1762_v6 = vperm.slane %v1716_v21, %v7785_v38 }
 0x996   :  { %v1731_v35 = vpop.permute.xlu1 %1730 }
 0x997   :  { %v1725_v28 = vpop.permute.xlu0 %1724  ;;  %v1769_v27 = vperm.slane %v1731_v35, %v7790_v36 }
 0x998   :  { %v1766_v59 = vperm.slane %v1725_v28, %v7790_v36  ;;  %v1764_v28 = vsel %vm752_vm10, %v1763_v20, %v1762_v6 }
 0x99a   :  { %v1767_v2 = vsel %vm752_vm10, %v1766_v59, %v1765_v54  ;;  %v1761_v59 = vpop.permute.xlu2 %1760 }
 0x99b   :  { %v1786_v52 = vsel %vm283_vm2, %v1767_v2, %v1764_v28 }
 0x99e   :  { %v1740_v50 = vpop.permute.xlu1 %1739 }
 0x99f   :  { %v1728_v31 = vpop.permute.xlu0 %1727  ;;  %v1774_v21 = vperm.slane %v1740_v50, %v7785_v38 }
 0x9a0   :  { %v1768_v47 = vperm.slane %v1728_v31, %v7785_v38 }
 0x9a1   :  { %v1776_v2 = vsel %vm752_vm10, %v1775_v63, %v1774_v21 }
 0x9a2   :  { %v1770_v34 = vsel %vm752_vm10, %v1769_v27, %v1768_v47 }
 0x9a3   :  { %v1787_v8 = vsel %vm285_vm3, %v1770_v34, %v1786_v52  ;;  %v1784_v34 = vperm.slane %v1761_v59, %v7790_v36 }
 0x9a6   :  { %v1749_v57 = vpop.permute.xlu1 %1748 }
 0x9a7   :  { %v1737_v53 = vpop.permute.xlu0 %1736  ;;  %v1778_v35 = vperm.slane %v1749_v57, %v7790_v36 }
 0x9a8   :  { %v1772_v1 = vperm.slane %v1737_v53, %v7790_v36 }
 0x9aa   :  { %v1773_v31 = vsel %vm752_vm10, %v1772_v1, %v1771_v5 }
 0x9ab   :  { %v1788_v27 = vsel %vm287_vm4, %v1773_v31, %v1787_v8 }
 0x9ac   :  { %v1789_v57 = vsel %vm289_vm5, %v1776_v2, %v1788_v27 }
 0x9ae   :  { %v1758_v53 = vpop.permute.xlu1 %1757 }
 0x9af   :  { %v1746_v19 = vpop.permute.xlu0 %1745  ;;  %v1783_v47 = vperm.slane %v1758_v53, %v7785_v38 }
 0x9b0   :  { %v1777_v0 = vperm.slane %v1746_v19, %v7785_v38  ;;  %v1780_v19 = vperm.slane %v1752_v60, %v7785_v38 }
 0x9b1   :  { %v1785_v8 = vsel %vm752_vm10, %v1784_v34, %v1783_v47 }
 0x9b2   :  { %v1779_v1 = vsel %vm752_vm10, %v1778_v35, %v1777_v0 }
 0x9b3   :  { %v1790_v54 = vsel %vm291_vm6, %v1779_v1, %v1789_v57 }
 0x9b7   :  { %v1755_v5 = vpop.permute.xlu0 %1754 }
 0x9b8   :  { %v1781_v50 = vperm.slane %v1755_v5, %v7790_v36 }
 0x9ba   :  { %v1782_v45 = vsel %vm752_vm10, %v1781_v50, %v1780_v19 }
 0x9bb   :  { %v1791_v20 = vsel %vm293_vm7, %v1782_v45, %v1790_v54 }
 0x9bc   :  { %v1792_v6 = vsel %vm295_vm8, %v1785_v8, %v1791_v20  ;;  %v6984_v20 = vld [vmem:[#allocation3 + $0x10] sm:$0xff] }
 0x9bd   :  { %v1794_v60 = vsel %vm449_vm9, %v1792_v6, 0.0 }
 0x9be   :  { %1795 = vadd.xlane.f32.xlu0 %v1794_v60  ;;  %v6985_v60 = vld [vmem:[#allocation3 + $0x20] sm:$0xff] }
 0xa31   :  { %v1796_v28 = vpop.xlane.xlu0 %1795 }
 0xa32   :  { %6714 = vrcp.f32 %v1796_v28 }
 0xa38   :  { %v6715_v31 = vpop.eup %6714 }
 0xa39   :  { %v1804_v0 = vperm.slane %v6715_v31, 5  ;;  %v1799_v52 = vperm.slane %v6715_v31, 0  ;;  %v1800_v63 = vperm.slane %v6715_v31, 1 }
 0xa3b   :  { %v8323_v21 = vmul.f32 %v8270_v42, %v1804_v0  ;;  %v8326_v53 = vmul.f32 %v8231_v37, %v1799_v52  ;;  %v8329_v35 = vmul.f32 %v8234_v43, %v1799_v52  ;;  %v8335_v59 = vmul.f32 %v8248_v55, %v1800_v63 }
 0xa3c   :  { %v8338_v27 = vmul.f32 %v8229_v26, %v1800_v63  ;;  %v1801_v37 = vperm.slane %v6715_v31, 2  ;;  %v1802_v55 = vperm.slane %v6715_v31, 3  ;;  %v6988_v63 = vld [vmem:[#allocation3 + $0x30] sm:$0xff] }
 0xa3d   :  { %10884 = vst [vmem:[#allocation41_spill] sm:$0xff] %v8323_v21  ;;  %1888 = vperm.xlu0 %6626, %v8323_v21   ;;  %1838 = vperm.xlu2 %6625, %v8326_v53  }
 0xa3e   :  { %10885 = vst [vmem:[#allocation42_spill] sm:$0xff] %v8326_v53  ;;  %1833 = vperm.xlu1 %6627, %v8329_v35   ;;  %v8343_v43 = vmul.f32 %v8245_v29, %v1801_v37  ;;  %v8346_v42 = vmul.f32 %v8261_v61, %v1801_v37  ;;  %v8351_v47 = vmul.f32 %v8273_v49, %v1802_v55  ;;  %v1803_v29 = vperm.slane %v6715_v31, 4 }
 0xa3f   :  { %10886 = vst [vmem:[#allocation43_spill] sm:$0xff] %v8329_v35  ;;  %v8354_v26 = vmul.f32 %v8243_v14, %v1802_v55  ;;  %v1805_v49 = vperm.slane %v6715_v31, 6  ;;  %v8370_v14 = vmul.f32 %v8283_v7, %v1804_v0  ;;  %v6989_v55 = vld [vmem:[#allocation3 + $0x28] sm:$0xff] }
 0xa40   :  { %10887 = vst [vmem:[#allocation44_spill] sm:$0xff] %v8335_v59  ;;  %v8359_v1 = vmul.f32 %v8256_v4, %v1803_v29  ;;  %v8362_v61 = vmul.f32 %v8258_v39, %v1803_v29  ;;  %v1806_v4 = vperm.slane %v6715_v31, 7  ;;  %v6986_v31 = vld [vmem:[#allocation3 + $0x18] sm:$0xff] }
 0xa41   :  { %10888 = vst [vmem:[#allocation45_spill] sm:$0xff] %v8338_v27  ;;  %v8367_v5 = vmul.f32 %v8268_v62, %v1805_v49  ;;  %v8378_v39 = vmul.f32 %v8287_v33, %v1805_v49 }
 0xa42   :  { %10889 = vst [vmem:[#allocation46_spill] sm:$0xff] %v8343_v43  ;;  %v8375_v19 = vmul.f32 %v8280_v46, %v1806_v4  ;;  %v8383_v62 = vmul.f32 %v8278_v32, %v1806_v4  ;;  %v6987_v32 = vld [vmem:[#allocation3] sm:$0xff] }
 0xa43   :  { %10890 = vst [vmem:[#allocation47_spill] sm:$0xff] %v8346_v42  ;;  %v6990_v4 = vld [vmem:[#allocation3 + $0x40] sm:$0xff] }
 0xa44   :  { %10891 = vst [vmem:[#allocation48_spill] sm:$0xff] %v8351_v47 }
 0xa45   :  { %1848 = vperm.xlu2 %6625, %v8335_v59   ;;  %10892 = vst [vmem:[#allocation49_spill] sm:$0xff] %v8354_v26 }
 0xa46   :  { %1843 = vperm.xlu1 %6627, %v8338_v27   ;;  %10893 = vst [vmem:[#allocation50_spill] sm:$0xff] %v8359_v1 }
 0xa47   :  { %10894 = vst [vmem:[#allocation51_spill] sm:$0xff] %v8362_v61 }
 0xa48   :  { %10895 = vst [vmem:[#allocation52_spill] sm:$0xff] %v8367_v5 }
 0xa49   :  { %10896 = vst [vmem:[#allocation53_spill] sm:$0xff] %v8370_v14 }
 0xa4a   :  { %10897 = vst [vmem:[#allocation54_spill] sm:$0xff] %v8375_v19 }
 0xa4b   :  { %10898 = vst [vmem:[#allocation55_spill] sm:$0xff] %v8378_v39 }
 0xa4c   :  { %10899 = vst [vmem:[#allocation56_spill] sm:$0xff] %v8383_v62 }
 0xa4d   :  { %1858 = vperm.xlu2 %6625, %v8343_v43  }
 0xa4e   :  { %1853 = vperm.xlu1 %6627, %v8346_v42  }
 0xa55   :  { %1868 = vperm.xlu2 %6625, %v8351_v47  }
 0xa56   :  { %1863 = vperm.xlu1 %6627, %v8354_v26  }
 0xa5d   :  { %1878 = vperm.xlu2 %6625, %v8359_v1  }
 0xa5e   :  { %1873 = vperm.xlu1 %6627, %v8362_v61  }
 0xa65   :  { %1893 = vperm.xlu2 %6625, %v8367_v5   ;;  %v6991_v5 = vld [vmem:[#allocation3 + $0x8] sm:$0xff] }
 0xa66   :  { %1883 = vperm.xlu1 %6627, %v8370_v14  }
 0xa6d   :  { %1903 = vperm.xlu2 %6625, %v8375_v19   ;;  %v6992_v19 = vld [vmem:[#allocation3 + $0x38] sm:$0xff] }
 0xa6e   :  { %1898 = vperm.xlu1 %6627, %v8378_v39  }
 0xa76   :  { %1908 = vperm.xlu1 %6627, %v8383_v62  }
 0xa97   :  { %v1839_v7 = vpop.permute.xlu2 %1838 }
 0xa98   :  { %v1912_v39 = vmul.f32 %v6991_v5, %v1839_v7 }
 0xa9a   :  { %v1928_v7 = vsel %vm179_vm0, %v1912_v39, 0.0 }
 0xa9f   :  { %v1849_v50 = vpop.permute.xlu2 %1848 }
 0xaa0   :  { %v1914_v0 = vmul.f32 %v6986_v31, %v1849_v50 }
 0xaa2   :  { %v1937_v50 = vsel %vm179_vm0, %v1914_v0, 0.0 }
 0xaa7   :  { %v1859_v57 = vpop.permute.xlu2 %1858 }
 0xaa8   :  { %v1916_v29 = vmul.f32 %v6989_v55, %v1859_v57 }
 0xaaf   :  { %v1869_v46 = vpop.permute.xlu2 %1868  ;;  %v1889_v49 = vpop.permute.xlu0 %1888 }
 0xab0   :  { %v1834_v2 = vpop.permute.xlu1 %1833  ;;  %v1918_v1 = vmul.f32 %v6992_v19, %v1869_v46 }
 0xab1   :  { %v1911_v52 = vmul.f32 %v6987_v32, %v1834_v2  ;;  %v6994_v2 = vld [vmem:[#allocation3 + $0x58] sm:$0xff] }
 0xab2   :  { %v1955_v46 = vsel %vm179_vm0, %v1918_v1, 0.0 }
 0xab7   :  { %v1879_v8 = vpop.permute.xlu2 %1878 }
 0xab8   :  { %v1844_v34 = vpop.permute.xlu1 %1843 }
 0xab9   :  { %v1913_v6 = vmul.f32 %v6984_v20, %v1844_v34  ;;  %v6993_v34 = vld [vmem:[#allocation3 + $0x48] sm:$0xff] }
 0xaba   :  { %v1920_v20 = vmul.f32 %v6993_v34, %v1879_v8  ;;  %v6996_v34 = vld [vmem:[#allocation3 + $0x60] sm:$0xff] }
 0xabb   :  { %v1936_v14 = vsel %vm179_vm0, %v1913_v6, 0.0  ;;  %v6995_v6 = vld [vmem:[#allocation3 + $0x50] sm:$0xff] }
 0xabc   :  { %v1938_v31 = vadd.f32 %v1937_v50, %v1936_v14  ;;  %v1964_v32 = vsel %vm179_vm0, %v1920_v20, 0.0  ;;  %v6997_v20 = vld [vmem:[#allocation3 + $0x68] sm:$0xff] }
 0xac0   :  { %v1854_v45 = vpop.permute.xlu1 %1853 }
 0xac1   :  { %v1915_v28 = vmul.f32 %v6985_v60, %v1854_v45  ;;  %v1922_v60 = vmul.f32 %v6994_v2, %v1889_v49 }
 0xac3   :  { %v1945_v45 = vsel %vm179_vm0, %v1915_v28, 0.0 }
 0xac8   :  { %v1864_v54 = vpop.permute.xlu1 %1863 }
 0xac9   :  { %v1917_v37 = vmul.f32 %v6988_v63, %v1864_v54  ;;  %v1927_v54 = vsel %vm179_vm0, %v1911_v52, 0.0  ;;  %v1894_v63 = vpop.permute.xlu2 %1893 }
 0xaca   :  { %v1929_v0 = vadd.f32 %v1928_v7, %v1927_v54  ;;  %v1923_v1 = vmul.f32 %v6996_v34, %v1894_v63 }
 0xacb   :  { %v1954_v57 = vsel %vm179_vm0, %v1917_v37, 0.0  ;;  %v1973_v37 = vsel %vm179_vm0, %v1922_v60, 0.0 }
 0xacc   :  { %v1956_v52 = vadd.f32 %v1955_v46, %v1954_v57  ;;  %v1981_v60 = vsel %vm179_vm0, %v1923_v1, 0.0 }
 0xace   :  { %v1957_v39 = vrot.slane %v1956_v52, 4 }
 0xad0   :  { %v1874_v33 = vpop.permute.xlu1 %1873  ;;  %v1958_v7 = vadd.f32 %v1957_v39, %v1956_v52  ;;  %v6999_v39 = vld [vmem:[#allocation3 + $0x78] sm:$0xff] }
 0xad1   :  { %v1919_v62 = vmul.f32 %v6990_v4, %v1874_v33  ;;  %v1946_v33 = vsel %vm179_vm0, %v1916_v29, 0.0  ;;  %v1939_v29 = vrot.slane %v1938_v31, 4  ;;  %v1930_v4 = vrot.slane %v1929_v0, 4 }
 0xad2   :  { %v1947_v8 = vadd.f32 %v1946_v33, %v1945_v45  ;;  %v1959_v34 = vrot.slane %v1958_v7, 2 }
 0xad3   :  { %v1963_v5 = vsel %vm179_vm0, %v1919_v62, 0.0  ;;  %v1940_v50 = vadd.f32 %v1939_v29, %v1938_v31  ;;  %v1931_v57 = vadd.f32 %v1930_v4, %v1929_v0  ;;  %v6998_v29 = vld [vmem:[#allocation3 + $0x70] sm:$0xff] }
 0xad4   :  { %v1965_v55 = vadd.f32 %v1964_v32, %v1963_v5  ;;  %v1948_v49 = vrot.slane %v1947_v8, 4 }
 0xad5   :  { %v1932_v63 = vrot.slane %v1931_v57, 2 }
 0xad6   :  { %v1966_v45 = vrot.slane %v1965_v55, 4  ;;  %v1949_v33 = vadd.f32 %v1948_v49, %v1947_v8 }
 0xad7   :  { %v1933_v1 = vadd.f32 %v1932_v63, %v1931_v57 }
 0xad8   :  { %v1884_v19 = vpop.permute.xlu1 %1883  ;;  %v1967_v5 = vadd.f32 %v1966_v45, %v1965_v55  ;;  %v1960_v45 = vadd.f32 %v1959_v34, %v1958_v7 }
 0xad9   :  { %v1921_v28 = vmul.f32 %v6995_v6, %v1884_v19  ;;  %v1941_v6 = vrot.slane %v1940_v50, 2 }
 0xada   :  { %v1968_v8 = vrot.slane %v1967_v5, 2 }
 0xadb   :  { %v1972_v14 = vsel %vm179_vm0, %v1921_v28, 0.0  ;;  %v1904_v28 = vpop.permute.xlu2 %1903  ;;  %v1942_v49 = vadd.f32 %v1941_v6, %v1940_v50  ;;  %v1934_v50 = vrot.slane %v1933_v1, 1  ;;  %v1961_v6 = vrot.slane %v1960_v45, 1 }
 0xadc   :  { %v1974_v62 = vadd.f32 %v1973_v37, %v1972_v14  ;;  %v1950_v14 = vrot.slane %v1949_v33, 2  ;;  %v1925_v21 = vmul.f32 %v6998_v29, %v1904_v28 }
 0xadd   :  { %v1935_v63 = vadd.f32 %v1934_v50, %v1933_v1  ;;  %v1962_v34 = vadd.f32 %v1961_v6, %v1960_v45  ;;  %v1442_v45 = vadd.f32 %v8101_v41, %v8044_v3 }
 0xade   :  { %v1975_v2 = vrot.slane %v1974_v62, 4  ;;  %v1951_v4 = vadd.f32 %v1950_v14, %v1949_v33 }
 0xae0   :  { %v1899_v54 = vpop.permute.xlu1 %1898  ;;  %v1976_v32 = vadd.f32 %v1975_v2, %v1974_v62  ;;  %v1990_v62 = vsel %vm179_vm0, %v1925_v21, 0.0  ;;  %v1969_v2 = vadd.f32 %v1968_v8, %v1967_v5  ;;  %v1952_v28 = vrot.slane %v1951_v4, 1 }
 0xae1   :  { %v1924_v19 = vmul.f32 %v6997_v20, %v1899_v54 }
 0xae2   :  { %v1977_v54 = vrot.slane %v1976_v32, 2  ;;  %v1953_v57 = vadd.f32 %v1952_v28, %v1951_v4 }
 0xae3   :  { %v1982_v46 = vsel %vm179_vm0, %v1924_v19, 0.0 }
 0xae4   :  { %v1983_v37 = vadd.f32 %v1982_v46, %v1981_v60  ;;  %v1943_v60 = vrot.slane %v1942_v49, 1  ;;  %v1978_v46 = vadd.f32 %v1977_v54, %v1976_v32 }
 0xae6   :  { %v1984_v31 = vrot.slane %v1983_v37, 4  ;;  %v1944_v33 = vadd.f32 %v1943_v60, %v1942_v49  ;;  %v1979_v14 = vrot.slane %v1978_v46, 1 }
 0xae8   :  { %v1985_v0 = vadd.f32 %v1984_v31, %v1983_v37  ;;  %v1909_v52 = vpop.permute.xlu1 %1908  ;;  %v1970_v31 = vrot.slane %v1969_v2, 1  ;;  %v1980_v8 = vadd.f32 %v1979_v14, %v1978_v46  ;;  %v2007_v32 = vsel %vm283_vm2, %v1944_v33, %v1935_v63  ;;  %v8414_v63 = vld [vmem:[#allocation12 + $0x18] sm:$0xff] }
 0xae9   :  { %v1926_v55 = vmul.f32 %v6999_v39, %v1909_v52 }
 0xaea   :  { %v1986_v20 = vrot.slane %v1985_v0, 2  ;;  %v1971_v5 = vadd.f32 %v1970_v31, %v1969_v2  ;;  %v6561_v2 = vmul.f32 -1.442695, %v1442_v45 }
 0xaeb   :  { %v1991_v19 = vsel %vm179_vm0, %v1926_v55, 0.0 }
 0xaec   :  { %v1992_v26 = vadd.f32 %v1991_v19, %v1990_v62  ;;  %v1987_v29 = vadd.f32 %v1986_v20, %v1985_v0  ;;  %v2008_v0 = vsel %vm285_vm3, %v1953_v57, %v2007_v32  ;;  %6716 = vpow2.f32 %v6561_v2  ;;  %v7004_v32 = vld [vmem:[%s10768_s12] ss:$0 sm:$0xff] }
 0xaed   :  { %v2009_v20 = vsel %vm287_vm4, %v1962_v34, %v2008_v0  ;;  %v8417_v34 = vld [vmem:[#allocation12 + $0x10] sm:$0xff] }
 0xaee   :  { %v1993_v37 = vrot.slane %v1992_v26, 4  ;;  %v1988_v7 = vrot.slane %v1987_v29, 1  ;;  %v2010_v49 = vsel %vm289_vm5, %v1971_v5, %v2009_v20  ;;  %v8423_v5 = vld [vmem:[#allocation12] sm:$0xff] }
 0xaf0   :  { %v1994_v52 = vadd.f32 %v1993_v37, %v1992_v26  ;;  %v1989_v54 = vadd.f32 %v1988_v7, %v1987_v29  ;;  %v2011_v26 = vsel %vm291_vm6, %v1980_v8, %v2010_v49  ;;  %v491_v8 = vpop.f32.mrf.mxu2 }
 0xaf2   :  { %v1995_v21 = vrot.slane %v1994_v52, 2  ;;  %v2012_v4 = vsel %vm293_vm7, %v1989_v54, %v2011_v26  ;;  %v6717_v19 = vpop.eup %6716  ;;  %v492_v54 = vadd.f32 %v7004_v32, %v491_v8  ;;  %v7006_v32 = vld [vmem:[%s10765_s9 + $0x30] sm:$0xff] }
 0xaf3   :  { %v1446_v60 = vadd.f32 1.0, %v6717_v19 }
 0xaf4   :  { %v1996_v39 = vadd.f32 %v1995_v21, %v1994_v52  ;;  %v8420_v21 = vld [vmem:[#allocation12 + $0x8] sm:$0xff] }
 0xaf5   :  { %6718 = vrcp.f32 %v1446_v60  ;;  %v1458_v37 = vand.u32 2147483648, %v1446_v60  ;;  %vm1452_vm14 = vweird.f32 %v1446_v60  ;;  %v1456_v31 = vand.u32 2147483647, %v1446_v60 }
 0xaf6   :  { %v1997_v55 = vrot.slane %v1996_v39, 1 }
 0xaf7   :  { %v1459_v14 = vor.u32 1.1754944e-38, %v1458_v37  ;;  %vm1457_vm1 = vcmp.eq.f32.partialorder %v1456_v31, 8.507059e+37 }
 0xaf8   :  { %v1998_v62 = vadd.f32 %v1997_v55, %v1996_v39  ;;  %v1418_v39 = vpop.f32.mrf.mxu3 }
 0xaf9   :  { %v2020_v0 = vadd.f32 %v1418_v39, %v492_v54  ;;  %v8446_v54 = vld [vmem:[#allocation14 + $0x10] sm:$0xff] }
 0xafa   :  { %v2013_v1 = vsel %vm295_vm8, %v1998_v62, %v2012_v4 }
 0xafb   :  { %2014 = vrot.lane.b32.xlu2 %v2013_v1, %s7391_s25  ;;  %v6719_v46 = vpop.eup %6718 }
 0xafc   :  { %v1448_v28 = vmul.f32 %v6719_v46, %v1446_v60  ;;  %vm1453_vm13 = vweird.f32 %v6719_v46 }
 0xafd   :  { %vm1454_vm15 = vmor %vm1452_vm14, %vm1453_vm13 }
 0xafe   :  { %v1449_v29 = vsub.f32 1.0, %v1448_v28 }
 0xb00   :  { %v1450_v50 = vmul.f32 %v6719_v46, %v1449_v29 }
 0xb02   :  { %v1451_v6 = vadd.f32 %v6719_v46, %v1450_v50 }
 0xb04   :  { %v1455_v33 = vsel %vm1454_vm15, %v6719_v46, %v1451_v6 }
 0xb05   :  { %v1460_v52 = vsel %vm1457_vm1, %v1459_v14, %v1455_v33 }
 0xb55   :  { %v2015_v41 = vpop.permute.xlu2 %2014 }
 0xb56   :  { %v2017_v57 = vmul.f32 %v2015_v41, %v1460_v52 }
 0xb58   :  { %2022 = vrot.lane.b32.xlu0 %v2017_v57, %s7392_s17  ;;  %v438_v57 = vld [vmem:[#allocation6 + $0x10] sm:$0xff] }
 0xb59   :  { %6548 = vmatmul.msk.f32.gmra.mxu2 %vm449_vm9, %v438_v57 }
 0xbca   :  { %v2023_v7 = vpop.permute.xlu0 %2022 }
 0xbcb   :  { %6562 = vmatmul.msk.f32.vlgmr.msra.gmra.mxu3 %vm179_vm0, %v2023_v7 }
 0xbcc   :  { %2886 = vmatpush.msra.mxu3 %v8414_v63 }
 0xbce   :  { %2887 = vmatpush.msra.mxu3 %v8417_v34 }
 0xbd0   :  { %2888 = vmatpush.msra.mxu3 %v8420_v21 }
 0xbd2   :  { %2889 = vmatpush.msra.mxu3 %v8423_v5 }
 0xc4e   :  { %v2043_v55 = vpop.f32.mrf.mxu3 }
 0xc4f   :  { %v2046_v20 = vadd.f32 %v2043_v55, %v2020_v0  ;;  %v7008_v0 = vld [vmem:[%s10765_s9 + $0x20] sm:$0xff]  ;;  %v8452_v55 = vld [vmem:[#allocation14 + $0x8] sm:$0xff] }
 0xc51   :  { %6720 = vtanh.f32 %v2046_v20  ;;  %v6563_v62 = vmul.f32 -1.442695, %v2046_v20  ;;  %v7010_v20 = vld [vmem:[%s10765_s9 + $0x10] sm:$0xff] }
 0xc53   :  { %6722 = vpow2.f32 %v6563_v62  ;;  %v7012_v62 = vld [vmem:[%s10765_s9] sm:$0xff] }
 0xc57   :  { %v6721_v49 = vpop.eup %6720 }
 0xc58   :  { %2069 = vrot.lane.b32.xlu1 %v6721_v49, %s7393_s5  ;;  %v8458_v49 = vld [vmem:[#allocation14] sm:$0xff] }
 0xc59   :  { %v6723_v26 = vpop.eup %6722 }
 0xc5a   :  { %v2050_v4 = vadd.f32 1.0, %v6723_v26 }
 0xc5c   :  { %6724 = vrcp.f32 %v2050_v4  ;;  %v2062_v46 = vand.u32 2147483648, %v2050_v4  ;;  %vm2056_vm12 = vweird.f32 %v2050_v4  ;;  %v2060_v28 = vand.u32 2147483647, %v2050_v4 }
 0xc5e   :  { %v2063_v50 = vor.u32 1.1754944e-38, %v2062_v46  ;;  %vm2061_vm14 = vcmp.eq.f32.partialorder %v2060_v28, 8.507059e+37 }
 0xc62   :  { %v6725_v1 = vpop.eup %6724 }
 0xc63   :  { %v2052_v45 = vmul.f32 %v6725_v1, %v2050_v4  ;;  %vm2057_vm11 = vweird.f32 %v6725_v1 }
 0xc64   :  { %vm2058_vm13 = vmor %vm2056_vm12, %vm2057_vm11 }
 0xc65   :  { %v2053_v2 = vsub.f32 1.0, %v2052_v45 }
 0xc67   :  { %v2054_v19 = vmul.f32 %v6725_v1, %v2053_v2 }
 0xc69   :  { %v2055_v60 = vadd.f32 %v6725_v1, %v2054_v19 }
 0xc6b   :  { %v2059_v29 = vsel %vm2058_vm13, %v6725_v1, %v2055_v60  ;;  %v7013_v1 = vld [vmem:[%s10763_s7] ss:$0 sm:$0xff] }
 0xc6c   :  { %v2064_v37 = vsel %vm2061_vm14, %v2063_v50, %v2059_v29 }
 0xc6d   :  { %v2067_v33 = vmul.f32 %v2064_v37, %v8070_v12  ;;  %v8440_v12 = vld [vmem:[#allocation14 + $0x18] sm:$0xff] }
 0xcca   :  { %v2070_v6 = vpop.permute.xlu1 %2069 }
 0xccb   :  { %v2072_v31 = vmul.f32 %v2070_v6, %v2064_v37 }
 0xccd   :  { %2074 = vrot.lane.b32.xlu2 %v2072_v31, %s7391_s25 }
 0xd27   :  { %v2075_v14 = vpop.permute.xlu2 %2074 }
 0xd28   :  { %v8432_v52 = vadd.f32 %v2075_v14, %v2067_v33  ;;  %v8492_v33 = vld [vmem:[%s10762_s6] ss:$0 sm:$0xff] }
 0xd2a   :  { %6726 = vtanh.f32 %v8432_v52 }
 0xd30   :  { %v6727_v41 = vpop.eup %6726 }
 0xd31   :  { %2080 = vrot.lane.b32.xlu0 %v6727_v41, %s7393_s5 }
 0xda3   :  { %v2081_v7 = vpop.permute.xlu0 %2080 }
 0xda4   :  { %v2083_v8 = vmul.f32 %v2081_v7, %v2064_v37 }
 0xda6   :  { %2085 = vrot.lane.b32.xlu1 %v2083_v8, %s7391_s25 }
 0xe18   :  { %v2086_v39 = vpop.permute.xlu1 %2085 }
 0xe19   :  { %6564 = vmatmul.msk.f32.vlgmr.msra.gmra.mxu0 %vm179_vm0, %v2086_v39  ;;  %6566 = vmatmul.msk.f32.vlgmr.msrb.gmra.mxu3 %vm179_vm0, %v2086_v39 }
 0xe1a   :  { %2949 = vmatpush.msra.mxu0 %v8440_v12  ;;  %3109 = vmatpush.msrb.mxu3 %v7006_v32 }
 0xe1c   :  { %2950 = vmatpush.msra.mxu0 %v8446_v54  ;;  %3110 = vmatpush.msrb.mxu3 %v7008_v0 }
 0xe1e   :  { %2951 = vmatpush.msra.mxu0 %v8452_v55  ;;  %3111 = vmatpush.msrb.mxu3 %v7010_v20 }
 0xe20   :  { %2952 = vmatpush.msra.mxu0 %v8458_v49  ;;  %3112 = vmatpush.msrb.mxu3 %v7012_v62 }
 0xe21   :  { %6567 = vmatmul.msk.f32.vlgmr.msrb.gmra.mxu0 %vm179_vm0, %v2086_v39 }
 0xe22   :  { %3734 = vmatpush.msrb.mxu0 %v8414_v63 }
 0xe24   :  { %3735 = vmatpush.msrb.mxu0 %v8417_v34 }
 0xe26   :  { %3736 = vmatpush.msrb.mxu0 %v8420_v21 }
 0xe28   :  { %3737 = vmatpush.msrb.mxu0 %v8423_v5 }
 0xe96   :  { %v8469_v26 = vpop.f32.mrf.mxu0 }
 0xe97   :  { %10900 = vst [vmem:[#allocation57_spill] sm:$0xff] %v8469_v26 }
 0xe9e   :  { %v8471_v4 = vpop.f32.mrf.mxu0 }
 0xe9f   :  { %v8477_v45 = vadd.f32 %v7013_v1, %v8471_v4 }
 0xea1   :  { %v2318_v2 = vperm.slane %v8477_v45, 0  ;;  %v2311_v63 = vrot.slane %v8477_v45, 1  ;;  %v2312_v34 = vrot.slane %v8477_v45, 2  ;;  %v2313_v46 = vrot.slane %v8477_v45, 3 }
 0xea2   :  { %v2314_v31 = vrot.slane %v8477_v45, 4 }
 0xea3   :  { %v2335_v21 = vadd.f32 %v2318_v2, %v7692_v25  ;;  %v2334_v5 = vadd.f32 %v2318_v2, %v7688_v23  ;;  %v2319_v19 = vperm.slane %v2311_v63, 0  ;;  %v2320_v60 = vperm.slane %v2312_v34, 0 }
 0xea4   :  { %v2321_v39 = vperm.slane %v2313_v46, 0  ;;  %v2322_v63 = vperm.slane %v2314_v31, 0 }
 0xea5   :  { %v2351_v28 = vmax.f32 %v2335_v21, 0.0  ;;  %v2350_v29 = vmax.f32 %v2334_v5, 0.0  ;;  %v2336_v50 = vadd.f32 %v2319_v19, %v7672_v9  ;;  %v2337_v6 = vadd.f32 %v2319_v19, %v7674_v10 }
 0xea6   :  { %v2338_v37 = vadd.f32 %v2320_v60, %v7676_v11  ;;  %v2339_v7 = vadd.f32 %v2320_v60, %v7678_v15  ;;  %v2341_v34 = vadd.f32 %v2321_v39, %v7682_v17  ;;  %v2340_v19 = vadd.f32 %v2321_v39, %v7680_v16 }
 0xea7   :  { %v2367_v14 = vmul.f32 %v8492_v33, %v2351_v28  ;;  %v2366_v41 = vmul.f32 %v8492_v33, %v2350_v29  ;;  %v2352_v57 = vmax.f32 %v2336_v50, 0.0  ;;  %v2353_v8 = vmax.f32 %v2337_v6, 0.0 }
 0xea8   :  { %v2354_v62 = vmax.f32 %v2338_v37, 0.0  ;;  %v2355_v2 = vmax.f32 %v2339_v7, 0.0  ;;  %v2315_v60 = vrot.slane %v8477_v45, 5  ;;  %v2342_v28 = vadd.f32 %v2322_v63, %v7684_v18 }
 0xea9   :  { %v2385_v32 = vsel %vm179_vm0, %v2367_v14, 0.0  ;;  %v2382_v0 = vsel %vm179_vm0, %v2366_v41, 0.0  ;;  %v2368_v20 = vmul.f32 %v8492_v33, %v2352_v57  ;;  %v2369_v5 = vmul.f32 %v8492_v33, %v2353_v8 }
 0xeaa   :  { %2386 = vadd.xlane.f32.xlu0 %v2385_v32  ;;  %2383 = vadd.xlane.f32.xlu2 %v2382_v0  ;;  %v2370_v21 = vmul.f32 %v8492_v33, %v2354_v62  ;;  %v2371_v46 = vmul.f32 %v8492_v33, %v2355_v2  ;;  %v2357_v29 = vmax.f32 %v2341_v34, 0.0  ;;  %v2356_v37 = vmax.f32 %v2340_v19, 0.0 }
 0xeab   :  { %v2388_v1 = vsel %vm179_vm0, %v2368_v20, 0.0  ;;  %v2391_v6 = vsel %vm179_vm0, %v2369_v5, 0.0  ;;  %v2323_v31 = vperm.slane %v2315_v60, 0  ;;  %v2358_v41 = vmax.f32 %v2342_v28, 0.0 }
 0xeac   :  { %2389 = vadd.xlane.f32.xlu1 %v2388_v1  ;;  %v2394_v50 = vsel %vm179_vm0, %v2370_v21, 0.0  ;;  %v2397_v14 = vsel %vm179_vm0, %v2371_v46, 0.0  ;;  %v2373_v57 = vmul.f32 %v8492_v33, %v2357_v29  ;;  %v2372_v7 = vmul.f32 %v8492_v33, %v2356_v37 }
 0xead   :  { %v2344_v8 = vadd.f32 %v2323_v31, %v7690_v24  ;;  %v2343_v39 = vadd.f32 %v2322_v63, %v7686_v22  ;;  %v2316_v32 = vrot.slane %v8477_v45, 6  ;;  %v2374_v0 = vmul.f32 %v8492_v33, %v2358_v41 }
 0xeae   :  { %v2345_v20 = vadd.f32 %v2323_v31, %v7697_v30  ;;  %v2317_v62 = vrot.slane %v8477_v45, 7  ;;  %v2403_v1 = vsel %vm179_vm0, %v2373_v57, 0.0  ;;  %v2400_v2 = vsel %vm179_vm0, %v2372_v7, 0.0 }
 0xeaf   :  { %v2360_v34 = vmax.f32 %v2344_v8, 0.0  ;;  %v2359_v21 = vmax.f32 %v2343_v39, 0.0  ;;  %v2324_v5 = vperm.slane %v2316_v32, 0  ;;  %v2406_v19 = vsel %vm179_vm0, %v2374_v0, 0.0 }
 0xeb0   :  { %v2361_v63 = vmax.f32 %v2345_v20, 0.0  ;;  %v2325_v60 = vperm.slane %v2317_v62, 0 }
 0xeb1   :  { %v2376_v46 = vmul.f32 %v8492_v33, %v2360_v34  ;;  %v2375_v28 = vmul.f32 %v8492_v33, %v2359_v21  ;;  %v2347_v45 = vadd.f32 %v2324_v5, %v7736_v13  ;;  %v2346_v29 = vadd.f32 %v2324_v5, %v7721_v51 }
 0xeb2   :  { %2395 = vadd.xlane.f32.xlu0 %v2394_v50  ;;  %2392 = vadd.xlane.f32.xlu2 %v2391_v6  ;;  %v2377_v50 = vmul.f32 %v8492_v33, %v2361_v63  ;;  %v2348_v6 = vadd.f32 %v2325_v60, %v7751_v48  ;;  %v2349_v32 = vadd.f32 %v2325_v60, %v7762_v44 }
 0xeb3   :  { %v2412_v37 = vsel %vm179_vm0, %v2376_v46, 0.0  ;;  %v2409_v31 = vsel %vm179_vm0, %v2375_v28, 0.0  ;;  %v2362_v41 = vmax.f32 %v2346_v29, 0.0 }
 0xeb4   :  { %2398 = vadd.xlane.f32.xlu1 %v2397_v14  ;;  %v2363_v14 = vmax.f32 %v2347_v45, 0.0  ;;  %v2415_v57 = vsel %vm179_vm0, %v2377_v50, 0.0  ;;  %v2364_v7 = vmax.f32 %v2348_v6, 0.0 }
 0xeb5   :  { %v2378_v39 = vmul.f32 %v8492_v33, %v2362_v41 }
 0xeb6   :  { %v2379_v8 = vmul.f32 %v8492_v33, %v2363_v14  ;;  %v2380_v0 = vmul.f32 %v8492_v33, %v2364_v7 }
 0xeb7   :  { %v2418_v62 = vsel %vm179_vm0, %v2378_v39, 0.0 }
 0xeb8   :  { %v2421_v20 = vsel %vm179_vm0, %v2379_v8, 0.0 }
 0xeba   :  { %2404 = vadd.xlane.f32.xlu0 %v2403_v1  ;;  %2401 = vadd.xlane.f32.xlu2 %v2400_v2  ;;  %v2365_v1 = vmax.f32 %v2349_v32, 0.0  ;;  %v2424_v2 = vsel %vm179_vm0, %v2380_v0, 0.0 }
 0xebc   :  { %2407 = vadd.xlane.f32.xlu1 %v2406_v19  ;;  %v2381_v34 = vmul.f32 %v8492_v33, %v2365_v1 }
 0xebe   :  { %v2427_v21 = vsel %vm179_vm0, %v2381_v34, 0.0 }
 0xec2   :  { %2413 = vadd.xlane.f32.xlu0 %v2412_v37  ;;  %2410 = vadd.xlane.f32.xlu2 %v2409_v31 }
 0xec4   :  { %2416 = vadd.xlane.f32.xlu1 %v2415_v57 }
 0xeca   :  { %2422 = vadd.xlane.f32.xlu0 %v2421_v20  ;;  %2419 = vadd.xlane.f32.xlu2 %v2418_v62 }
 0xecc   :  { %2425 = vadd.xlane.f32.xlu1 %v2424_v2 }
 0xed2   :  { %2428 = vadd.xlane.f32.xlu2 %v2427_v21 }
 0xf1d   :  { %v2387_v5 = vpop.xlane.xlu0 %2386  ;;  %v2384_v19 = vpop.xlane.xlu2 %2383 }
 0xf1e   :  { %v2447_v14 = vperm.slane %v2387_v5, %v7790_v36  ;;  %v2446_v41 = vperm.slane %v2384_v19, %v7785_v38 }
 0xf1f   :  { %v2390_v63 = vpop.xlane.xlu1 %2389 }
 0xf20   :  { %v2449_v57 = vperm.slane %v2390_v63, %v7785_v38  ;;  %v2448_v1 = vsel %vm752_vm10, %v2447_v14, %v2446_v41 }
 0xf25   :  { %v2396_v60 = vpop.xlane.xlu0 %2395  ;;  %v2393_v46 = vpop.xlane.xlu2 %2392 }
 0xf26   :  { %v2450_v33 = vperm.slane %v2393_v46, %v7790_v36  ;;  %v2452_v0 = vperm.slane %v2396_v60, %v7785_v38 }
 0xf27   :  { %v2399_v28 = vpop.xlane.xlu1 %2398 }
 0xf28   :  { %v2453_v7 = vperm.slane %v2399_v28, %v7790_v36  ;;  %v2451_v8 = vsel %vm752_vm10, %v2450_v33, %v2449_v57 }
 0xf29   :  { %v2470_v34 = vsel %vm283_vm2, %v2451_v8, %v2448_v1 }
 0xf2a   :  { %v2454_v21 = vsel %vm752_vm10, %v2453_v7, %v2452_v0 }
 0xf2b   :  { %v2471_v41 = vsel %vm285_vm3, %v2454_v21, %v2470_v34 }
 0xf2d   :  { %v8540_v45 = vpop.xlane.xlu0 %2404  ;;  %v8542_v29 = vpop.xlane.xlu2 %2401 }
 0xf2e   :  { %v2456_v39 = vperm.slane %v8540_v45, %v7790_v36  ;;  %v2455_v32 = vperm.slane %v8542_v29, %v7785_v38 }
 0xf2f   :  { %v8544_v50 = vpop.xlane.xlu1 %2407 }
 0xf30   :  { %v2458_v33 = vperm.slane %v8544_v50, %v7785_v38  ;;  %v2457_v57 = vsel %vm752_vm10, %v2456_v39, %v2455_v32 }
 0xf31   :  { %v2472_v8 = vsel %vm287_vm4, %v2457_v57, %v2471_v41 }
 0xf35   :  { %v8546_v6 = vpop.xlane.xlu0 %2413  ;;  %v8548_v37 = vpop.xlane.xlu2 %2410 }
 0xf36   :  { %v2459_v20 = vperm.slane %v8548_v37, %v7790_v36  ;;  %v2461_v7 = vperm.slane %v8546_v6, %v7785_v38 }
 0xf37   :  { %v8551_v31 = vpop.xlane.xlu1 %2416 }
 0xf38   :  { %v2462_v47 = vperm.slane %v8551_v31, %v7790_v36  ;;  %v2460_v61 = vsel %vm752_vm10, %v2459_v20, %v2458_v33 }
 0xf39   :  { %v2473_v32 = vsel %vm289_vm5, %v2460_v61, %v2472_v8 }
 0xf3a   :  { %v2463_v39 = vsel %vm752_vm10, %v2462_v47, %v2461_v7 }
 0xf3b   :  { %v2474_v21 = vsel %vm291_vm6, %v2463_v39, %v2473_v32 }
 0xf3d   :  { %v8565_v62 = vpop.xlane.xlu2 %2419  ;;  %v8568_v2 = vpop.xlane.xlu0 %2422 }
 0xf3e   :  { %v2465_v59 = vperm.slane %v8568_v2, %v7790_v36  ;;  %v2464_v14 = vperm.slane %v8565_v62, %v7785_v38 }
 0xf3f   :  { %v8586_v0 = vpop.xlane.xlu1 %2425 }
 0xf40   :  { %v2466_v1 = vsel %vm752_vm10, %v2465_v59, %v2464_v14  ;;  %v2467_v33 = vperm.slane %v8586_v0, %v7785_v38 }
 0xf41   :  { %v2475_v41 = vsel %vm293_vm7, %v2466_v1, %v2474_v21 }
 0xf45   :  { %v8590_v20 = vpop.xlane.xlu2 %2428 }
 0xf46   :  { %v2468_v34 = vperm.slane %v8590_v20, %v7790_v36 }
 0xf48   :  { %v2469_v57 = vsel %vm752_vm10, %v2468_v34, %v2467_v33 }
 0xf49   :  { %v2476_v47 = vsel %vm295_vm8, %v2469_v57, %v2475_v41 }
 0xf4a   :  { %v2478_v61 = vsel %vm449_vm9, %v2476_v47, -inf }
 0xf4b   :  { %2479 = vmax.xlane.f32.xlu0 %v2478_v61 }
 0xfbe   :  { %v8602_v7 = vpop.xlane.xlu0 %2479 }
 0xfbf   :  { %v2483_v59 = vperm.slane %v8602_v7, 1  ;;  %v2482_v14 = vperm.slane %v8602_v7, 0  ;;  %v2484_v39 = vperm.slane %v8602_v7, 2  ;;  %v2485_v47 = vperm.slane %v8602_v7, 3 }
 0xfc0   :  { %v2486_v61 = vperm.slane %v8602_v7, 4 }
 0xfc1   :  { %v2500_v8 = vsub.f32 %v2390_v63, %v2483_v59  ;;  %v2499_v42 = vsub.f32 %v2387_v5, %v2482_v14  ;;  %v2498_v43 = vsub.f32 %v2384_v19, %v2482_v14  ;;  %v2501_v1 = vsub.f32 %v2393_v46, %v2483_v59 }
 0xfc2   :  { %v2503_v21 = vsub.f32 %v2399_v28, %v2484_v39  ;;  %v2502_v57 = vsub.f32 %v2396_v60, %v2484_v39  ;;  %v2506_v60 = vsub.f32 %v8544_v50, %v2486_v61  ;;  %v2505_v46 = vsub.f32 %v8540_v45, %v2485_v47 }
 0xfc3   :  { %v2518_v32 = vmul.f32 1.442695, %v2500_v8  ;;  %v2516_v33 = vmul.f32 1.442695, %v2499_v42  ;;  %v2514_v34 = vmul.f32 1.442695, %v2498_v43  ;;  %v2504_v42 = vsub.f32 %v8542_v29, %v2485_v47 }
 0xfc4   :  { %v2520_v41 = vmul.f32 1.442695, %v2501_v1  ;;  %v2524_v26 = vmul.f32 1.442695, %v2503_v21  ;;  %v2522_v5 = vmul.f32 1.442695, %v2502_v57 }
 0xfc5   :  { %6728 = vpow2.f32 %v2518_v32  ;;  %v2526_v28 = vmul.f32 1.442695, %v2504_v42  ;;  %v2487_v59 = vperm.slane %v8602_v7, 5  ;;  %v2530_v14 = vmul.f32 1.442695, %v2506_v60 }
 0xfc6   :  { %6730 = vpow2.f32 %v2516_v33  ;;  %v2528_v39 = vmul.f32 1.442695, %v2505_v46  ;;  %v2489_v1 = vperm.slane %v8602_v7, 7 }
 0xfc7   :  { %6732 = vpow2.f32 %v2514_v34  ;;  %v2509_v45 = vsub.f32 %v8551_v31, %v2487_v59  ;;  %v2508_v50 = vsub.f32 %v8546_v6, %v2487_v59  ;;  %v2488_v34 = vperm.slane %v8602_v7, 6 }
 0xfc8   :  { %6734 = vpow2.f32 %v2520_v41  ;;  %v2512_v31 = vsub.f32 %v8586_v0, %v2489_v1 }
 0xfc9   :  { %6736 = vpow2.f32 %v2524_v26  ;;  %v2507_v26 = vsub.f32 %v8548_v37, %v2486_v61  ;;  %v2536_v21 = vmul.f32 1.442695, %v2509_v45  ;;  %v2534_v41 = vmul.f32 1.442695, %v2508_v50 }
 0xfca   :  { %6738 = vpow2.f32 %v2522_v5  ;;  %v2510_v6 = vsub.f32 %v8565_v62, %v2488_v34  ;;  %v2511_v7 = vsub.f32 %v8568_v2, %v2488_v34  ;;  %v2542_v5 = vmul.f32 1.442695, %v2512_v31 }
 0xfcb   :  { %v8609_v63 = vpop.eup %6728  ;;  %6740 = vpow2.f32 %v2526_v28  ;;  %v2532_v33 = vmul.f32 1.442695, %v2507_v26  ;;  %v2513_v62 = vsub.f32 %v8590_v20, %v2489_v1 }
 0xfcc   :  { %v8611_v19 = vpop.eup %6730  ;;  %2569 = vperm.xlu0 %6626, %v8609_v63   ;;  %6742 = vpow2.f32 %v2530_v14  ;;  %v2538_v61 = vmul.f32 1.442695, %v2510_v6  ;;  %v2540_v60 = vmul.f32 1.442695, %v2511_v7 }
 0xfcd   :  { %v8614_v43 = vpop.eup %6732  ;;  %2566 = vperm.xlu2 %6625, %v8611_v19   ;;  %6744 = vpow2.f32 %v2528_v39  ;;  %v2544_v2 = vmul.f32 1.442695, %v2513_v62 }
 0xfce   :  { %2563 = vperm.xlu1 %6627, %v8614_v43   ;;  %v8622_v8 = vpop.eup %6734  ;;  %6746 = vpow2.f32 %v2532_v33 }
 0xfcf   :  { %v8624_v32 = vpop.eup %6736  ;;  %6748 = vpow2.f32 %v2536_v21 }
 0xfd0   :  { %v8627_v29 = vpop.eup %6738  ;;  %6750 = vpow2.f32 %v2534_v41 }
 0xfd1   :  { %v8636_v57 = vpop.eup %6740  ;;  %6752 = vpow2.f32 %v2538_v61 }
 0xfd2   :  { %v8638_v47 = vpop.eup %6742  ;;  %6754 = vpow2.f32 %v2542_v5 }
 0xfd3   :  { %v8641_v37 = vpop.eup %6744  ;;  %6756 = vpow2.f32 %v2540_v60 }
 0xfd4   :  { %2572 = vperm.xlu0 %6626, %v8622_v8   ;;  %v8648_v42 = vpop.eup %6746  ;;  %6758 = vpow2.f32 %v2544_v2 }
 0xfd5   :  { %2578 = vperm.xlu2 %6625, %v8624_v32   ;;  %v8650_v46 = vpop.eup %6748 }
 0xfd6   :  { %2575 = vperm.xlu1 %6627, %v8627_v29   ;;  %v8653_v28 = vpop.eup %6750 }
 0xfd7   :  { %v8658_v0 = vpop.eup %6752 }
 0xfd8   :  { %v8660_v59 = vpop.eup %6754 }
 0xfd9   :  { %v8663_v14 = vpop.eup %6756 }
 0xfda   :  { %v8667_v39 = vpop.eup %6758 }
 0xfdc   :  { %2581 = vperm.xlu0 %6626, %v8636_v57  }
 0xfdd   :  { %2587 = vperm.xlu2 %6625, %v8638_v47  }
 0xfde   :  { %2584 = vperm.xlu1 %6627, %v8641_v37  }
 0xfe4   :  { %2590 = vperm.xlu0 %6626, %v8648_v42  }
 0xfe5   :  { %2596 = vperm.xlu2 %6625, %v8650_v46  }
 0xfe6   :  { %2593 = vperm.xlu1 %6627, %v8653_v28  }
 0xfec   :  { %2599 = vperm.xlu0 %6626, %v8658_v0  }
 0xfed   :  { %2605 = vperm.xlu2 %6625, %v8660_v59  }
 0xfee   :  { %2602 = vperm.xlu1 %6627, %v8663_v14  }
 0xff4   :  { %2608 = vperm.xlu0 %6626, %v8667_v39  }
0x1027   :  { %v2567_v20 = vpop.permute.xlu2 %2566 }
0x1028   :  { %v2611_v2 = vperm.slane %v2567_v20, %v7790_v36 }
0x102f   :  { %v2579_v50 = vpop.permute.xlu2 %2578 }
0x1030   :  { %v2617_v58 = vperm.slane %v2579_v50, %v7790_v36 }
0x1037   :  { %v2588_v21 = vpop.permute.xlu2 %2587 }
0x103e   :  { %v2570_v26 = vpop.permute.xlu0 %2569 }
0x103f   :  { %v2597_v61 = vpop.permute.xlu2 %2596  ;;  %v2613_v5 = vperm.slane %v2570_v26, %v7785_v38  ;;  %v2622_v26 = vperm.slane %v2588_v21, %v7785_v38 }
0x1040   :  { %v2564_v45 = vpop.permute.xlu1 %2563 }
0x1041   :  { %v2610_v60 = vperm.slane %v2564_v45, %v7785_v38 }
0x1043   :  { %v2612_v40 = vsel %vm752_vm10, %v2611_v2, %v2610_v60 }
0x1046   :  { %v2573_v33 = vpop.permute.xlu0 %2572 }
0x1047   :  { %v2614_v7 = vperm.slane %v2573_v33, %v7790_v36  ;;  %v2606_v21 = vpop.permute.xlu2 %2605 }
0x1048   :  { %v2576_v34 = vpop.permute.xlu1 %2575 }
0x1049   :  { %v2616_v62 = vperm.slane %v2576_v34, %v7785_v38  ;;  %v2615_v35 = vsel %vm752_vm10, %v2614_v7, %v2613_v5  ;;  %v2626_v5 = vperm.slane %v2597_v61, %v7790_v36 }
0x104a   :  { %v2634_v45 = vsel %vm283_vm2, %v2615_v35, %v2612_v40 }
0x104b   :  { %v2618_v34 = vsel %vm752_vm10, %v2617_v58, %v2616_v62 }
0x104c   :  { %v2635_v60 = vsel %vm285_vm3, %v2618_v34, %v2634_v45 }
0x104e   :  { %v2582_v1 = vpop.permute.xlu0 %2581 }
0x104f   :  { %v2619_v53 = vperm.slane %v2582_v1, %v7785_v38 }
0x1050   :  { %v2585_v41 = vpop.permute.xlu1 %2584 }
0x1051   :  { %v2620_v27 = vperm.slane %v2585_v41, %v7790_v36 }
0x1053   :  { %v2621_v7 = vsel %vm752_vm10, %v2620_v27, %v2619_v53 }
0x1054   :  { %v2636_v40 = vsel %vm287_vm4, %v2621_v7, %v2635_v60 }
0x1056   :  { %v2591_v6 = vpop.permute.xlu0 %2590 }
0x1057   :  { %v2623_v56 = vperm.slane %v2591_v6, %v7790_v36 }
0x1058   :  { %v2594_v31 = vpop.permute.xlu1 %2593 }
0x1059   :  { %v2625_v1 = vperm.slane %v2594_v31, %v7785_v38  ;;  %v2624_v41 = vsel %vm752_vm10, %v2623_v56, %v2622_v26  ;;  %v2631_v56 = vperm.slane %v2606_v21, %v7785_v38 }
0x105a   :  { %v2637_v35 = vsel %vm289_vm5, %v2624_v41, %v2636_v40 }
0x105b   :  { %v2627_v58 = vsel %vm752_vm10, %v2626_v5, %v2625_v1 }
0x105c   :  { %v2638_v62 = vsel %vm291_vm6, %v2627_v58, %v2637_v35 }
0x105e   :  { %v2600_v33 = vpop.permute.xlu0 %2599 }
0x105f   :  { %v2628_v50 = vperm.slane %v2600_v33, %v7785_v38 }
0x1060   :  { %v2603_v20 = vpop.permute.xlu1 %2602 }
0x1061   :  { %v2629_v6 = vperm.slane %v2603_v20, %v7790_v36 }
0x1063   :  { %v2630_v27 = vsel %vm752_vm10, %v2629_v6, %v2628_v50 }
0x1064   :  { %v2639_v2 = vsel %vm293_vm7, %v2630_v27, %v2638_v62 }
0x1066   :  { %v2609_v53 = vpop.permute.xlu0 %2608 }
0x1067   :  { %v2632_v31 = vperm.slane %v2609_v53, %v7790_v36 }
0x1069   :  { %v2633_v61 = vsel %vm752_vm10, %v2632_v31, %v2631_v56 }
0x106a   :  { %v2640_v33 = vsel %vm295_vm8, %v2633_v61, %v2639_v2  ;;  %v7015_v2 = vld [vmem:[#allocation3 + $0x18] sm:$0xff] }
0x106b   :  { %v2642_v26 = vsel %vm449_vm9, %v2640_v33, 0.0  ;;  %v7016_v33 = vld [vmem:[#allocation3 + $0x28] sm:$0xff] }
0x106c   :  { %2643 = vadd.xlane.f32.xlu1 %v2642_v26 }
0x10df   :  { %v2644_v45 = vpop.xlane.xlu1 %2643 }
0x10e0   :  { %6760 = vrcp.f32 %v2644_v45 }
0x10e6   :  { %v6761_v34 = vpop.eup %6760 }
0x10e7   :  { %v2652_v20 = vperm.slane %v6761_v34, 5  ;;  %v2647_v7 = vperm.slane %v6761_v34, 0  ;;  %v2648_v6 = vperm.slane %v6761_v34, 1 }
0x10e9   :  { %v8703_v1 = vmul.f32 %v8650_v46, %v2652_v20  ;;  %v8706_v41 = vmul.f32 %v8611_v19, %v2647_v7  ;;  %v8709_v50 = vmul.f32 %v8614_v43, %v2647_v7  ;;  %v8715_v5 = vmul.f32 %v8622_v8, %v2648_v6 }
0x10ea   :  { %v8718_v60 = vmul.f32 %v8609_v63, %v2648_v6  ;;  %v2649_v19 = vperm.slane %v6761_v34, 2  ;;  %v2650_v8 = vperm.slane %v6761_v34, 3 }
0x10eb   :  { %10901 = vst [vmem:[#allocation58_spill] sm:$0xff] %v8703_v1  ;;  %2736 = vperm.xlu1 %6627, %v8703_v1   ;;  %2686 = vperm.xlu0 %6626, %v8706_v41  }
0x10ec   :  { %10902 = vst [vmem:[#allocation59_spill] sm:$0xff] %v8706_v41  ;;  %2681 = vperm.xlu2 %6625, %v8709_v50   ;;  %v8723_v43 = vmul.f32 %v8624_v32, %v2649_v19  ;;  %v8726_v46 = vmul.f32 %v8627_v29, %v2649_v19  ;;  %v8731_v21 = vmul.f32 %v8641_v37, %v2650_v8  ;;  %v2651_v32 = vperm.slane %v6761_v34, 4  ;;  %v7019_v19 = vld [vmem:[#allocation3 + $0x38] sm:$0xff] }
0x10ed   :  { %10903 = vst [vmem:[#allocation60_spill] sm:$0xff] %v8715_v5  ;;  %v8734_v63 = vmul.f32 %v8636_v57, %v2650_v8  ;;  %v2653_v37 = vperm.slane %v6761_v34, 6  ;;  %v8750_v57 = vmul.f32 %v8653_v28, %v2652_v20  ;;  %v7017_v20 = vld [vmem:[#allocation3 + $0x10] sm:$0xff] }
0x10ee   :  { %10904 = vst [vmem:[#allocation61_spill] sm:$0xff] %v8718_v60  ;;  %v8739_v40 = vmul.f32 %v8648_v42, %v2651_v32  ;;  %v8742_v29 = vmul.f32 %v8638_v47, %v2651_v32  ;;  %v2654_v42 = vperm.slane %v6761_v34, 7  ;;  %v7020_v32 = vld [vmem:[#allocation3] sm:$0xff] }
0x10ef   :  { %10905 = vst [vmem:[#allocation62_spill] sm:$0xff] %v8723_v43  ;;  %v8747_v58 = vmul.f32 %v8658_v0, %v2653_v37  ;;  %v8758_v47 = vmul.f32 %v8663_v14, %v2653_v37 }
0x10f0   :  { %10906 = vst [vmem:[#allocation63_spill] sm:$0xff] %v8726_v46  ;;  %v8755_v35 = vmul.f32 %v8660_v59, %v2654_v42  ;;  %v8763_v0 = vmul.f32 %v8667_v39, %v2654_v42  ;;  %v7018_v39 = vld [vmem:[#allocation3 + $0x8] sm:$0xff]  ;;  %v7021_v42 = vld [vmem:[#allocation3 + $0x20] sm:$0xff] }
0x10f1   :  { %10907 = vst [vmem:[#allocation64_spill] sm:$0xff] %v8731_v21 }
0x10f2   :  { %10908 = vst [vmem:[#allocation65_spill] sm:$0xff] %v8734_v63 }
0x10f3   :  { %2696 = vperm.xlu0 %6626, %v8715_v5   ;;  %10909 = vst [vmem:[#allocation66_spill] sm:$0xff] %v8739_v40 }
0x10f4   :  { %2691 = vperm.xlu2 %6625, %v8718_v60   ;;  %10910 = vst [vmem:[#allocation67_spill] sm:$0xff] %v8742_v29 }
0x10f5   :  { %10911 = vst [vmem:[#allocation68_spill] sm:$0xff] %v8747_v58 }
0x10f6   :  { %10912 = vst [vmem:[#allocation69_spill] sm:$0xff] %v8750_v57 }
0x10f7   :  { %10913 = vst [vmem:[#allocation70_spill] sm:$0xff] %v8755_v35 }
0x10f8   :  { %10914 = vst [vmem:[#allocation71_spill] sm:$0xff] %v8758_v47 }
0x10f9   :  { %10915 = vst [vmem:[#allocation72_spill] sm:$0xff] %v8763_v0 }
0x10fb   :  { %2706 = vperm.xlu0 %6626, %v8723_v43  }
0x10fc   :  { %2701 = vperm.xlu2 %6625, %v8726_v46  }
0x1103   :  { %2716 = vperm.xlu0 %6626, %v8731_v21  }
0x1104   :  { %2711 = vperm.xlu2 %6625, %v8734_v63  }
0x110b   :  { %2726 = vperm.xlu0 %6626, %v8739_v40  }
0x110c   :  { %2721 = vperm.xlu2 %6625, %v8742_v29  }
0x1113   :  { %2741 = vperm.xlu0 %6626, %v8747_v58  }
0x1114   :  { %2731 = vperm.xlu2 %6625, %v8750_v57  }
0x111b   :  { %2751 = vperm.xlu0 %6626, %v8755_v35  }
0x111c   :  { %2746 = vperm.xlu2 %6625, %v8758_v47  }
0x1124   :  { %2756 = vperm.xlu2 %6625, %v8763_v0   ;;  %v7022_v0 = vld [vmem:[#allocation3 + $0x30] sm:$0xff] }
0x1146   :  { %v2682_v28 = vpop.permute.xlu2 %2681 }
0x1147   :  { %v2759_v37 = vmul.f32 %v7020_v32, %v2682_v28  ;;  %v7025_v32 = vld [vmem:[#allocation3 + $0x58] sm:$0xff] }
0x114e   :  { %v2692_v53 = vpop.permute.xlu2 %2691 }
0x114f   :  { %v2761_v7 = vmul.f32 %v7017_v20, %v2692_v53  ;;  %v7023_v20 = vld [vmem:[#allocation3 + $0x40] sm:$0xff] }
0x1156   :  { %v2702_v27 = vpop.permute.xlu2 %2701 }
0x1157   :  { %v2763_v47 = vmul.f32 %v7021_v42, %v2702_v27  ;;  %v7026_v42 = vld [vmem:[#allocation3 + $0x48] sm:$0xff] }
0x115d   :  { %v2687_v56 = vpop.permute.xlu0 %2686 }
0x115e   :  { %v2712_v31 = vpop.permute.xlu2 %2711  ;;  %v2760_v6 = vmul.f32 %v7018_v39, %v2687_v56  ;;  %v2775_v56 = vsel %vm179_vm0, %v2759_v37, 0.0 }
0x115f   :  { %v2765_v58 = vmul.f32 %v7022_v0, %v2712_v31 }
0x1161   :  { %v2802_v27 = vsel %vm179_vm0, %v2765_v58, 0.0 }
0x1165   :  { %v2697_v62 = vpop.permute.xlu0 %2696 }
0x1166   :  { %v2722_v59 = vpop.permute.xlu2 %2721  ;;  %v2762_v14 = vmul.f32 %v7015_v2, %v2697_v62  ;;  %v2776_v2 = vsel %vm179_vm0, %v2760_v6, 0.0 }
0x1167   :  { %v2767_v0 = vmul.f32 %v7023_v20, %v2722_v59 }
0x1168   :  { %v2785_v35 = vsel %vm179_vm0, %v2762_v14, 0.0  ;;  %v7024_v14 = vld [vmem:[#allocation3 + $0x50] sm:$0xff] }
0x116d   :  { %v2707_v61 = vpop.permute.xlu0 %2706 }
0x116e   :  { %v2764_v26 = vmul.f32 %v7016_v33, %v2707_v61  ;;  %v2732_v45 = vpop.permute.xlu2 %2731  ;;  %v2784_v61 = vsel %vm179_vm0, %v2761_v7, 0.0  ;;  %v2793_v33 = vsel %vm179_vm0, %v2763_v47, 0.0  ;;  %v2811_v47 = vsel %vm179_vm0, %v2767_v0, 0.0 }
0x116f   :  { %v2786_v28 = vadd.f32 %v2785_v35, %v2784_v61  ;;  %v2769_v39 = vmul.f32 %v7024_v14, %v2732_v45 }
0x1170   :  { %v2794_v62 = vsel %vm179_vm0, %v2764_v26, 0.0  ;;  %v2777_v26 = vadd.f32 %v2776_v2, %v2775_v56 }
0x1171   :  { %v2795_v31 = vadd.f32 %v2794_v62, %v2793_v33  ;;  %v2787_v1 = vrot.slane %v2786_v28, 4  ;;  %v2820_v35 = vsel %vm179_vm0, %v2769_v39, 0.0 }
0x1172   :  { %v2778_v59 = vrot.slane %v2777_v26, 4 }
0x1173   :  { %v2796_v40 = vrot.slane %v2795_v31, 4  ;;  %v2788_v2 = vadd.f32 %v2787_v1, %v2786_v28 }
0x1174   :  { %v2779_v20 = vadd.f32 %v2778_v59, %v2777_v26 }
0x1175   :  { %v2717_v34 = vpop.permute.xlu0 %2716  ;;  %v2797_v33 = vadd.f32 %v2796_v40, %v2795_v31  ;;  %v2789_v39 = vrot.slane %v2788_v2, 2 }
0x1176   :  { %v2766_v8 = vmul.f32 %v7019_v19, %v2717_v34  ;;  %v2737_v34 = vpop.permute.xlu1 %2736  ;;  %v2747_v37 = vpop.permute.xlu2 %2746 }
0x1177   :  { %v2770_v6 = vmul.f32 %v7025_v32, %v2737_v34  ;;  %v7027_v34 = vld [vmem:[#allocation3 + $0x68] sm:$0xff]  ;;  %v7028_v32 = vld [vmem:[#allocation3 + $0x60] sm:$0xff]  ;;  %v2790_v31 = vadd.f32 %v2789_v39, %v2788_v2 }
0x1178   :  { %v2803_v53 = vsel %vm179_vm0, %v2766_v8, 0.0 }
0x1179   :  { %v2804_v19 = vadd.f32 %v2803_v53, %v2802_v27  ;;  %v2821_v45 = vsel %vm179_vm0, %v2770_v6, 0.0  ;;  %v2772_v27 = vmul.f32 %v7027_v34, %v2747_v37  ;;  %v2780_v6 = vrot.slane %v2779_v20, 2 }
0x117a   :  { %v2822_v53 = vadd.f32 %v2821_v45, %v2820_v35 }
0x117b   :  { %v2805_v62 = vrot.slane %v2804_v19, 4  ;;  %v2830_v63 = vsel %vm179_vm0, %v2772_v27, 0.0 }
0x117c   :  { %v2823_v29 = vrot.slane %v2822_v53, 4 }
0x117d   :  { %v2727_v7 = vpop.permute.xlu0 %2726  ;;  %v2806_v14 = vadd.f32 %v2805_v62, %v2804_v19  ;;  %v2781_v62 = vadd.f32 %v2780_v6, %v2779_v20 }
0x117e   :  { %v2768_v8 = vmul.f32 %v7026_v42, %v2727_v7  ;;  %v2757_v28 = vpop.permute.xlu2 %2756  ;;  %v2824_v37 = vadd.f32 %v2823_v29, %v2822_v53 }
0x117f   :  { %v2807_v1 = vrot.slane %v2806_v14, 2  ;;  %v2782_v29 = vrot.slane %v2781_v62, 1 }
0x1180   :  { %v2812_v58 = vsel %vm179_vm0, %v2768_v8, 0.0  ;;  %v2798_v8 = vrot.slane %v2797_v33, 2 }
0x1181   :  { %v2813_v61 = vadd.f32 %v2812_v58, %v2811_v47  ;;  %v7029_v58 = vld [vmem:[#allocation3 + $0x78] sm:$0xff] }
0x1182   :  { %v2799_v19 = vadd.f32 %v2798_v8, %v2797_v33  ;;  %v2774_v59 = vmul.f32 %v7029_v58, %v2757_v28 }
0x1183   :  { %v2814_v56 = vrot.slane %v2813_v61, 4 }
0x1184   :  { %v2800_v60 = vrot.slane %v2799_v19, 1 }
0x1185   :  { %v2742_v7 = vpop.permute.xlu0 %2741  ;;  %v2815_v0 = vadd.f32 %v2814_v56, %v2813_v61  ;;  %v2808_v61 = vadd.f32 %v2807_v1, %v2806_v14 }
0x1186   :  { %v2771_v42 = vmul.f32 %v7028_v32, %v2742_v7  ;;  %v7030_v7 = vld [vmem:[#allocation3 + $0x70] sm:$0xff]  ;;  %v2791_v32 = vrot.slane %v2790_v31, 1  ;;  %v2801_v6 = vadd.f32 %v2800_v60, %v2799_v19 }
0x1187   :  { %v2816_v40 = vrot.slane %v2815_v0, 2  ;;  %v2809_v53 = vrot.slane %v2808_v61, 1 }
0x1188   :  { %v2829_v47 = vsel %vm179_vm0, %v2771_v42, 0.0  ;;  %v2825_v42 = vrot.slane %v2824_v37, 2  ;;  %v2792_v20 = vadd.f32 %v2791_v32, %v2790_v31 }
0x1189   :  { %v2831_v35 = vadd.f32 %v2830_v63, %v2829_v47  ;;  %v2817_v34 = vadd.f32 %v2816_v40, %v2815_v0  ;;  %v2839_v63 = vsel %vm179_vm0, %v2774_v59, 0.0  ;;  %v2783_v0 = vadd.f32 %v2782_v29, %v2781_v62 }
0x118a   :  { %v2826_v14 = vadd.f32 %v2825_v42, %v2824_v37  ;;  %v2810_v1 = vadd.f32 %v2809_v53, %v2808_v61 }
0x118b   :  { %v2832_v26 = vrot.slane %v2831_v35, 4  ;;  %v2818_v39 = vrot.slane %v2817_v34, 1 }
0x118c   :  { %v2827_v58 = vrot.slane %v2826_v14, 1 }
0x118d   :  { %v2833_v45 = vadd.f32 %v2832_v26, %v2831_v35  ;;  %v2752_v56 = vpop.permute.xlu0 %2751  ;;  %v2819_v35 = vadd.f32 %v2818_v39, %v2817_v34  ;;  %v2855_v26 = vsel %vm283_vm2, %v2792_v20, %v2783_v0 }
0x118e   :  { %v2773_v27 = vmul.f32 %v7030_v7, %v2752_v56  ;;  %v2856_v56 = vsel %vm285_vm3, %v2801_v6, %v2855_v26  ;;  %v2828_v31 = vadd.f32 %v2827_v58, %v2826_v14 }
0x118f   :  { %v2834_v43 = vrot.slane %v2833_v45, 2 }
0x1190   :  { %v2838_v2 = vsel %vm179_vm0, %v2773_v27, 0.0  ;;  %v2857_v27 = vsel %vm287_vm4, %v2810_v1, %v2856_v56 }
0x1191   :  { %v2840_v33 = vadd.f32 %v2839_v63, %v2838_v2  ;;  %v2835_v8 = vadd.f32 %v2834_v43, %v2833_v45  ;;  %v2858_v43 = vsel %vm289_vm5, %v2819_v35, %v2857_v27  ;;  %v2290_v45 = vadd.f32 %v8471_v4, %v8044_v3  ;;  %v2266_v35 = vpop.f32.mrf.mxu3 }
0x1192   :  { %v2859_v19 = vsel %vm291_vm6, %v2828_v31, %v2858_v43 }
0x1193   :  { %v2841_v47 = vrot.slane %v2840_v33, 4  ;;  %v2836_v40 = vrot.slane %v2835_v8, 1  ;;  %v6568_v34 = vmul.f32 -1.442695, %v2290_v45 }
0x1195   :  { %v2842_v28 = vadd.f32 %v2841_v47, %v2840_v33  ;;  %v2837_v63 = vadd.f32 %v2836_v40, %v2835_v8  ;;  %6762 = vpow2.f32 %v6568_v34  ;;  %v7031_v40 = vld [vmem:[%s10768_s12] ss:$0 sm:$0xff] }
0x1197   :  { %v2843_v59 = vrot.slane %v2842_v28, 2  ;;  %v2860_v62 = vsel %vm293_vm7, %v2837_v63, %v2859_v19 }
0x1199   :  { %v2844_v7 = vadd.f32 %v2843_v59, %v2842_v28  ;;  %v494_v28 = vpop.f32.mrf.mxu2 }
0x119a   :  { %v495_v26 = vadd.f32 %v7031_v40, %v494_v28  ;;  %v7037_v28 = vld [vmem:[#allocation14 + $0x10] sm:$0xff]  ;;  %v7039_v40 = vld [vmem:[#allocation12 + $0x8] sm:$0xff] }
0x119b   :  { %v2845_v37 = vrot.slane %v2844_v7, 1  ;;  %v6763_v32 = vpop.eup %6762 }
0x119c   :  { %v2294_v42 = vadd.f32 1.0, %v6763_v32  ;;  %v2868_v58 = vadd.f32 %v2266_v35, %v495_v26  ;;  %v7038_v35 = vld [vmem:[%s10765_s9 + $0x18] sm:$0xff]  ;;  %v7040_v26 = vld [vmem:[#allocation14 + $0x8] sm:$0xff] }
0x119d   :  { %v2846_v60 = vadd.f32 %v2845_v37, %v2844_v7 }
0x119e   :  { %6764 = vrcp.f32 %v2294_v42  ;;  %v2306_v8 = vand.u32 2147483648, %v2294_v42  ;;  %vm2300_vm1 = vweird.f32 %v2294_v42  ;;  %v2304_v20 = vand.u32 2147483647, %v2294_v42 }
0x119f   :  { %v2861_v61 = vsel %vm295_vm8, %v2846_v60, %v2860_v62 }
0x11a0   :  { %2862 = vrot.lane.b32.xlu0 %v2861_v61, %s7391_s25  ;;  %v2307_v47 = vor.u32 1.1754944e-38, %v2306_v8  ;;  %vm2305_vm12 = vcmp.eq.f32.partialorder %v2304_v20, 8.507059e+37  ;;  %v442_v8 = vld [vmem:[#allocation6 + $0x30] sm:$0xff] }
0x11a4   :  { %v6765_v2 = vpop.eup %6764 }
0x11a5   :  { %v2296_v29 = vmul.f32 %v6765_v2, %v2294_v42  ;;  %vm2301_vm15 = vweird.f32 %v6765_v2 }
0x11a6   :  { %vm2302_vm11 = vmor %vm2300_vm1, %vm2301_vm15 }
0x11a7   :  { %v2297_v53 = vsub.f32 1.0, %v2296_v29 }
0x11a9   :  { %v2298_v33 = vmul.f32 %v6765_v2, %v2297_v53  ;;  %v439_v53 = vld [vmem:[#allocation6 + $0x18] sm:$0xff] }
0x11aa   :  { %6549 = vmatmul.msk.f32.gmra.mxu2 %vm449_vm9, %v439_v53 }
0x11ab   :  { %v2299_v39 = vadd.f32 %v6765_v2, %v2298_v33  ;;  %v440_v33 = vld [vmem:[#allocation6 + $0x20] sm:$0xff] }
0x11ad   :  { %v2303_v14 = vsel %vm2302_vm11, %v6765_v2, %v2299_v39  ;;  %v441_v39 = vld [vmem:[#allocation6 + $0x28] sm:$0xff] }
0x11ae   :  { %v2308_v6 = vsel %vm2305_vm12, %v2307_v47, %v2303_v14  ;;  %v7032_v47 = vld [vmem:[%s10765_s9 + $0x38] sm:$0xff] }
0x11b2   :  { %6550 = vmatmul.msk.f32.gmra.mxu2 %vm449_vm9, %v440_v33 }
0x11ba   :  { %6551 = vmatmul.msk.f32.gmra.mxu2 %vm449_vm9, %v441_v39  ;;  %v8857_v39 = vld [vmem:[%s10762_s6] ss:$0 sm:$0xff] }
0x11c2   :  { %6552 = vmatmul.msk.f32.gmra.mxu2 %vm449_vm9, %v442_v8 }
0x1212   :  { %v2863_v4 = vpop.permute.xlu0 %2862 }
0x1213   :  { %v2865_v0 = vmul.f32 %v2863_v4, %v2308_v6  ;;  %v7033_v6 = vld [vmem:[#allocation12 + $0x18] sm:$0xff] }
0x1214   :  { %v7034_v4 = vld [vmem:[#allocation14 + $0x18] sm:$0xff] }
0x1215   :  { %2870 = vrot.lane.b32.xlu2 %v2865_v0, %s7392_s17  ;;  %v7035_v0 = vld [vmem:[%s10765_s9 + $0x28] sm:$0xff] }
0x126f   :  { %v2871_v1 = vpop.permute.xlu2 %2870 }
0x1270   :  { %6569 = vmatmul.msk.f32.vlgmr.msra.gmra.mxu3 %vm179_vm0, %v2871_v1  ;;  %v7036_v1 = vld [vmem:[#allocation12 + $0x10] sm:$0xff] }
0x1271   :  { %3797 = vmatpush.msra.mxu3 %v8440_v12 }
0x1273   :  { %3798 = vmatpush.msra.mxu3 %v8446_v54 }
0x1275   :  { %3799 = vmatpush.msra.mxu3 %v8452_v55 }
0x1277   :  { %3800 = vmatpush.msra.mxu3 %v8458_v49 }
0x12f3   :  { %v2891_v59 = vpop.f32.mrf.mxu3 }
0x12f4   :  { %v2894_v56 = vadd.f32 %v2891_v59, %v2868_v58  ;;  %v7041_v58 = vld [vmem:[%s10765_s9 + $0x8] sm:$0xff] }
0x12f5   :  { %v7042_v59 = vld [vmem:[#allocation12] sm:$0xff] }
0x12f6   :  { %6766 = vtanh.f32 %v2894_v56  ;;  %v6570_v12 = vmul.f32 -1.442695, %v2894_v56  ;;  %v7043_v56 = vld [vmem:[#allocation14] sm:$0xff] }
0x12f8   :  { %6768 = vpow2.f32 %v6570_v12 }
0x12fc   :  { %v6767_v7 = vpop.eup %6766 }
0x12fd   :  { %2917 = vrot.lane.b32.xlu1 %v6767_v7, %s7393_s5  ;;  %v8828_v7 = vpop.f32.mrf.mxu2 }
0x12fe   :  { %v6769_v54 = vpop.eup %6768 }
0x12ff   :  { %v2898_v55 = vadd.f32 1.0, %v6769_v54 }
0x1301   :  { %6770 = vrcp.f32 %v2898_v55  ;;  %v2910_v37 = vand.u32 2147483648, %v2898_v55  ;;  %vm2904_vm14 = vweird.f32 %v2898_v55  ;;  %v2908_v60 = vand.u32 2147483647, %v2898_v55 }
0x1303   :  { %v2911_v62 = vor.u32 1.1754944e-38, %v2910_v37  ;;  %vm2909_vm1 = vcmp.eq.f32.partialorder %v2908_v60, 8.507059e+37 }
0x1305   :  { %v8830_v12 = vpop.f32.mrf.mxu2 }
0x1307   :  { %v6771_v49 = vpop.eup %6770 }
0x1308   :  { %v2900_v27 = vmul.f32 %v6771_v49, %v2898_v55  ;;  %vm2905_vm13 = vweird.f32 %v6771_v49 }
0x1309   :  { %vm2906_vm15 = vmor %vm2904_vm14, %vm2905_vm13 }
0x130a   :  { %v2901_v63 = vsub.f32 1.0, %v2900_v27  ;;  %v7044_v27 = vld [vmem:[%s10763_s7] ss:$0 sm:$0xff] }
0x130c   :  { %v2902_v43 = vmul.f32 %v6771_v49, %v2901_v63 }
0x130d   :  { %v8832_v54 = vpop.f32.mrf.mxu2 }
0x130e   :  { %v2903_v31 = vadd.f32 %v6771_v49, %v2902_v43 }
0x1310   :  { %v2907_v19 = vsel %vm2906_vm15, %v6771_v49, %v2903_v31 }
0x1311   :  { %v2912_v45 = vsel %vm2909_vm1, %v2911_v62, %v2907_v19 }
0x1312   :  { %v2915_v32 = vmul.f32 %v2912_v45, %v8432_v52 }
0x1315   :  { %v8834_v55 = vpop.f32.mrf.mxu2 }
0x1316   :  { %10916 = vst [vmem:[#allocation73_spill] sm:$0xff] %v8834_v55 }
0x136f   :  { %v2918_v61 = vpop.permute.xlu1 %2917 }
0x1370   :  { %v2920_v34 = vmul.f32 %v2918_v61, %v2912_v45 }
0x1372   :  { %2922 = vrot.lane.b32.xlu0 %v2920_v34, %s7391_s25 }
0x13e4   :  { %v2923_v42 = vpop.permute.xlu0 %2922 }
0x13e5   :  { %v8804_v2 = vadd.f32 %v2923_v42, %v2915_v32 }
0x13e7   :  { %6772 = vtanh.f32 %v8804_v2 }
0x13ed   :  { %v6773_v29 = vpop.eup %6772 }
0x13ee   :  { %2928 = vrot.lane.b32.xlu2 %v6773_v29, %s7393_s5 }
0x1448   :  { %v2929_v52 = vpop.permute.xlu2 %2928 }
0x1449   :  { %v2931_v20 = vmul.f32 %v2929_v52, %v2912_v45 }
0x144b   :  { %2933 = vrot.lane.b32.xlu1 %v2931_v20, %s7391_s25 }
0x14bd   :  { %v2934_v14 = vpop.permute.xlu1 %2933 }
0x14be   :  { %6571 = vmatmul.msk.f32.vlgmr.msra.gmra.mxu0 %vm179_vm0, %v2934_v14  ;;  %6573 = vmatmul.msk.f32.vlgmr.msrb.gmra.mxu3 %vm179_vm0, %v2934_v14 }
0x14bf   :  { %6574 = vmatmul.msk.f32.vlgmr.msra.gmra.mxu2 %vm179_vm0, %v2934_v14  ;;  %3977 = vmatpush.msra.mxu0 %v7032_v47 }
0x14c0   :  { %4582 = vmatpush.msrb.mxu3 %v7033_v6  ;;  %4645 = vmatpush.msra.mxu2 %v7034_v4 }
0x14c1   :  { %3978 = vmatpush.msra.mxu0 %v7035_v0 }
0x14c2   :  { %4583 = vmatpush.msrb.mxu3 %v7036_v1  ;;  %4646 = vmatpush.msra.mxu2 %v7037_v28 }
0x14c3   :  { %3979 = vmatpush.msra.mxu0 %v7038_v35 }
0x14c4   :  { %4584 = vmatpush.msrb.mxu3 %v7039_v40  ;;  %4647 = vmatpush.msra.mxu2 %v7040_v26 }
0x14c5   :  { %3980 = vmatpush.msra.mxu0 %v7041_v58 }
0x14c6   :  { %4585 = vmatpush.msrb.mxu3 %v7042_v59  ;;  %4648 = vmatpush.msra.mxu2 %v7043_v56 }
0x1542   :  { %v8836_v49 = vpop.f32.mrf.mxu2 }
0x1543   :  { %v8842_v63 = vadd.f32 %v7044_v27, %v8836_v49 }
0x1545   :  { %v3166_v43 = vperm.slane %v8842_v63, 0  ;;  %v3159_v31 = vrot.slane %v8842_v63, 1  ;;  %v3160_v37 = vrot.slane %v8842_v63, 2  ;;  %v3161_v45 = vrot.slane %v8842_v63, 3 }
0x1546   :  { %v3162_v33 = vrot.slane %v8842_v63, 4 }
0x1547   :  { %v3183_v60 = vadd.f32 %v3166_v43, %v7692_v25  ;;  %v3182_v19 = vadd.f32 %v3166_v43, %v7688_v23  ;;  %v3167_v62 = vperm.slane %v3159_v31, 0  ;;  %v3168_v61 = vperm.slane %v3160_v37, 0 }
0x1548   :  { %v3169_v6 = vperm.slane %v3161_v45, 0  ;;  %v3170_v26 = vperm.slane %v3162_v33, 0  ;;  %v3163_v43 = vrot.slane %v8842_v63, 5 }
0x1549   :  { %v3199_v34 = vmax.f32 %v3183_v60, 0.0  ;;  %v3198_v32 = vmax.f32 %v3182_v19, 0.0  ;;  %v3184_v42 = vadd.f32 %v3167_v62, %v7672_v9  ;;  %v3185_v29 = vadd.f32 %v3167_v62, %v7674_v10 }
0x154a   :  { %v3186_v53 = vadd.f32 %v3168_v61, %v7676_v11  ;;  %v3187_v14 = vadd.f32 %v3168_v61, %v7678_v15  ;;  %v3189_v58 = vadd.f32 %v3169_v6, %v7682_v17  ;;  %v3188_v27 = vadd.f32 %v3169_v6, %v7680_v16 }
0x154b   :  { %v3215_v8 = vmul.f32 %v8857_v39, %v3199_v34  ;;  %v3214_v52 = vmul.f32 %v8857_v39, %v3198_v32  ;;  %v3200_v20 = vmax.f32 %v3184_v42, 0.0  ;;  %v3201_v47 = vmax.f32 %v3185_v29, 0.0 }
0x154c   :  { %v3202_v28 = vmax.f32 %v3186_v53, 0.0  ;;  %v3203_v40 = vmax.f32 %v3187_v14, 0.0  ;;  %v3190_v37 = vadd.f32 %v3170_v26, %v7684_v18  ;;  %v3205_v60 = vmax.f32 %v3189_v58, 0.0 }
0x154d   :  { %v3233_v4 = vsel %vm179_vm0, %v3215_v8, 0.0  ;;  %v3230_v0 = vsel %vm179_vm0, %v3214_v52, 0.0  ;;  %v3216_v1 = vmul.f32 %v8857_v39, %v3200_v20  ;;  %v3217_v56 = vmul.f32 %v8857_v39, %v3201_v47 }
0x154e   :  { %3234 = vadd.xlane.f32.xlu2 %v3233_v4  ;;  %3231 = vadd.xlane.f32.xlu0 %v3230_v0  ;;  %v3218_v59 = vmul.f32 %v8857_v39, %v3202_v28  ;;  %v3219_v31 = vmul.f32 %v8857_v39, %v3203_v40  ;;  %v3204_v61 = vmax.f32 %v3188_v27, 0.0  ;;  %v3171_v45 = vperm.slane %v3163_v43, 0 }
0x154f   :  { %v3236_v35 = vsel %vm179_vm0, %v3216_v1, 0.0  ;;  %v3239_v62 = vsel %vm179_vm0, %v3217_v56, 0.0  ;;  %v3206_v32 = vmax.f32 %v3190_v37, 0.0  ;;  %v3221_v42 = vmul.f32 %v8857_v39, %v3205_v60 }
0x1550   :  { %3237 = vadd.xlane.f32.xlu1 %v3236_v35  ;;  %v3242_v19 = vsel %vm179_vm0, %v3218_v59, 0.0  ;;  %v3245_v34 = vsel %vm179_vm0, %v3219_v31, 0.0  ;;  %v3220_v29 = vmul.f32 %v8857_v39, %v3204_v61  ;;  %v3192_v53 = vadd.f32 %v3171_v45, %v7690_v24 }
0x1551   :  { %v3191_v33 = vadd.f32 %v3170_v26, %v7686_v22  ;;  %v3164_v8 = vrot.slane %v8842_v63, 6  ;;  %v3222_v52 = vmul.f32 %v8857_v39, %v3206_v32  ;;  %v3193_v20 = vadd.f32 %v3171_v45, %v7697_v30 }
0x1552   :  { %v3165_v14 = vrot.slane %v8842_v63, 7  ;;  %v3251_v47 = vsel %vm179_vm0, %v3221_v42, 0.0  ;;  %v3248_v6 = vsel %vm179_vm0, %v3220_v29, 0.0  ;;  %v3208_v4 = vmax.f32 %v3192_v53, 0.0 }
0x1553   :  { %v3207_v0 = vmax.f32 %v3191_v33, 0.0  ;;  %v3172_v1 = vperm.slane %v3164_v8, 0  ;;  %v3254_v28 = vsel %vm179_vm0, %v3222_v52, 0.0  ;;  %v3209_v35 = vmax.f32 %v3193_v20, 0.0 }
0x1554   :  { %v3173_v40 = vperm.slane %v3165_v14, 0  ;;  %v3224_v26 = vmul.f32 %v8857_v39, %v3208_v4 }
0x1555   :  { %v3223_v58 = vmul.f32 %v8857_v39, %v3207_v0  ;;  %v3195_v63 = vadd.f32 %v3172_v1, %v7736_v13  ;;  %v3194_v59 = vadd.f32 %v3172_v1, %v7721_v51  ;;  %v3225_v56 = vmul.f32 %v8857_v39, %v3209_v35 }
0x1556   :  { %3243 = vadd.xlane.f32.xlu0 %v3242_v19  ;;  %3240 = vadd.xlane.f32.xlu2 %v3239_v62  ;;  %v3196_v27 = vadd.f32 %v3173_v40, %v7751_v48  ;;  %v3260_v43 = vsel %vm179_vm0, %v3224_v26, 0.0 }
0x1557   :  { %v3257_v31 = vsel %vm179_vm0, %v3223_v58, 0.0  ;;  %v3211_v37 = vmax.f32 %v3195_v63, 0.0  ;;  %v3210_v60 = vmax.f32 %v3194_v59, 0.0  ;;  %v3263_v19 = vsel %vm179_vm0, %v3225_v56, 0.0 }
0x1558   :  { %3246 = vadd.xlane.f32.xlu1 %v3245_v34  ;;  %v3212_v62 = vmax.f32 %v3196_v27, 0.0  ;;  %v3197_v34 = vadd.f32 %v3173_v40, %v7762_v44 }
0x1559   :  { %v3227_v61 = vmul.f32 %v8857_v39, %v3211_v37  ;;  %v3226_v45 = vmul.f32 %v8857_v39, %v3210_v60 }
0x155a   :  { %v3228_v32 = vmul.f32 %v8857_v39, %v3212_v62  ;;  %v3213_v53 = vmax.f32 %v3197_v34, 0.0 }
0x155b   :  { %v3269_v42 = vsel %vm179_vm0, %v3227_v61, 0.0  ;;  %v3266_v29 = vsel %vm179_vm0, %v3226_v45, 0.0 }
0x155c   :  { %v3272_v33 = vsel %vm179_vm0, %v3228_v32, 0.0  ;;  %v3229_v8 = vmul.f32 %v8857_v39, %v3213_v53 }
0x155e   :  { %3252 = vadd.xlane.f32.xlu0 %v3251_v47  ;;  %3249 = vadd.xlane.f32.xlu2 %v3248_v6  ;;  %v3275_v52 = vsel %vm179_vm0, %v3229_v8, 0.0 }
0x1560   :  { %3255 = vadd.xlane.f32.xlu1 %v3254_v28 }
0x1566   :  { %3261 = vadd.xlane.f32.xlu0 %v3260_v43  ;;  %3258 = vadd.xlane.f32.xlu2 %v3257_v31 }
0x1568   :  { %3264 = vadd.xlane.f32.xlu1 %v3263_v19 }
0x156e   :  { %3270 = vadd.xlane.f32.xlu0 %v3269_v42  ;;  %3267 = vadd.xlane.f32.xlu2 %v3266_v29 }
0x1570   :  { %3273 = vadd.xlane.f32.xlu1 %v3272_v33 }
0x1576   :  { %3276 = vadd.xlane.f32.xlu2 %v3275_v52 }
0x15c1   :  { %v3235_v20 = vpop.xlane.xlu2 %3234  ;;  %v3232_v14 = vpop.xlane.xlu0 %3231 }
0x15c2   :  { %v3295_v63 = vperm.slane %v3235_v20, %v7790_v36  ;;  %v3294_v59 = vperm.slane %v3232_v14, %v7785_v38 }
0x15c3   :  { %v3238_v47 = vpop.xlane.xlu1 %3237 }
0x15c4   :  { %v3297_v56 = vperm.slane %v3238_v47, %v7785_v38  ;;  %v3296_v61 = vsel %vm752_vm10, %v3295_v63, %v3294_v59 }
0x15c9   :  { %v3244_v6 = vpop.xlane.xlu0 %3243  ;;  %v3241_v4 = vpop.xlane.xlu2 %3240 }
0x15ca   :  { %v3298_v39 = vperm.slane %v3241_v4, %v7790_v36  ;;  %v3300_v60 = vperm.slane %v3244_v6, %v7785_v38 }
0x15cb   :  { %v3247_v0 = vpop.xlane.xlu1 %3246 }
0x15cc   :  { %v3301_v27 = vperm.slane %v3247_v0, %v7790_v36  ;;  %v3299_v43 = vsel %vm752_vm10, %v3298_v39, %v3297_v56 }
0x15cd   :  { %v3318_v34 = vsel %vm283_vm2, %v3299_v43, %v3296_v61 }
0x15ce   :  { %v3302_v32 = vsel %vm752_vm10, %v3301_v27, %v3300_v60 }
0x15cf   :  { %v3319_v39 = vsel %vm285_vm3, %v3302_v32, %v3318_v34 }
0x15d1   :  { %v8905_v1 = vpop.xlane.xlu0 %3252  ;;  %v8907_v28 = vpop.xlane.xlu2 %3249 }
0x15d2   :  { %v3304_v31 = vperm.slane %v8905_v1, %v7790_v36  ;;  %v3303_v37 = vperm.slane %v8907_v28, %v7785_v38 }
0x15d3   :  { %v8909_v35 = vpop.xlane.xlu1 %3255 }
0x15d4   :  { %v3306_v42 = vperm.slane %v8909_v35, %v7785_v38  ;;  %v3305_v29 = vsel %vm752_vm10, %v3304_v31, %v3303_v37 }
0x15d5   :  { %v3320_v59 = vsel %vm287_vm4, %v3305_v29, %v3319_v39 }
0x15d9   :  { %v8911_v40 = vpop.xlane.xlu0 %3261  ;;  %v8913_v26 = vpop.xlane.xlu2 %3258 }
0x15da   :  { %v3307_v19 = vperm.slane %v8913_v26, %v7790_v36  ;;  %v3309_v63 = vperm.slane %v8911_v40, %v7785_v38 }
0x15db   :  { %v8916_v58 = vpop.xlane.xlu1 %3264 }
0x15dc   :  { %v3310_v53 = vperm.slane %v8916_v58, %v7790_v36  ;;  %v3308_v33 = vsel %vm752_vm10, %v3307_v19, %v3306_v42 }
0x15dd   :  { %v3321_v43 = vsel %vm289_vm5, %v3308_v33, %v3320_v59 }
0x15de   :  { %v3311_v27 = vsel %vm752_vm10, %v3310_v53, %v3309_v63 }
0x15df   :  { %v3322_v61 = vsel %vm291_vm6, %v3311_v27, %v3321_v43 }
0x15e1   :  { %v8930_v62 = vpop.xlane.xlu2 %3267  ;;  %v8933_v45 = vpop.xlane.xlu0 %3270 }
0x15e2   :  { %v3313_v8 = vperm.slane %v8933_v45, %v7790_v36  ;;  %v3312_v52 = vperm.slane %v8930_v62, %v7785_v38 }
0x15e3   :  { %v8951_v56 = vpop.xlane.xlu1 %3273 }
0x15e4   :  { %v3314_v37 = vsel %vm752_vm10, %v3313_v8, %v3312_v52  ;;  %v3315_v60 = vperm.slane %v8951_v56, %v7785_v38 }
0x15e5   :  { %v3323_v32 = vsel %vm293_vm7, %v3314_v37, %v3322_v61 }
0x15e9   :  { %v8955_v31 = vpop.xlane.xlu2 %3276 }
0x15ea   :  { %v3316_v19 = vperm.slane %v8955_v31, %v7790_v36 }
0x15ec   :  { %v3317_v34 = vsel %vm752_vm10, %v3316_v19, %v3315_v60 }
0x15ed   :  { %v3324_v42 = vsel %vm295_vm8, %v3317_v34, %v3323_v32 }
0x15ee   :  { %v3326_v29 = vsel %vm449_vm9, %v3324_v42, -inf }
0x15ef   :  { %3327 = vmax.xlane.f32.xlu0 %v3326_v29 }
0x1662   :  { %v8967_v53 = vpop.xlane.xlu0 %3327 }
0x1663   :  { %v3330_v33 = vperm.slane %v8967_v53, 0  ;;  %v3331_v8 = vperm.slane %v8967_v53, 1  ;;  %v3332_v59 = vperm.slane %v8967_v53, 2  ;;  %v3333_v34 = vperm.slane %v8967_v53, 3 }
0x1664   :  { %v3334_v42 = vperm.slane %v8967_v53, 4 }
0x1665   :  { %v3346_v52 = vsub.f32 %v3232_v14, %v3330_v33  ;;  %v3347_v39 = vsub.f32 %v3235_v20, %v3330_v33  ;;  %v3348_v63 = vsub.f32 %v3238_v47, %v3331_v8  ;;  %v3349_v37 = vsub.f32 %v3241_v4, %v3331_v8 }
0x1666   :  { %v3351_v19 = vsub.f32 %v3247_v0, %v3332_v59  ;;  %v3350_v61 = vsub.f32 %v3244_v6, %v3332_v59  ;;  %v3352_v4 = vsub.f32 %v8907_v28, %v3333_v34  ;;  %v3354_v6 = vsub.f32 %v8909_v35, %v3334_v42 }
0x1667   :  { %v3362_v27 = vmul.f32 1.442695, %v3346_v52  ;;  %v3364_v43 = vmul.f32 1.442695, %v3347_v39  ;;  %v3366_v60 = vmul.f32 1.442695, %v3348_v63  ;;  %v3353_v0 = vsub.f32 %v8905_v1, %v3333_v34 }
0x1668   :  { %v3368_v32 = vmul.f32 1.442695, %v3349_v37  ;;  %v3372_v29 = vmul.f32 1.442695, %v3351_v19  ;;  %v3370_v20 = vmul.f32 1.442695, %v3350_v61  ;;  %v3355_v35 = vsub.f32 %v8913_v26, %v3334_v42 }
0x1669   :  { %6774 = vpow2.f32 %v3366_v60  ;;  %v3374_v8 = vmul.f32 1.442695, %v3352_v4  ;;  %v3335_v52 = vperm.slane %v8967_v53, 5  ;;  %v3378_v39 = vmul.f32 1.442695, %v3354_v6 }
0x166a   :  { %6776 = vpow2.f32 %v3364_v43  ;;  %v3376_v59 = vmul.f32 1.442695, %v3353_v0  ;;  %v3336_v60 = vperm.slane %v8967_v53, 6  ;;  %v3380_v37 = vmul.f32 1.442695, %v3355_v35 }
0x166b   :  { %6778 = vpow2.f32 %v3362_v27  ;;  %v3357_v1 = vsub.f32 %v8916_v58, %v3335_v52  ;;  %v3356_v43 = vsub.f32 %v8911_v40, %v3335_v52  ;;  %v3337_v19 = vperm.slane %v8967_v53, 7 }
0x166c   :  { %6780 = vpow2.f32 %v3368_v32  ;;  %v3358_v42 = vsub.f32 %v8930_v62, %v3336_v60  ;;  %v3359_v53 = vsub.f32 %v8933_v45, %v3336_v60 }
0x166d   :  { %6782 = vpow2.f32 %v3372_v29  ;;  %v3384_v61 = vmul.f32 1.442695, %v3357_v1  ;;  %v3382_v26 = vmul.f32 1.442695, %v3356_v43  ;;  %v3360_v40 = vsub.f32 %v8951_v56, %v3337_v19 }
0x166e   :  { %6784 = vpow2.f32 %v3370_v20  ;;  %v3386_v29 = vmul.f32 1.442695, %v3358_v42  ;;  %v3388_v6 = vmul.f32 1.442695, %v3359_v53 }
0x166f   :  { %v8974_v14 = vpop.eup %6774  ;;  %6786 = vpow2.f32 %v3374_v8  ;;  %v3390_v20 = vmul.f32 1.442695, %v3360_v40  ;;  %v3361_v8 = vsub.f32 %v8955_v31, %v3337_v19 }
0x1670   :  { %v8976_v47 = vpop.eup %6776  ;;  %3417 = vperm.xlu0 %6626, %v8974_v14   ;;  %6788 = vpow2.f32 %v3378_v39 }
0x1671   :  { %v8979_v33 = vpop.eup %6778  ;;  %3414 = vperm.xlu2 %6625, %v8976_v47   ;;  %6790 = vpow2.f32 %v3376_v59  ;;  %v3392_v45 = vmul.f32 1.442695, %v3361_v8 }
0x1672   :  { %3411 = vperm.xlu1 %6627, %v8979_v33   ;;  %v8987_v63 = vpop.eup %6780  ;;  %6792 = vpow2.f32 %v3380_v37 }
0x1673   :  { %v8989_v27 = vpop.eup %6782  ;;  %6794 = vpow2.f32 %v3384_v61 }
0x1674   :  { %v8992_v28 = vpop.eup %6784  ;;  %6796 = vpow2.f32 %v3382_v26 }
0x1675   :  { %v9001_v34 = vpop.eup %6786  ;;  %6798 = vpow2.f32 %v3386_v29 }
0x1676   :  { %v9003_v32 = vpop.eup %6788  ;;  %6800 = vpow2.f32 %v3390_v20 }
0x1677   :  { %v9006_v58 = vpop.eup %6790  ;;  %6802 = vpow2.f32 %v3388_v6 }
0x1678   :  { %3420 = vperm.xlu0 %6626, %v8987_v63   ;;  %v9013_v4 = vpop.eup %6792  ;;  %6804 = vpow2.f32 %v3392_v45 }
0x1679   :  { %3426 = vperm.xlu2 %6625, %v8989_v27   ;;  %v9015_v0 = vpop.eup %6794 }
0x167a   :  { %3423 = vperm.xlu1 %6627, %v8992_v28   ;;  %v9018_v62 = vpop.eup %6796 }
0x167b   :  { %v9023_v56 = vpop.eup %6798 }
0x167c   :  { %v9025_v52 = vpop.eup %6800 }
0x167d   :  { %v9028_v39 = vpop.eup %6802 }
0x167e   :  { %v9032_v31 = vpop.eup %6804 }
0x1680   :  { %3429 = vperm.xlu0 %6626, %v9001_v34  }
0x1681   :  { %3435 = vperm.xlu2 %6625, %v9003_v32  }
0x1682   :  { %3432 = vperm.xlu1 %6627, %v9006_v58  }
0x1688   :  { %3438 = vperm.xlu0 %6626, %v9013_v4  }
0x1689   :  { %3444 = vperm.xlu2 %6625, %v9015_v0  }
0x168a   :  { %3441 = vperm.xlu1 %6627, %v9018_v62  }
0x1690   :  { %3447 = vperm.xlu0 %6626, %v9023_v56  }
0x1691   :  { %3453 = vperm.xlu2 %6625, %v9025_v52  }
0x1692   :  { %3450 = vperm.xlu1 %6627, %v9028_v39  }
0x1698   :  { %3456 = vperm.xlu0 %6626, %v9032_v31  }
0x16cb   :  { %v3415_v59 = vpop.permute.xlu2 %3414 }
0x16cc   :  { %v3459_v45 = vperm.slane %v3415_v59, %v7790_v36 }
0x16d3   :  { %v3427_v43 = vpop.permute.xlu2 %3426 }
0x16d4   :  { %v3465_v21 = vperm.slane %v3427_v43, %v7790_v36 }
0x16db   :  { %v3436_v61 = vpop.permute.xlu2 %3435 }
0x16e2   :  { %v3418_v35 = vpop.permute.xlu0 %3417 }
0x16e3   :  { %v3445_v29 = vpop.permute.xlu2 %3444  ;;  %v3461_v20 = vperm.slane %v3418_v35, %v7785_v38  ;;  %v3470_v35 = vperm.slane %v3436_v61, %v7785_v38 }
0x16e4   :  { %v3412_v1 = vpop.permute.xlu1 %3411 }
0x16e5   :  { %v3458_v6 = vperm.slane %v3412_v1, %v7785_v38 }
0x16e7   :  { %v3460_v41 = vsel %vm752_vm10, %v3459_v45, %v3458_v6 }
0x16ea   :  { %v3421_v60 = vpop.permute.xlu0 %3420 }
0x16eb   :  { %v3462_v53 = vperm.slane %v3421_v60, %v7790_v36  ;;  %v3454_v61 = vpop.permute.xlu2 %3453 }
0x16ec   :  { %v3424_v37 = vpop.permute.xlu1 %3423 }
0x16ed   :  { %v3464_v8 = vperm.slane %v3424_v37, %v7785_v38  ;;  %v3463_v55 = vsel %vm752_vm10, %v3462_v53, %v3461_v20  ;;  %v3474_v20 = vperm.slane %v3445_v29, %v7790_v36 }
0x16ee   :  { %v3482_v1 = vsel %vm283_vm2, %v3463_v55, %v3460_v41 }
0x16ef   :  { %v3466_v37 = vsel %vm752_vm10, %v3465_v21, %v3464_v8 }
0x16f0   :  { %v3483_v6 = vsel %vm285_vm3, %v3466_v37, %v3482_v1 }
0x16f2   :  { %v3430_v19 = vpop.permute.xlu0 %3429 }
0x16f3   :  { %v3467_v57 = vperm.slane %v3430_v19, %v7785_v38 }
0x16f4   :  { %v3433_v26 = vpop.permute.xlu1 %3432 }
0x16f5   :  { %v3468_v46 = vperm.slane %v3433_v26, %v7790_v36 }
0x16f7   :  { %v3469_v53 = vsel %vm752_vm10, %v3468_v46, %v3467_v57 }
0x16f8   :  { %v3484_v41 = vsel %vm287_vm4, %v3469_v53, %v3483_v6 }
0x16fa   :  { %v3439_v42 = vpop.permute.xlu0 %3438 }
0x16fb   :  { %v3471_v5 = vperm.slane %v3439_v42, %v7790_v36 }
0x16fc   :  { %v3442_v40 = vpop.permute.xlu1 %3441 }
0x16fd   :  { %v3473_v19 = vperm.slane %v3442_v40, %v7785_v38  ;;  %v3472_v26 = vsel %vm752_vm10, %v3471_v5, %v3470_v35  ;;  %v3479_v5 = vperm.slane %v3454_v61, %v7785_v38 }
0x16fe   :  { %v3485_v21 = vsel %vm289_vm5, %v3472_v26, %v3484_v41 }
0x16ff   :  { %v3475_v55 = vsel %vm752_vm10, %v3474_v20, %v3473_v19 }
0x1700   :  { %v3486_v8 = vsel %vm291_vm6, %v3475_v55, %v3485_v21 }
0x1702   :  { %v3448_v60 = vpop.permute.xlu0 %3447 }
0x1703   :  { %v3476_v43 = vperm.slane %v3448_v60, %v7785_v38 }
0x1704   :  { %v3451_v59 = vpop.permute.xlu1 %3450 }
0x1705   :  { %v3477_v42 = vperm.slane %v3451_v59, %v7790_v36 }
0x1707   :  { %v3478_v46 = vsel %vm752_vm10, %v3477_v42, %v3476_v43 }
0x1708   :  { %v3487_v45 = vsel %vm293_vm7, %v3478_v46, %v3486_v8 }
0x170a   :  { %v3457_v57 = vpop.permute.xlu0 %3456 }
0x170b   :  { %v3480_v40 = vperm.slane %v3457_v57, %v7790_v36 }
0x170d   :  { %v3481_v29 = vsel %vm752_vm10, %v3480_v40, %v3479_v5 }
0x170e   :  { %v3488_v60 = vsel %vm295_vm8, %v3481_v29, %v3487_v45  ;;  %v7046_v45 = vld [vmem:[#allocation3 + $0x18] sm:$0xff] }
0x170f   :  { %v3490_v35 = vsel %vm449_vm9, %v3488_v60, 0.0  ;;  %v7047_v60 = vld [vmem:[#allocation3 + $0x28] sm:$0xff] }
0x1710   :  { %3491 = vadd.xlane.f32.xlu1 %v3490_v35 }
0x1783   :  { %v3492_v1 = vpop.xlane.xlu1 %3491 }
0x1784   :  { %6806 = vrcp.f32 %v3492_v1 }
0x178a   :  { %v6807_v37 = vpop.eup %6806 }
0x178b   :  { %v3500_v59 = vperm.slane %v6807_v37, 5  ;;  %v3495_v53 = vperm.slane %v6807_v37, 0  ;;  %v3496_v42 = vperm.slane %v6807_v37, 1 }
0x178d   :  { %v9068_v19 = vmul.f32 %v9018_v62, %v3500_v59  ;;  %v9071_v26 = vmul.f32 %v8976_v47, %v3495_v53  ;;  %v9074_v43 = vmul.f32 %v8979_v33, %v3495_v53  ;;  %v9080_v20 = vmul.f32 %v8987_v63, %v3496_v42 }
0x178e   :  { %v9083_v6 = vmul.f32 %v8974_v14, %v3496_v42  ;;  %v3497_v47 = vperm.slane %v6807_v37, 2  ;;  %v3498_v63 = vperm.slane %v6807_v37, 3 }
0x178f   :  { %10917 = vst [vmem:[#allocation74_spill] sm:$0xff] %v9068_v19  ;;  %3579 = vperm.xlu1 %6627, %v9068_v19   ;;  %3534 = vperm.xlu0 %6626, %v9071_v26  }
0x1790   :  { %10918 = vst [vmem:[#allocation75_spill] sm:$0xff] %v9071_v26  ;;  %3529 = vperm.xlu2 %6625, %v9074_v43   ;;  %v9088_v33 = vmul.f32 %v8989_v27, %v3497_v47  ;;  %v9091_v62 = vmul.f32 %v8992_v28, %v3497_v47  ;;  %v9096_v61 = vmul.f32 %v9006_v58, %v3498_v63  ;;  %v3499_v27 = vperm.slane %v6807_v37, 4  ;;  %v7050_v47 = vld [vmem:[#allocation3 + $0x38] sm:$0xff] }
0x1791   :  { %10919 = vst [vmem:[#allocation76_spill] sm:$0xff] %v9074_v43  ;;  %v9099_v14 = vmul.f32 %v9001_v34, %v3498_v63  ;;  %v3501_v58 = vperm.slane %v6807_v37, 6  ;;  %v9115_v34 = vmul.f32 %v9015_v0, %v3500_v59  ;;  %v7048_v59 = vld [vmem:[#allocation3 + $0x10] sm:$0xff] }
0x1792   :  { %10920 = vst [vmem:[#allocation77_spill] sm:$0xff] %v9080_v20  ;;  %v9104_v41 = vmul.f32 %v9013_v4, %v3499_v27  ;;  %v9107_v28 = vmul.f32 %v9003_v32, %v3499_v27  ;;  %v3502_v4 = vperm.slane %v6807_v37, 7  ;;  %v7051_v27 = vld [vmem:[#allocation3] sm:$0xff] }
0x1793   :  { %10921 = vst [vmem:[#allocation78_spill] sm:$0xff] %v9083_v6  ;;  %v9112_v21 = vmul.f32 %v9023_v56, %v3501_v58  ;;  %v9123_v32 = vmul.f32 %v9028_v39, %v3501_v58 }
0x1794   :  { %10922 = vst [vmem:[#allocation79_spill] sm:$0xff] %v9088_v33  ;;  %v9120_v55 = vmul.f32 %v9025_v52, %v3502_v4  ;;  %v9128_v56 = vmul.f32 %v9032_v31, %v3502_v4  ;;  %v7049_v31 = vld [vmem:[#allocation3 + $0x8] sm:$0xff]  ;;  %v7052_v4 = vld [vmem:[#allocation3 + $0x20] sm:$0xff] }
0x1795   :  { %10923 = vst [vmem:[#allocation80_spill] sm:$0xff] %v9091_v62 }
0x1796   :  { %10924 = vst [vmem:[#allocation81_spill] sm:$0xff] %v9096_v61 }
0x1797   :  { %3544 = vperm.xlu0 %6626, %v9080_v20   ;;  %10925 = vst [vmem:[#allocation82_spill] sm:$0xff] %v9099_v14 }
0x1798   :  { %3539 = vperm.xlu2 %6625, %v9083_v6   ;;  %10926 = vst [vmem:[#allocation83_spill] sm:$0xff] %v9104_v41 }
0x1799   :  { %10927 = vst [vmem:[#allocation84_spill] sm:$0xff] %v9107_v28 }
0x179a   :  { %10928 = vst [vmem:[#allocation85_spill] sm:$0xff] %v9112_v21 }
0x179b   :  { %10929 = vst [vmem:[#allocation86_spill] sm:$0xff] %v9115_v34 }
0x179c   :  { %10930 = vst [vmem:[#allocation87_spill] sm:$0xff] %v9120_v55 }
0x179d   :  { %10931 = vst [vmem:[#allocation88_spill] sm:$0xff] %v9123_v32 }
0x179e   :  { %10932 = vst [vmem:[#allocation89_spill] sm:$0xff] %v9128_v56 }
0x179f   :  { %3554 = vperm.xlu0 %6626, %v9088_v33  }
0x17a0   :  { %3549 = vperm.xlu2 %6625, %v9091_v62  }
0x17a7   :  { %3564 = vperm.xlu0 %6626, %v9096_v61  }
0x17a8   :  { %3559 = vperm.xlu2 %6625, %v9099_v14  }
0x17af   :  { %3574 = vperm.xlu0 %6626, %v9104_v41  }
0x17b0   :  { %3569 = vperm.xlu2 %6625, %v9107_v28  }
0x17b7   :  { %3589 = vperm.xlu0 %6626, %v9112_v21   ;;  %v7053_v21 = vld [vmem:[#allocation3 + $0x30] sm:$0xff] }
0x17b8   :  { %3584 = vperm.xlu2 %6625, %v9115_v34  }
0x17bf   :  { %3599 = vperm.xlu0 %6626, %v9120_v55  }
0x17c0   :  { %3594 = vperm.xlu2 %6625, %v9123_v32  }
0x17c8   :  { %3604 = vperm.xlu2 %6625, %v9128_v56  }
0x17ea   :  { %v3530_v0 = vpop.permute.xlu2 %3529 }
0x17eb   :  { %v3607_v58 = vmul.f32 %v7051_v27, %v3530_v0  ;;  %v7056_v27 = vld [vmem:[#allocation3 + $0x50] sm:$0xff] }
0x17f2   :  { %v3540_v46 = vpop.permute.xlu2 %3539 }
0x17f3   :  { %v3609_v53 = vmul.f32 %v7048_v59, %v3540_v46  ;;  %v7054_v59 = vld [vmem:[#allocation3 + $0x40] sm:$0xff] }
0x17fa   :  { %v3550_v57 = vpop.permute.xlu2 %3549 }
0x17fb   :  { %v3611_v56 = vmul.f32 %v7052_v4, %v3550_v57  ;;  %v7057_v4 = vld [vmem:[#allocation3 + $0x48] sm:$0xff] }
0x1801   :  { %v3535_v5 = vpop.permute.xlu0 %3534 }
0x1802   :  { %v3560_v40 = vpop.permute.xlu2 %3559  ;;  %v3608_v42 = vmul.f32 %v7049_v31, %v3535_v5  ;;  %v3623_v5 = vsel %vm179_vm0, %v3607_v58, 0.0 }
0x1803   :  { %v3613_v32 = vmul.f32 %v7053_v21, %v3560_v40 }
0x1805   :  { %v3650_v57 = vsel %vm179_vm0, %v3613_v32, 0.0 }
0x1809   :  { %v3545_v8 = vpop.permute.xlu0 %3544 }
0x180a   :  { %v3570_v52 = vpop.permute.xlu2 %3569  ;;  %v3610_v39 = vmul.f32 %v7046_v45, %v3545_v8  ;;  %v3624_v45 = vsel %vm179_vm0, %v3608_v42, 0.0 }
0x180b   :  { %v3615_v21 = vmul.f32 %v7054_v59, %v3570_v52 }
0x180c   :  { %v3633_v55 = vsel %vm179_vm0, %v3610_v39, 0.0  ;;  %v7055_v39 = vld [vmem:[#allocation3 + $0x58] sm:$0xff] }
0x1811   :  { %v3555_v29 = vpop.permute.xlu0 %3554 }
0x1812   :  { %v3612_v35 = vmul.f32 %v7047_v60, %v3555_v29  ;;  %v3585_v1 = vpop.permute.xlu2 %3584  ;;  %v3632_v29 = vsel %vm179_vm0, %v3609_v53, 0.0  ;;  %v3641_v60 = vsel %vm179_vm0, %v3611_v56, 0.0  ;;  %v3659_v56 = vsel %vm179_vm0, %v3615_v21, 0.0 }
0x1813   :  { %v3634_v0 = vadd.f32 %v3633_v55, %v3632_v29  ;;  %v3618_v31 = vmul.f32 %v7055_v39, %v3585_v1 }
0x1814   :  { %v3642_v8 = vsel %vm179_vm0, %v3612_v35, 0.0  ;;  %v3625_v35 = vadd.f32 %v3624_v45, %v3623_v5 }
0x1815   :  { %v3643_v40 = vadd.f32 %v3642_v8, %v3641_v60  ;;  %v3635_v41 = vrot.slane %v3634_v0, 4  ;;  %v3669_v55 = vsel %vm179_vm0, %v3618_v31, 0.0 }
0x1816   :  { %v3626_v52 = vrot.slane %v3625_v35, 4 }
0x1817   :  { %v3644_v19 = vrot.slane %v3643_v40, 4  ;;  %v3636_v45 = vadd.f32 %v3635_v41, %v3634_v0 }
0x1818   :  { %v3627_v59 = vadd.f32 %v3626_v52, %v3625_v35 }
0x1819   :  { %v3565_v37 = vpop.permute.xlu0 %3564  ;;  %v3645_v60 = vadd.f32 %v3644_v19, %v3643_v40  ;;  %v3637_v31 = vrot.slane %v3636_v45, 2 }
0x181a   :  { %v3614_v63 = vmul.f32 %v7050_v47, %v3565_v37  ;;  %v3580_v37 = vpop.permute.xlu1 %3579  ;;  %v3595_v58 = vpop.permute.xlu2 %3594 }
0x181b   :  { %v3617_v42 = vmul.f32 %v7056_v27, %v3580_v37  ;;  %v7058_v37 = vld [vmem:[#allocation3 + $0x68] sm:$0xff]  ;;  %v7059_v27 = vld [vmem:[#allocation3 + $0x60] sm:$0xff]  ;;  %v3638_v40 = vadd.f32 %v3637_v31, %v3636_v45 }
0x181c   :  { %v3651_v46 = vsel %vm179_vm0, %v3614_v63, 0.0 }
0x181d   :  { %v3652_v47 = vadd.f32 %v3651_v46, %v3650_v57  ;;  %v3668_v1 = vsel %vm179_vm0, %v3617_v42, 0.0  ;;  %v3620_v57 = vmul.f32 %v7058_v37, %v3595_v58  ;;  %v3628_v42 = vrot.slane %v3627_v59, 2 }
0x181e   :  { %v3670_v46 = vadd.f32 %v3669_v55, %v3668_v1 }
0x181f   :  { %v3653_v8 = vrot.slane %v3652_v47, 4  ;;  %v3678_v14 = vsel %vm179_vm0, %v3620_v57, 0.0 }
0x1820   :  { %v3671_v34 = vrot.slane %v3670_v46, 4 }
0x1821   :  { %v3575_v53 = vpop.permute.xlu0 %3574  ;;  %v3654_v39 = vadd.f32 %v3653_v8, %v3652_v47  ;;  %v3629_v8 = vadd.f32 %v3628_v42, %v3627_v59 }
0x1822   :  { %v3616_v63 = vmul.f32 %v7057_v4, %v3575_v53  ;;  %v3605_v0 = vpop.permute.xlu2 %3604  ;;  %v3672_v58 = vadd.f32 %v3671_v34, %v3670_v46 }
0x1823   :  { %v3655_v41 = vrot.slane %v3654_v39, 2  ;;  %v3630_v34 = vrot.slane %v3629_v8, 1 }
0x1824   :  { %v3660_v32 = vsel %vm179_vm0, %v3616_v63, 0.0  ;;  %v3646_v63 = vrot.slane %v3645_v60, 2 }
0x1825   :  { %v3661_v29 = vadd.f32 %v3660_v32, %v3659_v56  ;;  %v7060_v32 = vld [vmem:[#allocation3 + $0x78] sm:$0xff] }
0x1826   :  { %v3647_v47 = vadd.f32 %v3646_v63, %v3645_v60  ;;  %v3622_v52 = vmul.f32 %v7060_v32, %v3605_v0 }
0x1827   :  { %v3662_v5 = vrot.slane %v3661_v29, 4 }
0x1828   :  { %v3648_v28 = vrot.slane %v3647_v47, 1 }
0x1829   :  { %v3590_v53 = vpop.permute.xlu0 %3589  ;;  %v3663_v21 = vadd.f32 %v3662_v5, %v3661_v29  ;;  %v3656_v29 = vadd.f32 %v3655_v41, %v3654_v39 }
0x182a   :  { %v3619_v4 = vmul.f32 %v7059_v27, %v3590_v53  ;;  %v7061_v53 = vld [vmem:[#allocation3 + $0x70] sm:$0xff]  ;;  %v3639_v27 = vrot.slane %v3638_v40, 1  ;;  %v3649_v42 = vadd.f32 %v3648_v28, %v3647_v47 }
0x182b   :  { %v3664_v19 = vrot.slane %v3663_v21, 2  ;;  %v3657_v46 = vrot.slane %v3656_v29, 1 }
0x182c   :  { %v3677_v56 = vsel %vm179_vm0, %v3619_v4, 0.0  ;;  %v3673_v4 = vrot.slane %v3672_v58, 2  ;;  %v3640_v59 = vadd.f32 %v3639_v27, %v3638_v40 }
0x182d   :  { %v3679_v55 = vadd.f32 %v3678_v14, %v3677_v56  ;;  %v3665_v37 = vadd.f32 %v3664_v19, %v3663_v21  ;;  %v3687_v14 = vsel %vm179_vm0, %v3622_v52, 0.0  ;;  %v3631_v21 = vadd.f32 %v3630_v34, %v3629_v8 }
0x182e   :  { %v3674_v39 = vadd.f32 %v3673_v4, %v3672_v58  ;;  %v3658_v41 = vadd.f32 %v3657_v46, %v3656_v29 }
0x182f   :  { %v3680_v35 = vrot.slane %v3679_v55, 4  ;;  %v3666_v31 = vrot.slane %v3665_v37, 1 }
0x1830   :  { %v3675_v32 = vrot.slane %v3674_v39, 1 }
0x1831   :  { %v3681_v1 = vadd.f32 %v3680_v35, %v3679_v55  ;;  %v3600_v5 = vpop.permute.xlu0 %3599  ;;  %v3667_v55 = vadd.f32 %v3666_v31, %v3665_v37  ;;  %v3703_v35 = vsel %vm283_vm2, %v3640_v59, %v3631_v21 }
0x1832   :  { %v3621_v57 = vmul.f32 %v7061_v53, %v3600_v5  ;;  %v3704_v5 = vsel %vm285_vm3, %v3649_v42, %v3703_v35  ;;  %v3676_v40 = vadd.f32 %v3675_v32, %v3674_v39  ;;  %v7065_v35 = vld [vmem:[%s10765_s9] sm:$0xff]  ;;  %v9171_v32 = vpop.f32.mrf.mxu0 }
0x1833   :  { %v3682_v61 = vrot.slane %v3681_v1, 2 }
0x1834   :  { %v3686_v45 = vsel %vm179_vm0, %v3621_v57, 0.0  ;;  %v3705_v57 = vsel %vm287_vm4, %v3658_v41, %v3704_v5  ;;  %v7066_v5 = vld [vmem:[%s10768_s12] ss:$0 sm:$0xff] }
0x1835   :  { %v3688_v60 = vadd.f32 %v3687_v14, %v3686_v45  ;;  %v3683_v63 = vadd.f32 %v3682_v61, %v3681_v1  ;;  %v3706_v61 = vsel %vm289_vm5, %v3667_v55, %v3705_v57  ;;  %v3138_v1 = vadd.f32 %v8836_v49, %v8044_v3  ;;  %v7063_v55 = vld [vmem:[%s10765_s9 + $0x20] sm:$0xff] }
0x1836   :  { %v3707_v47 = vsel %vm291_vm6, %v3676_v40, %v3706_v61 }
0x1837   :  { %v3689_v56 = vrot.slane %v3688_v60, 4  ;;  %v3684_v19 = vrot.slane %v3683_v63, 1  ;;  %v6575_v37 = vmul.f32 -1.442695, %v3138_v1 }
0x1839   :  { %v3690_v0 = vadd.f32 %v3689_v56, %v3688_v60  ;;  %v3685_v14 = vadd.f32 %v3684_v19, %v3683_v63  ;;  %6808 = vpow2.f32 %v6575_v37  ;;  %v7064_v19 = vld [vmem:[%s10765_s9 + $0x10] sm:$0xff] }
0x183b   :  { %v3691_v52 = vrot.slane %v3690_v0, 2  ;;  %v3708_v8 = vsel %vm293_vm7, %v3685_v14, %v3707_v47 }
0x183d   :  { %v3692_v53 = vadd.f32 %v3691_v52, %v3690_v0  ;;  %v7062_v0 = vld [vmem:[%s10765_s9 + $0x30] sm:$0xff]  ;;  %v3114_v52 = vpop.f32.mrf.mxu3 }
0x183f   :  { %v3693_v58 = vrot.slane %v3692_v53, 1  ;;  %v6809_v27 = vpop.eup %6808 }
0x1840   :  { %v3142_v4 = vadd.f32 1.0, %v6809_v27 }
0x1841   :  { %v3694_v28 = vadd.f32 %v3693_v58, %v3692_v53  ;;  %v498_v53 = vadd.f32 %v7066_v5, %v8828_v7  ;;  %v7074_v5 = vld [vmem:[#allocation12 + $0x8] sm:$0xff] }
0x1842   :  { %6810 = vrcp.f32 %v3142_v4  ;;  %v3154_v63 = vand.u32 2147483648, %v3142_v4  ;;  %vm3148_vm12 = vweird.f32 %v3142_v4  ;;  %v3152_v59 = vand.u32 2147483647, %v3142_v4 }
0x1843   :  { %v3709_v29 = vsel %vm295_vm8, %v3694_v28, %v3708_v8  ;;  %v3716_v57 = vadd.f32 %v3114_v52, %v498_v53  ;;  %v7073_v52 = vld [vmem:[%s10765_s9 + $0x18] sm:$0xff]  ;;  %v7075_v53 = vld [vmem:[#allocation14 + $0x8] sm:$0xff] }
0x1844   :  { %3710 = vrot.lane.b32.xlu0 %v3709_v29, %s7391_s25  ;;  %v3155_v56 = vor.u32 1.1754944e-38, %v3154_v63  ;;  %vm3153_vm14 = vcmp.eq.f32.partialorder %v3152_v59, 8.507059e+37 }
0x1848   :  { %v6811_v45 = vpop.eup %6810 }
0x1849   :  { %v3144_v34 = vmul.f32 %v6811_v45, %v3142_v4  ;;  %vm3149_vm11 = vweird.f32 %v6811_v45 }
0x184a   :  { %vm3150_vm13 = vmor %vm3148_vm12, %vm3149_vm11 }
0x184b   :  { %v3145_v46 = vsub.f32 1.0, %v3144_v34 }
0x184d   :  { %v3146_v60 = vmul.f32 %v6811_v45, %v3145_v46 }
0x184f   :  { %v3147_v31 = vadd.f32 %v6811_v45, %v3146_v60 }
0x1851   :  { %v3151_v39 = vsel %vm3150_vm13, %v6811_v45, %v3147_v31 }
0x1852   :  { %v3156_v42 = vsel %vm3153_vm14, %v3155_v56, %v3151_v39 }
0x18b6   :  { %v3711_v49 = vpop.permute.xlu0 %3710 }
0x18b7   :  { %v3713_v21 = vmul.f32 %v3711_v49, %v3156_v42 }
0x18b9   :  { %3718 = vrot.lane.b32.xlu1 %v3713_v21, %s7392_s17 }
0x192b   :  { %v3719_v41 = vpop.permute.xlu1 %3718 }
0x192c   :  { %6576 = vmatmul.msk.f32.vlgmr.msrb.gmra.mxu0 %vm179_vm0, %v3719_v41  ;;  %v7068_v41 = vld [vmem:[#allocation12 + $0x18] sm:$0xff] }
0x192d   :  { %4805 = vmatpush.msrb.mxu0 %v7062_v0  ;;  %v7069_v0 = vld [vmem:[#allocation14 + $0x18] sm:$0xff] }
0x192f   :  { %4806 = vmatpush.msrb.mxu0 %v7063_v55  ;;  %v7070_v55 = vld [vmem:[%s10765_s9 + $0x28] sm:$0xff] }
0x1931   :  { %4807 = vmatpush.msrb.mxu0 %v7064_v19  ;;  %v7071_v19 = vld [vmem:[#allocation12 + $0x10] sm:$0xff] }
0x1933   :  { %4808 = vmatpush.msrb.mxu0 %v7065_v35  ;;  %v7072_v35 = vld [vmem:[#allocation14 + $0x10] sm:$0xff] }
0x19a9   :  { %v3739_v14 = vpop.f32.mrf.mxu0 }
0x19aa   :  { %v3742_v61 = vadd.f32 %v3739_v14, %v3716_v57  ;;  %v7076_v57 = vld [vmem:[%s10765_s9 + $0x8] sm:$0xff] }
0x19ab   :  { %v7077_v14 = vld [vmem:[#allocation12] sm:$0xff] }
0x19ac   :  { %6812 = vtanh.f32 %v3742_v61  ;;  %v6577_v58 = vmul.f32 -1.442695, %v3742_v61  ;;  %v7078_v61 = vld [vmem:[#allocation14] sm:$0xff] }
0x19ae   :  { %6814 = vpow2.f32 %v6577_v58  ;;  %v7079_v58 = vld [vmem:[%s10763_s7] ss:$0 sm:$0xff] }
0x19b2   :  { %v6813_v40 = vpop.eup %6812 }
0x19b3   :  { %3765 = vrot.lane.b32.xlu2 %v6813_v40, %s7393_s5 }
0x19b4   :  { %v6815_v28 = vpop.eup %6814 }
0x19b5   :  { %v3746_v47 = vadd.f32 1.0, %v6815_v28 }
0x19b7   :  { %6816 = vrcp.f32 %v3746_v47  ;;  %v3758_v4 = vand.u32 2147483648, %v3746_v47  ;;  %vm3752_vm1 = vweird.f32 %v3746_v47  ;;  %v3756_v7 = vand.u32 2147483647, %v3746_v47 }
0x19b9   :  { %v3759_v34 = vor.u32 1.1754944e-38, %v3758_v4  ;;  %vm3757_vm12 = vcmp.eq.f32.partialorder %v3756_v7, 8.507059e+37 }
0x19bd   :  { %v6817_v8 = vpop.eup %6816 }
0x19be   :  { %v3748_v29 = vmul.f32 %v6817_v8, %v3746_v47  ;;  %vm3753_vm15 = vweird.f32 %v6817_v8 }
0x19bf   :  { %vm3754_vm11 = vmor %vm3752_vm1, %vm3753_vm15 }
0x19c0   :  { %v3749_v1 = vsub.f32 1.0, %v3748_v29 }
0x19c2   :  { %v3750_v37 = vmul.f32 %v6817_v8, %v3749_v1 }
0x19c4   :  { %v3751_v27 = vadd.f32 %v6817_v8, %v3750_v37 }
0x19c6   :  { %v3755_v45 = vsel %vm3754_vm11, %v6817_v8, %v3751_v27 }
0x19c7   :  { %v3760_v60 = vsel %vm3757_vm12, %v3759_v34, %v3755_v45 }
0x19c8   :  { %v3763_v63 = vmul.f32 %v3760_v60, %v8804_v2  ;;  %v7067_v2 = vld [vmem:[%s10765_s9 + $0x38] sm:$0xff] }
0x1a0d   :  { %v3766_v46 = vpop.permute.xlu2 %3765 }
0x1a0e   :  { %v3768_v31 = vmul.f32 %v3766_v46, %v3760_v60 }
0x1a10   :  { %3770 = vrot.lane.b32.xlu0 %v3768_v31, %s7391_s25 }
0x1a82   :  { %v3771_v59 = vpop.permute.xlu0 %3770 }
0x1a83   :  { %v9180_v39 = vadd.f32 %v3771_v59, %v3763_v63  ;;  %v9214_v59 = vld [vmem:[%s10762_s6] ss:$0 sm:$0xff] }
0x1a85   :  { %6818 = vtanh.f32 %v9180_v39 }
0x1a8b   :  { %v6819_v56 = vpop.eup %6818 }
0x1a8c   :  { %3776 = vrot.lane.b32.xlu1 %v6819_v56, %s7393_s5 }
0x1afe   :  { %v3777_v42 = vpop.permute.xlu1 %3776 }
0x1aff   :  { %v3779_v49 = vmul.f32 %v3777_v42, %v3760_v60 }
0x1b01   :  { %3781 = vrot.lane.b32.xlu2 %v3779_v49, %s7391_s25 }
0x1b5b   :  { %v3782_v21 = vpop.permute.xlu2 %3781 }
0x1b5c   :  { %6578 = vmatmul.msk.f32.vlgmr.msra.gmra.mxu3 %vm179_vm0, %v3782_v21  ;;  %6580 = vmatmul.msk.f32.vlgmr.msrb.gmra.mxu2 %vm179_vm0, %v3782_v21 }
0x1b5d   :  { %6581 = vmatmul.msk.f32.vlgmr.msra.gmra.mxu0 %vm179_vm0, %v3782_v21  ;;  %4825 = vmatpush.msra.mxu3 %v7067_v2 }
0x1b5e   :  { %5430 = vmatpush.msrb.mxu2 %v7068_v41  ;;  %5493 = vmatpush.msra.mxu0 %v7069_v0 }
0x1b5f   :  { %4826 = vmatpush.msra.mxu3 %v7070_v55 }
0x1b60   :  { %5431 = vmatpush.msrb.mxu2 %v7071_v19  ;;  %5494 = vmatpush.msra.mxu0 %v7072_v35 }
0x1b61   :  { %4827 = vmatpush.msra.mxu3 %v7073_v52 }
0x1b62   :  { %5432 = vmatpush.msrb.mxu2 %v7074_v5  ;;  %5495 = vmatpush.msra.mxu0 %v7075_v53 }
0x1b63   :  { %4828 = vmatpush.msra.mxu3 %v7076_v57 }
0x1b64   :  { %5433 = vmatpush.msrb.mxu2 %v7077_v14  ;;  %5496 = vmatpush.msra.mxu0 %v7078_v61 }
0x1bda   :  { %v9200_v40 = vpop.f32.mrf.mxu0 }
0x1bdb   :  { %v3985_v28 = vadd.f32 %v7079_v58, %v9200_v40 }
0x1bdd   :  { %v4014_v47 = vperm.slane %v3985_v28, 0  ;;  %v4007_v8 = vrot.slane %v3985_v28, 1  ;;  %v4008_v29 = vrot.slane %v3985_v28, 2  ;;  %v4010_v7 = vrot.slane %v3985_v28, 4 }
0x1bde   :  { %v4009_v45 = vrot.slane %v3985_v28, 3 }
0x1bdf   :  { %v4031_v1 = vadd.f32 %v4014_v47, %v7692_v25  ;;  %v4030_v37 = vadd.f32 %v4014_v47, %v7688_v23  ;;  %v4015_v27 = vperm.slane %v4007_v8, 0  ;;  %v4016_v4 = vperm.slane %v4008_v29, 0 }
0x1be0   :  { %v4018_v41 = vperm.slane %v4010_v7, 0  ;;  %v4017_v0 = vperm.slane %v4009_v45, 0  ;;  %v4011_v47 = vrot.slane %v3985_v28, 5 }
0x1be1   :  { %v4047_v34 = vmax.f32 %v4031_v1, 0.0  ;;  %v4046_v46 = vmax.f32 %v4030_v37, 0.0  ;;  %v4032_v60 = vadd.f32 %v4015_v27, %v7672_v9  ;;  %v4033_v31 = vadd.f32 %v4015_v27, %v7674_v10 }
0x1be2   :  { %v4035_v63 = vadd.f32 %v4016_v4, %v7678_v15  ;;  %v4034_v21 = vadd.f32 %v4016_v4, %v7676_v11  ;;  %v4038_v57 = vadd.f32 %v4018_v41, %v7684_v18  ;;  %v4036_v58 = vadd.f32 %v4017_v0, %v7680_v16 }
0x1be3   :  { %v4063_v56 = vmul.f32 %v9214_v59, %v4047_v34  ;;  %v4062_v42 = vmul.f32 %v9214_v59, %v4046_v46  ;;  %v4048_v49 = vmax.f32 %v4032_v60, 0.0  ;;  %v4049_v2 = vmax.f32 %v4033_v31, 0.0 }
0x1be4   :  { %v4051_v52 = vmax.f32 %v4035_v63, 0.0  ;;  %v4050_v53 = vmax.f32 %v4034_v21, 0.0  ;;  %v4037_v29 = vadd.f32 %v4017_v0, %v7682_v17  ;;  %v4054_v1 = vmax.f32 %v4038_v57, 0.0 }
0x1be5   :  { %v4081_v55 = vsel %vm179_vm0, %v4063_v56, 0.0  ;;  %v4078_v19 = vsel %vm179_vm0, %v4062_v42, 0.0  ;;  %v4064_v35 = vmul.f32 %v9214_v59, %v4048_v49  ;;  %v4065_v61 = vmul.f32 %v9214_v59, %v4049_v2 }
0x1be6   :  { %4082 = vadd.xlane.f32.xlu1 %v4081_v55  ;;  %4079 = vadd.xlane.f32.xlu0 %v4078_v19  ;;  %v4067_v14 = vmul.f32 %v9214_v59, %v4051_v52  ;;  %v4066_v8 = vmul.f32 %v9214_v59, %v4050_v53  ;;  %v4052_v4 = vmax.f32 %v4036_v58, 0.0  ;;  %v4019_v7 = vperm.slane %v4011_v47, 0 }
0x1be7   :  { %v4084_v5 = vsel %vm179_vm0, %v4064_v35, 0.0  ;;  %v4087_v27 = vsel %vm179_vm0, %v4065_v61, 0.0  ;;  %v4053_v34 = vmax.f32 %v4037_v29, 0.0  ;;  %v4070_v46 = vmul.f32 %v9214_v59, %v4054_v1 }
0x1be8   :  { %4085 = vadd.xlane.f32.xlu2 %v4084_v5  ;;  %v4093_v37 = vsel %vm179_vm0, %v4067_v14, 0.0  ;;  %v4090_v45 = vsel %vm179_vm0, %v4066_v8, 0.0  ;;  %v4013_v60 = vrot.slane %v3985_v28, 7  ;;  %v4068_v31 = vmul.f32 %v9214_v59, %v4052_v4 }
0x1be9   :  { %v4041_v63 = vadd.f32 %v4019_v7, %v7697_v30  ;;  %v4039_v56 = vadd.f32 %v4018_v41, %v7686_v22  ;;  %v4012_v42 = vrot.slane %v3985_v28, 6  ;;  %v4069_v49 = vmul.f32 %v9214_v59, %v4053_v34 }
0x1bea   :  { %v4040_v21 = vadd.f32 %v4019_v7, %v7690_v24  ;;  %v4102_v2 = vsel %vm179_vm0, %v4070_v46, 0.0  ;;  %v4021_v0 = vperm.slane %v4013_v60, 0  ;;  %v4096_v55 = vsel %vm179_vm0, %v4068_v31, 0.0 }
0x1beb   :  { %v4057_v19 = vmax.f32 %v4041_v63, 0.0  ;;  %v4055_v35 = vmax.f32 %v4039_v56, 0.0  ;;  %v4020_v52 = vperm.slane %v4012_v42, 0  ;;  %v4099_v5 = vsel %vm179_vm0, %v4069_v49, 0.0 }
0x1bec   :  { %v4056_v53 = vmax.f32 %v4040_v21, 0.0  ;;  %v4044_v57 = vadd.f32 %v4021_v0, %v7751_v48 }
0x1bed   :  { %v4073_v28 = vmul.f32 %v9214_v59, %v4057_v19  ;;  %v4071_v41 = vmul.f32 %v9214_v59, %v4055_v35  ;;  %v4042_v14 = vadd.f32 %v4020_v52, %v7721_v51  ;;  %v4043_v58 = vadd.f32 %v4020_v52, %v7736_v13 }
0x1bee   :  { %4094 = vadd.xlane.f32.xlu1 %v4093_v37  ;;  %4088 = vadd.xlane.f32.xlu0 %v4087_v27  ;;  %v4072_v61 = vmul.f32 %v9214_v59, %v4056_v53  ;;  %v4060_v29 = vmax.f32 %v4044_v57, 0.0 }
0x1bef   :  { %v4111_v47 = vsel %vm179_vm0, %v4073_v28, 0.0  ;;  %v4105_v8 = vsel %vm179_vm0, %v4071_v41, 0.0  ;;  %v4058_v1 = vmax.f32 %v4042_v14, 0.0  ;;  %v4059_v27 = vmax.f32 %v4043_v58, 0.0 }
0x1bf0   :  { %4091 = vadd.xlane.f32.xlu2 %v4090_v45  ;;  %v4108_v37 = vsel %vm179_vm0, %v4072_v61, 0.0  ;;  %v4076_v4 = vmul.f32 %v9214_v59, %v4060_v29  ;;  %v4045_v45 = vadd.f32 %v4021_v0, %v7762_v44 }
0x1bf1   :  { %v4074_v7 = vmul.f32 %v9214_v59, %v4058_v1  ;;  %v4075_v34 = vmul.f32 %v9214_v59, %v4059_v27 }
0x1bf2   :  { %v4120_v46 = vsel %vm179_vm0, %v4076_v4, 0.0  ;;  %v4061_v31 = vmax.f32 %v4045_v45, 0.0 }
0x1bf3   :  { %v4114_v60 = vsel %vm179_vm0, %v4074_v7, 0.0  ;;  %v4117_v63 = vsel %vm179_vm0, %v4075_v34, 0.0 }
0x1bf4   :  { %v4077_v56 = vmul.f32 %v9214_v59, %v4061_v31 }
0x1bf6   :  { %4103 = vadd.xlane.f32.xlu1 %v4102_v2  ;;  %4097 = vadd.xlane.f32.xlu0 %v4096_v55  ;;  %v4123_v42 = vsel %vm179_vm0, %v4077_v56, 0.0 }
0x1bf8   :  { %4100 = vadd.xlane.f32.xlu2 %v4099_v5 }
0x1bfe   :  { %4112 = vadd.xlane.f32.xlu1 %v4111_v47  ;;  %4106 = vadd.xlane.f32.xlu0 %v4105_v8 }
0x1c00   :  { %4109 = vadd.xlane.f32.xlu2 %v4108_v37 }
0x1c06   :  { %4121 = vadd.xlane.f32.xlu1 %v4120_v46  ;;  %4115 = vadd.xlane.f32.xlu0 %v4114_v60 }
0x1c08   :  { %4118 = vadd.xlane.f32.xlu2 %v4117_v63 }
0x1c0e   :  { %4124 = vadd.xlane.f32.xlu0 %v4123_v42 }
0x1c59   :  { %v4083_v49 = vpop.xlane.xlu1 %4082  ;;  %v4080_v21 = vpop.xlane.xlu0 %4079 }
0x1c5a   :  { %v4143_v57 = vperm.slane %v4083_v49, %v7790_v36  ;;  %v4142_v14 = vperm.slane %v4080_v21, %v7785_v38 }
0x1c5b   :  { %v4086_v2 = vpop.xlane.xlu2 %4085 }
0x1c5c   :  { %v4145_v61 = vperm.slane %v4086_v2, %v7785_v38  ;;  %v4144_v27 = vsel %vm752_vm10, %v4143_v57, %v4142_v14 }
0x1c61   :  { %v4095_v0 = vpop.xlane.xlu1 %4094  ;;  %v4089_v55 = vpop.xlane.xlu0 %4088 }
0x1c62   :  { %v4146_v59 = vperm.slane %v4089_v55, %v7790_v36  ;;  %v4149_v29 = vperm.slane %v4095_v0, %v7790_v36 }
0x1c63   :  { %v4092_v19 = vpop.xlane.xlu2 %4091 }
0x1c64   :  { %v4148_v58 = vperm.slane %v4092_v19, %v7785_v38  ;;  %v4147_v47 = vsel %vm752_vm10, %v4146_v59, %v4145_v61 }
0x1c65   :  { %v4166_v7 = vsel %vm283_vm2, %v4147_v47, %v4144_v27 }
0x1c66   :  { %v4150_v45 = vsel %vm752_vm10, %v4149_v29, %v4148_v58 }
0x1c67   :  { %v4167_v42 = vsel %vm285_vm3, %v4150_v45, %v4166_v7 }
0x1c69   :  { %v9259_v35 = vpop.xlane.xlu0 %4097  ;;  %v9261_v52 = vpop.xlane.xlu1 %4103 }
0x1c6a   :  { %v4151_v4 = vperm.slane %v9259_v35, %v7785_v38  ;;  %v4154_v34 = vperm.slane %v9261_v52, %v7785_v38 }
0x1c6b   :  { %v9263_v5 = vpop.xlane.xlu2 %4100 }
0x1c6c   :  { %v4152_v8 = vperm.slane %v9263_v5, %v7790_v36 }
0x1c6e   :  { %v4153_v60 = vsel %vm752_vm10, %v4152_v8, %v4151_v4 }
0x1c6f   :  { %v4168_v57 = vsel %vm287_vm4, %v4153_v60, %v4167_v42 }
0x1c71   :  { %v9265_v53 = vpop.xlane.xlu0 %4106  ;;  %v9270_v41 = vpop.xlane.xlu1 %4112 }
0x1c72   :  { %v4155_v1 = vperm.slane %v9265_v53, %v7790_v36  ;;  %v4158_v59 = vperm.slane %v9270_v41, %v7790_v36 }
0x1c73   :  { %v9267_v28 = vpop.xlane.xlu2 %4109 }
0x1c74   :  { %v4157_v31 = vperm.slane %v9267_v28, %v7785_v38  ;;  %v4156_v63 = vsel %vm752_vm10, %v4155_v1, %v4154_v34 }
0x1c75   :  { %v4169_v47 = vsel %vm289_vm5, %v4156_v63, %v4168_v57 }
0x1c76   :  { %v4159_v58 = vsel %vm752_vm10, %v4158_v59, %v4157_v31 }
0x1c77   :  { %v4170_v4 = vsel %vm291_vm6, %v4159_v58, %v4169_v47 }
0x1c79   :  { %v9282_v37 = vpop.xlane.xlu0 %4115  ;;  %v9303_v14 = vpop.xlane.xlu1 %4121 }
0x1c7a   :  { %v4160_v61 = vperm.slane %v9282_v37, %v7785_v38  ;;  %v4163_v1 = vperm.slane %v9303_v14, %v7785_v38 }
0x1c7b   :  { %v9291_v46 = vpop.xlane.xlu2 %4118 }
0x1c7c   :  { %v4161_v56 = vperm.slane %v9291_v46, %v7790_v36 }
0x1c7e   :  { %v4162_v29 = vsel %vm752_vm10, %v4161_v56, %v4160_v61 }
0x1c7f   :  { %v4171_v45 = vsel %vm293_vm7, %v4162_v29, %v4170_v4 }
0x1c81   :  { %v9309_v8 = vpop.xlane.xlu0 %4124 }
0x1c82   :  { %v4164_v27 = vperm.slane %v9309_v8, %v7790_v36 }
0x1c84   :  { %v4165_v7 = vsel %vm752_vm10, %v4164_v27, %v4163_v1 }
0x1c85   :  { %v4172_v34 = vsel %vm295_vm8, %v4165_v7, %v4171_v45 }
0x1c86   :  { %v4174_v60 = vsel %vm449_vm9, %v4172_v34, -inf }
0x1c87   :  { %4175 = vmax.xlane.f32.xlu2 %v4174_v60 }
0x1cfa   :  { %v9321_v31 = vpop.xlane.xlu2 %4175 }
0x1cfb   :  { %v4178_v63 = vperm.slane %v9321_v31, 0  ;;  %v4179_v56 = vperm.slane %v9321_v31, 1  ;;  %v4180_v61 = vperm.slane %v9321_v31, 2  ;;  %v4182_v7 = vperm.slane %v9321_v31, 4 }
0x1cfc   :  { %v4181_v34 = vperm.slane %v9321_v31, 3 }
0x1cfd   :  { %v4194_v42 = vsub.f32 %v4080_v21, %v4178_v63  ;;  %v4195_v59 = vsub.f32 %v4083_v49, %v4178_v63  ;;  %v4196_v57 = vsub.f32 %v4086_v2, %v4179_v56  ;;  %v4199_v29 = vsub.f32 %v4095_v0, %v4180_v61 }
0x1cfe   :  { %v4197_v27 = vsub.f32 %v4089_v55, %v4179_v56  ;;  %v4198_v4 = vsub.f32 %v4092_v19, %v4180_v61  ;;  %v4202_v0 = vsub.f32 %v9261_v52, %v4182_v7  ;;  %v4200_v55 = vsub.f32 %v9259_v35, %v4181_v34 }
0x1cff   :  { %v4210_v58 = vmul.f32 1.442695, %v4194_v42  ;;  %v4212_v47 = vmul.f32 1.442695, %v4195_v59  ;;  %v4214_v1 = vmul.f32 1.442695, %v4196_v57  ;;  %v4201_v19 = vsub.f32 %v9263_v5, %v4181_v34 }
0x1d00   :  { %v4220_v45 = vmul.f32 1.442695, %v4199_v29  ;;  %v4216_v60 = vmul.f32 1.442695, %v4197_v27  ;;  %v4218_v49 = vmul.f32 1.442695, %v4198_v4  ;;  %v4203_v5 = vsub.f32 %v9265_v53, %v4182_v7 }
0x1d01   :  { %6820 = vpow2.f32 %v4214_v1  ;;  %v4183_v56 = vperm.slane %v9321_v31, 5  ;;  %v4226_v42 = vmul.f32 1.442695, %v4202_v0  ;;  %v4222_v59 = vmul.f32 1.442695, %v4200_v55 }
0x1d02   :  { %6822 = vpow2.f32 %v4212_v47  ;;  %v4224_v61 = vmul.f32 1.442695, %v4201_v19  ;;  %v4185_v1 = vperm.slane %v9321_v31, 7  ;;  %v4184_v27 = vperm.slane %v9321_v31, 6 }
0x1d03   :  { %6824 = vpow2.f32 %v4210_v58  ;;  %v4205_v35 = vsub.f32 %v9270_v41, %v4183_v56  ;;  %v4204_v47 = vsub.f32 %v9267_v28, %v4183_v56  ;;  %v4228_v4 = vmul.f32 1.442695, %v4203_v5 }
0x1d04   :  { %6826 = vpow2.f32 %v4220_v45  ;;  %v4208_v7 = vsub.f32 %v9303_v14, %v4185_v1  ;;  %v4206_v28 = vsub.f32 %v9282_v37, %v4184_v27  ;;  %v4207_v31 = vsub.f32 %v9291_v46, %v4184_v27 }
0x1d05   :  { %6828 = vpow2.f32 %v4216_v60  ;;  %v4232_v29 = vmul.f32 1.442695, %v4205_v35  ;;  %v4230_v41 = vmul.f32 1.442695, %v4204_v47  ;;  %v4209_v37 = vsub.f32 %v9309_v8, %v4185_v1 }
0x1d06   :  { %6830 = vpow2.f32 %v4218_v49  ;;  %v4238_v60 = vmul.f32 1.442695, %v4208_v7  ;;  %v4234_v49 = vmul.f32 1.442695, %v4206_v28  ;;  %v4236_v55 = vmul.f32 1.442695, %v4207_v31 }
0x1d07   :  { %v9328_v21 = vpop.eup %6820  ;;  %6832 = vpow2.f32 %v4226_v42  ;;  %v4240_v46 = vmul.f32 1.442695, %v4209_v37 }
0x1d08   :  { %v9330_v2 = vpop.eup %6822  ;;  %4265 = vperm.xlu2 %6625, %v9328_v21   ;;  %6834 = vpow2.f32 %v4222_v59 }
0x1d09   :  { %v9333_v63 = vpop.eup %6824  ;;  %4262 = vperm.xlu0 %6626, %v9330_v2   ;;  %6836 = vpow2.f32 %v4224_v61 }
0x1d0a   :  { %4259 = vperm.xlu1 %6627, %v9333_v63   ;;  %v9341_v57 = vpop.eup %6826  ;;  %6838 = vpow2.f32 %v4232_v29 }
0x1d0b   :  { %v9343_v58 = vpop.eup %6828  ;;  %6840 = vpow2.f32 %v4228_v4 }
0x1d0c   :  { %v9346_v52 = vpop.eup %6830  ;;  %6842 = vpow2.f32 %v4230_v41 }
0x1d0d   :  { %v9355_v45 = vpop.eup %6832  ;;  %6844 = vpow2.f32 %v4238_v60 }
0x1d0e   :  { %v9357_v34 = vpop.eup %6834  ;;  %6846 = vpow2.f32 %v4234_v49 }
0x1d0f   :  { %v9360_v53 = vpop.eup %6836  ;;  %6848 = vpow2.f32 %v4236_v55 }
0x1d10   :  { %4274 = vperm.xlu2 %6625, %v9341_v57   ;;  %v9367_v0 = vpop.eup %6838  ;;  %6850 = vpow2.f32 %v4240_v46 }
0x1d11   :  { %4268 = vperm.xlu0 %6626, %v9343_v58   ;;  %v9369_v19 = vpop.eup %6840 }
0x1d12   :  { %4271 = vperm.xlu1 %6627, %v9346_v52   ;;  %v9372_v14 = vpop.eup %6842 }
0x1d13   :  { %v9377_v56 = vpop.eup %6844 }
0x1d14   :  { %v9379_v42 = vpop.eup %6846 }
0x1d15   :  { %v9382_v59 = vpop.eup %6848 }
0x1d16   :  { %v9386_v61 = vpop.eup %6850 }
0x1d18   :  { %4283 = vperm.xlu2 %6625, %v9355_v45  }
0x1d19   :  { %4277 = vperm.xlu0 %6626, %v9357_v34  }
0x1d1a   :  { %4280 = vperm.xlu1 %6627, %v9360_v53  }
0x1d20   :  { %4292 = vperm.xlu2 %6625, %v9367_v0  }
0x1d21   :  { %4286 = vperm.xlu0 %6626, %v9369_v19  }
0x1d22   :  { %4289 = vperm.xlu1 %6627, %v9372_v14  }
0x1d28   :  { %4301 = vperm.xlu2 %6625, %v9377_v56  }
0x1d29   :  { %4295 = vperm.xlu0 %6626, %v9379_v42  }
0x1d2a   :  { %4298 = vperm.xlu1 %6627, %v9382_v59  }
0x1d31   :  { %4304 = vperm.xlu0 %6626, %v9386_v61  }
0x1d62   :  { %v4266_v8 = vpop.permute.xlu2 %4265 }
0x1d63   :  { %v4309_v49 = vperm.slane %v4266_v8, %v7785_v38 }
0x1d6a   :  { %v4275_v47 = vpop.permute.xlu2 %4274 }
0x1d6b   :  { %v4313_v43 = vperm.slane %v4275_v47, %v7790_v36 }
0x1d72   :  { %v4284_v41 = vpop.permute.xlu2 %4283 }
0x1d7a   :  { %v4293_v60 = vpop.permute.xlu2 %4292 }
0x1d7b   :  { %v4263_v35 = vpop.permute.xlu0 %4262 }
0x1d7c   :  { %v4260_v5 = vpop.permute.xlu1 %4259  ;;  %v4307_v55 = vperm.slane %v4263_v35, %v7790_v36  ;;  %v4318_v35 = vperm.slane %v4284_v41, %v7785_v38 }
0x1d7d   :  { %v4306_v37 = vperm.slane %v4260_v5, %v7785_v38 }
0x1d7f   :  { %v4308_v6 = vsel %vm752_vm10, %v4307_v55, %v4306_v37 }
0x1d82   :  { %v4302_v37 = vpop.permute.xlu2 %4301 }
0x1d83   :  { %v4269_v1 = vpop.permute.xlu0 %4268 }
0x1d84   :  { %v4272_v29 = vpop.permute.xlu1 %4271  ;;  %v4310_v31 = vperm.slane %v4269_v1, %v7790_v36 }
0x1d85   :  { %v4312_v46 = vperm.slane %v4272_v29, %v7785_v38 }
0x1d86   :  { %v4311_v20 = vsel %vm752_vm10, %v4310_v31, %v4309_v49  ;;  %v4322_v49 = vperm.slane %v4293_v60, %v7790_v36 }
0x1d87   :  { %v4330_v5 = vsel %vm283_vm2, %v4311_v20, %v4308_v6  ;;  %v4314_v29 = vsel %vm752_vm10, %v4313_v43, %v4312_v46 }
0x1d88   :  { %v4331_v55 = vsel %vm285_vm3, %v4314_v29, %v4330_v5 }
0x1d8b   :  { %v4278_v27 = vpop.permute.xlu0 %4277 }
0x1d8c   :  { %v4281_v4 = vpop.permute.xlu1 %4280  ;;  %v4315_v62 = vperm.slane %v4278_v27, %v7785_v38 }
0x1d8d   :  { %v4316_v33 = vperm.slane %v4281_v4, %v7790_v36 }
0x1d8f   :  { %v4317_v31 = vsel %vm752_vm10, %v4316_v33, %v4315_v62 }
0x1d90   :  { %v4332_v41 = vsel %vm287_vm4, %v4317_v31, %v4331_v55 }
0x1d93   :  { %v4287_v7 = vpop.permute.xlu0 %4286 }
0x1d94   :  { %v4290_v28 = vpop.permute.xlu1 %4289  ;;  %v4319_v26 = vperm.slane %v4287_v7, %v7790_v36 }
0x1d95   :  { %v4321_v27 = vperm.slane %v4290_v28, %v7785_v38 }
0x1d96   :  { %v4320_v4 = vsel %vm752_vm10, %v4319_v26, %v4318_v35  ;;  %v4327_v26 = vperm.slane %v4302_v37, %v7785_v38 }
0x1d97   :  { %v4333_v20 = vsel %vm289_vm5, %v4320_v4, %v4332_v41  ;;  %v4323_v43 = vsel %vm752_vm10, %v4322_v49, %v4321_v27 }
0x1d98   :  { %v4334_v28 = vsel %vm291_vm6, %v4323_v43, %v4333_v20 }
0x1d9b   :  { %v4296_v1 = vpop.permute.xlu0 %4295 }
0x1d9c   :  { %v4299_v8 = vpop.permute.xlu1 %4298  ;;  %v4324_v47 = vperm.slane %v4296_v1, %v7785_v38 }
0x1d9d   :  { %v4325_v7 = vperm.slane %v4299_v8, %v7790_v36 }
0x1d9f   :  { %v4326_v6 = vsel %vm752_vm10, %v4325_v7, %v4324_v47 }
0x1da0   :  { %v4335_v46 = vsel %vm293_vm7, %v4326_v6, %v4334_v28 }
0x1da3   :  { %v4305_v33 = vpop.permute.xlu0 %4304 }
0x1da4   :  { %v4328_v62 = vperm.slane %v4305_v33, %v7790_v36 }
0x1da6   :  { %v4329_v60 = vsel %vm752_vm10, %v4328_v62, %v4327_v26 }
0x1da7   :  { %v4336_v1 = vsel %vm295_vm8, %v4329_v60, %v4335_v46  ;;  %v7081_v46 = vld [vmem:[#allocation3 + $0x18] sm:$0xff] }
0x1da8   :  { %v4338_v8 = vsel %vm449_vm9, %v4336_v1, 0.0  ;;  %v7082_v1 = vld [vmem:[#allocation3 + $0x28] sm:$0xff] }
0x1da9   :  { %4339 = vadd.xlane.f32.xlu1 %v4338_v8 }
0x1e1c   :  { %v4340_v35 = vpop.xlane.xlu1 %4339 }
0x1e1d   :  { %6852 = vrcp.f32 %v4340_v35 }
0x1e23   :  { %v6853_v5 = vpop.eup %6852 }
0x1e24   :  { %v4348_v29 = vperm.slane %v6853_v5, 5  ;;  %v4343_v31 = vperm.slane %v6853_v5, 0  ;;  %v4344_v7 = vperm.slane %v6853_v5, 1 }
0x1e26   :  { %v9422_v27 = vmul.f32 %v9372_v14, %v4348_v29  ;;  %v9425_v4 = vmul.f32 %v9330_v2, %v4343_v31  ;;  %v9428_v47 = vmul.f32 %v9333_v63, %v4343_v31  ;;  %v9434_v49 = vmul.f32 %v9343_v58, %v4344_v7 }
0x1e27   :  { %v9437_v55 = vmul.f32 %v9328_v21, %v4344_v7  ;;  %v4345_v2 = vperm.slane %v6853_v5, 2  ;;  %v4346_v58 = vperm.slane %v6853_v5, 3 }
0x1e28   :  { %10933 = vst [vmem:[#allocation90_spill] sm:$0xff] %v9422_v27  ;;  %4427 = vperm.xlu1 %6627, %v9422_v27   ;;  %4382 = vperm.xlu0 %6626, %v9425_v4  }
0x1e29   :  { %10934 = vst [vmem:[#allocation91_spill] sm:$0xff] %v9425_v4  ;;  %4377 = vperm.xlu2 %6625, %v9428_v47   ;;  %v9442_v63 = vmul.f32 %v9341_v57, %v4345_v2  ;;  %v9445_v14 = vmul.f32 %v9346_v52, %v4345_v2  ;;  %v9450_v37 = vmul.f32 %v9360_v53, %v4346_v58  ;;  %v4347_v57 = vperm.slane %v6853_v5, 4  ;;  %v7085_v2 = vld [vmem:[#allocation3 + $0x38] sm:$0xff] }
0x1e2a   :  { %10935 = vst [vmem:[#allocation92_spill] sm:$0xff] %v9428_v47  ;;  %v9453_v21 = vmul.f32 %v9357_v34, %v4346_v58  ;;  %v4349_v53 = vperm.slane %v6853_v5, 6  ;;  %v9469_v34 = vmul.f32 %v9367_v0, %v4348_v29  ;;  %v7083_v29 = vld [vmem:[#allocation3 + $0x10] sm:$0xff] }
0x1e2b   :  { %10936 = vst [vmem:[#allocation93_spill] sm:$0xff] %v9434_v49  ;;  %v9458_v41 = vmul.f32 %v9369_v19, %v4347_v57  ;;  %v9461_v52 = vmul.f32 %v9355_v45, %v4347_v57  ;;  %v4350_v19 = vperm.slane %v6853_v5, 7  ;;  %v7086_v57 = vld [vmem:[#allocation3] sm:$0xff] }
0x1e2c   :  { %10937 = vst [vmem:[#allocation94_spill] sm:$0xff] %v9437_v55  ;;  %v9466_v20 = vmul.f32 %v9379_v42, %v4349_v53  ;;  %v9477_v45 = vmul.f32 %v9382_v59, %v4349_v53 }
0x1e2d   :  { %10938 = vst [vmem:[#allocation95_spill] sm:$0xff] %v9442_v63  ;;  %v9474_v43 = vmul.f32 %v9377_v56, %v4350_v19  ;;  %v9482_v42 = vmul.f32 %v9386_v61, %v4350_v19  ;;  %v7084_v61 = vld [vmem:[#allocation3 + $0x8] sm:$0xff]  ;;  %v7087_v19 = vld [vmem:[#allocation3 + $0x20] sm:$0xff] }
0x1e2e   :  { %10939 = vst [vmem:[#allocation96_spill] sm:$0xff] %v9445_v14 }
0x1e2f   :  { %10940 = vst [vmem:[#allocation97_spill] sm:$0xff] %v9450_v37 }
0x1e30   :  { %4392 = vperm.xlu0 %6626, %v9434_v49   ;;  %10941 = vst [vmem:[#allocation98_spill] sm:$0xff] %v9453_v21 }
0x1e31   :  { %4387 = vperm.xlu2 %6625, %v9437_v55   ;;  %10942 = vst [vmem:[#allocation99_spill] sm:$0xff] %v9458_v41 }
0x1e32   :  { %10943 = vst [vmem:[#allocation100_spill] sm:$0xff] %v9461_v52 }
0x1e33   :  { %10944 = vst [vmem:[#allocation101_spill] sm:$0xff] %v9466_v20 }
0x1e34   :  { %10945 = vst [vmem:[#allocation102_spill] sm:$0xff] %v9469_v34 }
0x1e35   :  { %10946 = vst [vmem:[#allocation103_spill] sm:$0xff] %v9474_v43 }
0x1e36   :  { %10947 = vst [vmem:[#allocation104_spill] sm:$0xff] %v9477_v45 }
0x1e37   :  { %10948 = vst [vmem:[#allocation105_spill] sm:$0xff] %v9482_v42 }
0x1e38   :  { %4402 = vperm.xlu0 %6626, %v9442_v63  }
0x1e39   :  { %4397 = vperm.xlu2 %6625, %v9445_v14  }
0x1e40   :  { %4412 = vperm.xlu0 %6626, %v9450_v37  }
0x1e41   :  { %4407 = vperm.xlu2 %6625, %v9453_v21  }
0x1e48   :  { %4422 = vperm.xlu0 %6626, %v9458_v41  }
0x1e49   :  { %4417 = vperm.xlu2 %6625, %v9461_v52  }
0x1e50   :  { %4437 = vperm.xlu0 %6626, %v9466_v20   ;;  %v7088_v20 = vld [vmem:[#allocation3 + $0x30] sm:$0xff] }
0x1e51   :  { %4432 = vperm.xlu2 %6625, %v9469_v34   ;;  %v7094_v34 = vld [vmem:[#allocation3 + $0x60] sm:$0xff] }
0x1e58   :  { %4447 = vperm.xlu0 %6626, %v9474_v43  }
0x1e59   :  { %4442 = vperm.xlu2 %6625, %v9477_v45  }
0x1e61   :  { %4452 = vperm.xlu2 %6625, %v9482_v42  }
0x1e83   :  { %v4378_v0 = vpop.permute.xlu2 %4377 }
0x1e84   :  { %v4455_v53 = vmul.f32 %v7086_v57, %v4378_v0  ;;  %v7091_v57 = vld [vmem:[#allocation3 + $0x50] sm:$0xff] }
0x1e8b   :  { %v4388_v6 = vpop.permute.xlu2 %4387 }
0x1e8c   :  { %v4457_v31 = vmul.f32 %v7083_v29, %v4388_v6  ;;  %v7089_v29 = vld [vmem:[#allocation3 + $0x40] sm:$0xff] }
0x1e93   :  { %v4398_v33 = vpop.permute.xlu2 %4397 }
0x1e94   :  { %v4459_v42 = vmul.f32 %v7087_v19, %v4398_v33  ;;  %v9493_v19 = vld [vmem:[#allocation3 + $0x48] sm:$0xff] }
0x1e9a   :  { %v4383_v26 = vpop.permute.xlu0 %4382 }
0x1e9b   :  { %v4408_v62 = vpop.permute.xlu2 %4407  ;;  %v4456_v7 = vmul.f32 %v7084_v61, %v4383_v26  ;;  %v4471_v26 = vsel %vm179_vm0, %v4455_v53, 0.0 }
0x1e9c   :  { %v4461_v45 = vmul.f32 %v7088_v20, %v4408_v62 }
0x1e9e   :  { %v4498_v33 = vsel %vm179_vm0, %v4461_v45, 0.0 }
0x1ea2   :  { %v4393_v28 = vpop.permute.xlu0 %4392 }
0x1ea3   :  { %v4418_v56 = vpop.permute.xlu2 %4417  ;;  %v4458_v59 = vmul.f32 %v7081_v46, %v4393_v28  ;;  %v4472_v46 = vsel %vm179_vm0, %v4456_v7, 0.0 }
0x1ea4   :  { %v4463_v20 = vmul.f32 %v7089_v29, %v4418_v56  ;;  %v7093_v29 = vld [vmem:[#allocation3 + $0x68] sm:$0xff] }
0x1ea5   :  { %v4481_v43 = vsel %vm179_vm0, %v4458_v59, 0.0  ;;  %v7090_v59 = vld [vmem:[#allocation3 + $0x58] sm:$0xff] }
0x1eaa   :  { %v4403_v60 = vpop.permute.xlu0 %4402 }
0x1eab   :  { %v4460_v8 = vmul.f32 %v7082_v1, %v4403_v60  ;;  %v4433_v35 = vpop.permute.xlu2 %4432  ;;  %v4480_v60 = vsel %vm179_vm0, %v4457_v31, 0.0  ;;  %v4489_v1 = vsel %vm179_vm0, %v4459_v42, 0.0 }
0x1eac   :  { %v4482_v0 = vadd.f32 %v4481_v43, %v4480_v60  ;;  %v4466_v61 = vmul.f32 %v7090_v59, %v4433_v35  ;;  %v4507_v43 = vsel %vm179_vm0, %v4463_v20, 0.0 }
0x1ead   :  { %v4490_v28 = vsel %vm179_vm0, %v4460_v8, 0.0  ;;  %v4473_v8 = vadd.f32 %v4472_v46, %v4471_v26 }
0x1eae   :  { %v4491_v62 = vadd.f32 %v4490_v28, %v4489_v1  ;;  %v4483_v53 = vrot.slane %v4482_v0, 4  ;;  %v4517_v45 = vsel %vm179_vm0, %v4466_v61, 0.0 }
0x1eaf   :  { %v4474_v28 = vrot.slane %v4473_v8, 4 }
0x1eb0   :  { %v4492_v60 = vrot.slane %v4491_v62, 4  ;;  %v4484_v26 = vadd.f32 %v4483_v53, %v4482_v0 }
0x1eb2   :  { %v4413_v5 = vpop.permute.xlu0 %4412  ;;  %v4485_v61 = vrot.slane %v4484_v26, 2 }
0x1eb3   :  { %v4462_v58 = vmul.f32 %v7085_v2, %v4413_v5  ;;  %v4428_v5 = vpop.permute.xlu1 %4427  ;;  %v4443_v42 = vpop.permute.xlu2 %4442 }
0x1eb4   :  { %v4465_v7 = vmul.f32 %v7091_v57, %v4428_v5  ;;  %v4468_v59 = vmul.f32 %v7093_v29, %v4443_v42 }
0x1eb5   :  { %v4499_v6 = vsel %vm179_vm0, %v4462_v58, 0.0 }
0x1eb6   :  { %v4500_v2 = vadd.f32 %v4499_v6, %v4498_v33  ;;  %v4516_v6 = vsel %vm179_vm0, %v4465_v7, 0.0  ;;  %v4493_v33 = vadd.f32 %v4492_v60, %v4491_v62  ;;  %v4526_v63 = vsel %vm179_vm0, %v4468_v59, 0.0 }
0x1eb7   :  { %v4518_v1 = vadd.f32 %v4517_v45, %v4516_v6  ;;  %v4486_v60 = vadd.f32 %v4485_v61, %v4484_v26 }
0x1eb8   :  { %v4501_v35 = vrot.slane %v4500_v2, 4 }
0x1eb9   :  { %v4519_v41 = vrot.slane %v4518_v1, 4  ;;  %v4487_v59 = vrot.slane %v4486_v60, 1 }
0x1eba   :  { %v4423_v31 = vpop.permute.xlu0 %4422  ;;  %v4502_v57 = vadd.f32 %v4501_v35, %v4500_v2 }
0x1ebb   :  { %v4464_v58 = vmul.f32 %v9493_v19, %v4423_v31  ;;  %v4475_v31 = vadd.f32 %v4474_v28, %v4473_v8  ;;  %v4453_v53 = vpop.permute.xlu2 %4452  ;;  %v4520_v42 = vadd.f32 %v4519_v41, %v4518_v1 }
0x1ebc   :  { %v4503_v0 = vrot.slane %v4502_v57, 2 }
0x1ebd   :  { %v4508_v56 = vsel %vm179_vm0, %v4464_v58, 0.0  ;;  %v4494_v58 = vrot.slane %v4493_v33, 2  ;;  %v4476_v7 = vrot.slane %v4475_v31, 2 }
0x1ebe   :  { %v4509_v46 = vadd.f32 %v4508_v56, %v4507_v43  ;;  %v7095_v56 = vld [vmem:[#allocation3 + $0x78] sm:$0xff] }
0x1ebf   :  { %v4495_v2 = vadd.f32 %v4494_v58, %v4493_v33  ;;  %v4470_v28 = vmul.f32 %v7095_v56, %v4453_v53  ;;  %v4477_v35 = vadd.f32 %v4476_v7, %v4475_v31  ;;  %v4488_v31 = vadd.f32 %v4487_v59, %v4486_v60 }
0x1ec0   :  { %v4510_v5 = vrot.slane %v4509_v46, 4 }
0x1ec1   :  { %v4496_v37 = vrot.slane %v4495_v2, 1  ;;  %v4478_v41 = vrot.slane %v4477_v35, 1 }
0x1ec2   :  { %v4438_v27 = vpop.permute.xlu0 %4437  ;;  %v4511_v20 = vadd.f32 %v4510_v5, %v4509_v46  ;;  %v7096_v5 = vld [vmem:[#allocation3 + $0x70] sm:$0xff] }
0x1ec3   :  { %v4467_v52 = vmul.f32 %v7094_v34, %v4438_v27  ;;  %v4504_v27 = vadd.f32 %v4503_v0, %v4502_v57  ;;  %v4497_v7 = vadd.f32 %v4496_v37, %v4495_v2 }
0x1ec4   :  { %v4512_v62 = vrot.slane %v4511_v20, 2 }
0x1ec5   :  { %v4525_v43 = vsel %vm179_vm0, %v4467_v52, 0.0  ;;  %v4521_v52 = vrot.slane %v4520_v42, 2  ;;  %v4505_v1 = vrot.slane %v4504_v27, 1 }
0x1ec6   :  { %v4527_v45 = vadd.f32 %v4526_v63, %v4525_v43  ;;  %v4513_v6 = vadd.f32 %v4512_v62, %v4511_v20  ;;  %v4535_v63 = vsel %vm179_vm0, %v4470_v28, 0.0  ;;  %v4479_v20 = vadd.f32 %v4478_v41, %v4477_v35 }
0x1ec7   :  { %v4522_v57 = vadd.f32 %v4521_v52, %v4520_v42  ;;  %v4506_v0 = vadd.f32 %v4505_v1, %v4504_v27 }
0x1ec8   :  { %v4528_v8 = vrot.slane %v4527_v45, 4  ;;  %v4514_v61 = vrot.slane %v4513_v6, 1 }
0x1ec9   :  { %v4523_v56 = vrot.slane %v4522_v57, 1 }
0x1eca   :  { %v4529_v34 = vadd.f32 %v4528_v8, %v4527_v45  ;;  %v4448_v46 = vpop.permute.xlu0 %4447  ;;  %v4515_v45 = vadd.f32 %v4514_v61, %v4513_v6  ;;  %v4551_v8 = vsel %vm283_vm2, %v4488_v31, %v4479_v20 }
0x1ecb   :  { %v4469_v29 = vmul.f32 %v7096_v5, %v4448_v46  ;;  %v4552_v46 = vsel %vm285_vm3, %v4497_v7, %v4551_v8  ;;  %v4524_v60 = vadd.f32 %v4523_v56, %v4522_v57  ;;  %v7100_v8 = vld [vmem:[%s10765_s9] sm:$0xff]  ;;  %v9528_v56 = vpop.f32.mrf.mxu3 }
0x1ecc   :  { %v4530_v21 = vrot.slane %v4529_v34, 2  ;;  %10949 = vst [vmem:[#allocation106_spill] sm:$0xff] %v9528_v56 }
0x1ecd   :  { %v4534_v26 = vsel %vm179_vm0, %v4469_v29, 0.0  ;;  %v4553_v29 = vsel %vm287_vm4, %v4506_v0, %v4552_v46  ;;  %v7101_v46 = vld [vmem:[%s10768_s12] ss:$0 sm:$0xff] }
0x1ece   :  { %v4536_v33 = vadd.f32 %v4535_v63, %v4534_v26  ;;  %v4531_v58 = vadd.f32 %v4530_v21, %v4529_v34  ;;  %v4554_v21 = vsel %vm289_vm5, %v4515_v45, %v4553_v29  ;;  %v3986_v34 = vadd.f32 %v9200_v40, %v8044_v3  ;;  %v7098_v45 = vld [vmem:[%s10765_s9 + $0x20] sm:$0xff] }
0x1ecf   :  { %v4555_v2 = vsel %vm291_vm6, %v4524_v60, %v4554_v21 }
0x1ed0   :  { %v4537_v43 = vrot.slane %v4536_v33, 4  ;;  %v4532_v62 = vrot.slane %v4531_v58, 1  ;;  %v6582_v6 = vmul.f32 -1.442695, %v3986_v34 }
0x1ed2   :  { %v4538_v53 = vadd.f32 %v4537_v43, %v4536_v33  ;;  %v4533_v63 = vadd.f32 %v4532_v62, %v4531_v58  ;;  %6854 = vpow2.f32 %v6582_v6  ;;  %v7099_v62 = vld [vmem:[%s10765_s9 + $0x10] sm:$0xff] }
0x1ed4   :  { %v4539_v28 = vrot.slane %v4538_v53, 2  ;;  %v4556_v35 = vsel %vm293_vm7, %v4533_v63, %v4555_v2 }
0x1ed6   :  { %v4540_v5 = vadd.f32 %v4539_v28, %v4538_v53  ;;  %v7097_v53 = vld [vmem:[%s10765_s9 + $0x30] sm:$0xff]  ;;  %v3962_v28 = vpop.f32.mrf.mxu2 }
0x1ed8   :  { %v4541_v42 = vrot.slane %v4540_v5, 1  ;;  %v6855_v59 = vpop.eup %6854 }
0x1ed9   :  { %v3990_v52 = vadd.f32 1.0, %v6855_v59 }
0x1eda   :  { %v4542_v37 = vadd.f32 %v4541_v42, %v4540_v5  ;;  %v501_v5 = vadd.f32 %v7101_v46, %v8830_v12  ;;  %v7109_v46 = vld [vmem:[#allocation12 + $0x8] sm:$0xff] }
0x1edb   :  { %6856 = vrcp.f32 %v3990_v52  ;;  %v4002_v58 = vand.u32 2147483648, %v3990_v52  ;;  %vm3996_vm14 = vweird.f32 %v3990_v52  ;;  %v4000_v31 = vand.u32 2147483647, %v3990_v52 }
0x1edc   :  { %v4557_v27 = vsel %vm295_vm8, %v4542_v37, %v4556_v35  ;;  %v4564_v29 = vadd.f32 %v3962_v28, %v501_v5  ;;  %v7108_v28 = vld [vmem:[%s10765_s9 + $0x18] sm:$0xff]  ;;  %v7110_v5 = vld [vmem:[#allocation14 + $0x8] sm:$0xff] }
0x1edd   :  { %4558 = vrot.lane.b32.xlu0 %v4557_v27, %s7391_s25  ;;  %v4003_v43 = vor.u32 1.1754944e-38, %v4002_v58  ;;  %vm4001_vm1 = vcmp.eq.f32.partialorder %v4000_v31, 8.507059e+37 }
0x1ee1   :  { %v6857_v26 = vpop.eup %6856 }
0x1ee2   :  { %v3992_v41 = vmul.f32 %v6857_v26, %v3990_v52  ;;  %vm3997_vm13 = vweird.f32 %v6857_v26 }
0x1ee3   :  { %vm3998_vm15 = vmor %vm3996_vm14, %vm3997_vm13 }
0x1ee4   :  { %v3993_v1 = vsub.f32 1.0, %v3992_v41 }
0x1ee6   :  { %v3994_v33 = vmul.f32 %v6857_v26, %v3993_v1 }
0x1ee8   :  { %v3995_v61 = vadd.f32 %v6857_v26, %v3994_v33 }
0x1eea   :  { %v3999_v57 = vsel %vm3998_vm15, %v6857_v26, %v3995_v61 }
0x1eeb   :  { %v4004_v7 = vsel %vm4001_vm1, %v4003_v43, %v3999_v57 }
0x1f4f   :  { %v4559_v40 = vpop.permute.xlu0 %4558 }
0x1f50   :  { %v4561_v20 = vmul.f32 %v4559_v40, %v4004_v7 }
0x1f52   :  { %4566 = vrot.lane.b32.xlu1 %v4561_v20, %s7392_s17 }
0x1fc4   :  { %v4567_v0 = vpop.permute.xlu1 %4566 }
0x1fc5   :  { %6583 = vmatmul.msk.f32.vlgmr.msrb.gmra.mxu3 %vm179_vm0, %v4567_v0  ;;  %v7103_v0 = vld [vmem:[#allocation12 + $0x18] sm:$0xff] }
0x1fc6   :  { %5653 = vmatpush.msrb.mxu3 %v7097_v53  ;;  %v7104_v53 = vld [vmem:[#allocation14 + $0x18] sm:$0xff] }
0x1fc8   :  { %5654 = vmatpush.msrb.mxu3 %v7098_v45  ;;  %v7105_v45 = vld [vmem:[%s10765_s9 + $0x28] sm:$0xff] }
0x1fca   :  { %5655 = vmatpush.msrb.mxu3 %v7099_v62  ;;  %v7106_v62 = vld [vmem:[#allocation12 + $0x10] sm:$0xff] }
0x1fcc   :  { %5656 = vmatpush.msrb.mxu3 %v7100_v8  ;;  %v7107_v8 = vld [vmem:[#allocation14 + $0x10] sm:$0xff] }
0x2048   :  { %v4587_v63 = vpop.f32.mrf.mxu3 }
0x2049   :  { %v4590_v21 = vadd.f32 %v4587_v63, %v4564_v29  ;;  %v7111_v29 = vld [vmem:[%s10765_s9 + $0x8] sm:$0xff] }
0x204a   :  { %v7112_v63 = vld [vmem:[#allocation12] sm:$0xff] }
0x204b   :  { %6858 = vtanh.f32 %v4590_v21  ;;  %v6584_v42 = vmul.f32 -1.442695, %v4590_v21  ;;  %v7113_v21 = vld [vmem:[#allocation14] sm:$0xff] }
0x204d   :  { %6860 = vpow2.f32 %v6584_v42  ;;  %v7114_v42 = vld [vmem:[%s10763_s7] ss:$0 sm:$0xff] }
0x2051   :  { %v6859_v60 = vpop.eup %6858 }
0x2052   :  { %4613 = vrot.lane.b32.xlu2 %v6859_v60, %s7393_s5 }
0x2053   :  { %v6861_v37 = vpop.eup %6860 }
0x2054   :  { %v4594_v2 = vadd.f32 1.0, %v6861_v37 }
0x2056   :  { %6862 = vrcp.f32 %v4594_v2  ;;  %v4606_v52 = vand.u32 2147483648, %v4594_v2  ;;  %vm4600_vm12 = vweird.f32 %v4594_v2  ;;  %v4604_v12 = vand.u32 2147483647, %v4594_v2 }
0x2058   :  { %v4607_v41 = vor.u32 1.1754944e-38, %v4606_v52  ;;  %vm4605_vm14 = vcmp.eq.f32.partialorder %v4604_v12, 8.507059e+37 }
0x205c   :  { %v6863_v35 = vpop.eup %6862 }
0x205d   :  { %v4596_v27 = vmul.f32 %v6863_v35, %v4594_v2  ;;  %vm4601_vm11 = vweird.f32 %v6863_v35 }
0x205e   :  { %vm4602_vm13 = vmor %vm4600_vm12, %vm4601_vm11 }
0x205f   :  { %v4597_v34 = vsub.f32 1.0, %v4596_v27 }
0x2061   :  { %v4598_v6 = vmul.f32 %v6863_v35, %v4597_v34 }
0x2063   :  { %v4599_v59 = vadd.f32 %v6863_v35, %v4598_v6 }
0x2065   :  { %v4603_v26 = vsel %vm4602_vm13, %v6863_v35, %v4599_v59 }
0x2066   :  { %v4608_v33 = vsel %vm4605_vm14, %v4607_v41, %v4603_v26 }
0x2067   :  { %v4611_v58 = vmul.f32 %v4608_v33, %v9180_v39  ;;  %v7102_v39 = vld [vmem:[%s10765_s9 + $0x38] sm:$0xff] }
0x20ac   :  { %v4614_v1 = vpop.permute.xlu2 %4613 }
0x20ad   :  { %v4616_v61 = vmul.f32 %v4614_v1, %v4608_v33 }
0x20af   :  { %4618 = vrot.lane.b32.xlu0 %v4616_v61, %s7391_s25 }
0x2121   :  { %v4619_v31 = vpop.permute.xlu0 %4618 }
0x2122   :  { %v9537_v57 = vadd.f32 %v4619_v31, %v4611_v58  ;;  %v9578_v31 = vld [vmem:[%s10762_s6] ss:$0 sm:$0xff] }
0x2124   :  { %6864 = vtanh.f32 %v9537_v57 }
0x212a   :  { %v6865_v43 = vpop.eup %6864 }
0x212b   :  { %4624 = vrot.lane.b32.xlu1 %v6865_v43, %s7393_s5 }
0x219d   :  { %v4625_v7 = vpop.permute.xlu1 %4624 }
0x219e   :  { %v4627_v40 = vmul.f32 %v4625_v7, %v4608_v33 }
0x21a0   :  { %4629 = vrot.lane.b32.xlu2 %v4627_v40, %s7391_s25 }
0x21fa   :  { %v4630_v20 = vpop.permute.xlu2 %4629 }
0x21fb   :  { %6585 = vmatmul.msk.f32.vlgmr.msra.gmra.mxu2 %vm179_vm0, %v4630_v20  ;;  %6587 = vmatmul.msk.f32.vlgmr.msrb.gmra.mxu0 %vm179_vm0, %v4630_v20 }
0x21fc   :  { %6588 = vmatmul.msk.f32.vlgmr.msra.gmra.mxu3 %vm179_vm0, %v4630_v20  ;;  %5673 = vmatpush.msra.mxu2 %v7102_v39 }
0x21fd   :  { %6278 = vmatpush.msrb.mxu0 %v7103_v0  ;;  %6341 = vmatpush.msra.mxu3 %v7104_v53 }
0x21fe   :  { %5674 = vmatpush.msra.mxu2 %v7105_v45 }
0x21ff   :  { %6279 = vmatpush.msrb.mxu0 %v7106_v62  ;;  %6342 = vmatpush.msra.mxu3 %v7107_v8 }
0x2200   :  { %5675 = vmatpush.msra.mxu2 %v7108_v28 }
0x2201   :  { %6280 = vmatpush.msrb.mxu0 %v7109_v46  ;;  %6343 = vmatpush.msra.mxu3 %v7110_v5 }
0x2202   :  { %5676 = vmatpush.msra.mxu2 %v7111_v29 }
0x2203   :  { %6281 = vmatpush.msrb.mxu0 %v7112_v63  ;;  %6344 = vmatpush.msra.mxu3 %v7113_v21 }
0x227f   :  { %v9557_v60 = vpop.f32.mrf.mxu3 }
0x2280   :  { %v9563_v37 = vadd.f32 %v7114_v42, %v9557_v60 }
0x2282   :  { %v4862_v2 = vperm.slane %v9563_v37, 0  ;;  %v4855_v35 = vrot.slane %v9563_v37, 1  ;;  %v4856_v27 = vrot.slane %v9563_v37, 2  ;;  %v4857_v12 = vrot.slane %v9563_v37, 3 }
0x2283   :  { %v4858_v58 = vrot.slane %v9563_v37, 4 }
0x2284   :  { %v4879_v34 = vadd.f32 %v4862_v2, %v7692_v25  ;;  %v4878_v6 = vadd.f32 %v4862_v2, %v7688_v23  ;;  %v4863_v59 = vperm.slane %v4855_v35, 0  ;;  %v4864_v52 = vperm.slane %v4856_v27, 0 }
0x2285   :  { %v4865_v0 = vperm.slane %v4857_v12, 0  ;;  %v4866_v5 = vperm.slane %v4858_v58, 0  ;;  %v4859_v2 = vrot.slane %v9563_v37, 5 }
0x2286   :  { %v4895_v26 = vmax.f32 %v4879_v34, 0.0  ;;  %v4894_v41 = vmax.f32 %v4878_v6, 0.0  ;;  %v4880_v1 = vadd.f32 %v4863_v59, %v7672_v9  ;;  %v4881_v33 = vadd.f32 %v4863_v59, %v7674_v10 }
0x2287   :  { %v4882_v61 = vadd.f32 %v4864_v52, %v7676_v11  ;;  %v4883_v20 = vadd.f32 %v4864_v52, %v7678_v15  ;;  %v4885_v29 = vadd.f32 %v4865_v0, %v7682_v17  ;;  %v4884_v42 = vadd.f32 %v4865_v0, %v7680_v16 }
0x2288   :  { %v4911_v43 = vmul.f32 %v9578_v31, %v4895_v26  ;;  %v4910_v7 = vmul.f32 %v9578_v31, %v4894_v41  ;;  %v4896_v40 = vmax.f32 %v4880_v1, 0.0  ;;  %v4897_v39 = vmax.f32 %v4881_v33, 0.0 }
0x2289   :  { %v4898_v8 = vmax.f32 %v4882_v61, 0.0  ;;  %v4899_v46 = vmax.f32 %v4883_v20, 0.0  ;;  %v4886_v27 = vadd.f32 %v4866_v5, %v7684_v18  ;;  %v4901_v34 = vmax.f32 %v4885_v29, 0.0 }
0x228a   :  { %v4929_v53 = vsel %vm179_vm0, %v4911_v43, 0.0  ;;  %v4926_v45 = vsel %vm179_vm0, %v4910_v7, 0.0  ;;  %v4912_v62 = vmul.f32 %v9578_v31, %v4896_v40  ;;  %v4913_v21 = vmul.f32 %v9578_v31, %v4897_v39 }
0x228b   :  { %4930 = vadd.xlane.f32.xlu1 %v4929_v53  ;;  %4927 = vadd.xlane.f32.xlu0 %v4926_v45  ;;  %v4914_v63 = vmul.f32 %v9578_v31, %v4898_v8  ;;  %v4915_v35 = vmul.f32 %v9578_v31, %v4899_v46  ;;  %v4900_v52 = vmax.f32 %v4884_v42, 0.0  ;;  %v4867_v12 = vperm.slane %v4859_v2, 0 }
0x228c   :  { %v4932_v28 = vsel %vm179_vm0, %v4912_v62, 0.0  ;;  %v4935_v59 = vsel %vm179_vm0, %v4913_v21, 0.0  ;;  %v4902_v41 = vmax.f32 %v4886_v27, 0.0  ;;  %v4917_v1 = vmul.f32 %v9578_v31, %v4901_v34 }
0x228d   :  { %4933 = vadd.xlane.f32.xlu2 %v4932_v28  ;;  %v4938_v6 = vsel %vm179_vm0, %v4914_v63, 0.0  ;;  %v4941_v26 = vsel %vm179_vm0, %v4915_v35, 0.0  ;;  %v4916_v33 = vmul.f32 %v9578_v31, %v4900_v52  ;;  %v4888_v61 = vadd.f32 %v4867_v12, %v7690_v24 }
0x228e   :  { %v4887_v58 = vadd.f32 %v4866_v5, %v7686_v22  ;;  %v4860_v43 = vrot.slane %v9563_v37, 6  ;;  %v4918_v7 = vmul.f32 %v9578_v31, %v4902_v41  ;;  %v4889_v40 = vadd.f32 %v4867_v12, %v7697_v30 }
0x228f   :  { %v4861_v20 = vrot.slane %v9563_v37, 7  ;;  %v4947_v39 = vsel %vm179_vm0, %v4917_v1, 0.0  ;;  %v4944_v0 = vsel %vm179_vm0, %v4916_v33, 0.0  ;;  %v4904_v53 = vmax.f32 %v4888_v61, 0.0 }
0x2290   :  { %v4903_v45 = vmax.f32 %v4887_v58, 0.0  ;;  %v4868_v62 = vperm.slane %v4860_v43, 0  ;;  %v4950_v8 = vsel %vm179_vm0, %v4918_v7, 0.0  ;;  %v4905_v28 = vmax.f32 %v4889_v40, 0.0 }
0x2291   :  { %v4869_v46 = vperm.slane %v4861_v20, 0  ;;  %v4920_v5 = vmul.f32 %v9578_v31, %v4904_v53 }
0x2292   :  { %v4919_v29 = vmul.f32 %v9578_v31, %v4903_v45  ;;  %v4891_v37 = vadd.f32 %v4868_v62, %v7736_v13  ;;  %v4890_v63 = vadd.f32 %v4868_v62, %v7721_v51  ;;  %v4921_v21 = vmul.f32 %v9578_v31, %v4905_v28 }
0x2293   :  { %4939 = vadd.xlane.f32.xlu1 %v4938_v6  ;;  %4936 = vadd.xlane.f32.xlu0 %v4935_v59  ;;  %v4892_v42 = vadd.f32 %v4869_v46, %v7751_v48  ;;  %v4956_v2 = vsel %vm179_vm0, %v4920_v5, 0.0 }
0x2294   :  { %v4953_v35 = vsel %vm179_vm0, %v4919_v29, 0.0  ;;  %v4907_v27 = vmax.f32 %v4891_v37, 0.0  ;;  %v4906_v34 = vmax.f32 %v4890_v63, 0.0  ;;  %v4959_v6 = vsel %vm179_vm0, %v4921_v21, 0.0 }
0x2295   :  { %4942 = vadd.xlane.f32.xlu2 %v4941_v26  ;;  %v4908_v59 = vmax.f32 %v4892_v42, 0.0  ;;  %v4893_v26 = vadd.f32 %v4869_v46, %v7762_v44 }
0x2296   :  { %v4923_v52 = vmul.f32 %v9578_v31, %v4907_v27  ;;  %v4922_v12 = vmul.f32 %v9578_v31, %v4906_v34 }
0x2297   :  { %v4924_v41 = vmul.f32 %v9578_v31, %v4908_v59  ;;  %v4909_v61 = vmax.f32 %v4893_v26, 0.0 }
0x2298   :  { %v4965_v1 = vsel %vm179_vm0, %v4923_v52, 0.0  ;;  %v4962_v33 = vsel %vm179_vm0, %v4922_v12, 0.0 }
0x2299   :  { %v4968_v58 = vsel %vm179_vm0, %v4924_v41, 0.0  ;;  %v4925_v43 = vmul.f32 %v9578_v31, %v4909_v61 }
0x229b   :  { %4948 = vadd.xlane.f32.xlu1 %v4947_v39  ;;  %4945 = vadd.xlane.f32.xlu0 %v4944_v0  ;;  %v4971_v7 = vsel %vm179_vm0, %v4925_v43, 0.0 }
0x229d   :  { %4951 = vadd.xlane.f32.xlu2 %v4950_v8 }
0x22a3   :  { %4957 = vadd.xlane.f32.xlu1 %v4956_v2  ;;  %4954 = vadd.xlane.f32.xlu0 %v4953_v35 }
0x22a5   :  { %4960 = vadd.xlane.f32.xlu2 %v4959_v6 }
0x22ab   :  { %4966 = vadd.xlane.f32.xlu1 %v4965_v1  ;;  %4963 = vadd.xlane.f32.xlu0 %v4962_v33 }
0x22ad   :  { %4969 = vadd.xlane.f32.xlu2 %v4968_v58 }
0x22b3   :  { %4972 = vadd.xlane.f32.xlu0 %v4971_v7 }
0x22fe   :  { %v4931_v40 = vpop.xlane.xlu1 %4930  ;;  %v4928_v20 = vpop.xlane.xlu0 %4927 }
0x22ff   :  { %v4991_v37 = vperm.slane %v4931_v40, %v7790_v36  ;;  %v4990_v63 = vperm.slane %v4928_v20, %v7785_v38 }
0x2300   :  { %v4934_v39 = vpop.xlane.xlu2 %4933 }
0x2301   :  { %v4993_v21 = vperm.slane %v4934_v39, %v7785_v38  ;;  %v4992_v52 = vsel %vm752_vm10, %v4991_v37, %v4990_v63 }
0x2306   :  { %v4940_v0 = vpop.xlane.xlu1 %4939  ;;  %v4937_v53 = vpop.xlane.xlu0 %4936 }
0x2307   :  { %v4994_v31 = vperm.slane %v4937_v53, %v7790_v36  ;;  %v4996_v34 = vperm.slane %v4940_v0, %v7785_v38 }
0x2308   :  { %v9626_v45 = vpop.xlane.xlu2 %4942 }
0x2309   :  { %v4997_v42 = vperm.slane %v9626_v45, %v7790_v36  ;;  %v4995_v2 = vsel %vm752_vm10, %v4994_v31, %v4993_v21 }
0x230a   :  { %v5014_v26 = vsel %vm283_vm2, %v4995_v2, %v4992_v52 }
0x230b   :  { %v4998_v41 = vsel %vm752_vm10, %v4997_v42, %v4996_v34 }
0x230c   :  { %v5015_v31 = vsel %vm285_vm3, %v4998_v41, %v5014_v26 }
0x230e   :  { %v9628_v62 = vpop.xlane.xlu1 %4948  ;;  %v4946_v8 = vpop.xlane.xlu0 %4945 }
0x230f   :  { %v5000_v35 = vperm.slane %v9628_v62, %v7790_v36  ;;  %v4999_v27 = vperm.slane %v4946_v8, %v7785_v38 }
0x2310   :  { %v9630_v28 = vpop.xlane.xlu2 %4951 }
0x2311   :  { %v5002_v1 = vperm.slane %v9630_v28, %v7785_v38  ;;  %v5001_v33 = vsel %vm752_vm10, %v5000_v35, %v4999_v27 }
0x2312   :  { %v5016_v63 = vsel %vm287_vm4, %v5001_v33, %v5015_v31 }
0x2316   :  { %v9632_v46 = vpop.xlane.xlu1 %4957  ;;  %v9634_v5 = vpop.xlane.xlu0 %4954 }
0x2317   :  { %v5003_v6 = vperm.slane %v9634_v5, %v7790_v36  ;;  %v5005_v37 = vperm.slane %v9632_v46, %v7785_v38 }
0x2318   :  { %v9637_v29 = vpop.xlane.xlu2 %4960 }
0x2319   :  { %v5006_v61 = vperm.slane %v9637_v29, %v7790_v36  ;;  %v5004_v58 = vsel %vm752_vm10, %v5003_v6, %v5002_v1 }
0x231a   :  { %v5017_v2 = vsel %vm289_vm5, %v5004_v58, %v5016_v63 }
0x231b   :  { %v5007_v42 = vsel %vm752_vm10, %v5006_v61, %v5005_v37 }
0x231c   :  { %v5018_v52 = vsel %vm291_vm6, %v5007_v42, %v5017_v2 }
0x231e   :  { %v9651_v59 = vpop.xlane.xlu0 %4963  ;;  %v9654_v12 = vpop.xlane.xlu1 %4966 }
0x231f   :  { %v5009_v43 = vperm.slane %v9654_v12, %v7790_v36  ;;  %v5008_v7 = vperm.slane %v9651_v59, %v7785_v38 }
0x2320   :  { %v9672_v21 = vpop.xlane.xlu2 %4969 }
0x2321   :  { %v5010_v27 = vsel %vm752_vm10, %v5009_v43, %v5008_v7  ;;  %v5011_v34 = vperm.slane %v9672_v21, %v7785_v38 }
0x2322   :  { %v5019_v41 = vsel %vm293_vm7, %v5010_v27, %v5018_v52 }
0x2326   :  { %v9676_v35 = vpop.xlane.xlu0 %4972 }
0x2327   :  { %v5012_v6 = vperm.slane %v9676_v35, %v7790_v36 }
0x2329   :  { %v5013_v26 = vsel %vm752_vm10, %v5012_v6, %v5011_v34 }
0x232a   :  { %v5020_v1 = vsel %vm295_vm8, %v5013_v26, %v5019_v41 }
0x232b   :  { %v5022_v33 = vsel %vm449_vm9, %v5020_v1, -inf }
0x232c   :  { %5023 = vmax.xlane.f32.xlu1 %v5022_v33 }
0x239f   :  { %v9688_v61 = vpop.xlane.xlu1 %5023 }
0x23a0   :  { %v5026_v58 = vperm.slane %v9688_v61, 0  ;;  %v5027_v43 = vperm.slane %v9688_v61, 1  ;;  %v5029_v63 = vperm.slane %v9688_v61, 3  ;;  %v5028_v42 = vperm.slane %v9688_v61, 2 }
0x23a1   :  { %v5030_v41 = vperm.slane %v9688_v61, 4 }
0x23a2   :  { %v5042_v7 = vsub.f32 %v4928_v20, %v5026_v58  ;;  %v5043_v31 = vsub.f32 %v4931_v40, %v5026_v58  ;;  %v5044_v37 = vsub.f32 %v4934_v39, %v5027_v43  ;;  %v5048_v6 = vsub.f32 %v4946_v8, %v5029_v63 }
0x23a3   :  { %v5045_v52 = vsub.f32 %v4937_v53, %v5027_v43  ;;  %v5046_v26 = vsub.f32 %v4940_v0, %v5028_v42  ;;  %v5051_v8 = vsub.f32 %v9634_v5, %v5030_v41  ;;  %v5047_v0 = vsub.f32 %v9626_v45, %v5028_v42 }
0x23a4   :  { %v5058_v2 = vmul.f32 1.442695, %v5042_v7  ;;  %v5060_v27 = vmul.f32 1.442695, %v5043_v31  ;;  %v5062_v34 = vmul.f32 1.442695, %v5044_v37  ;;  %v5049_v53 = vsub.f32 %v9628_v62, %v5029_v63 }
0x23a5   :  { %v5070_v1 = vmul.f32 1.442695, %v5048_v6  ;;  %v5064_v33 = vmul.f32 1.442695, %v5045_v52  ;;  %v5066_v40 = vmul.f32 1.442695, %v5046_v26  ;;  %v5050_v62 = vsub.f32 %v9630_v28, %v5030_v41 }
0x23a6   :  { %6866 = vpow2.f32 %v5062_v34  ;;  %v5032_v43 = vperm.slane %v9688_v61, 6  ;;  %v5076_v7 = vmul.f32 1.442695, %v5051_v8  ;;  %v5068_v31 = vmul.f32 1.442695, %v5047_v0 }
0x23a7   :  { %6868 = vpow2.f32 %v5060_v27  ;;  %v5072_v5 = vmul.f32 1.442695, %v5049_v53  ;;  %v5033_v34 = vperm.slane %v9688_v61, 7  ;;  %v5074_v52 = vmul.f32 1.442695, %v5050_v62 }
0x23a8   :  { %6870 = vpow2.f32 %v5058_v2  ;;  %v5031_v2 = vperm.slane %v9688_v61, 5  ;;  %v5054_v42 = vsub.f32 %v9651_v59, %v5032_v43  ;;  %v5055_v61 = vsub.f32 %v9654_v12, %v5032_v43 }
0x23a9   :  { %6872 = vpow2.f32 %v5070_v1  ;;  %v5057_v28 = vsub.f32 %v9676_v35, %v5033_v34 }
0x23aa   :  { %6874 = vpow2.f32 %v5064_v33  ;;  %v5052_v63 = vsub.f32 %v9632_v46, %v5031_v2  ;;  %v5082_v6 = vmul.f32 1.442695, %v5054_v42  ;;  %v5053_v46 = vsub.f32 %v9637_v29, %v5031_v2 }
0x23ab   :  { %6876 = vpow2.f32 %v5066_v40  ;;  %v5088_v41 = vmul.f32 1.442695, %v5057_v28  ;;  %v5084_v0 = vmul.f32 1.442695, %v5055_v61  ;;  %v5056_v29 = vsub.f32 %v9672_v21, %v5033_v34 }
0x23ac   :  { %v9695_v20 = vpop.eup %6866  ;;  %6878 = vpow2.f32 %v5076_v7  ;;  %v5078_v1 = vmul.f32 1.442695, %v5052_v63  ;;  %v5080_v40 = vmul.f32 1.442695, %v5053_v46 }
0x23ad   :  { %v9697_v39 = vpop.eup %6868  ;;  %5113 = vperm.xlu1 %6627, %v9695_v20   ;;  %6880 = vpow2.f32 %v5068_v31  ;;  %v5086_v12 = vmul.f32 1.442695, %v5056_v29 }
0x23ae   :  { %v9700_v58 = vpop.eup %6870  ;;  %5110 = vperm.xlu0 %6626, %v9697_v39   ;;  %6882 = vpow2.f32 %v5072_v5 }
0x23af   :  { %5107 = vperm.xlu2 %6625, %v9700_v58   ;;  %v9708_v37 = vpop.eup %6872  ;;  %6884 = vpow2.f32 %v5082_v6 }
0x23b0   :  { %v9711_v27 = vpop.eup %6874  ;;  %6886 = vpow2.f32 %v5074_v52 }
0x23b1   :  { %v9714_v45 = vpop.eup %6876  ;;  %6888 = vpow2.f32 %v5078_v1 }
0x23b2   :  { %v9722_v26 = vpop.eup %6878  ;;  %6890 = vpow2.f32 %v5088_v41 }
0x23b3   :  { %v9724_v33 = vpop.eup %6880  ;;  %6892 = vpow2.f32 %v5080_v40 }
0x23b4   :  { %v9727_v59 = vpop.eup %6882  ;;  %6894 = vpow2.f32 %v5084_v0 }
0x23b5   :  { %5125 = vperm.xlu1 %6627, %v9708_v37   ;;  %v9734_v8 = vpop.eup %6884  ;;  %6896 = vpow2.f32 %v5086_v12 }
0x23b6   :  { %5116 = vperm.xlu0 %6626, %v9711_v27   ;;  %v9736_v53 = vpop.eup %6886 }
0x23b7   :  { %5119 = vperm.xlu2 %6625, %v9714_v45   ;;  %v9739_v35 = vpop.eup %6888 }
0x23b8   :  { %v9744_v43 = vpop.eup %6890 }
0x23b9   :  { %v9746_v7 = vpop.eup %6892 }
0x23ba   :  { %v9749_v31 = vpop.eup %6894 }
0x23bb   :  { %v9753_v2 = vpop.eup %6896 }
0x23bd   :  { %5134 = vperm.xlu1 %6627, %v9722_v26  }
0x23be   :  { %5122 = vperm.xlu0 %6626, %v9724_v33  }
0x23bf   :  { %5128 = vperm.xlu2 %6625, %v9727_v59  }
0x23c5   :  { %5143 = vperm.xlu1 %6627, %v9734_v8  }
0x23c6   :  { %5131 = vperm.xlu0 %6626, %v9736_v53  }
0x23c7   :  { %5137 = vperm.xlu2 %6625, %v9739_v35  }
0x23cd   :  { %5152 = vperm.xlu1 %6627, %v9744_v43  }
0x23ce   :  { %5140 = vperm.xlu0 %6626, %v9746_v7  }
0x23cf   :  { %5146 = vperm.xlu2 %6625, %v9749_v31  }
0x23d6   :  { %5149 = vperm.xlu0 %6626, %v9753_v2  }
0x2409   :  { %v5108_v21 = vpop.permute.xlu2 %5107 }
0x240a   :  { %v5154_v49 = vperm.slane %v5108_v21, %v7785_v38 }
0x2411   :  { %v5120_v62 = vpop.permute.xlu2 %5119 }
0x2412   :  { %v5160_v12 = vperm.slane %v5120_v62, %v7785_v38 }
0x2419   :  { %v5129_v52 = vpop.permute.xlu2 %5128 }
0x241a   :  { %v5164_v62 = vperm.slane %v5129_v52, %v7790_v36 }
0x241f   :  { %v5114_v5 = vpop.permute.xlu1 %5113 }
0x2420   :  { %v5111_v42 = vpop.permute.xlu0 %5110  ;;  %v5157_v0 = vperm.slane %v5114_v5, %v7785_v38 }
0x2421   :  { %v5138_v46 = vpop.permute.xlu2 %5137  ;;  %v5155_v29 = vperm.slane %v5111_v42, %v7790_v36 }
0x2422   :  { %v5169_v21 = vperm.slane %v5138_v46, %v7785_v38 }
0x2427   :  { %v5126_v63 = vpop.permute.xlu1 %5125 }
0x2428   :  { %v5117_v34 = vpop.permute.xlu0 %5116 }
0x2429   :  { %v5158_v61 = vperm.slane %v5117_v34, %v7790_v36  ;;  %v5156_v34 = vsel %vm752_vm10, %v5155_v29, %v5154_v49 }
0x242b   :  { %v5159_v14 = vsel %vm752_vm10, %v5158_v61, %v5157_v0  ;;  %v5147_v0 = vpop.permute.xlu2 %5146 }
0x242c   :  { %v5178_v5 = vsel %vm283_vm2, %v5159_v14, %v5156_v34  ;;  %v5173_v52 = vperm.slane %v5147_v0, %v7790_v36 }
0x242f   :  { %v5135_v1 = vpop.permute.xlu1 %5134 }
0x2430   :  { %v5123_v6 = vpop.permute.xlu0 %5122  ;;  %v5167_v42 = vperm.slane %v5135_v1, %v7790_v36 }
0x2431   :  { %v5161_v41 = vperm.slane %v5123_v6, %v7790_v36  ;;  %v5163_v6 = vperm.slane %v5126_v63, %v7785_v38 }
0x2433   :  { %v5162_v47 = vsel %vm752_vm10, %v5161_v41, %v5160_v12 }
0x2434   :  { %v5179_v61 = vsel %vm285_vm3, %v5162_v47, %v5178_v5 }
0x2437   :  { %v5144_v40 = vpop.permute.xlu1 %5143 }
0x2438   :  { %v5132_v28 = vpop.permute.xlu0 %5131  ;;  %v5172_v63 = vperm.slane %v5144_v40, %v7785_v38 }
0x2439   :  { %v5166_v4 = vperm.slane %v5132_v28, %v7785_v38  ;;  %v5165_v28 = vsel %vm752_vm10, %v5164_v62, %v5163_v6 }
0x243a   :  { %v5174_v12 = vsel %vm752_vm10, %v5173_v52, %v5172_v63 }
0x243b   :  { %v5168_v41 = vsel %vm752_vm10, %v5167_v42, %v5166_v4 }
0x243f   :  { %v5153_v14 = vpop.permute.xlu1 %5152 }
0x2440   :  { %v5141_v55 = vpop.permute.xlu0 %5140  ;;  %v5176_v47 = vperm.slane %v5153_v14, %v7790_v36 }
0x2441   :  { %v5170_v56 = vperm.slane %v5141_v55, %v7790_v36  ;;  %v5180_v55 = vsel %vm287_vm4, %v5165_v28, %v5179_v61 }
0x2442   :  { %v5181_v1 = vsel %vm289_vm5, %v5168_v41, %v5180_v55 }
0x2443   :  { %v5171_v49 = vsel %vm752_vm10, %v5170_v56, %v5169_v21 }
0x2444   :  { %v5182_v46 = vsel %vm291_vm6, %v5171_v49, %v5181_v1 }
0x2445   :  { %v5183_v40 = vsel %vm293_vm7, %v5174_v12, %v5182_v46 }
0x2448   :  { %v5150_v29 = vpop.permute.xlu0 %5149 }
0x2449   :  { %v5175_v4 = vperm.slane %v5150_v29, %v7785_v38 }
0x244b   :  { %v5177_v56 = vsel %vm752_vm10, %v5176_v47, %v5175_v4 }
0x244c   :  { %v5184_v34 = vsel %vm295_vm8, %v5177_v56, %v5183_v40 }
0x244d   :  { %v5186_v6 = vsel %vm449_vm9, %v5184_v34, 0.0  ;;  %v7116_v34 = vld [vmem:[#allocation3 + $0x18] sm:$0xff] }
0x244e   :  { %5187 = vadd.xlane.f32.xlu2 %v5186_v6 }
0x24c1   :  { %v5188_v5 = vpop.xlane.xlu2 %5187 }
0x24c2   :  { %6898 = vrcp.f32 %v5188_v5  ;;  %v7117_v5 = vld [vmem:[#allocation3 + $0x10] sm:$0xff] }
0x24c8   :  { %v6899_v42 = vpop.eup %6898 }
0x24c9   :  { %v5196_v62 = vperm.slane %v6899_v42, 5  ;;  %v5191_v21 = vperm.slane %v6899_v42, 0  ;;  %v5192_v0 = vperm.slane %v6899_v42, 1 }
0x24cb   :  { %v9789_v61 = vmul.f32 %v9739_v35, %v5196_v62  ;;  %v9792_v41 = vmul.f32 %v9697_v39, %v5191_v21  ;;  %v9795_v28 = vmul.f32 %v9700_v58, %v5191_v21  ;;  %v9801_v49 = vmul.f32 %v9711_v27, %v5192_v0 }
0x24cc   :  { %v9804_v63 = vmul.f32 %v9695_v20, %v5192_v0  ;;  %v5193_v39 = vperm.slane %v6899_v42, 2  ;;  %v5194_v27 = vperm.slane %v6899_v42, 3 }
0x24cd   :  { %10950 = vst [vmem:[#allocation107_spill] sm:$0xff] %v9789_v61  ;;  %5275 = vperm.xlu2 %6625, %v9789_v61   ;;  %5230 = vperm.xlu1 %6627, %v9792_v41  }
0x24ce   :  { %5225 = vperm.xlu0 %6626, %v9795_v28   ;;  %10951 = vst [vmem:[#allocation108_spill] sm:$0xff] %v9804_v63  ;;  %v9809_v58 = vmul.f32 %v9724_v33, %v5193_v39  ;;  %v9812_v35 = vmul.f32 %v9714_v45, %v5193_v39  ;;  %v9817_v55 = vmul.f32 %v9727_v59, %v5194_v27  ;;  %v5195_v33 = vperm.slane %v6899_v42, 4 }
0x24cf   :  { %v9820_v20 = vmul.f32 %v9708_v37, %v5194_v27  ;;  %v5197_v59 = vperm.slane %v6899_v42, 6  ;;  %v9836_v37 = vmul.f32 %v9746_v7, %v5196_v62  ;;  %v7118_v62 = vld [vmem:[#allocation3 + $0x28] sm:$0xff] }
0x24d0   :  { %10952 = vst [vmem:[#allocation109_spill] sm:$0xff] %v9809_v58  ;;  %v9825_v14 = vmul.f32 %v9722_v26, %v5195_v33  ;;  %v9828_v45 = vmul.f32 %v9736_v53, %v5195_v33  ;;  %v5198_v26 = vperm.slane %v6899_v42, 7  ;;  %v7120_v27 = vld [vmem:[#allocation3 + $0x8] sm:$0xff] }
0x24d1   :  { %10953 = vst [vmem:[#allocation110_spill] sm:$0xff] %v9817_v55  ;;  %v9833_v1 = vmul.f32 %v9734_v8, %v5197_v59  ;;  %v9844_v53 = vmul.f32 %v9749_v31, %v5197_v59  ;;  %v7121_v59 = vld [vmem:[#allocation3] sm:$0xff] }
0x24d2   :  { %10954 = vst [vmem:[#allocation111_spill] sm:$0xff] %v9828_v45  ;;  %v9841_v52 = vmul.f32 %v9753_v2, %v5198_v26  ;;  %v9849_v8 = vmul.f32 %v9744_v43, %v5198_v26  ;;  %v7119_v43 = vld [vmem:[#allocation3 + $0x20] sm:$0xff] }
0x24d3   :  { %10955 = vst [vmem:[#allocation112_spill] sm:$0xff] %v9836_v37 }
0x24d4   :  { %10956 = vst [vmem:[#allocation113_spill] sm:$0xff] %v9841_v52 }
0x24d5   :  { %5240 = vperm.xlu1 %6627, %v9801_v49   ;;  %10957 = vst [vmem:[#allocation114_spill] sm:$0xff] %v9844_v53 }
0x24d6   :  { %5235 = vperm.xlu0 %6626, %v9804_v63   ;;  %10958 = vst [vmem:[#allocation115_spill] sm:$0xff] %v9849_v8 }
0x24dd   :  { %5250 = vperm.xlu1 %6627, %v9809_v58  }
0x24de   :  { %5245 = vperm.xlu0 %6626, %v9812_v35  }
0x24e5   :  { %5260 = vperm.xlu1 %6627, %v9817_v55   ;;  %v7124_v55 = vld [vmem:[#allocation3 + $0x40] sm:$0xff] }
0x24e6   :  { %5255 = vperm.xlu0 %6626, %v9820_v20  }
0x24ed   :  { %5270 = vperm.xlu1 %6627, %v9825_v14  }
0x24ee   :  { %5265 = vperm.xlu0 %6626, %v9828_v45   ;;  %v7123_v45 = vld [vmem:[#allocation3 + $0x30] sm:$0xff] }
0x24f5   :  { %5285 = vperm.xlu1 %6627, %v9833_v1  }
0x24f6   :  { %5280 = vperm.xlu0 %6626, %v9836_v37  }
0x24fd   :  { %5295 = vperm.xlu1 %6627, %v9841_v52   ;;  %v7122_v52 = vld [vmem:[#allocation3 + $0x38] sm:$0xff] }
0x24fe   :  { %5290 = vperm.xlu0 %6626, %v9844_v53  }
0x2506   :  { %5300 = vperm.xlu0 %6626, %v9849_v8  }
0x2527   :  { %v5276_v39 = vpop.permute.xlu2 %5275 }
0x253f   :  { %v5231_v7 = vpop.permute.xlu1 %5230 }
0x2540   :  { %v5226_v29 = vpop.permute.xlu0 %5225  ;;  %v5304_v33 = vmul.f32 %v7120_v27, %v5231_v7 }
0x2541   :  { %v5303_v26 = vmul.f32 %v7121_v59, %v5226_v29 }
0x2542   :  { %v5320_v29 = vsel %vm179_vm0, %v5304_v33, 0.0 }
0x2547   :  { %v5241_v46 = vpop.permute.xlu1 %5240 }
0x2548   :  { %v5236_v47 = vpop.permute.xlu0 %5235  ;;  %v5306_v6 = vmul.f32 %v7116_v34, %v5241_v46 }
0x2549   :  { %v5305_v42 = vmul.f32 %v7117_v5, %v5236_v47 }
0x254a   :  { %v5329_v46 = vsel %vm179_vm0, %v5306_v6, 0.0  ;;  %v7126_v6 = vld [vmem:[#allocation3 + $0x58] sm:$0xff] }
0x254b   :  { %v5328_v47 = vsel %vm179_vm0, %v5305_v42, 0.0 }
0x254f   :  { %v5251_v4 = vpop.permute.xlu1 %5250 }
0x2550   :  { %v5246_v12 = vpop.permute.xlu0 %5245  ;;  %v5308_v21 = vmul.f32 %v7118_v62, %v5251_v4  ;;  %v7125_v4 = vld [vmem:[#allocation3 + $0x50] sm:$0xff] }
0x2551   :  { %v5307_v0 = vmul.f32 %v7119_v43, %v5246_v12  ;;  %v5313_v34 = vmul.f32 %v7125_v4, %v5276_v39 }
0x2552   :  { %v5338_v12 = vsel %vm179_vm0, %v5308_v21, 0.0 }
0x2553   :  { %v5337_v7 = vsel %vm179_vm0, %v5307_v0, 0.0  ;;  %v5364_v43 = vsel %vm179_vm0, %v5313_v34, 0.0 }
0x2557   :  { %v5261_v2 = vpop.permute.xlu1 %5260 }
0x2558   :  { %v5256_v56 = vpop.permute.xlu0 %5255  ;;  %v5310_v37 = vmul.f32 %v7122_v52, %v5261_v2  ;;  %v5319_v52 = vsel %vm179_vm0, %v5303_v26, 0.0  ;;  %v5330_v2 = vadd.f32 %v5329_v46, %v5328_v47  ;;  %v7127_v26 = vld [vmem:[#allocation3 + $0x60] sm:$0xff] }
0x2559   :  { %v5309_v53 = vmul.f32 %v7123_v45, %v5256_v56  ;;  %v5321_v42 = vadd.f32 %v5320_v29, %v5319_v52 }
0x255a   :  { %v5347_v45 = vsel %vm179_vm0, %v5310_v37, 0.0  ;;  %v5331_v37 = vrot.slane %v5330_v2, 4 }
0x255b   :  { %v5322_v33 = vrot.slane %v5321_v42, 4 }
0x255c   :  { %v5332_v46 = vadd.f32 %v5331_v37, %v5330_v2 }
0x255d   :  { %v5323_v52 = vadd.f32 %v5322_v33, %v5321_v42  ;;  %v7130_v33 = vld [vmem:[#allocation3 + $0x78] sm:$0xff] }
0x255f   :  { %v5271_v40 = vpop.permute.xlu1 %5270 }
0x2560   :  { %v5266_v31 = vpop.permute.xlu0 %5265  ;;  %v5312_v61 = vmul.f32 %v9493_v19, %v5271_v40  ;;  %v5346_v19 = vsel %vm179_vm0, %v5309_v53, 0.0 }
0x2561   :  { %v5311_v58 = vmul.f32 %v7124_v55, %v5266_v31  ;;  %v5339_v31 = vadd.f32 %v5338_v12, %v5337_v7  ;;  %v5348_v62 = vadd.f32 %v5347_v45, %v5346_v19  ;;  %v7128_v7 = vld [vmem:[#allocation3 + $0x68] sm:$0xff] }
0x2562   :  { %v5356_v55 = vsel %vm179_vm0, %v5312_v61, 0.0 }
0x2563   :  { %v5355_v56 = vsel %vm179_vm0, %v5311_v58, 0.0  ;;  %v5340_v53 = vrot.slane %v5339_v31, 4  ;;  %v5349_v59 = vrot.slane %v5348_v62, 4 }
0x2564   :  { %v5357_v0 = vadd.f32 %v5356_v55, %v5355_v56  ;;  %v5333_v56 = vrot.slane %v5332_v46, 2 }
0x2565   :  { %v5341_v12 = vadd.f32 %v5340_v53, %v5339_v31  ;;  %v5350_v45 = vadd.f32 %v5349_v59, %v5348_v62 }
0x2566   :  { %v5358_v61 = vrot.slane %v5357_v0, 4  ;;  %v5334_v53 = vadd.f32 %v5333_v56, %v5332_v46 }
0x2567   :  { %v5286_v21 = vpop.permute.xlu1 %5285 }
0x2568   :  { %v5281_v40 = vpop.permute.xlu0 %5280  ;;  %v5315_v58 = vmul.f32 %v7127_v26, %v5286_v21  ;;  %v5359_v34 = vadd.f32 %v5358_v61, %v5357_v0  ;;  %v5351_v21 = vrot.slane %v5350_v45, 2  ;;  %v7129_v26 = vld [vmem:[#allocation3 + $0x70] sm:$0xff] }
0x2569   :  { %v5314_v5 = vmul.f32 %v7126_v6, %v5281_v40 }
0x256a   :  { %v5373_v19 = vsel %vm179_vm0, %v5315_v58, 0.0  ;;  %v5360_v37 = vrot.slane %v5359_v34, 2  ;;  %v5352_v58 = vadd.f32 %v5351_v21, %v5350_v45 }
0x256b   :  { %v5365_v39 = vsel %vm179_vm0, %v5314_v5, 0.0 }
0x256c   :  { %v5366_v27 = vadd.f32 %v5365_v39, %v5364_v43  ;;  %v5342_v43 = vrot.slane %v5341_v12, 2  ;;  %v5324_v39 = vrot.slane %v5323_v52, 2  ;;  %v5353_v56 = vrot.slane %v5352_v58, 1 }
0x256e   :  { %v5367_v47 = vrot.slane %v5366_v27, 4  ;;  %v5343_v0 = vadd.f32 %v5342_v43, %v5341_v12  ;;  %v5325_v61 = vadd.f32 %v5324_v39, %v5323_v52 }
0x256f   :  { %v5296_v6 = vpop.permute.xlu1 %5295 }
0x2570   :  { %v5291_v4 = vpop.permute.xlu0 %5290  ;;  %v5368_v40 = vadd.f32 %v5367_v47, %v5366_v27  ;;  %v5317_v31 = vmul.f32 %v7129_v26, %v5296_v6  ;;  %v5361_v27 = vadd.f32 %v5360_v37, %v5359_v34  ;;  %v5344_v8 = vrot.slane %v5343_v0, 1 }
0x2571   :  { %v5316_v29 = vmul.f32 %v7128_v7, %v5291_v4  ;;  %v5326_v46 = vrot.slane %v5325_v61, 1  ;;  %v5354_v34 = vadd.f32 %v5353_v56, %v5352_v58 }
0x2572   :  { %v5369_v4 = vrot.slane %v5368_v40, 2  ;;  %v5382_v47 = vsel %vm179_vm0, %v5317_v31, 0.0  ;;  %v5345_v52 = vadd.f32 %v5344_v8, %v5343_v0 }
0x2573   :  { %v5374_v55 = vsel %vm179_vm0, %v5316_v29, 0.0  ;;  %v5327_v39 = vadd.f32 %v5326_v46, %v5325_v61  ;;  %v4834_v61 = vadd.f32 %v9557_v60, %v8044_v3 }
0x2574   :  { %v5375_v5 = vadd.f32 %v5374_v55, %v5373_v19  ;;  %v5335_v19 = vrot.slane %v5334_v53, 1  ;;  %v5370_v55 = vadd.f32 %v5369_v4, %v5368_v40 }
0x2575   :  { %v6589_v58 = vmul.f32 -1.442695, %v4834_v61 }
0x2576   :  { %v5376_v2 = vrot.slane %v5375_v5, 4  ;;  %v5336_v12 = vadd.f32 %v5335_v19, %v5334_v53  ;;  %v5371_v43 = vrot.slane %v5370_v55, 1 }
0x2577   :  { %6900 = vpow2.f32 %v6589_v58 }
0x2578   :  { %v5377_v42 = vadd.f32 %v5376_v2, %v5375_v5  ;;  %v5301_v62 = vpop.permute.xlu0 %5300  ;;  %v5362_v2 = vrot.slane %v5361_v27, 1  ;;  %v5399_v31 = vsel %vm283_vm2, %v5336_v12, %v5327_v39 }
0x2579   :  { %v5318_v59 = vmul.f32 %v7130_v33, %v5301_v62  ;;  %v5372_v62 = vadd.f32 %v5371_v43, %v5370_v55 }
0x257a   :  { %v5378_v7 = vrot.slane %v5377_v42, 2  ;;  %v5363_v37 = vadd.f32 %v5362_v2, %v5361_v27 }
0x257b   :  { %v5383_v29 = vsel %vm179_vm0, %v5318_v59, 0.0 }
0x257c   :  { %v5384_v63 = vadd.f32 %v5383_v29, %v5382_v47  ;;  %v5379_v6 = vadd.f32 %v5378_v7, %v5377_v42  ;;  %v5400_v42 = vsel %vm285_vm3, %v5345_v52, %v5399_v31  ;;  %v1264_v52 = vld [vmem:[%s10758_s2] sm:$0xff] }
0x257d   :  { %v5401_v59 = vsel %vm287_vm4, %v5354_v34, %v5400_v42  ;;  %v6901_v27 = vpop.eup %6900  ;;  %v9889_v34 = vld [vmem:[%s10770_s14] ss:$0 sm:$0xff] }
0x257e   :  { %v5385_v5 = vrot.slane %v5384_v63, 4  ;;  %v5380_v45 = vrot.slane %v5379_v6, 1  ;;  %v5402_v53 = vsel %vm289_vm5, %v5363_v37, %v5401_v59  ;;  %v4838_v47 = vadd.f32 1.0, %v6901_v27  ;;  %v10959_v37 = vld [vmem:[#allocation28_spill] sm:$0xff]  ;;  %v10964_v27 = vld [vmem:[#allocation35_spill] sm:$0xff] }
0x2580   :  { %v5386_v26 = vadd.f32 %v5385_v5, %v5384_v63  ;;  %v5381_v4 = vadd.f32 %v5380_v45, %v5379_v6  ;;  %v5403_v63 = vsel %vm291_vm6, %v5372_v62, %v5402_v53  ;;  %6902 = vrcp.f32 %v4838_v47  ;;  %v10960_v62 = vld [vmem:[#allocation40_spill] sm:$0xff] }
0x2581   :  { %v4850_v56 = vand.u32 2147483648, %v4838_v47  ;;  %vm4844_vm1 = vweird.f32 %v4838_v47  ;;  %v4848_v5 = vand.u32 2147483647, %v4838_v47 }
0x2582   :  { %v5387_v21 = vrot.slane %v5386_v26, 2  ;;  %v5404_v8 = vsel %vm293_vm7, %v5381_v4, %v5403_v63 }
0x2583   :  { %v4851_v12 = vor.u32 1.1754944e-38, %v4850_v56  ;;  %vm4849_vm12 = vcmp.eq.f32.partialorder %v4848_v5, 8.507059e+37  ;;  %v7131_v56 = vld [vmem:[%s10768_s12] ss:$0 sm:$0xff] }
0x2584   :  { %v5388_v40 = vadd.f32 %v5387_v21, %v5386_v26  ;;  %v504_v5 = vadd.f32 %v7131_v56, %v8832_v54  ;;  %v10968_v56 = vld [vmem:[#allocation27_spill] sm:$0xff] }
0x2586   :  { %v5389_v33 = vrot.slane %v5388_v40, 1  ;;  %v6903_v29 = vpop.eup %6902 }
0x2587   :  { %v4840_v19 = vmul.f32 %v6903_v29, %v4838_v47  ;;  %vm4845_vm15 = vweird.f32 %v6903_v29 }
0x2588   :  { %v5390_v7 = vadd.f32 %v5389_v33, %v5388_v40  ;;  %vm4846_vm11 = vmor %vm4844_vm1, %vm4845_vm15  ;;  %v1262_v40 = vadd.f32 %v9889_v34, %v10960_v62  ;;  %v10961_v33 = vld [vmem:[#allocation30_spill] sm:$0xff] }
0x2589   :  { %v4841_v55 = vsub.f32 1.0, %v4840_v19  ;;  %v10965_v19 = vld [vmem:[#allocation39_spill] sm:$0xff] }
0x258a   :  { %v5405_v0 = vsel %vm295_vm8, %v5390_v7, %v5404_v8  ;;  %v10962_v7 = vld [vmem:[#allocation31_spill] sm:$0xff] }
0x258b   :  { %5406 = vrot.lane.b32.xlu1 %v5405_v0, %s7391_s25  ;;  %v4842_v6 = vmul.f32 %v6903_v29, %v4841_v55  ;;  %v10963_v0 = vld [vmem:[#allocation33_spill] sm:$0xff] }
0x258d   :  { %v4843_v46 = vadd.f32 %v6903_v29, %v4842_v6  ;;  %v9910_v6 = vpop.f32.mrf.mxu2 }
0x258f   :  { %v4847_v2 = vsel %vm4846_vm11, %v6903_v29, %v4843_v46  ;;  %v4810_v46 = vpop.f32.mrf.mxu0 }
0x2590   :  { %v4852_v43 = vsel %vm4849_vm12, %v4851_v12, %v4847_v2  ;;  %v5412_v2 = vadd.f32 %v4810_v46, %v504_v5 }
0x25fd   :  { %v5407_v60 = vpop.permute.xlu1 %5406 }
0x25fe   :  { %v5409_v26 = vmul.f32 %v5407_v60, %v4852_v43 }
0x2600   :  { %5414 = vrot.lane.b32.xlu2 %v5409_v26, %s7392_s17 }
0x2608   :  { %1267 = vperm.xlu2 %6625, %v1264_v52   ;;  %v10966_v52 = vld [vmem:[#allocation26_spill] sm:$0xff] }
0x265a   :  { %v5415_v45 = vpop.permute.xlu2 %5414 }
0x265b   :  { %6590 = vmatmul.msk.f32.vlgmr.msrb.gmra.mxu2 %vm179_vm0, %v5415_v45 }
0x2662   :  { %v9884_v39 = vpop.permute.xlu2 %1267 }
0x2663   :  { %v1273_v21 = vperm.slane %v9884_v39, 1  ;;  %v1274_v4 = vperm.slane %v9884_v39, 2  ;;  %v1270_v42 = vmul.f32 %v9884_v39, %v1262_v40  ;;  %v1275_v53 = vperm.slane %v9884_v39, 3 }
0x2664   :  { %v1276_v8 = vperm.slane %v9884_v39, 4  ;;  %v1278_v58 = vperm.slane %v9884_v39, 6  ;;  %v1279_v29 = vperm.slane %v9884_v39, 7  ;;  %v1272_v26 = vperm.slane %v9884_v39, 0 }
0x2665   :  { %v1290_v31 = vmul.f32 %v1273_v21, %v10959_v37  ;;  %1271 = vst [vmem:[#allocation15] sm:$0xff] %v1270_v42  ;;  %v1292_v59 = vmul.f32 %v1274_v4, %v10961_v33  ;;  %v1295_v63 = vmul.f32 %v1275_v53, %v10962_v7  ;;  %v1291_v5 = vmul.f32 %v1273_v21, %v10968_v56  ;;  %v10971_v21 = vld [vmem:[#allocation34_spill] sm:$0xff]  ;;  %v10976_v56 = vld [vmem:[#allocation45_spill] sm:$0xff] }
0x2666   :  { %v1297_v61 = vmul.f32 %v1276_v8, %v10963_v0  ;;  %v1300_v47 = vmul.f32 %v1278_v58, %v10964_v27  ;;  %v1303_v55 = vmul.f32 %v1279_v29, %v10965_v19  ;;  %v1288_v45 = vmul.f32 %v1272_v26, %v10966_v52 }
0x2667   :  { %1327 = vperm.xlu2 %6625, %v1290_v31  }
0x266f   :  { %1333 = vperm.xlu2 %6625, %v1292_v59  }
0x2677   :  { %1342 = vperm.xlu2 %6625, %v1295_v63  }
0x267f   :  { %1348 = vperm.xlu2 %6625, %v1297_v61  }
0x2687   :  { %1357 = vperm.xlu2 %6625, %v1300_v47  }
0x268f   :  { %1366 = vperm.xlu2 %6625, %v1303_v55   ;;  %v10967_v55 = vld [vmem:[#allocation25_spill] sm:$0xff] }
0x2690   :  { %v1289_v46 = vmul.f32 %v1272_v26, %v10967_v55 }
0x26de   :  { %v5435_v12 = vpop.f32.mrf.mxu2 }
0x26df   :  { %v5438_v43 = vadd.f32 %v5435_v12, %v5412_v2  ;;  %v10969_v2 = vld [vmem:[#allocation32_spill] sm:$0xff] }
0x26e0   :  { %v1294_v12 = vmul.f32 %v1275_v53, %v10969_v2  ;;  %v1277_v53 = vperm.slane %v9884_v39, 5  ;;  %v10977_v2 = vld [vmem:[#allocation42_spill] sm:$0xff] }
0x26e1   :  { %6904 = vtanh.f32 %v5438_v43  ;;  %v6591_v37 = vmul.f32 -1.442695, %v5438_v43 }
0x26e3   :  { %6906 = vpow2.f32 %v6591_v37  ;;  %v10970_v37 = vld [vmem:[#allocation29_spill] sm:$0xff] }
0x26e4   :  { %v1293_v26 = vmul.f32 %v1274_v4, %v10970_v37 }
0x26e7   :  { %v6905_v60 = vpop.eup %6904 }
0x26e8   :  { %5461 = vrot.lane.b32.xlu0 %v6905_v60, %s7393_s5 }
0x26e9   :  { %v6907_v31 = vpop.eup %6906 }
0x26ea   :  { %v5442_v62 = vadd.f32 1.0, %v6907_v31  ;;  %v1296_v31 = vmul.f32 %v1276_v8, %v10971_v21 }
0x26ec   :  { %6908 = vrcp.f32 %v5442_v62  ;;  %v5454_v7 = vand.u32 2147483648, %v5442_v62  ;;  %vm5448_vm14 = vweird.f32 %v5442_v62  ;;  %v5452_v63 = vand.u32 2147483647, %v5442_v62 }
0x26ee   :  { %v5455_v61 = vor.u32 1.1754944e-38, %v5454_v7  ;;  %vm5453_vm1 = vcmp.eq.f32.partialorder %v5452_v63, 8.507059e+37  ;;  %v10974_v7 = vld [vmem:[#allocation36_spill] sm:$0xff] }
0x26ef   :  { %v1299_v63 = vmul.f32 %v1277_v53, %v10974_v7 }
0x26f0   :  { %1321 = vperm.xlu0 %6626, %v1288_v45  }
0x26f2   :  { %v6909_v40 = vpop.eup %6908 }
0x26f3   :  { %v5444_v42 = vmul.f32 %v6909_v40, %v5442_v62  ;;  %vm5449_vm13 = vweird.f32 %v6909_v40  ;;  %v10972_v62 = vld [vmem:[#allocation24_spill] sm:$0xff] }
0x26f4   :  { %vm5450_vm15 = vmor %vm5448_vm14, %vm5449_vm13 }
0x26f5   :  { %v5445_v54 = vsub.f32 1.0, %v5444_v42 }
0x26f7   :  { %v5446_v33 = vmul.f32 %v6909_v40, %v5445_v54  ;;  %v6565_v54 = vld [vmem:[%s10758_s2 + $0x8] sm:$0xff] }
0x26f9   :  { %v5447_v59 = vadd.f32 %v6909_v40, %v5446_v33 }
0x26fb   :  { %v5451_v0 = vsel %vm5450_vm15, %v6909_v40, %v5447_v59  ;;  %v10973_v40 = vld [vmem:[#allocation38_spill] sm:$0xff] }
0x26fc   :  { %v5456_v47 = vsel %vm5453_vm1, %v5455_v61, %v5451_v0  ;;  %v1301_v42 = vmul.f32 %v1278_v58, %v10973_v40  ;;  %v10975_v58 = vld [vmem:[#allocation37_spill] sm:$0xff] }
0x26fd   :  { %v5459_v43 = vmul.f32 %v5456_v47, %v9537_v57  ;;  %v1298_v57 = vmul.f32 %v1277_v53, %v10972_v62  ;;  %v1302_v61 = vmul.f32 %v1279_v29, %v10975_v58  ;;  %v10982_v62 = vld [vmem:[#allocation44_spill] sm:$0xff] }
0x275a   :  { %v5462_v27 = vpop.permute.xlu0 %5461 }
0x275b   :  { %v5464_v19 = vmul.f32 %v5462_v27, %v5456_v47 }
0x275d   :  { %5466 = vrot.lane.b32.xlu1 %v5464_v19, %s7391_s25 }
0x2762   :  { %v9938_v33 = vpop.permute.xlu0 %1321 }
0x2765   :  { %1324 = vperm.xlu1 %6627, %v1289_v46  }
0x276d   :  { %1330 = vperm.xlu1 %6627, %v1291_v5  }
0x2775   :  { %1339 = vperm.xlu1 %6627, %v1294_v12  }
0x27cf   :  { %v5467_v60 = vpop.permute.xlu1 %5466 }
0x27d0   :  { %v9924_v52 = vadd.f32 %v5467_v60, %v5459_v43  ;;  %v10978_v43 = vld [vmem:[#allocation43_spill] sm:$0xff] }
0x27d2   :  { %6910 = vtanh.f32 %v9924_v52 }
0x27d8   :  { %v6911_v45 = vpop.eup %6910 }
0x27d9   :  { %5472 = vrot.lane.b32.xlu0 %v6911_v45, %s7393_s5  ;;  %v10979_v45 = vld [vmem:[#allocation57_spill] sm:$0xff] }
0x27da   :  { %v2107_v37 = vadd.f32 %v9889_v34, %v10979_v45  ;;  %v10989_v45 = vld [vmem:[#allocation54_spill] sm:$0xff] }
0x27e1   :  { %1336 = vperm.xlu0 %6626, %v1293_v26   ;;  %v10980_v26 = vld [vmem:[#allocation46_spill] sm:$0xff] }
0x27e9   :  { %1345 = vperm.xlu0 %6626, %v1296_v31   ;;  %v10981_v31 = vld [vmem:[#allocation47_spill] sm:$0xff] }
0x27f1   :  { %1351 = vperm.xlu0 %6626, %v1298_v57  }
0x27f9   :  { %1360 = vperm.xlu0 %6626, %v1301_v42  }
0x2801   :  { %2113 = vperm.xlu0 %6626, %v6565_v54   ;;  %v10983_v54 = vld [vmem:[#allocation51_spill] sm:$0xff] }
0x284b   :  { %v5473_v4 = vpop.permute.xlu0 %5472 }
0x284c   :  { %v5475_v59 = vmul.f32 %v5473_v4, %v5456_v47 }
0x284e   :  { %5477 = vrot.lane.b32.xlu1 %v5475_v59, %s7391_s25  ;;  %v10984_v59 = vld [vmem:[#allocation48_spill] sm:$0xff] }
0x2853   :  { %v9941_v8 = vpop.permute.xlu0 %1336 }
0x2856   :  { %1354 = vperm.xlu1 %6627, %v1299_v63   ;;  %v10985_v63 = vld [vmem:[#allocation49_spill] sm:$0xff] }
0x285b   :  { %v9944_v0 = vpop.permute.xlu0 %1345 }
0x285e   :  { %1363 = vperm.xlu1 %6627, %v1302_v61  }
0x2863   :  { %v9949_v27 = vpop.permute.xlu0 %1351 }
0x286b   :  { %v9951_v19 = vpop.permute.xlu0 %1360 }
0x2873   :  { %v2114_v55 = vpop.permute.xlu0 %2113 }
0x2874   :  { %v2120_v47 = vperm.slane %v2114_v55, 1  ;;  %v2119_v46 = vperm.slane %v2114_v55, 0  ;;  %v2121_v39 = vperm.slane %v2114_v55, 2  ;;  %v2116_v29 = vmul.f32 %v2114_v55, %v2107_v37 }
0x2875   :  { %v2123_v40 = vperm.slane %v2114_v55, 4  ;;  %v2122_v42 = vperm.slane %v2114_v55, 3  ;;  %v2124_v61 = vperm.slane %v2114_v55, 5 }
0x2876   :  { %v2137_v5 = vmul.f32 %v2120_v47, %v10976_v56  ;;  %v2136_v12 = vmul.f32 %v2119_v46, %v10977_v2  ;;  %v2135_v60 = vmul.f32 %v2119_v46, %v10978_v43  ;;  %2118 = vst [vmem:[#allocation15 + $0x8] sm:$0xff] %v2116_v29  ;;  %v2140_v21 = vmul.f32 %v2121_v39, %v10980_v26  ;;  %v10986_v46 = vld [vmem:[#allocation41_spill] sm:$0xff]  ;;  %v10991_v26 = vld [vmem:[#allocation52_spill] sm:$0xff] }
0x2877   :  { %v2139_v53 = vmul.f32 %v2121_v39, %v10981_v31  ;;  %v2138_v57 = vmul.f32 %v2120_v47, %v10982_v62  ;;  %v2143_v4 = vmul.f32 %v2123_v40, %v10983_v54  ;;  %v2142_v7 = vmul.f32 %v2122_v42, %v10984_v59  ;;  %v10988_v47 = vld [vmem:[#allocation50_spill] sm:$0xff]  ;;  %v10990_v39 = vld [vmem:[#allocation55_spill] sm:$0xff]  ;;  %v1328_v31 = vpop.permute.xlu2 %1327  ;;  %v10992_v62 = vld [vmem:[#allocation56_spill] sm:$0xff] }
0x2878   :  { %2174 = vperm.xlu0 %6626, %v2137_v5   ;;  %2171 = vperm.xlu2 %6625, %v2136_v12   ;;  %v2141_v58 = vmul.f32 %v2122_v42, %v10985_v63  ;;  %v2146_v56 = vmul.f32 %v2124_v61, %v10986_v46  ;;  %v10987_v5 = vld [vmem:[#allocation53_spill] sm:$0xff]  ;;  %v2144_v12 = vmul.f32 %v2123_v40, %v10988_v47  ;;  %v2126_v43 = vperm.slane %v2114_v55, 7 }
0x2879   :  { %2168 = vperm.xlu1 %6627, %v2135_v60   ;;  %v2145_v2 = vmul.f32 %v2124_v61, %v10987_v5  ;;  %v2125_v60 = vperm.slane %v2114_v55, 6  ;;  %v1325_v55 = vpop.permute.xlu1 %1324  ;;  %v1375_v61 = vperm.slane %v9941_v8, %v7790_v36  ;;  %v1371_v46 = vperm.slane %v1328_v31, %v7785_v38 }
0x287a   :  { %v2149_v37 = vmul.f32 %v2126_v43, %v10989_v45  ;;  %v1383_v31 = vperm.slane %v9949_v27, %v7785_v38 }
0x287b   :  { %v2148_v29 = vmul.f32 %v2125_v60, %v10990_v39 }
0x287f   :  { %v1334_v40 = vpop.permute.xlu2 %1333 }
0x2880   :  { %2183 = vperm.xlu0 %6626, %v2140_v21   ;;  %2180 = vperm.xlu2 %6625, %v2139_v53   ;;  %v2147_v21 = vmul.f32 %v2125_v60, %v10991_v26  ;;  %v6572_v53 = vld [vmem:[%s10758_s2 + $0x10] sm:$0xff]  ;;  %v1374_v5 = vperm.slane %v1334_v40, %v7785_v38  ;;  %v1387_v40 = vperm.slane %v9951_v19, %v7790_v36 }
0x2881   :  { %2177 = vperm.xlu1 %6627, %v2138_v57   ;;  %v2150_v57 = vmul.f32 %v2126_v43, %v10992_v62  ;;  %v1331_v54 = vpop.permute.xlu1 %1330  ;;  %v1380_v43 = vperm.slane %v9944_v0, %v7785_v38 }
0x2887   :  { %v1343_v42 = vpop.permute.xlu2 %1342 }
0x2888   :  { %2192 = vperm.xlu0 %6626, %v2143_v4   ;;  %2189 = vperm.xlu2 %6625, %v2142_v7  }
0x2889   :  { %2186 = vperm.xlu1 %6627, %v2141_v58   ;;  %v1340_v59 = vpop.permute.xlu1 %1339  ;;  %v1372_v58 = vperm.slane %v1331_v54, %v7790_v36 }
0x288a   :  { %v1377_v8 = vperm.slane %v1340_v59, %v7785_v38 }
0x288b   :  { %v1373_v47 = vsel %vm752_vm10, %v1372_v58, %v1371_v46 }
0x288f   :  { %v1349_v4 = vpop.permute.xlu2 %1348 }
0x2890   :  { %2201 = vperm.xlu0 %6626, %v2146_v56   ;;  %2198 = vperm.xlu2 %6625, %v2145_v2   ;;  %v1369_v56 = vperm.slane %v1325_v55, %v7790_v36  ;;  %v1368_v2 = vperm.slane %v9938_v33, %v7785_v38  ;;  %v1381_v39 = vperm.slane %v1349_v4, %v7790_v36 }
0x2891   :  { %2195 = vperm.xlu1 %6627, %v2144_v12   ;;  %v1376_v12 = vsel %vm752_vm10, %v1375_v61, %v1374_v5  ;;  %v1378_v33 = vperm.slane %v1343_v42, %v7790_v36 }
0x2892   :  { %v1370_v45 = vsel %vm752_vm10, %v1369_v56, %v1368_v2  ;;  %v1382_v0 = vsel %vm752_vm10, %v1381_v39, %v1380_v43 }
0x2893   :  { %v1392_v26 = vsel %vm283_vm2, %v1373_v47, %v1370_v45  ;;  %v2955_v45 = vadd.f32 %v9889_v34, %v9171_v32 }
0x2897   :  { %v1358_v7 = vpop.permute.xlu2 %1357 }
0x2898   :  { %2210 = vperm.xlu0 %6626, %v2149_v37   ;;  %2207 = vperm.xlu2 %6625, %v2148_v29   ;;  %v1386_v42 = vperm.slane %v1358_v7, %v7785_v38 }
0x2899   :  { %2204 = vperm.xlu1 %6627, %v2147_v21   ;;  %v1393_v21 = vsel %vm285_vm3, %v1376_v12, %v1392_v26 }
0x289f   :  { %v1367_v29 = vpop.permute.xlu2 %1366 }
0x28a0   :  { %2961 = vperm.xlu2 %6625, %v6572_v53   ;;  %v1379_v53 = vsel %vm752_vm10, %v1378_v33, %v1377_v8  ;;  %v1390_v27 = vperm.slane %v1367_v29, %v7790_v36 }
0x28a1   :  { %2213 = vperm.xlu1 %6627, %v2150_v57   ;;  %v1394_v57 = vsel %vm287_vm4, %v1379_v53, %v1393_v21  ;;  %v10993_v21 = vld [vmem:[#allocation59_spill] sm:$0xff] }
0x28a2   :  { %v1395_v55 = vsel %vm289_vm5, %v1382_v0, %v1394_v57 }
0x28c0   :  { %v5478_v63 = vpop.permute.xlu1 %5477 }
0x28c1   :  { %6592 = vmatmul.msk.f32.vlgmr.msra.gmra.mxu0 %vm179_vm0, %v5478_v63  ;;  %6594 = vmatmul.msk.f32.vlgmr.msrb.gmra.mxu3 %vm179_vm0, %v5478_v63 }
0x28c2   :  { %6595 = vmatmul.msk.f32.vlgmr.msra.gmra.mxu2 %vm179_vm0, %v5478_v63  ;;  %v1388_v63 = vsel %vm752_vm10, %v1387_v40, %v1386_v42 }
0x28c8   :  { %v1355_v60 = vpop.permute.xlu1 %1354 }
0x28c9   :  { %v1384_v37 = vperm.slane %v1355_v60, %v7790_v36 }
0x28cb   :  { %v1385_v62 = vsel %vm752_vm10, %v1384_v37, %v1383_v31 }
0x28cc   :  { %v1396_v54 = vsel %vm291_vm6, %v1385_v62, %v1395_v55  ;;  %v10994_v62 = vld [vmem:[#allocation60_spill] sm:$0xff] }
0x28cd   :  { %v1397_v46 = vsel %vm293_vm7, %v1388_v63, %v1396_v54 }
0x28d0   :  { %v1364_v4 = vpop.permute.xlu1 %1363 }
0x28d1   :  { %v1389_v59 = vperm.slane %v1364_v4, %v7785_v38 }
0x28d2   :  { %v2172_v58 = vpop.permute.xlu2 %2171 }
0x28d3   :  { %v1391_v61 = vsel %vm752_vm10, %v1390_v27, %v1389_v59  ;;  %v2216_v42 = vperm.slane %v2172_v58, %v7790_v36 }
0x28d4   :  { %v1398_v19 = vsel %vm295_vm8, %v1391_v61, %v1397_v46 }
0x28d5   :  { %1400 = vst.msk [vmem:[#allocation16] sm:$0xff] %vm449_vm9, %v1398_v19 }
0x28da   :  { %v2181_v56 = vpop.permute.xlu2 %2180 }
0x28db   :  { %v2221_v27 = vperm.slane %v2181_v56, %v7785_v38 }
0x28e2   :  { %v2190_v7 = vpop.permute.xlu2 %2189 }
0x28e3   :  { %v2225_v61 = vperm.slane %v2190_v7, %v7790_v36 }
0x28ea   :  { %v2175_v5 = vpop.permute.xlu0 %2174  ;;  %v2199_v2 = vpop.permute.xlu2 %2198 }
0x28eb   :  { %v2169_v47 = vpop.permute.xlu1 %2168  ;;  %v2218_v40 = vperm.slane %v2175_v5, %v7785_v38 }
0x28ec   :  { %v2215_v55 = vperm.slane %v2169_v47, %v7785_v38 }
0x28ee   :  { %v2217_v46 = vsel %vm752_vm10, %v2216_v42, %v2215_v55 }
0x28f2   :  { %v2208_v12 = vpop.permute.xlu2 %2207  ;;  %v2184_v43 = vpop.permute.xlu0 %2183 }
0x28f3   :  { %v2178_v60 = vpop.permute.xlu1 %2177 }
0x28f4   :  { %v2219_v34 = vperm.slane %v2178_v60, %v7790_v36 }
0x28f6   :  { %v2220_v54 = vsel %vm752_vm10, %v2219_v34, %v2218_v40  ;;  %v7132_v40 = vld [vmem:[%s10763_s7] ss:$0 sm:$0xff] }
0x28f7   :  { %v2239_v5 = vsel %vm283_vm2, %v2220_v54, %v2217_v46 }
0x28fa   :  { %v10016_v8 = vpop.permute.xlu2 %2961  ;;  %v2193_v26 = vpop.permute.xlu0 %2192 }
0x28fb   :  { %v2964_v37 = vmul.f32 %v10016_v8, %v2955_v45  ;;  %v2187_v39 = vpop.permute.xlu1 %2186  ;;  %v2967_v29 = vperm.slane %v10016_v8, 0  ;;  %v2968_v0 = vperm.slane %v10016_v8, 1  ;;  %v2227_v47 = vperm.slane %v2193_v26, %v7785_v38 }
0x28fc   :  { %v2224_v4 = vperm.slane %v2187_v39, %v7785_v38  ;;  %v2230_v45 = vperm.slane %v2199_v2, %v7785_v38 }
0x28fd   :  { %2966 = vst [vmem:[#allocation15 + $0x10] sm:$0xff] %v2964_v37  ;;  %v2983_v33 = vmul.f32 %v2967_v29, %v8709_v50  ;;  %v2984_v31 = vmul.f32 %v2967_v29, %v10993_v21  ;;  %v2986_v32 = vmul.f32 %v2968_v0, %v10994_v62  ;;  %v2222_v50 = vperm.slane %v2184_v43, %v7790_v36 }
0x28fe   :  { %v2226_v58 = vsel %vm752_vm10, %v2225_v61, %v2224_v4  ;;  %v2234_v37 = vperm.slane %v2208_v12, %v7790_v36 }
0x28ff   :  { %3016 = vperm.xlu0 %6626, %v2983_v33   ;;  %3019 = vperm.xlu1 %6627, %v2984_v31   ;;  %v2223_v19 = vsel %vm752_vm10, %v2222_v50, %v2221_v27 }
0x2900   :  { %v2240_v7 = vsel %vm285_vm3, %v2223_v19, %v2239_v5 }
0x2901   :  { %v2241_v39 = vsel %vm287_vm4, %v2226_v58, %v2240_v7 }
0x2902   :  { %v2202_v57 = vpop.permute.xlu0 %2201 }
0x2903   :  { %v2196_v53 = vpop.permute.xlu1 %2195  ;;  %v2231_v43 = vperm.slane %v2202_v57, %v7790_v36 }
0x2904   :  { %v2228_v59 = vperm.slane %v2196_v53, %v7790_v36 }
0x2905   :  { %v2232_v33 = vsel %vm752_vm10, %v2231_v43, %v2230_v45 }
0x2906   :  { %v2229_v60 = vsel %vm752_vm10, %v2228_v59, %v2227_v47 }
0x2907   :  { %3025 = vperm.xlu0 %6626, %v2986_v32   ;;  %v2242_v26 = vsel %vm289_vm5, %v2229_v60, %v2241_v39 }
0x2908   :  { %v2243_v2 = vsel %vm291_vm6, %v2232_v33, %v2242_v26 }
0x290a   :  { %v2211_v29 = vpop.permute.xlu0 %2210 }
0x290b   :  { %v2205_v63 = vpop.permute.xlu1 %2204  ;;  %v2236_v53 = vperm.slane %v2211_v29, %v7785_v38 }
0x290c   :  { %v2233_v56 = vperm.slane %v2205_v63, %v7785_v38 }
0x290e   :  { %v2235_v21 = vsel %vm752_vm10, %v2234_v37, %v2233_v56 }
0x290f   :  { %v2244_v32 = vsel %vm293_vm7, %v2235_v21, %v2243_v2 }
0x2913   :  { %v2214_v31 = vpop.permute.xlu1 %2213 }
0x2914   :  { %v2237_v62 = vperm.slane %v2214_v31, %v7790_v36 }
0x2916   :  { %v2238_v12 = vsel %vm752_vm10, %v2237_v62, %v2236_v53 }
0x2917   :  { %v2245_v34 = vsel %vm295_vm8, %v2238_v12, %v2244_v32 }
0x2918   :  { %2248 = vst.msk [vmem:[#allocation16 + $0x8] sm:$0xff] %vm449_vm9, %v2245_v34 }
0x2945   :  { %v10058_v57 = vpop.f32.mrf.mxu2 }
0x2946   :  { %v10064_v55 = vadd.f32 %v7132_v40, %v10058_v57 }
0x2948   :  { %v5710_v50 = vperm.slane %v10064_v55, 0  ;;  %v5703_v42 = vrot.slane %v10064_v55, 1  ;;  %v5704_v54 = vrot.slane %v10064_v55, 2  ;;  %v5705_v61 = vrot.slane %v10064_v55, 3 }
0x2949   :  { %v5706_v43 = vrot.slane %v10064_v55, 4  ;;  %v5707_v62 = vrot.slane %v10064_v55, 5 }
0x294a   :  { %v5726_v4 = vadd.f32 %v5710_v50, %v7688_v23  ;;  %v5727_v27 = vadd.f32 %v5710_v50, %v7692_v25  ;;  %v5711_v59 = vperm.slane %v5703_v42, 0  ;;  %v5712_v63 = vperm.slane %v5704_v54, 0  ;;  %v10079_v23 = vld [vmem:[%s10762_s6] ss:$0 sm:$0xff] }
0x294b   :  { %v5714_v26 = vperm.slane %v5706_v43, 0  ;;  %v5715_v42 = vperm.slane %v5707_v62, 0 }
0x294c   :  { %v5742_v46 = vmax.f32 %v5726_v4, 0.0  ;;  %v5743_v19 = vmax.f32 %v5727_v27, 0.0  ;;  %v5728_v5 = vadd.f32 %v5711_v59, %v7672_v9  ;;  %v5729_v47 = vadd.f32 %v5711_v59, %v7674_v10 }
0x294d   :  { %v5730_v58 = vadd.f32 %v5712_v63, %v7676_v11  ;;  %v5731_v45 = vadd.f32 %v5712_v63, %v7678_v15  ;;  %v5713_v9 = vperm.slane %v5705_v61, 0  ;;  %v5734_v32 = vadd.f32 %v5714_v26, %v7684_v18 }
0x294e   :  { %v5758_v25 = vmul.f32 %v10079_v23, %v5742_v46  ;;  %v5759_v60 = vmul.f32 %v10079_v23, %v5743_v19  ;;  %v5744_v56 = vmax.f32 %v5728_v5, 0.0  ;;  %v5745_v7 = vmax.f32 %v5729_v47, 0.0 }
0x294f   :  { %v5746_v39 = vmax.f32 %v5730_v58, 0.0  ;;  %v5747_v33 = vmax.f32 %v5731_v45, 0.0  ;;  %v5732_v21 = vadd.f32 %v5713_v9, %v7680_v16  ;;  %v5733_v53 = vadd.f32 %v5713_v9, %v7682_v17 }
0x2950   :  { %v5774_v10 = vsel %vm179_vm0, %v5758_v25, 0.0  ;;  %v5777_v11 = vsel %vm179_vm0, %v5759_v60, 0.0  ;;  %v5760_v37 = vmul.f32 %v10079_v23, %v5744_v56  ;;  %v5761_v15 = vmul.f32 %v10079_v23, %v5745_v7 }
0x2951   :  { %5775 = vadd.xlane.f32.xlu2 %v5774_v10  ;;  %5778 = vadd.xlane.f32.xlu0 %v5777_v11  ;;  %v5762_v31 = vmul.f32 %v10079_v23, %v5746_v39  ;;  %v5763_v2 = vmul.f32 %v10079_v23, %v5747_v33  ;;  %v5748_v12 = vmax.f32 %v5732_v21, 0.0  ;;  %v5749_v50 = vmax.f32 %v5733_v53, 0.0 }
0x2952   :  { %v5780_v29 = vsel %vm179_vm0, %v5760_v37, 0.0  ;;  %v5783_v34 = vsel %vm179_vm0, %v5761_v15, 0.0  ;;  %v5750_v54 = vmax.f32 %v5734_v32, 0.0  ;;  %v5735_v27 = vadd.f32 %v5714_v26, %v7686_v22 }
0x2953   :  { %5781 = vadd.xlane.f32.xlu1 %v5780_v29  ;;  %v5786_v40 = vsel %vm179_vm0, %v5762_v31, 0.0  ;;  %v5789_v16 = vsel %vm179_vm0, %v5763_v2, 0.0  ;;  %v5764_v17 = vmul.f32 %v10079_v23, %v5748_v12  ;;  %v5765_v4 = vmul.f32 %v10079_v23, %v5749_v50 }
0x2954   :  { %v5736_v18 = vadd.f32 %v5715_v42, %v7690_v24  ;;  %v5708_v59 = vrot.slane %v10064_v55, 6  ;;  %v5766_v63 = vmul.f32 %v10079_v23, %v5750_v54  ;;  %v5737_v61 = vadd.f32 %v5715_v42, %v7697_v30  ;;  %v10997_v42 = vld [vmem:[#allocation69_spill] sm:$0xff] }
0x2955   :  { %v5709_v46 = vrot.slane %v10064_v55, 7  ;;  %v5792_v19 = vsel %vm179_vm0, %v5764_v17, 0.0  ;;  %v5795_v5 = vsel %vm179_vm0, %v5765_v4, 0.0  ;;  %v5751_v47 = vmax.f32 %v5735_v27, 0.0  ;;  %v10999_v17 = vld [vmem:[#allocation62_spill] sm:$0xff] }
0x2956   :  { %v5752_v58 = vmax.f32 %v5736_v18, 0.0  ;;  %v5716_v43 = vperm.slane %v5708_v59, 0  ;;  %v5798_v22 = vsel %vm179_vm0, %v5766_v63, 0.0  ;;  %v5753_v24 = vmax.f32 %v5737_v61, 0.0  ;;  %v11000_v18 = vld [vmem:[#allocation65_spill] sm:$0xff]  ;;  %v11001_v63 = vld [vmem:[#allocation67_spill] sm:$0xff] }
0x2957   :  { %v5717_v25 = vperm.slane %v5709_v46, 0  ;;  %v5767_v60 = vmul.f32 %v10079_v23, %v5751_v47  ;;  %v2970_v2 = vperm.slane %v10016_v8, 3  ;;  %v2969_v12 = vperm.slane %v10016_v8, 2  ;;  %v11002_v46 = vld [vmem:[#allocation66_spill] sm:$0xff] }
0x2958   :  { %v5768_v30 = vmul.f32 %v10079_v23, %v5752_v58  ;;  %v5738_v55 = vadd.f32 %v5716_v43, %v7721_v51  ;;  %v5739_v56 = vadd.f32 %v5716_v43, %v7736_v13  ;;  %v5769_v45 = vmul.f32 %v10079_v23, %v5753_v24 }
0x2959   :  { %5784 = vadd.xlane.f32.xlu2 %v5783_v34  ;;  %5787 = vadd.xlane.f32.xlu0 %v5786_v40  ;;  %v5740_v7 = vadd.f32 %v5717_v25, %v7751_v48  ;;  %v5801_v9 = vsel %vm179_vm0, %v5767_v60, 0.0  ;;  %v5741_v33 = vadd.f32 %v5717_v25, %v7762_v44  ;;  %v10995_v44 = vld [vmem:[#allocation64_spill] sm:$0xff]  ;;  %v2972_v34 = vperm.slane %v10016_v8, 5  ;;  %v10996_v40 = vld [vmem:[#allocation63_spill] sm:$0xff] }
0x295a   :  { %v5804_v10 = vsel %vm179_vm0, %v5768_v30, 0.0  ;;  %v5754_v11 = vmax.f32 %v5738_v55, 0.0  ;;  %v5755_v37 = vmax.f32 %v5739_v56, 0.0  ;;  %v5807_v39 = vsel %vm179_vm0, %v5769_v45, 0.0 }
0x295b   :  { %5790 = vadd.xlane.f32.xlu1 %v5789_v16  ;;  %v5756_v29 = vmax.f32 %v5740_v7, 0.0  ;;  %v5757_v15 = vmax.f32 %v5741_v33, 0.0  ;;  %v2990_v32 = vmul.f32 %v2970_v2, %v10995_v44  ;;  %v2987_v50 = vmul.f32 %v2969_v12, %v10996_v40 }
0x295c   :  { %v5770_v51 = vmul.f32 %v10079_v23, %v5754_v11  ;;  %v5771_v13 = vmul.f32 %v10079_v23, %v5755_v37  ;;  %v2993_v16 = vmul.f32 %v2972_v34, %v10997_v42  ;;  %v2988_v4 = vmul.f32 %v2969_v12, %v10999_v17 }
0x295d   :  { %v5772_v48 = vmul.f32 %v10079_v23, %v5756_v29  ;;  %v5773_v53 = vmul.f32 %v10079_v23, %v5757_v15  ;;  %v10998_v23 = vld [vmem:[#allocation61_spill] sm:$0xff]  ;;  %v2971_v27 = vperm.slane %v10016_v8, 4  ;;  %v2989_v59 = vmul.f32 %v2970_v2, %v11000_v18 }
0x295e   :  { %v5810_v26 = vsel %vm179_vm0, %v5770_v51, 0.0  ;;  %v5813_v21 = vsel %vm179_vm0, %v5771_v13, 0.0  ;;  %v2985_v54 = vmul.f32 %v2968_v0, %v10998_v23 }
0x295f   :  { %v5816_v31 = vsel %vm179_vm0, %v5772_v48, 0.0  ;;  %v5819_v62 = vsel %vm179_vm0, %v5773_v53, 0.0  ;;  %v2991_v61 = vmul.f32 %v2971_v27, %v11001_v63 }
0x2961   :  { %5793 = vadd.xlane.f32.xlu2 %v5792_v19  ;;  %5796 = vadd.xlane.f32.xlu0 %v5795_v5  ;;  %v2992_v19 = vmul.f32 %v2971_v27, %v11002_v46 }
0x2963   :  { %5799 = vadd.xlane.f32.xlu1 %v5798_v22 }
0x2969   :  { %5802 = vadd.xlane.f32.xlu2 %v5801_v9  ;;  %5805 = vadd.xlane.f32.xlu0 %v5804_v10 }
0x296b   :  { %5808 = vadd.xlane.f32.xlu1 %v5807_v39 }
0x2971   :  { %5811 = vadd.xlane.f32.xlu2 %v5810_v26  ;;  %5814 = vadd.xlane.f32.xlu0 %v5813_v21  ;;  %v3017_v5 = vpop.permute.xlu0 %3016  ;;  %v3020_v58 = vpop.permute.xlu1 %3019 }
0x2973   :  { %5817 = vadd.xlane.f32.xlu1 %v5816_v31 }
0x2979   :  { %5820 = vadd.xlane.f32.xlu2 %v5819_v62  ;;  %v3026_v47 = vpop.permute.xlu0 %3025 }
0x2985   :  { %3037 = vperm.xlu0 %6626, %v2990_v32  }
0x298c   :  { %3028 = vperm.xlu1 %6627, %v2987_v50  }
0x298d   :  { %3046 = vperm.xlu0 %6626, %v2993_v16  }
0x2991   :  { %3022 = vperm.xlu2 %6625, %v2985_v54  }
0x2994   :  { %3031 = vperm.xlu1 %6627, %v2988_v4  }
0x2999   :  { %3034 = vperm.xlu2 %6625, %v2989_v59  }
0x299c   :  { %3040 = vperm.xlu1 %6627, %v2991_v61  }
0x29a1   :  { %3043 = vperm.xlu2 %6625, %v2992_v19  }
0x29c4   :  { %v10143_v43 = vpop.xlane.xlu0 %5778  ;;  %v10145_v0 = vpop.xlane.xlu2 %5775 }
0x29c5   :  { %v5839_v11 = vperm.slane %v10143_v43, %v7790_v36  ;;  %v5838_v37 = vperm.slane %v10145_v0, %v7785_v38 }
0x29c6   :  { %v10147_v22 = vpop.xlane.xlu1 %5781 }
0x29c7   :  { %v5841_v39 = vperm.slane %v10147_v22, %v7785_v38  ;;  %v5840_v15 = vsel %vm752_vm10, %v5839_v11, %v5838_v37  ;;  %v3063_v37 = vperm.slane %v3017_v5, %v7785_v38 }
0x29cc   :  { %v10149_v24 = vpop.xlane.xlu0 %5787  ;;  %v10151_v25 = vpop.xlane.xlu2 %5784 }
0x29cd   :  { %v5842_v9 = vperm.slane %v10151_v25, %v7790_v36  ;;  %v5844_v48 = vperm.slane %v10149_v24, %v7785_v38 }
0x29ce   :  { %v10153_v60 = vpop.xlane.xlu1 %5790 }
0x29cf   :  { %v5845_v29 = vperm.slane %v10153_v60, %v7790_v36  ;;  %v5843_v51 = vsel %vm752_vm10, %v5842_v9, %v5841_v39  ;;  %v3064_v39 = vperm.slane %v3020_v58, %v7790_v36 }
0x29d0   :  { %v5862_v53 = vsel %vm283_vm2, %v5843_v51, %v5840_v15  ;;  %v3067_v51 = vperm.slane %v3026_v47, %v7790_v36 }
0x29d1   :  { %v5846_v62 = vsel %vm752_vm10, %v5845_v29, %v5844_v48 }
0x29d2   :  { %v5863_v42 = vsel %vm285_vm3, %v5846_v62, %v5862_v53 }
0x29d4   :  { %v10155_v30 = vpop.xlane.xlu0 %5796  ;;  %v10157_v55 = vpop.xlane.xlu2 %5793 }
0x29d5   :  { %v5848_v13 = vperm.slane %v10155_v30, %v7790_v36  ;;  %v5847_v33 = vperm.slane %v10157_v55, %v7785_v38 }
0x29d6   :  { %v10159_v56 = vpop.xlane.xlu1 %5799 }
0x29d7   :  { %v5850_v2 = vperm.slane %v10159_v56, %v7785_v38  ;;  %v5849_v44 = vsel %vm752_vm10, %v5848_v13, %v5847_v33  ;;  %v3065_v33 = vsel %vm752_vm10, %v3064_v39, %v3063_v37 }
0x29d8   :  { %v5864_v23 = vsel %vm287_vm4, %v5849_v44, %v5863_v42 }
0x29dc   :  { %v10161_v45 = vpop.xlane.xlu0 %5805  ;;  %v10163_v7 = vpop.xlane.xlu2 %5802 }
0x29dd   :  { %v5851_v26 = vperm.slane %v10163_v7, %v7790_v36  ;;  %v5853_v16 = vperm.slane %v10161_v45, %v7785_v38 }
0x29de   :  { %v10167_v10 = vpop.xlane.xlu1 %5808 }
0x29df   :  { %v5854_v32 = vperm.slane %v10167_v10, %v7790_v36  ;;  %v5852_v12 = vsel %vm752_vm10, %v5851_v26, %v5850_v2 }
0x29e0   :  { %v5865_v17 = vsel %vm289_vm5, %v5852_v12, %v5864_v23 }
0x29e1   :  { %v5855_v4 = vsel %vm752_vm10, %v5854_v32, %v5853_v16 }
0x29e2   :  { %v5866_v61 = vsel %vm291_vm6, %v5855_v4, %v5865_v17 }
0x29e4   :  { %v10186_v21 = vpop.xlane.xlu2 %5811  ;;  %v10189_v31 = vpop.xlane.xlu0 %5814 }
0x29e5   :  { %v5857_v40 = vperm.slane %v10189_v31, %v7790_v36  ;;  %v5856_v50 = vperm.slane %v10186_v21, %v7785_v38 }
0x29e6   :  { %v10207_v54 = vpop.xlane.xlu1 %5817 }
0x29e7   :  { %v5858_v27 = vsel %vm752_vm10, %v5857_v40, %v5856_v50  ;;  %v5859_v59 = vperm.slane %v10207_v54, %v7785_v38 }
0x29e8   :  { %v5867_v19 = vsel %vm293_vm7, %v5858_v27, %v5866_v61 }
0x29ec   :  { %v10212_v18 = vpop.xlane.xlu2 %5820 }
0x29ed   :  { %v5860_v63 = vperm.slane %v10212_v18, %v7790_v36 }
0x29ef   :  { %v5861_v46 = vsel %vm752_vm10, %v5860_v63, %v5859_v59 }
0x29f0   :  { %v5868_v9 = vsel %vm295_vm8, %v5861_v46, %v5867_v19 }
0x29f1   :  { %v5870_v11 = vsel %vm449_vm9, %v5868_v9, -inf }
0x29f2   :  { %5871 = vmax.xlane.f32.xlu0 %v5870_v11 }
0x29f4   :  { %v3023_v29 = vpop.permute.xlu2 %3022 }
0x29f5   :  { %v3066_v13 = vperm.slane %v3023_v29, %v7785_v38 }
0x29f7   :  { %v3068_v48 = vsel %vm752_vm10, %v3067_v51, %v3066_v13  ;;  %v3038_v15 = vpop.permute.xlu0 %3037 }
0x29f8   :  { %v3087_v26 = vsel %vm283_vm2, %v3068_v48, %v3065_v33  ;;  %v3073_v62 = vperm.slane %v3038_v15, %v7790_v36 }
0x29fc   :  { %v3035_v53 = vpop.permute.xlu2 %3034 }
0x29fd   :  { %v3072_v2 = vperm.slane %v3035_v53, %v7785_v38 }
0x29fe   :  { %v3029_v5 = vpop.permute.xlu1 %3028 }
0x29ff   :  { %v3074_v58 = vsel %vm752_vm10, %v3073_v62, %v3072_v2  ;;  %v3069_v47 = vperm.slane %v3029_v5, %v7785_v38  ;;  %v10240_v42 = vpop.permute.xlu0 %3046 }
0x2a06   :  { %v3032_v44 = vpop.permute.xlu1 %3031 }
0x2a07   :  { %v3070_v32 = vperm.slane %v3032_v44, %v7790_v36 }
0x2a09   :  { %v3071_v12 = vsel %vm752_vm10, %v3070_v32, %v3069_v47 }
0x2a0a   :  { %v3088_v40 = vsel %vm285_vm3, %v3071_v12, %v3087_v26 }
0x2a0b   :  { %v10238_v50 = vsel %vm287_vm4, %v3074_v58, %v3088_v40 }
0x2a65   :  { %v10242_v16 = vpop.xlane.xlu0 %5871 }
0x2a66   :  { %v5874_v23 = vperm.slane %v10242_v16, 0  ;;  %v5875_v17 = vperm.slane %v10242_v16, 1  ;;  %v5876_v63 = vperm.slane %v10242_v16, 2  ;;  %v5879_v26 = vperm.slane %v10242_v16, 5 }
0x2a67   :  { %v5880_v58 = vperm.slane %v10242_v16, 6  ;;  %v5881_v12 = vperm.slane %v10242_v16, 7 }
0x2a68   :  { %v5890_v4 = vsub.f32 %v10145_v0, %v5874_v23  ;;  %v5891_v27 = vsub.f32 %v10143_v43, %v5874_v23  ;;  %v5892_v59 = vsub.f32 %v10147_v22, %v5875_v17  ;;  %v5893_v9 = vsub.f32 %v10151_v25, %v5875_v17 }
0x2a69   :  { %v5894_v11 = vsub.f32 %v10149_v24, %v5876_v63  ;;  %v5895_v37 = vsub.f32 %v10153_v60, %v5876_v63  ;;  %v5877_v0 = vperm.slane %v10242_v16, 3  ;;  %v5878_v22 = vperm.slane %v10242_v16, 4 }
0x2a6a   :  { %v5906_v61 = vmul.f32 1.442695, %v5890_v4  ;;  %v5908_v46 = vmul.f32 1.442695, %v5891_v27  ;;  %v5910_v19 = vmul.f32 1.442695, %v5892_v59  ;;  %v5901_v5 = vsub.f32 %v10167_v10, %v5879_v26 }
0x2a6b   :  { %v5912_v39 = vmul.f32 1.442695, %v5893_v9  ;;  %v5914_v43 = vmul.f32 1.442695, %v5894_v11  ;;  %v5916_v51 = vmul.f32 1.442695, %v5895_v37  ;;  %v5896_v24 = vsub.f32 %v10157_v55, %v5877_v0  ;;  %v10316_v9 = vpop.permute.xlu2 %3043  ;;  %v10318_v11 = vpop.permute.xlu1 %3040 }
0x2a6c   :  { %6912 = vpow2.f32 %v5906_v61  ;;  %v5897_v60 = vsub.f32 %v10155_v30, %v5877_v0  ;;  %v5898_v33 = vsub.f32 %v10159_v56, %v5878_v22  ;;  %v5899_v30 = vsub.f32 %v10163_v7, %v5878_v22 }
0x2a6d   :  { %6914 = vpow2.f32 %v5908_v46  ;;  %v5918_v48 = vmul.f32 1.442695, %v5896_v24  ;;  %v5900_v56 = vsub.f32 %v10161_v45, %v5879_v26  ;;  %v5928_v7 = vmul.f32 1.442695, %v5901_v5 }
0x2a6e   :  { %6916 = vpow2.f32 %v5910_v19  ;;  %v5920_v15 = vmul.f32 1.442695, %v5897_v60  ;;  %v5922_v62 = vmul.f32 1.442695, %v5898_v33  ;;  %v5924_v44 = vmul.f32 1.442695, %v5899_v30 }
0x2a6f   :  { %6918 = vpow2.f32 %v5912_v39  ;;  %v5926_v47 = vmul.f32 1.442695, %v5900_v56  ;;  %v5902_v23 = vsub.f32 %v10186_v21, %v5880_v58  ;;  %v5903_v10 = vsub.f32 %v10189_v31, %v5880_v58 }
0x2a70   :  { %6920 = vpow2.f32 %v5914_v43  ;;  %v5904_v17 = vsub.f32 %v10207_v54, %v5881_v12  ;;  %v5905_v61 = vsub.f32 %v10212_v18, %v5881_v12 }
0x2a71   :  { %6922 = vpow2.f32 %v5916_v51  ;;  %v5930_v16 = vmul.f32 1.442695, %v5902_v23  ;;  %v5932_v4 = vmul.f32 1.442695, %v5903_v10 }
0x2a72   :  { %v10254_v29 = vpop.eup %6912  ;;  %6924 = vpow2.f32 %v5918_v48  ;;  %v5934_v59 = vmul.f32 1.442695, %v5904_v17  ;;  %v5936_v31 = vmul.f32 1.442695, %v5905_v61 }
0x2a73   :  { %v10257_v13 = vpop.eup %6914  ;;  %5955 = vperm.xlu1 %6627, %v10254_v29   ;;  %6926 = vpow2.f32 %v5920_v15 }
0x2a74   :  { %v10260_v25 = vpop.eup %6916  ;;  %5958 = vperm.xlu2 %6625, %v10257_v13   ;;  %6928 = vpow2.f32 %v5922_v62 }
0x2a75   :  { %5961 = vperm.xlu0 %6626, %v10260_v25   ;;  %v10268_v53 = vpop.eup %6918  ;;  %6930 = vpow2.f32 %v5924_v44 }
0x2a76   :  { %v10270_v2 = vpop.eup %6920  ;;  %6932 = vpow2.f32 %v5926_v47 }
0x2a77   :  { %v10273_v55 = vpop.eup %6922  ;;  %6934 = vpow2.f32 %v5928_v7 }
0x2a78   :  { %v10281_v32 = vpop.eup %6924  ;;  %6936 = vpow2.f32 %v5930_v16 }
0x2a79   :  { %v10284_v40 = vpop.eup %6926  ;;  %6938 = vpow2.f32 %v5932_v4 }
0x2a7a   :  { %v10287_v45 = vpop.eup %6928  ;;  %6940 = vpow2.f32 %v5934_v59 }
0x2a7b   :  { %5964 = vperm.xlu1 %6627, %v10268_v53   ;;  %v10294_v27 = vpop.eup %6930  ;;  %6942 = vpow2.f32 %v5936_v31 }
0x2a7c   :  { %5967 = vperm.xlu2 %6625, %v10270_v2   ;;  %v10296_v63 = vpop.eup %6932 }
0x2a7d   :  { %5970 = vperm.xlu0 %6626, %v10273_v55   ;;  %v10299_v21 = vpop.eup %6934 }
0x2a7e   :  { %v10304_v54 = vpop.eup %6936 }
0x2a7f   :  { %v10306_v46 = vpop.eup %6938 }
0x2a80   :  { %v10309_v19 = vpop.eup %6940 }
0x2a81   :  { %v10313_v18 = vpop.eup %6942 }
0x2a83   :  { %5973 = vperm.xlu1 %6627, %v10281_v32  }
0x2a84   :  { %5976 = vperm.xlu2 %6625, %v10284_v40  }
0x2a85   :  { %5979 = vperm.xlu0 %6626, %v10287_v45  }
0x2a8b   :  { %5982 = vperm.xlu1 %6627, %v10294_v27  }
0x2a8c   :  { %5985 = vperm.xlu2 %6625, %v10296_v63  }
0x2a8d   :  { %5988 = vperm.xlu0 %6626, %v10299_v21  }
0x2a93   :  { %5991 = vperm.xlu1 %6627, %v10304_v54  }
0x2a94   :  { %5994 = vperm.xlu2 %6625, %v10306_v46  }
0x2a95   :  { %5997 = vperm.xlu0 %6626, %v10309_v19  }
0x2a9b   :  { %6000 = vperm.xlu1 %6627, %v10313_v18  }
0x2ace   :  { %v5959_v37 = vpop.permute.xlu2 %5958 }
0x2acf   :  { %v6003_v58 = vperm.slane %v5959_v37, %v7790_v36 }
0x2ad6   :  { %v5968_v43 = vpop.permute.xlu2 %5967 }
0x2ad7   :  { %v6008_v12 = vperm.slane %v5968_v43, %v7785_v38 }
0x2ade   :  { %v5977_v24 = vpop.permute.xlu2 %5976 }
0x2adf   :  { %v6012_v10 = vperm.slane %v5977_v24, %v7790_v36 }
0x2ae5   :  { %v5956_v0 = vpop.permute.xlu1 %5955 }
0x2ae6   :  { %v5986_v26 = vpop.permute.xlu2 %5985  ;;  %v6002_v56 = vperm.slane %v5956_v0, %v7785_v38 }
0x2ae7   :  { %v5962_v39 = vpop.permute.xlu0 %5961  ;;  %v6017_v43 = vperm.slane %v5986_v26, %v7785_v38 }
0x2ae8   :  { %v6005_v30 = vperm.slane %v5962_v39, %v7785_v38  ;;  %v6004_v17 = vsel %vm752_vm10, %v6003_v58, %v6002_v56 }
0x2aed   :  { %v5965_v22 = vpop.permute.xlu1 %5964 }
0x2aee   :  { %v6006_v15 = vperm.slane %v5965_v22, %v7790_v36  ;;  %v5995_v61 = vpop.permute.xlu2 %5994 }
0x2aef   :  { %v5971_v51 = vpop.permute.xlu0 %5970 }
0x2af0   :  { %v6009_v5 = vperm.slane %v5971_v51, %v7790_v36  ;;  %v6007_v44 = vsel %vm752_vm10, %v6006_v15, %v6005_v30  ;;  %v6021_v51 = vperm.slane %v5995_v61, %v7790_v36 }
0x2af1   :  { %v6026_v4 = vsel %vm283_vm2, %v6007_v44, %v6004_v17 }
0x2af2   :  { %v6010_v16 = vsel %vm752_vm10, %v6009_v5, %v6008_v12 }
0x2af3   :  { %v6027_v22 = vsel %vm285_vm3, %v6010_v16, %v6026_v4 }
0x2af5   :  { %v5974_v60 = vpop.permute.xlu1 %5973 }
0x2af6   :  { %v6011_v47 = vperm.slane %v5974_v60, %v7785_v38 }
0x2af7   :  { %v5980_v33 = vpop.permute.xlu0 %5979 }
0x2af8   :  { %v6014_v59 = vperm.slane %v5980_v33, %v7785_v38  ;;  %v6013_v31 = vsel %vm752_vm10, %v6012_v10, %v6011_v47 }
0x2af9   :  { %v6028_v24 = vsel %vm287_vm4, %v6013_v31, %v6027_v22 }
0x2afd   :  { %v5983_v48 = vpop.permute.xlu1 %5982 }
0x2afe   :  { %v6015_v7 = vperm.slane %v5983_v48, %v7790_v36 }
0x2aff   :  { %v5989_v62 = vpop.permute.xlu0 %5988 }
0x2b00   :  { %v6018_v37 = vperm.slane %v5989_v62, %v7790_v36  ;;  %v6016_v0 = vsel %vm752_vm10, %v6015_v7, %v6014_v59 }
0x2b01   :  { %v6029_v48 = vsel %vm289_vm5, %v6016_v0, %v6028_v24 }
0x2b02   :  { %v6019_v33 = vsel %vm752_vm10, %v6018_v37, %v6017_v43 }
0x2b03   :  { %v6030_v26 = vsel %vm291_vm6, %v6019_v33, %v6029_v48 }
0x2b05   :  { %v5992_v23 = vpop.permute.xlu1 %5991 }
0x2b06   :  { %v6020_v39 = vperm.slane %v5992_v23, %v7785_v38 }
0x2b07   :  { %v5998_v60 = vpop.permute.xlu0 %5997 }
0x2b08   :  { %v6022_v15 = vsel %vm752_vm10, %v6021_v51, %v6020_v39  ;;  %v6023_v30 = vperm.slane %v5998_v60, %v7785_v38  ;;  %v11007_v51 = vld [vmem:[#allocation70_spill] sm:$0xff] }
0x2b09   :  { %v6031_v58 = vsel %vm293_vm7, %v6022_v15, %v6030_v26 }
0x2b0d   :  { %v6001_v62 = vpop.permute.xlu1 %6000 }
0x2b0e   :  { %v6024_v56 = vperm.slane %v6001_v62, %v7790_v36 }
0x2b10   :  { %v6025_v5 = vsel %vm752_vm10, %v6024_v56, %v6023_v30 }
0x2b11   :  { %v6032_v44 = vsel %vm295_vm8, %v6025_v5, %v6031_v58  ;;  %v7134_v5 = vld [vmem:[#allocation3 + $0x18] sm:$0xff]  ;;  %v7135_v58 = vld [vmem:[#allocation3 + $0x10] sm:$0xff] }
0x2b12   :  { %v6034_v47 = vsel %vm449_vm9, %v6032_v44, 0.0 }
0x2b13   :  { %6035 = vadd.xlane.f32.xlu2 %v6034_v47  ;;  %v7136_v47 = vld [vmem:[#allocation3 + $0x28] sm:$0xff] }
0x2b86   :  { %v6036_v12 = vpop.xlane.xlu2 %6035 }
0x2b87   :  { %6944 = vrcp.f32 %v6036_v12 }
0x2b8d   :  { %v6945_v7 = vpop.eup %6944 }
0x2b8e   :  { %v6044_v23 = vperm.slane %v6945_v7, 5  ;;  %v6039_v10 = vperm.slane %v6945_v7, 0  ;;  %v6040_v59 = vperm.slane %v6945_v7, 1 }
0x2b90   :  { %v10353_v17 = vmul.f32 %v10296_v63, %v6044_v23  ;;  %v10356_v16 = vmul.f32 %v10257_v13, %v6039_v10  ;;  %v10359_v4 = vmul.f32 %v10254_v29, %v6039_v10  ;;  %v10365_v61 = vmul.f32 %v10268_v53, %v6040_v59 }
0x2b91   :  { %v10368_v31 = vmul.f32 %v10260_v25, %v6040_v59  ;;  %v6041_v13 = vperm.slane %v6945_v7, 2  ;;  %v6042_v53 = vperm.slane %v6945_v7, 3  ;;  %v7138_v59 = vld [vmem:[#allocation3 + $0x8] sm:$0xff] }
0x2b92   :  { %6123 = vperm.xlu2 %6625, %v10353_v17   ;;  %6078 = vperm.xlu1 %6627, %v10356_v16  }
0x2b93   :  { %6073 = vperm.xlu0 %6626, %v10359_v4   ;;  %v10373_v29 = vmul.f32 %v10273_v55, %v6041_v13  ;;  %v10376_v63 = vmul.f32 %v10270_v2, %v6041_v13  ;;  %v10381_v37 = vmul.f32 %v10284_v40, %v6042_v53  ;;  %v10384_v25 = vmul.f32 %v10281_v32, %v6042_v53  ;;  %v7139_v53 = vld [vmem:[#allocation3] sm:$0xff] }
0x2b94   :  { %v6043_v55 = vperm.slane %v6945_v7, 4  ;;  %v6045_v40 = vperm.slane %v6945_v7, 6  ;;  %v10400_v32 = vmul.f32 %v10299_v21, %v6044_v23  ;;  %v11006_v21 = vld [vmem:[#allocation58_spill] sm:$0xff] }
0x2b95   :  { %v2994_v22 = vmul.f32 %v2972_v34, %v11006_v21  ;;  %v7141_v21 = vld [vmem:[#allocation3 + $0x30] sm:$0xff] }
0x2b96   :  { %v10389_v0 = vmul.f32 %v10294_v27, %v6043_v55  ;;  %v10392_v2 = vmul.f32 %v10287_v45, %v6043_v55  ;;  %v10397_v39 = vmul.f32 %v10304_v54, %v6045_v40  ;;  %v6046_v27 = vperm.slane %v6945_v7, 7  ;;  %v7137_v7 = vld [vmem:[#allocation3 + $0x20] sm:$0xff] }
0x2b97   :  { %v10408_v45 = vmul.f32 %v10306_v46, %v6045_v40  ;;  %v7140_v40 = vld [vmem:[#allocation3 + $0x38] sm:$0xff] }
0x2b98   :  { %11003 = vst [vmem:[#allocation28_spill] sm:$0xff] %v10397_v39  ;;  %v10405_v43 = vmul.f32 %v10309_v19, %v6046_v27  ;;  %v10413_v54 = vmul.f32 %v10313_v18, %v6046_v27  ;;  %v10861_v19 = vperm.slane %v10016_v8, 7 }
0x2b99   :  { %11004 = vst [vmem:[#allocation40_spill] sm:$0xff] %v10408_v45 }
0x2b9a   :  { %6088 = vperm.xlu1 %6627, %v10365_v61   ;;  %11005 = vst [vmem:[#allocation30_spill] sm:$0xff] %v10413_v54  ;;  %v2997_v46 = vmul.f32 %v10861_v19, %v11007_v51  ;;  %v7142_v51 = vld [vmem:[#allocation3 + $0x48] sm:$0xff]  ;;  %v7143_v19 = vld [vmem:[#allocation3 + $0x40] sm:$0xff] }
0x2b9b   :  { %6083 = vperm.xlu0 %6626, %v10368_v31  }
0x2ba2   :  { %6098 = vperm.xlu1 %6627, %v10373_v29  }
0x2ba3   :  { %6093 = vperm.xlu0 %6626, %v10376_v63  }
0x2baa   :  { %6108 = vperm.xlu1 %6627, %v10381_v37  }
0x2bab   :  { %6103 = vperm.xlu0 %6626, %v10384_v25  }
0x2bb2   :  { %6118 = vperm.xlu1 %6627, %v10389_v0  }
0x2bb3   :  { %6113 = vperm.xlu0 %6626, %v10392_v2  }
0x2bba   :  { %6133 = vperm.xlu1 %6627, %v10397_v39  }
0x2bbb   :  { %6128 = vperm.xlu0 %6626, %v10400_v32  }
0x2bc2   :  { %6143 = vperm.xlu1 %6627, %v10405_v43  }
0x2bc3   :  { %6138 = vperm.xlu0 %6626, %v10408_v45  }
0x2bcb   :  { %6148 = vperm.xlu0 %6626, %v10413_v54  }
0x2bd3   :  { %3049 = vperm.xlu0 %6626, %v2994_v22  }
0x2bdb   :  { %3058 = vperm.xlu0 %6626, %v2997_v46  }
0x2bec   :  { %v6124_v10 = vpop.permute.xlu2 %6123 }
0x2c04   :  { %v6079_v24 = vpop.permute.xlu1 %6078 }
0x2c05   :  { %v6074_v60 = vpop.permute.xlu0 %6073  ;;  %v6152_v13 = vmul.f32 %v7138_v59, %v6079_v24 }
0x2c06   :  { %v6151_v55 = vmul.f32 %v7139_v53, %v6074_v60 }
0x2c07   :  { %v6168_v60 = vsel %vm179_vm0, %v6152_v13, 0.0 }
0x2c0c   :  { %v6089_v33 = vpop.permute.xlu1 %6088 }
0x2c0d   :  { %v6084_v48 = vpop.permute.xlu0 %6083  ;;  %v6154_v34 = vmul.f32 %v7134_v5, %v6089_v33 }
0x2c0e   :  { %v6153_v44 = vmul.f32 %v7135_v58, %v6084_v48 }
0x2c0f   :  { %v6177_v33 = vsel %vm179_vm0, %v6154_v34, 0.0 }
0x2c10   :  { %v6176_v48 = vsel %vm179_vm0, %v6153_v44, 0.0 }
0x2c11   :  { %v6178_v58 = vadd.f32 %v6177_v33, %v6176_v48 }
0x2c14   :  { %v6099_v18 = vpop.permute.xlu1 %6098 }
0x2c15   :  { %v6094_v15 = vpop.permute.xlu0 %6093  ;;  %v6156_v12 = vmul.f32 %v7136_v47, %v6099_v18  ;;  %v7144_v18 = vld [vmem:[#allocation3 + $0x50] sm:$0xff]  ;;  %v7145_v47 = vld [vmem:[#allocation3 + $0x58] sm:$0xff] }
0x2c16   :  { %v6155_v23 = vmul.f32 %v7137_v7, %v6094_v15  ;;  %v6161_v5 = vmul.f32 %v7144_v18, %v6124_v10 }
0x2c17   :  { %v6186_v15 = vsel %vm179_vm0, %v6156_v12, 0.0 }
0x2c18   :  { %v6185_v24 = vsel %vm179_vm0, %v6155_v23, 0.0  ;;  %v6212_v59 = vsel %vm179_vm0, %v6161_v5, 0.0 }
0x2c19   :  { %v6187_v44 = vadd.f32 %v6186_v15, %v6185_v24  ;;  %v7147_v24 = vld [vmem:[#allocation3 + $0x68] sm:$0xff] }
0x2c1c   :  { %v6109_v62 = vpop.permute.xlu1 %6108 }
0x2c1d   :  { %v6104_v30 = vpop.permute.xlu0 %6103  ;;  %v6158_v27 = vmul.f32 %v7140_v40, %v6109_v62  ;;  %v6167_v62 = vsel %vm179_vm0, %v6151_v55, 0.0  ;;  %v6179_v55 = vrot.slane %v6178_v58, 4 }
0x2c1e   :  { %v6157_v22 = vmul.f32 %v7141_v21, %v6104_v30  ;;  %v6169_v12 = vadd.f32 %v6168_v60, %v6167_v62 }
0x2c1f   :  { %v6195_v30 = vsel %vm179_vm0, %v6158_v27, 0.0  ;;  %v6188_v27 = vrot.slane %v6187_v44, 4  ;;  %v6180_v33 = vadd.f32 %v6179_v55, %v6178_v58 }
0x2c20   :  { %v6170_v21 = vrot.slane %v6169_v12, 4 }
0x2c21   :  { %v6189_v15 = vadd.f32 %v6188_v27, %v6187_v44 }
0x2c22   :  { %v6171_v62 = vadd.f32 %v6170_v21, %v6169_v12  ;;  %v7149_v21 = vld [vmem:[#allocation3 + $0x78] sm:$0xff] }
0x2c24   :  { %v6119_v56 = vpop.permute.xlu1 %6118 }
0x2c25   :  { %v6114_v26 = vpop.permute.xlu0 %6113  ;;  %v6160_v46 = vmul.f32 %v7142_v51, %v6119_v56  ;;  %v6194_v56 = vsel %vm179_vm0, %v6157_v22, 0.0 }
0x2c26   :  { %v6159_v54 = vmul.f32 %v7143_v19, %v6114_v26  ;;  %v6196_v10 = vadd.f32 %v6195_v30, %v6194_v56 }
0x2c27   :  { %v6204_v19 = vsel %vm179_vm0, %v6160_v46, 0.0  ;;  %v7146_v46 = vld [vmem:[#allocation3 + $0x60] sm:$0xff] }
0x2c28   :  { %v6203_v26 = vsel %vm179_vm0, %v6159_v54, 0.0  ;;  %v6197_v22 = vrot.slane %v6196_v10, 4 }
0x2c29   :  { %v6205_v13 = vadd.f32 %v6204_v19, %v6203_v26  ;;  %v6181_v26 = vrot.slane %v6180_v33, 2 }
0x2c2a   :  { %v6198_v30 = vadd.f32 %v6197_v22, %v6196_v10 }
0x2c2b   :  { %v6206_v51 = vrot.slane %v6205_v13, 4  ;;  %v6182_v27 = vadd.f32 %v6181_v26, %v6180_v33 }
0x2c2c   :  { %v6134_v23 = vpop.permute.xlu1 %6133 }
0x2c2d   :  { %v6129_v34 = vpop.permute.xlu0 %6128  ;;  %v6163_v54 = vmul.f32 %v7146_v46, %v6134_v23  ;;  %v6207_v5 = vadd.f32 %v6206_v51, %v6205_v13  ;;  %v6199_v23 = vrot.slane %v6198_v30, 2  ;;  %v7148_v46 = vld [vmem:[#allocation3 + $0x70] sm:$0xff] }
0x2c2e   :  { %v6162_v7 = vmul.f32 %v7145_v47, %v6129_v34 }
0x2c2f   :  { %v6221_v56 = vsel %vm179_vm0, %v6163_v54, 0.0  ;;  %v6208_v55 = vrot.slane %v6207_v5, 2  ;;  %v6200_v54 = vadd.f32 %v6199_v23, %v6198_v30 }
0x2c30   :  { %v6213_v53 = vsel %vm179_vm0, %v6162_v7, 0.0 }
0x2c31   :  { %v6214_v40 = vadd.f32 %v6213_v53, %v6212_v59  ;;  %v6190_v59 = vrot.slane %v6189_v15, 2  ;;  %v6172_v53 = vrot.slane %v6171_v62, 2  ;;  %v6201_v26 = vrot.slane %v6200_v54, 1 }
0x2c33   :  { %v6215_v48 = vrot.slane %v6214_v40, 4  ;;  %v6191_v13 = vadd.f32 %v6190_v59, %v6189_v15  ;;  %v6173_v51 = vadd.f32 %v6172_v53, %v6171_v62 }
0x2c34   :  { %v6144_v47 = vpop.permute.xlu1 %6143 }
0x2c35   :  { %v6139_v18 = vpop.permute.xlu0 %6138  ;;  %v6216_v34 = vadd.f32 %v6215_v48, %v6214_v40  ;;  %v6165_v44 = vmul.f32 %v7148_v46, %v6144_v47  ;;  %v6209_v40 = vadd.f32 %v6208_v55, %v6207_v5  ;;  %v6192_v45 = vrot.slane %v6191_v13, 1 }
0x2c36   :  { %v6164_v60 = vmul.f32 %v7147_v24, %v6139_v18  ;;  %v6174_v33 = vrot.slane %v6173_v51, 1  ;;  %v6202_v5 = vadd.f32 %v6201_v26, %v6200_v54  ;;  %v11008_v54 = vld [vmem:[#allocation68_spill] sm:$0xff] }
0x2c37   :  { %v6217_v18 = vrot.slane %v6216_v34, 2  ;;  %v6230_v48 = vsel %vm179_vm0, %v6165_v44, 0.0  ;;  %v6193_v62 = vadd.f32 %v6192_v45, %v6191_v13 }
0x2c38   :  { %v6222_v19 = vsel %vm179_vm0, %v6164_v60, 0.0  ;;  %v6175_v53 = vadd.f32 %v6174_v33, %v6173_v51  ;;  %v2973_v51 = vperm.slane %v10016_v8, 6 }
0x2c39   :  { %v6223_v7 = vadd.f32 %v6222_v19, %v6221_v56  ;;  %v6183_v56 = vrot.slane %v6182_v27, 1  ;;  %v6218_v19 = vadd.f32 %v6217_v18, %v6216_v34 }
0x2c3b   :  { %v6224_v58 = vrot.slane %v6223_v7, 4  ;;  %v6184_v15 = vadd.f32 %v6183_v56, %v6182_v27  ;;  %v6219_v59 = vrot.slane %v6218_v19, 1 }
0x2c3d   :  { %v6225_v12 = vadd.f32 %v6224_v58, %v6223_v7  ;;  %v6149_v10 = vpop.permute.xlu0 %6148  ;;  %v6210_v58 = vrot.slane %v6209_v40, 1  ;;  %v6247_v44 = vsel %vm283_vm2, %v6184_v15, %v6175_v53 }
0x2c3e   :  { %v6166_v22 = vmul.f32 %v7149_v21, %v6149_v10  ;;  %v6220_v10 = vadd.f32 %v6219_v59, %v6218_v19  ;;  %v6248_v18 = vsel %vm285_vm3, %v6193_v62, %v6247_v44  ;;  %v5682_v19 = vadd.f32 %v10058_v57, %v8044_v3  ;;  %v6579_v44 = vld [vmem:[%s10758_s2 + $0x18] sm:$0xff] }
0x2c3f   :  { %v6226_v24 = vrot.slane %v6225_v12, 2  ;;  %v6211_v55 = vadd.f32 %v6210_v58, %v6209_v40  ;;  %v2995_v40 = vmul.f32 %v2973_v51, %v11008_v54 }
0x2c40   :  { %v6231_v60 = vsel %vm179_vm0, %v6166_v22, 0.0  ;;  %v6249_v22 = vsel %vm287_vm4, %v6202_v5, %v6248_v18 }
0x2c41   :  { %v6232_v39 = vadd.f32 %v6231_v60, %v6230_v48  ;;  %v6227_v47 = vadd.f32 %v6226_v24, %v6225_v12  ;;  %v6250_v27 = vsel %vm289_vm5, %v6211_v55, %v6249_v22  ;;  %v11009_v48 = vld [vmem:[#allocation72_spill] sm:$0xff]  ;;  %v11010_v60 = vperm.slane %v10016_v8, 7 }
0x2c42   :  { %v3076_v22 = vperm.slane %v10316_v9, %v7790_v36 }
0x2c43   :  { %v6233_v7 = vrot.slane %v6232_v39, 4  ;;  %v6228_v30 = vrot.slane %v6227_v47, 1  ;;  %v2998_v56 = vmul.f32 %v11010_v60, %v11009_v48 }
0x2c45   :  { %v6234_v46 = vadd.f32 %v6233_v7, %v6232_v39  ;;  %v6229_v12 = vadd.f32 %v6228_v30, %v6227_v47  ;;  %v6251_v39 = vsel %vm291_vm6, %v6220_v10, %v6250_v27  ;;  %v6596_v47 = vmul.f32 -1.442695, %v5682_v19 }
0x2c47   :  { %v6235_v23 = vrot.slane %v6234_v46, 2  ;;  %v6252_v45 = vsel %vm293_vm7, %v6229_v12, %v6251_v39  ;;  %6946 = vpow2.f32 %v6596_v47  ;;  %v3075_v12 = vperm.slane %v10318_v11, %v7785_v38 }
0x2c49   :  { %v6236_v34 = vadd.f32 %v6235_v23, %v6234_v46  ;;  %v11011_v23 = vld [vmem:[#allocation71_spill] sm:$0xff]  ;;  %v3077_v39 = vsel %vm752_vm10, %v3076_v22, %v3075_v12 }
0x2c4a   :  { %v2996_v55 = vmul.f32 %v2973_v51, %v11011_v23  ;;  %v3090_v48 = vsel %vm289_vm5, %v3077_v39, %v10238_v50  ;;  %v11012_v50 = vld [vmem:[#allocation106_spill] sm:$0xff] }
0x2c4b   :  { %v6237_v21 = vrot.slane %v6236_v34, 1  ;;  %v11021_v39 = vld [vmem:[#allocation82_spill] sm:$0xff] }
0x2c4d   :  { %v6238_v24 = vadd.f32 %v6237_v21, %v6236_v34  ;;  %v6947_v33 = vpop.eup %6946  ;;  %v3050_v34 = vpop.permute.xlu0 %3049 }
0x2c4e   :  { %v5686_v26 = vadd.f32 1.0, %v6947_v33  ;;  %v3079_v21 = vperm.slane %v3050_v34, %v7790_v36  ;;  %v10484_v33 = vld [vmem:[%s10770_s14] ss:$0 sm:$0xff] }
0x2c4f   :  { %v6253_v13 = vsel %vm295_vm8, %v6238_v24, %v6252_v45  ;;  %v3078_v24 = vperm.slane %v10240_v42, %v7785_v38 }
0x2c50   :  { %6254 = vrot.lane.b32.xlu1 %v6253_v13, %s7391_s25  ;;  %6948 = vrcp.f32 %v5686_v26  ;;  %v5698_v62 = vand.u32 2147483648, %v5686_v26  ;;  %vm5692_vm12 = vweird.f32 %v5686_v26  ;;  %v5696_v30 = vand.u32 2147483647, %v5686_v26 }
0x2c51   :  { %v3080_v13 = vsel %vm752_vm10, %v3079_v21, %v3078_v24  ;;  %v11019_v21 = vld [vmem:[#allocation84_spill] sm:$0xff] }
0x2c52   :  { %v5699_v53 = vor.u32 1.1754944e-38, %v5698_v62  ;;  %vm5697_vm14 = vcmp.eq.f32.partialorder %v5696_v30, 8.507059e+37  ;;  %v3091_v60 = vsel %vm291_vm6, %v3080_v13, %v3090_v48  ;;  %v11014_v30 = vld [vmem:[#allocation75_spill] sm:$0xff] }
0x2c53   :  { %v11024_v48 = vld [vmem:[#allocation83_spill] sm:$0xff] }
0x2c55   :  { %v3059_v45 = vpop.permute.xlu0 %3058 }
0x2c56   :  { %v6949_v7 = vpop.eup %6948  ;;  %v3084_v9 = vperm.slane %v3059_v45, %v7785_v38 }
0x2c57   :  { %v5688_v58 = vmul.f32 %v6949_v7, %v5686_v26  ;;  %vm5693_vm11 = vweird.f32 %v6949_v7  ;;  %v3803_v26 = vadd.f32 %v10484_v33, %v11012_v50 }
0x2c58   :  { %3052 = vperm.xlu1 %6627, %v2995_v40   ;;  %vm5694_vm13 = vmor %vm5692_vm12, %vm5693_vm11 }
0x2c59   :  { %v5689_v15 = vsub.f32 1.0, %v5688_v58 }
0x2c5b   :  { %v5690_v59 = vmul.f32 %v6949_v7, %v5689_v15 }
0x2c5d   :  { %v5691_v46 = vadd.f32 %v6949_v7, %v5690_v59 }
0x2c5f   :  { %v5695_v8 = vsel %vm5694_vm13, %v6949_v7, %v5691_v46  ;;  %v11013_v46 = vld [vmem:[#allocation78_spill] sm:$0xff] }
0x2c60   :  { %3061 = vperm.xlu1 %6627, %v2998_v56   ;;  %v5700_v5 = vsel %vm5697_vm14, %v5699_v53, %v5695_v8  ;;  %v11015_v53 = vld [vmem:[#allocation76_spill] sm:$0xff] }
0x2cc2   :  { %v6255_v3 = vpop.permute.xlu1 %6254 }
0x2cc3   :  { %v6257_v57 = vmul.f32 %v6255_v3, %v5700_v5 }
0x2cc5   :  { %6262 = vrot.lane.b32.xlu2 %v6257_v57, %s7392_s17  ;;  %v11016_v57 = vld [vmem:[#allocation79_spill] sm:$0xff] }
0x2cca   :  { %v3053_v10 = vpop.permute.xlu1 %3052 }
0x2ccb   :  { %v3081_v40 = vperm.slane %v3053_v10, %v7785_v38  ;;  %v11018_v10 = vld [vmem:[#allocation77_spill] sm:$0xff] }
0x2ccd   :  { %3055 = vperm.xlu2 %6625, %v2996_v55   ;;  %v11017_v55 = vld [vmem:[#allocation80_spill] sm:$0xff] }
0x2cd2   :  { %v3062_v27 = vpop.permute.xlu1 %3061 }
0x2cd3   :  { %v3085_v51 = vperm.slane %v3062_v27, %v7790_v36  ;;  %v11020_v27 = vld [vmem:[#allocation81_spill] sm:$0xff] }
0x2cd5   :  { %3809 = vperm.xlu2 %6625, %v6579_v44   ;;  %v3086_v56 = vsel %vm752_vm10, %v3085_v51, %v3084_v9  ;;  %v11022_v51 = vld [vmem:[#allocation86_spill] sm:$0xff] }
0x2d1f   :  { %v6263_v18 = vpop.permute.xlu2 %6262 }
0x2d20   :  { %6597 = vmatmul.msk.f32.vlgmr.msrb.gmra.mxu0 %vm179_vm0, %v6263_v18 }
0x2d27   :  { %v3056_v54 = vpop.permute.xlu2 %3055 }
0x2d28   :  { %v3082_v11 = vperm.slane %v3056_v54, %v7790_v36 }
0x2d2a   :  { %v3083_v42 = vsel %vm752_vm10, %v3082_v11, %v3081_v40  ;;  %v11023_v40 = vld [vmem:[#allocation74_spill] sm:$0xff] }
0x2d2b   :  { %v3092_v19 = vsel %vm293_vm7, %v3083_v42, %v3091_v60 }
0x2d2c   :  { %v3093_v47 = vsel %vm295_vm8, %v3086_v56, %v3092_v19  ;;  %v11025_v56 = vld [vmem:[#allocation87_spill] sm:$0xff] }
0x2d2d   :  { %3096 = vst.msk [vmem:[#allocation16 + $0x10] sm:$0xff] %vm449_vm9, %v3093_v47  ;;  %v11026_v47 = vld [vmem:[#allocation88_spill] sm:$0xff] }
0x2d2f   :  { %v3810_v7 = vpop.permute.xlu2 %3809 }
0x2d30   :  { %v3812_v58 = vmul.f32 %v3810_v7, %v3803_v26  ;;  %v3816_v15 = vperm.slane %v3810_v7, 1  ;;  %v3815_v59 = vperm.slane %v3810_v7, 0  ;;  %v3817_v3 = vperm.slane %v3810_v7, 2  ;;  %v11027_v26 = vld [vmem:[#allocation85_spill] sm:$0xff] }
0x2d31   :  { %v3819_v18 = vperm.slane %v3810_v7, 4  ;;  %v3818_v12 = vperm.slane %v3810_v7, 3  ;;  %v3820_v13 = vperm.slane %v3810_v7, 5  ;;  %v3822_v60 = vperm.slane %v3810_v7, 7 }
0x2d32   :  { %3814 = vst [vmem:[#allocation15 + $0x18] sm:$0xff] %v3812_v58  ;;  %v3833_v62 = vmul.f32 %v3816_v15, %v11013_v46  ;;  %v3832_v8 = vmul.f32 %v3815_v59, %v11014_v30  ;;  %v3831_v5 = vmul.f32 %v3815_v59, %v11015_v53  ;;  %v3836_v23 = vmul.f32 %v3817_v3, %v11016_v57  ;;  %v11028_v59 = vld [vmem:[#allocation89_spill] sm:$0xff] }
0x2d33   :  { %v3835_v44 = vmul.f32 %v3817_v3, %v11017_v55  ;;  %v3834_v34 = vmul.f32 %v3816_v15, %v11018_v10  ;;  %v3839_v22 = vmul.f32 %v3819_v18, %v11019_v21  ;;  %v3838_v24 = vmul.f32 %v3818_v12, %v11020_v27  ;;  %v6586_v15 = vld [vmem:[%s10758_s2 + $0x20] sm:$0xff] }
0x2d34   :  { %3870 = vperm.xlu2 %6625, %v3833_v62   ;;  %3867 = vperm.xlu1 %6627, %v3832_v8   ;;  %v3837_v45 = vmul.f32 %v3818_v12, %v11021_v39  ;;  %v3842_v54 = vmul.f32 %v3820_v13, %v11022_v51  ;;  %v3841_v11 = vmul.f32 %v3820_v13, %v11023_v40  ;;  %v3821_v42 = vperm.slane %v3810_v7, 6 }
0x2d35   :  { %3864 = vperm.xlu0 %6626, %v3831_v5   ;;  %v3840_v9 = vmul.f32 %v3819_v18, %v11024_v48  ;;  %v3845_v19 = vmul.f32 %v3822_v60, %v11025_v56  ;;  %v3846_v46 = vmul.f32 %v3822_v60, %v11028_v59 }
0x2d36   :  { %v3844_v50 = vmul.f32 %v3821_v42, %v11026_v47  ;;  %v3843_v58 = vmul.f32 %v3821_v42, %v11027_v26 }
0x2d3c   :  { %3879 = vperm.xlu2 %6625, %v3836_v23   ;;  %3876 = vperm.xlu1 %6627, %v3835_v44  }
0x2d3d   :  { %3873 = vperm.xlu0 %6626, %v3834_v34  }
0x2d44   :  { %3888 = vperm.xlu2 %6625, %v3839_v22   ;;  %3885 = vperm.xlu1 %6627, %v3838_v24   ;;  %v10511_v22 = vpop.f32.mrf.mxu0 }
0x2d45   :  { %3882 = vperm.xlu0 %6626, %v3837_v45  }
0x2d4c   :  { %3897 = vperm.xlu2 %6625, %v3842_v54   ;;  %3894 = vperm.xlu1 %6627, %v3841_v11  }
0x2d4d   :  { %3891 = vperm.xlu0 %6626, %v3840_v9  }
0x2d54   :  { %3906 = vperm.xlu2 %6625, %v3845_v19   ;;  %3903 = vperm.xlu1 %6627, %v3844_v50   ;;  %v5658_v19 = vpop.f32.mrf.mxu3 }
0x2d55   :  { %3900 = vperm.xlu0 %6626, %v3843_v58   ;;  %v7151_v58 = vld [vmem:[%s10768_s12] ss:$0 sm:$0xff] }
0x2d5c   :  { %4657 = vperm.xlu1 %6627, %v6586_v15   ;;  %v11029_v15 = vld [vmem:[#allocation73_spill] sm:$0xff] }
0x2d5d   :  { %3909 = vperm.xlu0 %6626, %v3846_v46   ;;  %v507_v59 = vadd.f32 %v7151_v58, %v11029_v15  ;;  %v11036_v15 = vld [vmem:[#allocation98_spill] sm:$0xff] }
0x2d8e   :  { %v3871_v62 = vpop.permute.xlu2 %3870 }
0x2d8f   :  { %v3914_v18 = vperm.slane %v3871_v62, %v7785_v38 }
0x2d96   :  { %v3880_v53 = vpop.permute.xlu2 %3879 }
0x2d97   :  { %v3918_v51 = vperm.slane %v3880_v53, %v7790_v36 }
0x2d9e   :  { %v3889_v23 = vpop.permute.xlu2 %3888 }
0x2d9f   :  { %v3923_v48 = vperm.slane %v3889_v23, %v7785_v38 }
0x2da6   :  { %v3868_v30 = vpop.permute.xlu1 %3867  ;;  %v3898_v34 = vpop.permute.xlu2 %3897 }
0x2da7   :  { %v3865_v7 = vpop.permute.xlu0 %3864  ;;  %v3912_v12 = vperm.slane %v3868_v30, %v7790_v36  ;;  %v3927_v46 = vperm.slane %v3898_v34, %v7790_v36  ;;  %v4651_v30 = vadd.f32 %v10484_v33, %v9910_v6 }
0x2da8   :  { %v3911_v21 = vperm.slane %v3865_v7, %v7785_v38  ;;  %v6283_v7 = vpop.f32.mrf.mxu0 }
0x2daa   :  { %v3913_v11 = vsel %vm752_vm10, %v3912_v12, %v3911_v21 }
0x2dae   :  { %v3877_v8 = vpop.permute.xlu1 %3876 }
0x2daf   :  { %v3874_v5 = vpop.permute.xlu0 %3873  ;;  %v3917_v27 = vperm.slane %v3877_v8, %v7785_v38  ;;  %v3907_v8 = vpop.permute.xlu2 %3906 }
0x2db0   :  { %v3915_v10 = vperm.slane %v3874_v5, %v7790_v36  ;;  %v6260_v5 = vadd.f32 %v5658_v19, %v507_v59  ;;  %v3932_v12 = vperm.slane %v3907_v8, %v7785_v38 }
0x2db1   :  { %v3919_v9 = vsel %vm752_vm10, %v3918_v51, %v3917_v27  ;;  %v11032_v51 = vld [vmem:[#allocation92_spill] sm:$0xff] }
0x2db2   :  { %v3916_v24 = vsel %vm752_vm10, %v3915_v10, %v3914_v18  ;;  %v6286_v18 = vadd.f32 %v6283_v7, %v6260_v5  ;;  %v11038_v7 = vld [vmem:[#allocation99_spill] sm:$0xff] }
0x2db3   :  { %v3935_v60 = vsel %vm283_vm2, %v3916_v24, %v3913_v11  ;;  %v11030_v24 = vld [vmem:[#allocation94_spill] sm:$0xff] }
0x2db4   :  { %v3936_v62 = vsel %vm285_vm3, %v3919_v9, %v3935_v60  ;;  %6950 = vtanh.f32 %v6286_v18  ;;  %v11033_v60 = vld [vmem:[#allocation96_spill] sm:$0xff] }
0x2db6   :  { %v3886_v3 = vpop.permute.xlu1 %3885 }
0x2db7   :  { %v3883_v57 = vpop.permute.xlu0 %3882  ;;  %v3921_v39 = vperm.slane %v3886_v3, %v7790_v36 }
0x2db8   :  { %v3920_v45 = vperm.slane %v3883_v57, %v7785_v38 }
0x2dba   :  { %v3922_v42 = vsel %vm752_vm10, %v3921_v39, %v3920_v45  ;;  %v11031_v45 = vld [vmem:[#allocation91_spill] sm:$0xff] }
0x2dbb   :  { %v3937_v53 = vsel %vm287_vm4, %v3922_v42, %v3936_v62 }
0x2dbe   :  { %v3895_v55 = vpop.permute.xlu1 %3894 }
0x2dbf   :  { %v3892_v44 = vpop.permute.xlu0 %3891  ;;  %v3926_v56 = vperm.slane %v3895_v55, %v7785_v38 }
0x2dc0   :  { %v3924_v54 = vperm.slane %v3892_v44, %v7790_v36 }
0x2dc1   :  { %v3928_v3 = vsel %vm752_vm10, %v3927_v46, %v3926_v56  ;;  %v11034_v56 = vld [vmem:[#allocation93_spill] sm:$0xff]  ;;  %v11037_v46 = vld [vmem:[#allocation95_spill] sm:$0xff] }
0x2dc2   :  { %v3925_v47 = vsel %vm752_vm10, %v3924_v54, %v3923_v48 }
0x2dc3   :  { %v3938_v57 = vsel %vm289_vm5, %v3925_v47, %v3937_v53  ;;  %v6951_v47 = vpop.eup %6950  ;;  %v11039_v53 = vld [vmem:[#allocation100_spill] sm:$0xff] }
0x2dc4   :  { %v3939_v27 = vsel %vm291_vm6, %v3928_v3, %v3938_v57  ;;  %v11040_v57 = vld [vmem:[#allocation102_spill] sm:$0xff] }
0x2dc6   :  { %v3904_v13 = vpop.permute.xlu1 %3903 }
0x2dc7   :  { %v3901_v40 = vpop.permute.xlu0 %3900  ;;  %v3930_v50 = vperm.slane %v3904_v13, %v7790_v36 }
0x2dc8   :  { %v3929_v26 = vperm.slane %v3901_v40, %v7785_v38 }
0x2dca   :  { %v3931_v55 = vsel %vm752_vm10, %v3930_v50, %v3929_v26  ;;  %v11035_v26 = vld [vmem:[#allocation97_spill] sm:$0xff] }
0x2dcb   :  { %v3940_v40 = vsel %vm293_vm7, %v3931_v55, %v3939_v27  ;;  %v11043_v27 = vld [vmem:[#allocation104_spill] sm:$0xff] }
0x2dce   :  { %v10539_v23 = vpop.permute.xlu1 %4657 }
0x2dcf   :  { %v4660_v44 = vmul.f32 %v10539_v23, %v4651_v30  ;;  %v3910_v10 = vpop.permute.xlu0 %3909  ;;  %v4664_v34 = vperm.slane %v10539_v23, 1  ;;  %v4663_v6 = vperm.slane %v10539_v23, 0  ;;  %v4665_v9 = vperm.slane %v10539_v23, 2 }
0x2dd0   :  { %v3933_v21 = vperm.slane %v3910_v10, %v7790_v36  ;;  %v4666_v50 = vperm.slane %v10539_v23, 3  ;;  %v4667_v30 = vperm.slane %v10539_v23, 4  ;;  %v4668_v3 = vperm.slane %v10539_v23, 5 }
0x2dd1   :  { %4662 = vst [vmem:[#allocation15 + $0x20] sm:$0xff] %v4660_v44  ;;  %v4681_v39 = vmul.f32 %v4664_v34, %v11030_v24  ;;  %v4680_v13 = vmul.f32 %v4663_v6, %v11031_v45  ;;  %v4679_v54 = vmul.f32 %v4663_v6, %v11032_v51  ;;  %v4683_v42 = vmul.f32 %v4665_v9, %v11033_v60  ;;  %v11041_v44 = vld [vmem:[#allocation90_spill] sm:$0xff] }
0x2dd2   :  { %v3934_v11 = vsel %vm752_vm10, %v3933_v21, %v3932_v12  ;;  %v4682_v19 = vmul.f32 %v4664_v34, %v11034_v56  ;;  %v4686_v58 = vmul.f32 %v4666_v50, %v11035_v26  ;;  %v4685_v59 = vmul.f32 %v4666_v50, %v11036_v15  ;;  %v11042_v12 = vld [vmem:[#allocation103_spill] sm:$0xff] }
0x2dd3   :  { %v3941_v48 = vsel %vm295_vm8, %v3934_v11, %v3940_v40  ;;  %4718 = vperm.xlu1 %6627, %v4681_v39   ;;  %4715 = vperm.xlu0 %6626, %v4680_v13   ;;  %v4684_v62 = vmul.f32 %v4665_v9, %v11037_v46  ;;  %v4688_v8 = vmul.f32 %v4667_v30, %v11038_v7  ;;  %v4670_v34 = vperm.slane %v10539_v23, 7  ;;  %v6593_v39 = vld [vmem:[%s10758_s2 + $0x28] sm:$0xff] }
0x2dd4   :  { %3944 = vst.msk [vmem:[#allocation16 + $0x18] sm:$0xff] %vm449_vm9, %v3941_v48  ;;  %4712 = vperm.xlu2 %6625, %v4679_v54   ;;  %v4687_v5 = vmul.f32 %v4667_v30, %v11039_v53  ;;  %v4690_v55 = vmul.f32 %v4668_v3, %v11040_v57  ;;  %v4689_v10 = vmul.f32 %v4668_v3, %v11041_v44  ;;  %v4669_v6 = vperm.slane %v10539_v23, 6  ;;  %v11045_v30 = vld [vmem:[#allocation105_spill] sm:$0xff] }
0x2dd5   :  { %v4693_v21 = vmul.f32 %v4670_v34, %v11042_v12  ;;  %v6598_v45 = vmul.f32 -1.442695, %v6286_v18  ;;  %v4694_v7 = vmul.f32 %v4670_v34, %v11045_v30 }
0x2dd6   :  { %v4692_v24 = vmul.f32 %v4669_v6, %v11043_v27 }
0x2dd7   :  { %6952 = vpow2.f32 %v6598_v45 }
0x2ddb   :  { %4724 = vperm.xlu1 %6627, %v4683_v42   ;;  %4721 = vperm.xlu0 %6626, %v4682_v19  }
0x2ddc   :  { %6309 = vrot.lane.b32.xlu2 %v6951_v47, %s7393_s5 }
0x2ddd   :  { %v6953_v13 = vpop.eup %6952 }
0x2dde   :  { %v6290_v51 = vadd.f32 1.0, %v6953_v13 }
0x2de0   :  { %6954 = vrcp.f32 %v6290_v51  ;;  %v6302_v60 = vand.u32 2147483648, %v6290_v51  ;;  %vm6296_vm1 = vweird.f32 %v6290_v51  ;;  %v6300_v42 = vand.u32 2147483647, %v6290_v51 }
0x2de2   :  { %v6303_v19 = vor.u32 1.1754944e-38, %v6302_v60  ;;  %vm6301_vm12 = vcmp.eq.f32.partialorder %v6300_v42, 8.507059e+37 }
0x2de3   :  { %4733 = vperm.xlu1 %6627, %v4686_v58   ;;  %4730 = vperm.xlu0 %6626, %v4685_v59   ;;  %v11044_v58 = vld [vmem:[#allocation101_spill] sm:$0xff] }
0x2de4   :  { %4727 = vperm.xlu2 %6625, %v4684_v62   ;;  %v4691_v15 = vmul.f32 %v4669_v6, %v11044_v58 }
0x2de6   :  { %v6955_v54 = vpop.eup %6954 }
0x2de7   :  { %v6292_v40 = vmul.f32 %v6955_v54, %v6290_v51  ;;  %vm6297_vm15 = vweird.f32 %v6955_v54 }
0x2de8   :  { %vm6298_vm11 = vmor %vm6296_vm1, %vm6297_vm15 }
0x2de9   :  { %v6293_v11 = vsub.f32 1.0, %v6292_v40  ;;  %v5499_v40 = vadd.f32 %v10484_v33, %v10511_v22 }
0x2deb   :  { %4739 = vperm.xlu0 %6626, %v4688_v8   ;;  %v6294_v23 = vmul.f32 %v6955_v54, %v6293_v11 }
0x2dec   :  { %4736 = vperm.xlu2 %6625, %v4687_v5  }
0x2ded   :  { %v6295_v9 = vadd.f32 %v6955_v54, %v6294_v23 }
0x2def   :  { %v6299_v56 = vsel %vm6298_vm11, %v6955_v54, %v6295_v9 }
0x2df0   :  { %v10576_v47 = vsel %vm6301_vm12, %v6303_v19, %v6299_v56 }
0x2df3   :  { %4745 = vperm.xlu0 %6626, %v4690_v55  }
0x2df4   :  { %4742 = vperm.xlu2 %6625, %v4689_v10  }
0x2dfb   :  { %4754 = vperm.xlu0 %6626, %v4693_v21  }
0x2dfc   :  { %4751 = vperm.xlu2 %6625, %v4692_v24  }
0x2e04   :  { %5505 = vperm.xlu2 %6625, %v6593_v39  }
0x2e2e   :  { %v4713_v48 = vpop.permute.xlu2 %4712 }
0x2e2f   :  { %v4759_v53 = vperm.slane %v4713_v48, %v7785_v38 }
0x2e36   :  { %v6310_v18 = vpop.permute.xlu2 %6309 }
0x2e37   :  { %v6312_v50 = vmul.f32 %v6310_v18, %v10576_v47 }
0x2e39   :  { %6314 = vrot.lane.b32.xlu1 %v6312_v50, %s7391_s25 }
0x2e3e   :  { %v4728_v26 = vpop.permute.xlu2 %4727 }
0x2e3f   :  { %v4766_v57 = vperm.slane %v4728_v26, %v7790_v36 }
0x2e41   :  { %4748 = vperm.xlu1 %6627, %v4691_v15  }
0x2e45   :  { %v4719_v59 = vpop.permute.xlu1 %4718  ;;  %v4716_v46 = vpop.permute.xlu0 %4715 }
0x2e46   :  { %v4737_v62 = vpop.permute.xlu2 %4736  ;;  %v4760_v8 = vperm.slane %v4716_v46, %v7790_v36  ;;  %v4762_v55 = vperm.slane %v4719_v59, %v7785_v38 }
0x2e47   :  { %v4771_v48 = vperm.slane %v4737_v62, %v7785_v38 }
0x2e48   :  { %v4761_v12 = vsel %vm752_vm10, %v4760_v8, %v4759_v53 }
0x2e49   :  { %4757 = vperm.xlu1 %6627, %v4694_v7  }
0x2e4d   :  { %v4725_v5 = vpop.permute.xlu1 %4724  ;;  %v4722_v3 = vpop.permute.xlu0 %4721 }
0x2e4e   :  { %v4765_v44 = vperm.slane %v4725_v5, %v7785_v38  ;;  %v4743_v10 = vpop.permute.xlu2 %4742  ;;  %v4763_v6 = vperm.slane %v4722_v3, %v7790_v36 }
0x2e4f   :  { %v4774_v46 = vperm.slane %v4743_v10, %v7785_v38  ;;  %v6307_v10 = vmul.f32 %v10576_v47, %v9924_v52 }
0x2e50   :  { %v4767_v34 = vsel %vm752_vm10, %v4766_v57, %v4765_v44  ;;  %v4764_v21 = vsel %vm752_vm10, %v4763_v6, %v4762_v55 }
0x2e51   :  { %v4783_v27 = vsel %vm283_vm2, %v4764_v21, %v4761_v12 }
0x2e52   :  { %v4784_v24 = vsel %vm285_vm3, %v4767_v34, %v4783_v27 }
0x2e55   :  { %v4731_v39 = vpop.permute.xlu0 %4730  ;;  %v4734_v45 = vpop.permute.xlu1 %4733 }
0x2e56   :  { %v4752_v13 = vpop.permute.xlu2 %4751  ;;  %v4769_v51 = vperm.slane %v4734_v45, %v7790_v36  ;;  %v4768_v54 = vperm.slane %v4731_v39, %v7785_v38  ;;  %v11047_v45 = vld [vmem:[#allocation108_spill] sm:$0xff] }
0x2e58   :  { %v4770_v11 = vsel %vm752_vm10, %v4769_v51, %v4768_v54 }
0x2e59   :  { %v4785_v19 = vsel %vm287_vm4, %v4770_v11, %v4784_v24  ;;  %v11048_v11 = vld [vmem:[#allocation109_spill] sm:$0xff] }
0x2e5d   :  { %v4740_v23 = vpop.permute.xlu0 %4739 }
0x2e5e   :  { %v10599_v9 = vpop.permute.xlu2 %5505  ;;  %v4772_v60 = vperm.slane %v4740_v23, %v7790_v36 }
0x2e5f   :  { %v5508_v42 = vmul.f32 %v10599_v9, %v5499_v40  ;;  %v5511_v56 = vperm.slane %v10599_v9, 0  ;;  %v5513_v15 = vperm.slane %v10599_v9, 2  ;;  %v5512_v59 = vperm.slane %v10599_v9, 1 }
0x2e60   :  { %v4773_v18 = vsel %vm752_vm10, %v4772_v60, %v4771_v48  ;;  %v5515_v5 = vperm.slane %v10599_v9, 4  ;;  %v5517_v57 = vperm.slane %v10599_v9, 6  ;;  %v11049_v48 = vld [vmem:[#allocation110_spill] sm:$0xff] }
0x2e61   :  { %5510 = vst [vmem:[#allocation15 + $0x28] sm:$0xff] %v5508_v42  ;;  %v4786_v22 = vsel %vm289_vm5, %v4773_v18, %v4785_v19  ;;  %v5528_v50 = vmul.f32 %v5511_v56, %v9792_v41  ;;  %v5527_v26 = vmul.f32 %v5511_v56, %v9795_v28  ;;  %v5531_v8 = vmul.f32 %v5513_v15, %v9812_v35  ;;  %v11050_v56 = vld [vmem:[#allocation107_spill] sm:$0xff]  ;;  %v11051_v18 = vld [vmem:[#allocation114_spill] sm:$0xff] }
0x2e62   :  { %v5530_v41 = vmul.f32 %v5512_v59, %v9801_v49  ;;  %v5514_v28 = vperm.slane %v10599_v9, 3  ;;  %v5536_v3 = vmul.f32 %v5515_v5, %v9825_v14  ;;  %v5539_v55 = vmul.f32 %v5517_v57, %v9833_v1  ;;  %v11046_v49 = vld [vmem:[#allocation115_spill] sm:$0xff] }
0x2e63   :  { %5563 = vperm.xlu2 %6625, %v5528_v50   ;;  %5560 = vperm.xlu1 %6627, %v5527_v26   ;;  %v5518_v35 = vperm.slane %v10599_v9, 7  ;;  %v4778_v14 = vperm.slane %v4752_v13, %v7790_v36  ;;  %v5529_v51 = vmul.f32 %v5512_v59, %v11047_v45  ;;  %v5532_v23 = vmul.f32 %v5513_v15, %v11048_v11  ;;  %v6600_v50 = vld [vmem:[%s10758_s2 + $0x30] sm:$0xff]  ;;  %s7394_s2 = smov [#allocation16]  }
0x2e64   :  { %v5533_v53 = vmul.f32 %v5514_v28, %v9820_v20  ;;  %v5534_v60 = vmul.f32 %v5514_v28, %v11049_v48  ;;  %v5516_v42 = vperm.slane %v10599_v9, 5  ;;  %v11052_v9 = vld [vmem:[#allocation111_spill] sm:$0xff] }
0x2e65   :  { %v4746_v58 = vpop.permute.xlu0 %4745  ;;  %v5542_v44 = vmul.f32 %v5518_v35, %v11046_v49  ;;  %v11053_v49 = vld [vmem:[#allocation112_spill] sm:$0xff] }
0x2e66   :  { %v4775_v62 = vperm.slane %v4746_v58, %v7790_v36  ;;  %v5537_v19 = vmul.f32 %v5516_v42, %v11050_v56 }
0x2e68   :  { %v4776_v30 = vsel %vm752_vm10, %v4775_v62, %v4774_v46  ;;  %v5535_v62 = vmul.f32 %v5515_v5, %v11052_v9  ;;  %v5538_v5 = vmul.f32 %v5516_v42, %v11053_v49 }
0x2e69   :  { %v4787_v7 = vsel %vm291_vm6, %v4776_v30, %v4786_v22  ;;  %v5540_v22 = vmul.f32 %v5517_v57, %v11051_v18 }
0x2e6b   :  { %5572 = vperm.xlu2 %6625, %v5531_v8   ;;  %5569 = vperm.xlu1 %6627, %v5530_v41  }
0x2e6d   :  { %v4755_v24 = vpop.permute.xlu0 %4754 }
0x2e6e   :  { %v4780_v52 = vperm.slane %v4755_v24, %v7785_v38 }
0x2e73   :  { %5578 = vperm.xlu2 %6625, %v5533_v53  }
0x2e7b   :  { %5587 = vperm.xlu2 %6625, %v5536_v3  }
0x2e83   :  { %5596 = vperm.xlu2 %6625, %v5539_v55  }
0x2e8b   :  { %5605 = vperm.xlu2 %6625, %v5542_v44  }
0x2eab   :  { %v6315_v20 = vpop.permute.xlu1 %6314 }
0x2eac   :  { %v6317_v6 = vadd.f32 %v6315_v20, %v6307_v10 }
0x2eae   :  { %6956 = vtanh.f32 %v6317_v6 }
0x2eb3   :  { %v4749_v12 = vpop.permute.xlu1 %4748 }
0x2eb4   :  { %v6957_v34 = vpop.eup %6956  ;;  %v4777_v21 = vperm.slane %v4749_v12, %v7785_v38 }
0x2eb5   :  { %6320 = vrot.lane.b32.xlu0 %v6957_v34, %s7393_s5 }
0x2eb6   :  { %v4779_v1 = vsel %vm752_vm10, %v4778_v14, %v4777_v21 }
0x2eb7   :  { %v4788_v27 = vsel %vm293_vm7, %v4779_v1, %v4787_v7  ;;  %v11054_v1 = vld [vmem:[#allocation113_spill] sm:$0xff] }
0x2ebb   :  { %v4758_v39 = vpop.permute.xlu1 %4757 }
0x2ebc   :  { %v4781_v54 = vperm.slane %v4758_v39, %v7790_v36 }
0x2ebd   :  { %5566 = vperm.xlu0 %6626, %v5529_v51   ;;  %v5564_v59 = vpop.permute.xlu2 %5563 }
0x2ebe   :  { %v4782_v40 = vsel %vm752_vm10, %v4781_v54, %v4780_v52  ;;  %v5608_v53 = vperm.slane %v5564_v59, %v7790_v36 }
0x2ebf   :  { %v4789_v13 = vsel %vm295_vm8, %v4782_v40, %v4788_v27  ;;  %v5541_v27 = vmul.f32 %v5518_v35, %v11054_v1 }
0x2ec0   :  { %4792 = vst.msk [vmem:[#allocation16 + $0x20] sm:$0xff] %vm449_vm9, %v4789_v13 }
0x2ec5   :  { %5575 = vperm.xlu0 %6626, %v5532_v23   ;;  %v5573_v7 = vpop.permute.xlu2 %5572 }
0x2ec6   :  { %v5613_v57 = vperm.slane %v5573_v7, %v7785_v38 }
0x2ecd   :  { %5581 = vperm.xlu0 %6626, %v5534_v60   ;;  %v5579_v12 = vpop.permute.xlu2 %5578 }
0x2ece   :  { %v5616_v14 = vperm.slane %v5579_v12, %v7785_v38 }
0x2ed5   :  { %5590 = vperm.xlu0 %6626, %v5537_v19   ;;  %v5561_v58 = vpop.permute.xlu1 %5560 }
0x2ed6   :  { %v5607_v41 = vperm.slane %v5561_v58, %v7785_v38 }
0x2ed8   :  { %v5609_v44 = vsel %vm752_vm10, %v5608_v53, %v5607_v41 }
0x2edd   :  { %5599 = vperm.xlu0 %6626, %v5540_v22   ;;  %v5570_v30 = vpop.permute.xlu1 %5569  ;;  %v11055_v22 = vld [vmem:[#allocation40_spill] sm:$0xff] }
0x2ede   :  { %v5611_v28 = vperm.slane %v5570_v30, %v7790_v36 }
0x2ee5   :  { %6353 = vperm.xlu0 %6626, %v6600_v50  }
0x2f27   :  { %v6321_v26 = vpop.permute.xlu0 %6320 }
0x2f28   :  { %v6323_v15 = vmul.f32 %v6321_v26, %v10576_v47  ;;  %v11056_v26 = vld [vmem:[#allocation28_spill] sm:$0xff] }
0x2f2a   :  { %6325 = vrot.lane.b32.xlu1 %v6323_v15, %s7391_s25  ;;  %v5588_v15 = vpop.permute.xlu2 %5587  ;;  %s6506_s25 = sshll.u32 %s7394_s2, 4  ;;  %s6507_s25 = int_to_ptr.vmem [resolvable:$true] %s6506_s25 }
0x2f2f   :  { %v5567_v46 = vpop.permute.xlu0 %5566 }
0x2f30   :  { %v5610_v8 = vperm.slane %v5567_v46, %v7785_v38 }
0x2f32   :  { %5584 = vperm.xlu1 %6627, %v5535_v62   ;;  %v5612_v3 = vsel %vm752_vm10, %v5611_v28, %v5610_v8  ;;  %v5597_v46 = vpop.permute.xlu2 %5596 }
0x2f33   :  { %v5631_v10 = vsel %vm283_vm2, %v5612_v3, %v5609_v44  ;;  %v5625_v28 = vperm.slane %v5597_v46, %v7785_v38 }
0x2f37   :  { %v5576_v47 = vpop.permute.xlu0 %5575 }
0x2f38   :  { %v5614_v55 = vperm.slane %v5576_v47, %v7790_v36 }
0x2f3a   :  { %v5615_v20 = vsel %vm752_vm10, %v5614_v55, %v5613_v57  ;;  %5593 = vperm.xlu1 %6627, %v5538_v5   ;;  %v5606_v49 = vpop.permute.xlu2 %5605 }
0x2f3b   :  { %v5632_v6 = vsel %vm285_vm3, %v5615_v20, %v5631_v10  ;;  %v5629_v44 = vperm.slane %v5606_v49, %v7790_v36 }
0x2f3f   :  { %v5582_v34 = vpop.permute.xlu0 %5581 }
0x2f40   :  { %v5617_v21 = vperm.slane %v5582_v34, %v7790_v36 }
0x2f42   :  { %v5618_v24 = vsel %vm752_vm10, %v5617_v21, %v5616_v14  ;;  %5602 = vperm.xlu1 %6627, %v5541_v27  }
0x2f43   :  { %v5633_v39 = vsel %vm287_vm4, %v5618_v24, %v5632_v6 }
0x2f47   :  { %v5591_v45 = vpop.permute.xlu0 %5590 }
0x2f48   :  { %v5622_v8 = vperm.slane %v5591_v45, %v7785_v38 }
0x2f4f   :  { %v5600_v51 = vpop.permute.xlu0 %5599 }
0x2f50   :  { %v5626_v62 = vperm.slane %v5600_v51, %v7790_v36 }
0x2f52   :  { %v5627_v47 = vsel %vm752_vm10, %v5626_v62, %v5625_v28 }
0x2f57   :  { %v10666_v52 = vpop.permute.xlu0 %6353 }
0x2f58   :  { %v6360_v54 = vperm.slane %v10666_v52, 1  ;;  %v6359_v40 = vperm.slane %v10666_v52, 0  ;;  %v6361_v35 = vperm.slane %v10666_v52, 2 }
0x2f5a   :  { %v6377_v13 = vmul.f32 %v6360_v54, %v10368_v31  ;;  %v6376_v11 = vmul.f32 %v6359_v40, %v10356_v16  ;;  %v6375_v23 = vmul.f32 %v6359_v40, %v10359_v4  ;;  %v6380_v48 = vmul.f32 %v6361_v35, %v10373_v29 }
0x2f5b   :  { %v6379_v60 = vmul.f32 %v6361_v35, %v10376_v63  ;;  %v6378_v42 = vmul.f32 %v6360_v54, %v10365_v61  ;;  %v6363_v31 = vperm.slane %v10666_v52, 4  ;;  %v6362_v16 = vperm.slane %v10666_v52, 3 }
0x2f5c   :  { %6414 = vperm.xlu0 %6626, %v6377_v13   ;;  %6411 = vperm.xlu2 %6625, %v6376_v11   ;;  %v6364_v29 = vperm.slane %v10666_v52, 5 }
0x2f5d   :  { %6408 = vperm.xlu1 %6627, %v6375_v23   ;;  %v6383_v4 = vmul.f32 %v6363_v31, %v10392_v2  ;;  %v6382_v56 = vmul.f32 %v6362_v16, %v10381_v37  ;;  %v6381_v19 = vmul.f32 %v6362_v16, %v10384_v25  ;;  %v6384_v18 = vmul.f32 %v6363_v31, %v10389_v0 }
0x2f5e   :  { %v6386_v61 = vmul.f32 %v6364_v29, %v10400_v32  ;;  %v6385_v63 = vmul.f32 %v6364_v29, %v10353_v17  ;;  %v6366_v2 = vperm.slane %v10666_v52, 7  ;;  %v6365_v37 = vperm.slane %v10666_v52, 6  ;;  %v11057_v32 = vld [vmem:[#allocation30_spill] sm:$0xff] }
0x2f60   :  { %v6389_v25 = vmul.f32 %v6366_v2, %v10405_v43  ;;  %v6388_v50 = vmul.f32 %v6365_v37, %v11055_v22  ;;  %v6387_v58 = vmul.f32 %v6365_v37, %v11056_v26  ;;  %v6390_v17 = vmul.f32 %v6366_v2, %v11057_v32 }
0x2f61   :  { %v5620_v43 = vperm.slane %v5588_v15, %v7790_v36 }
0x2f64   :  { %6423 = vperm.xlu0 %6626, %v6380_v48   ;;  %6420 = vperm.xlu2 %6625, %v6379_v60  }
0x2f65   :  { %6417 = vperm.xlu1 %6627, %v6378_v42  }
0x2f6c   :  { %6432 = vperm.xlu0 %6626, %v6383_v4   ;;  %6429 = vperm.xlu2 %6625, %v6382_v56  }
0x2f6d   :  { %6426 = vperm.xlu1 %6627, %v6381_v19  }
0x2f74   :  { %6441 = vperm.xlu0 %6626, %v6386_v61   ;;  %6438 = vperm.xlu2 %6625, %v6385_v63  }
0x2f75   :  { %6435 = vperm.xlu1 %6627, %v6384_v18  }
0x2f7c   :  { %6450 = vperm.xlu0 %6626, %v6389_v25   ;;  %6447 = vperm.xlu2 %6625, %v6388_v50  }
0x2f7d   :  { %6444 = vperm.xlu1 %6627, %v6387_v58  }
0x2f85   :  { %6453 = vperm.xlu1 %6627, %v6390_v17  }
0x2f9c   :  { %v6326_v0 = vpop.permute.xlu1 %6325 }
0x2f9d   :  { %6599 = vmatmul.msk.f32.vlgmr.msra.gmra.mxu3 %vm179_vm0, %v6326_v0 }
0x2fa4   :  { %v5585_v59 = vpop.permute.xlu1 %5584 }
0x2fa5   :  { %v5619_v9 = vperm.slane %v5585_v59, %v7785_v38 }
0x2fa7   :  { %v5621_v30 = vsel %vm752_vm10, %v5620_v43, %v5619_v9 }
0x2fa8   :  { %v5634_v53 = vsel %vm289_vm5, %v5621_v30, %v5633_v39 }
0x2fac   :  { %v5594_v7 = vpop.permute.xlu1 %5593 }
0x2fad   :  { %v5623_v41 = vperm.slane %v5594_v7, %v7790_v36 }
0x2faf   :  { %v5624_v3 = vsel %vm752_vm10, %v5623_v41, %v5622_v8 }
0x2fb0   :  { %v5635_v57 = vsel %vm291_vm6, %v5624_v3, %v5634_v53 }
0x2fb1   :  { %v5636_v55 = vsel %vm293_vm7, %v5627_v47, %v5635_v57 }
0x2fb4   :  { %v5603_v5 = vpop.permute.xlu1 %5602 }
0x2fb5   :  { %v5628_v10 = vperm.slane %v5603_v5, %v7785_v38 }
0x2fb6   :  { %v6412_v12 = vpop.permute.xlu2 %6411 }
0x2fb7   :  { %v5630_v20 = vsel %vm752_vm10, %v5629_v44, %v5628_v10  ;;  %v6456_v48 = vperm.slane %v6412_v12, %v7790_v36 }
0x2fb8   :  { %v5637_v6 = vsel %vm295_vm8, %v5630_v20, %v5636_v55 }
0x2fb9   :  { %5640 = vst.msk [vmem:[#allocation16 + $0x28] sm:$0xff] %vm449_vm9, %v5637_v6 }
0x2fbe   :  { %v6421_v21 = vpop.permute.xlu2 %6420 }
0x2fbf   :  { %v6461_v31 = vperm.slane %v6421_v21, %v7785_v38 }
0x2fc6   :  { %v6430_v24 = vpop.permute.xlu2 %6429 }
0x2fc7   :  { %v6465_v56 = vperm.slane %v6430_v24, %v7790_v36 }
0x2fce   :  { %v6415_v34 = vpop.permute.xlu0 %6414  ;;  %v6439_v54 = vpop.permute.xlu2 %6438 }
0x2fcf   :  { %v6409_v14 = vpop.permute.xlu1 %6408  ;;  %v6458_v11 = vperm.slane %v6415_v34, %v7785_v38  ;;  %v6470_v50 = vperm.slane %v6439_v54, %v7785_v38 }
0x2fd0   :  { %v6455_v23 = vperm.slane %v6409_v14, %v7785_v38 }
0x2fd2   :  { %v6457_v19 = vsel %vm752_vm10, %v6456_v48, %v6455_v23 }
0x2fd6   :  { %v6424_v1 = vpop.permute.xlu0 %6423  ;;  %v6448_v18 = vpop.permute.xlu2 %6447 }
0x2fd7   :  { %v6418_v27 = vpop.permute.xlu1 %6417  ;;  %v6462_v35 = vperm.slane %v6424_v1, %v7790_v36  ;;  %v6474_v58 = vperm.slane %v6448_v18, %v7790_v36 }
0x2fd8   :  { %v6459_v40 = vperm.slane %v6418_v27, %v7790_v36 }
0x2fd9   :  { %v6463_v29 = vsel %vm752_vm10, %v6462_v35, %v6461_v31 }
0x2fda   :  { %v6460_v60 = vsel %vm752_vm10, %v6459_v40, %v6458_v11 }
0x2fdb   :  { %v6479_v61 = vsel %vm283_vm2, %v6460_v60, %v6457_v19 }
0x2fdc   :  { %v6480_v26 = vsel %vm285_vm3, %v6463_v29, %v6479_v61 }
0x2fde   :  { %v6433_v45 = vpop.permute.xlu0 %6432 }
0x2fdf   :  { %v6427_v39 = vpop.permute.xlu1 %6426  ;;  %v6467_v63 = vperm.slane %v6433_v45, %v7785_v38 }
0x2fe0   :  { %v6464_v42 = vperm.slane %v6427_v39, %v7785_v38 }
0x2fe2   :  { %v6466_v2 = vsel %vm752_vm10, %v6465_v56, %v6464_v42 }
0x2fe3   :  { %v6481_v32 = vsel %vm287_vm4, %v6466_v2, %v6480_v26 }
0x2fe6   :  { %v6442_v13 = vpop.permute.xlu0 %6441 }
0x2fe7   :  { %v6436_v51 = vpop.permute.xlu1 %6435  ;;  %v6471_v37 = vperm.slane %v6442_v13, %v7790_v36 }
0x2fe8   :  { %v6468_v16 = vperm.slane %v6436_v51, %v7790_v36 }
0x2fe9   :  { %v6472_v0 = vsel %vm752_vm10, %v6471_v37, %v6470_v50 }
0x2fea   :  { %v6469_v25 = vsel %vm752_vm10, %v6468_v16, %v6467_v63 }
0x2feb   :  { %v6482_v15 = vsel %vm289_vm5, %v6469_v25, %v6481_v32 }
0x2fec   :  { %v6483_v62 = vsel %vm291_vm6, %v6472_v0, %v6482_v15 }
0x2fee   :  { %v6451_v17 = vpop.permute.xlu0 %6450 }
0x2fef   :  { %v6445_v4 = vpop.permute.xlu1 %6444  ;;  %v6476_v9 = vperm.slane %v6451_v17, %v7785_v38 }
0x2ff0   :  { %v6473_v22 = vperm.slane %v6445_v4, %v7785_v38 }
0x2ff2   :  { %v6475_v59 = vsel %vm752_vm10, %v6474_v58, %v6473_v22 }
0x2ff3   :  { %v6484_v30 = vsel %vm293_vm7, %v6475_v59, %v6483_v62 }
0x2ff7   :  { %v6454_v46 = vpop.permute.xlu1 %6453 }
0x2ff8   :  { %v6477_v43 = vperm.slane %v6454_v46, %v7790_v36 }
0x2ffa   :  { %v6478_v7 = vsel %vm752_vm10, %v6477_v43, %v6476_v9 }
0x2ffb   :  { %v6485_v8 = vsel %vm295_vm8, %v6478_v7, %v6484_v30 }
0x2ffc   :  { %6488 = vst.msk [vmem:[#allocation16 + $0x30] sm:$0xff] %vm449_vm9, %v6485_v8 }
0x2ffd   :  { %6514 = dma.vmem_to_hbm [thread:$0]  %s6507_s25, 896, %s6509_s1, [#allocation17], %s7381_s29, %s7381_s29, %s7382_s30  }
0x3020   :  { %v6346_v41 = vpop.f32.mrf.mxu3 }
0x3021   :  { %v6347_v38 = vadd.f32 %v10484_v33, %v6346_v41 }
0x3023   :  { %v6356_v36 = vmul.f32 %v10666_v52, %v6347_v38 }
0x3025   :  { %6358 = vst [vmem:[#allocation15 + $0x30] sm:$0xff] %v6356_v36 }
0x3026   :  { %6501 = dma.vmem_to_hbm [thread:$0]  %s6494_s3, 896, %s6496_s24, [#allocation5], %s7381_s29, %s7381_s29, %s7382_s30  }
0x3027   :  { %7376 = dma.done.wait [#allocation5], 896  }
0x3028   :  { %7377 = vsyncadd [#allocation5], 4294966400 }
0x3029   :  { %7378 = dma.done.wait [#allocation17], 896  }
0x302a   :  { %7379 = vsyncadd [#allocation17], 4294966400 }
0x302b   :  { %6523 = vsyncpa [#allocation4], 1 }
0x302c   :  { %6524 = vsyncpa [#allocation7], 1 }
0x302d   :  { %6525 = vsyncpa [#allocation10], 1 }
0x302e   :  { %6526 = vsyncpa [#allocation13], 1 }
0x302f   :  { %6527 = vsyncpa [#allocation5], 1 }
0x3030   :  { %6528 = vsyncpa [#allocation17], 1 }

</bundles_post_ra>
